<compile_context>
chip_gen: v7x
topology: tpu7x:2x2x1
jax: 0.10.0
libtpu: 0.0.40
codegen_flags: <defaults>
</compile_context>

<pallas_src>
import functools
import math

import jax
import jax.numpy as jnp
from jax.experimental import pallas as pl
from jax.experimental.pallas import tpu as pltpu

# ----------------------------------------------------------------------------
# Small stand-in configuration (real model: output_size=1024, resize=256, ...)
OUTPUT_SIZE = 16                                   # opts.output_size
RESIZE = 32                                        # stand-in for the 256x256 resize
HIDDEN_DIM = 32                                    # opts.hidden_dim (hypernet)
LATENT = 512                                       # StyleGAN W dimension
NUM_WS = int(math.log(OUTPUT_SIZE, 2)) * 2 - 2     # n_styles / num_ws = 6
SYN_CH = 16                                        # channels of stand-in synthesis net

# Synthetic "conv weight without bias" shape table (stand-in for
# STYLEGAN2_ADA_CONV_WEIGHT_WITHOUT_BIAS_SHAPES).
STYLEGAN2_ADA_CONV_WEIGHT_WITHOUT_BIAS_SHAPES = {
    'b8.conv0': (SYN_CH, SYN_CH, 3, 3),
    'b8.conv1': (SYN_CH, SYN_CH, 3, 3),
    'b16.conv0': (SYN_CH, SYN_CH, 3, 3),
    'b16.conv1': (SYN_CH, SYN_CH, 3, 3),
    'b32.conv0': (SYN_CH, SYN_CH, 3, 3),   # filtered out (res > OUTPUT_SIZE)
    'b32.conv1': (SYN_CH, SYN_CH, 3, 3),
}


def get_target_shapes(output_size):
    """Faithful port of models/hyper_inverter.py::get_target_shapes."""
    general_shape = STYLEGAN2_ADA_CONV_WEIGHT_WITHOUT_BIAS_SHAPES
    target_shape = {}
    for layer_name in general_shape:
        cur_resolution = int(layer_name.split('.')[0][1:])
        if cur_resolution <= output_size:
            target_shape[layer_name] = general_shape[layer_name]
    return target_shape


TARGET_SHAPE = get_target_shapes(OUTPUT_SIZE)
TARGET_KEYS = list(TARGET_SHAPE.keys())
TARGET_SIZES = [int(math.prod(TARGET_SHAPE[k])) for k in TARGET_KEYS]

LAYER_SPECS = [('b8.conv0', True, 0), ('b8.conv1', False, 1),
               ('b16.conv0', True, 2), ('b16.conv1', False, 3)]

_VMEM_SPEC = pl.BlockSpec(memory_space=pltpu.MemorySpace.VMEM)


# ----------------------------------------------------------------------------
# Pallas kernels
# ----------------------------------------------------------------------------
def _mm_single_kernel(a_ref, b_ref, o_ref):
    # Whole-operand single-block matmul (everything already resident in VMEM).
    o_ref[...] = jnp.dot(a_ref[...], b_ref[...],
                         preferred_element_type=jnp.float32).astype(o_ref.dtype)


@functools.lru_cache(maxsize=None)
def _mm_single_call(M, K, N):
    return pl.pallas_call(
        _mm_single_kernel,
        out_shape=jax.ShapeDtypeStruct((M, N), jnp.float32),
        in_specs=[_VMEM_SPEC, _VMEM_SPEC],
        out_specs=_VMEM_SPEC,
    )


def _mm_ktiled_kernel(a_ref, b_ref, o_ref, acc_ref):
    @pl.when(pl.program_id(2) == 0)
    def _():
        acc_ref[...] = jnp.zeros_like(acc_ref)

    acc_ref[...] += jnp.dot(a_ref[...], b_ref[...],
                            preferred_element_type=jnp.float32)

    # Only store (+ cast) on the final K step.
    @pl.when(pl.program_id(2) == pl.num_programs(2) - 1)
    def _():
        o_ref[...] = acc_ref[...].astype(o_ref.dtype)


@functools.lru_cache(maxsize=None)
def _mm_ktiled_call(M, K, N, tn, tk):
    return pl.pallas_call(
        _mm_ktiled_kernel,
        out_shape=jax.ShapeDtypeStruct((M, N), jnp.float32),
        grid=(1, N // tn, K // tk),
        in_specs=[pl.BlockSpec((M, tk), lambda i, j, k: (i, k)),
                  pl.BlockSpec((tk, tn), lambda i, j, k: (k, j))],
        out_specs=pl.BlockSpec((M, tn), lambda i, j, k: (i, j)),
        scratch_shapes=[pltpu.VMEM((M, tn), jnp.float32)],
        compiler_params=pltpu.CompilerParams(
            dimension_semantics=("parallel", "parallel", "arbitrary"),
            vmem_limit_bytes=32 * 1024 * 1024),
    )


def pallas_matmul(a, b):
    """General matmul: bf16 operands, f32 accumulation/output, no padding."""
    a = a.astype(jnp.bfloat16)
    b = b.astype(jnp.bfloat16)
    M, K = a.shape
    K2, N = b.shape
    assert K == K2
    # Tile only when K is long and the shapes tile cleanly; otherwise single block.
    tk = next((c for c in (2048, 1536, 1024, 768, 512) if K % c == 0), None)
    # tn=256 preferred so N=512 gives >=2 parallel blocks (v7x has 2 TensorCores).
    tn = next((c for c in (256, 512, 384, 128) if N % c == 0), None)
    if tk is not None and tn is not None and K > tk:
        return _mm_ktiled_call(M, K, N, tn, tk)(a, b)
    return _mm_single_call(M, K, N)(a, b)


def _bmm_kernel(a_ref, b_ref, o_ref):
    o_ref[0] = jnp.dot(a_ref[0], b_ref[0],
                       preferred_element_type=jnp.float32).astype(o_ref.dtype)


@functools.lru_cache(maxsize=None)
def _bmm_call(B, M, K, N):
    return pl.pallas_call(
        _bmm_kernel,
        out_shape=jax.ShapeDtypeStruct((B, M, N), jnp.float32),
        grid=(B,),
        in_specs=[pl.BlockSpec((1, M, K), lambda b: (b, 0, 0)),
                  pl.BlockSpec((1, K, N), lambda b: (b, 0, 0))],
        out_specs=pl.BlockSpec((1, M, N), lambda b: (b, 0, 0)),
        compiler_params=pltpu.CompilerParams(
            dimension_semantics=("parallel",)),
    )


def pallas_bmm(a, b):
    """Batched matmul [B,M,K]x[B,K,N] -> [B,M,N]; bf16 in, f32 out."""
    a = a.astype(jnp.bfloat16)
    b = b.astype(jnp.bfloat16)
    B, M, K = a.shape
    B2, K2, N = b.shape
    assert B == B2 and K == K2
    return _bmm_call(B, M, K, N)(a, b)


# ----------------------------------------------------------------------------
# w_codes + latent_avg broadcast / num_ws repeat — one dense store.
# ----------------------------------------------------------------------------
def _wplus_kernel(w_ref, avg_ref, o_ref):
    w = w_ref[...] + avg_ref[...]
    o_ref[...] = jnp.broadcast_to(w[:, None, :], o_ref.shape)


def wplus_broadcast_add(w_codes, latent_avg, num_ws):
    B, D = w_codes.shape
    return pl.pallas_call(
        _wplus_kernel,
        out_shape=jax.ShapeDtypeStruct((B, num_ws, D), jnp.float32),
        in_specs=[_VMEM_SPEC, _VMEM_SPEC],
        out_specs=_VMEM_SPEC,
    )(w_codes, latent_avg.reshape(1, D))


# ----------------------------------------------------------------------------
# Fused ODL stand-in MLP (result is only printed in the reference module).
# ----------------------------------------------------------------------------
def _odl_kernel(a_ref, w1_ref, w2t_ref, o_ref):
    h = jnp.maximum(
        jnp.dot(a_ref[...], w1_ref[...], preferred_element_type=jnp.float32), 0.0)
    # Final layer has a single output unit -> elementwise mul + lane reduce.
    o_ref[...] = jnp.sum(h * w2t_ref[...], axis=-1, keepdims=True)


def odl_forward(params, landmarks, w_codes):
    B = w_codes.shape[0]
    odl_in = jnp.concatenate(
        [jnp.broadcast_to(landmarks.reshape(1, -1), (B, 68 * 2)), w_codes], -1)
    return pl.pallas_call(
        _odl_kernel,
        out_shape=jax.ShapeDtypeStruct((B, 1), jnp.float32),
        in_specs=[_VMEM_SPEC, _VMEM_SPEC, _VMEM_SPEC],
        out_specs=_VMEM_SPEC,
    )(odl_in, params['odl_w1'], params['odl_w2'].T)


# ----------------------------------------------------------------------------
# Bilinear resize (== F.interpolate(mode='bilinear', align_corners=False)),
# fused into ONE kernel per (B*C) plane: out = LH @ X @ LW^T on the MXU.
# ----------------------------------------------------------------------------
def _interp_matrix(in_size, out_size):
    scale = in_size / out_size
    idx = jnp.arange(out_size, dtype=jnp.float32)
    src = jnp.clip((idx + 0.5) * scale - 0.5, 0.0, float(in_size - 1))
    lo = jnp.floor(src).astype(jnp.int32)
    hi = jnp.minimum(lo + 1, in_size - 1)
    frac = src - lo.astype(jnp.float32)
    m = jnp.zeros((out_size, in_size), jnp.float32)
    m = m.at[jnp.arange(out_size), lo].add(1.0 - frac)
    m = m.at[jnp.arange(out_size), hi].add(frac)
    return m


def _resize_kernel(lh_ref, x_ref, lwT_ref, o_ref):
    t = jnp.dot(lh_ref[...], x_ref[0], preferred_element_type=jnp.float32)
    o_ref[0] = jnp.dot(t, lwT_ref[...], preferred_element_type=jnp.float32)


@functools.lru_cache(maxsize=None)
def _resize_call(P, H, W, out_h, out_w):
    return pl.pallas_call(
        _resize_kernel,
        out_shape=jax.ShapeDtypeStruct((P, out_h, out_w), jnp.float32),
        grid=(P,),
        in_specs=[pl.BlockSpec((out_h, H), lambda p: (0, 0)),
                  pl.BlockSpec((1, H, W), lambda p: (p, 0, 0)),
                  pl.BlockSpec((W, out_w), lambda p: (0, 0))],
        out_specs=pl.BlockSpec((1, out_h, out_w), lambda p: (p, 0, 0)),
        compiler_params=pltpu.CompilerParams(
            dimension_semantics=("parallel",)),
    )


def bilinear_resize(x, out_h, out_w):
    B, C, H, W = x.shape
    lh = _interp_matrix(H, out_h)               # [out_h, H]
    lw = _interp_matrix(W, out_w)               # [out_w, W]
    planes = x.reshape(B * C, H, W).astype(jnp.float32)
    out = _resize_call(B * C, H, W, out_h, out_w)(lh, planes, lw.T)
    return out.reshape(B, C, out_h, out_w)


# ----------------------------------------------------------------------------
# Batched stand-in StyleGAN2-style synthesis (modulated conv via im2col + bmm)
# ----------------------------------------------------------------------------
def _im2col_batched(x, kh, kw, pad):
    # x: [B, Cin, H, W] -> [B, Cin*kh*kw, H*W], flattening order (cin, dy, dx)
    B, Cin, H, W = x.shape
    xp = jnp.pad(x, ((0, 0), (0, 0), (pad, pad), (pad, pad)))
    cols = []
    for dy in range(kh):
        for dx in range(kw):
            cols.append(xp[:, :, dy:dy + H, dx:dx + W])
    cols = jnp.stack(cols, axis=2)               # [B, Cin, kh*kw, H, W]
    return cols.reshape(B, Cin * kh * kw, H * W)


def modulated_conv2d_batched(x, weight, styles, added=None, demodulate=True):
    # x: [B, Cin, H, W]; weight: [Cout, Cin, kh, kw]; styles: [B, Cin]
    # added: optional per-sample weight delta [B, Cout, Cin, kh, kw]
    B, Cin, H, W = x.shape
    Cout, _, kh, kw = weight.shape
    w = jnp.broadcast_to(weight[None], (B, Cout, Cin, kh, kw))
    if added is not None:
        w = w + added
    w = w * styles[:, None, :, None, None]
    if demodulate:
        d = jax.lax.rsqrt(jnp.sum(w * w, axis=(2, 3, 4)) + 1e-8)   # f32 reduction
        w = w * d[:, :, None, None, None]
    patches = _im2col_batched(x, kh, kw, kh // 2)                  # [B, Cin*9, H*W]
    out = pallas_bmm(w.reshape(B, Cout, Cin * kh * kw), patches)   # [B, Cout, H*W]
    return out.reshape(B, Cout, H, W)


def synthesis_batched(params, w_plus, added_weights=None):
    # w_plus: [B, NUM_WS, 512] -> images [B, 3, OUTPUT_SIZE, OUTPUT_SIZE]
    # TODO(synk): small stand-in for the full StyleGAN2-ADA generator
    # (noise injection, upfirdn2d filtering and all resolutions are omitted).
    B = w_plus.shape[0]
    n_layers = len(LAYER_SPECS)

    # All per-layer styles (conv layers + toRGB) in ONE matmul.
    affine_cat = jnp.concatenate(
        [params[name + '.affine'] for name, _, _ in LAYER_SPECS]
        + [params['torgb.affine']], axis=1)                        # [512, 16*(L+1)]
    styles_all = pallas_matmul(w_plus.reshape(B * NUM_WS, LATENT), affine_cat) + 1.0
    styles_all = styles_all.reshape(B, NUM_WS, n_layers + 1, SYN_CH)

    x = jnp.broadcast_to(params['const'][None], (B, SYN_CH, 4, 4))
    for li, (name, up, widx) in enumerate(LAYER_SPECS):
        if up:
            # TODO(synk): nearest-neighbour upsample stands in for upfirdn2d.
            x = jnp.repeat(jnp.repeat(x, 2, axis=2), 2, axis=3)
        style = styles_all[:, widx, li, :]                         # [B, Cin]
        added = None
        if added_weights is not None and name in added_weights:
            added = added_weights[name]
        x = modulated_conv2d_batched(x, params[name + '.weight'], style, added)
        x = jax.nn.leaky_relu(x, 0.2) * math.sqrt(2.0)

    style = styles_all[:, 4, n_layers, :]                          # toRGB style
    w_rgb = params['torgb.weight'][None] * style[:, None, :]       # [B, 3, Cin]
    img = pallas_bmm(w_rgb, x.reshape(B, SYN_CH, -1))              # [B, 3, H*W]
    return img.reshape(B, 3, x.shape[2], x.shape[3])


# ----------------------------------------------------------------------------
# Hypernetwork: fused heads — one matmul for all W1, block-diagonal W2.
# ----------------------------------------------------------------------------
def hypernet(params, w_image_codes, w_bar_codes):
    feat = jnp.concatenate([w_image_codes, w_bar_codes], axis=-1)  # [B, 1024]
    B = feat.shape[0]
    h = jax.nn.relu(pallas_matmul(feat, params['hyper.w1_cat']))   # [B, nh*HIDDEN]
    flat = pallas_matmul(h, params['hyper.w2_bd']) * 0.01          # [B, sum(outs)]
    predicted = {}
    off = 0
    for k, n in zip(TARGET_KEYS, TARGET_SIZES):
        predicted[k] = flat[:, off:off + n].reshape((B,) + TARGET_SHAPE[k])
        off += n
    return predicted


# ----------------------------------------------------------------------------
# Deterministic parameter initialization (synthetic; no checkpoint loading)
# ----------------------------------------------------------------------------
def init_params(key):
    keys = iter(jax.random.split(key, 64))

    def nrm(shape, scale):
        return jax.random.normal(next(keys), shape, jnp.float32) * scale

    p = {}
    in_feat = 3 * RESIZE * RESIZE
    # TODO(synk): stand-ins for pretrained IR-SE50 W encoder & layer-wise encoder.
    p['w_enc'] = nrm((in_feat, LATENT), 1.0 / math.sqrt(in_feat))
    p['w_bar_enc'] = nrm((in_feat, LATENT), 1.0 / math.sqrt(in_feat))
    p['latent_avg'] = nrm((LATENT,), 1.0)
    # TODO(synk): simpleODL(68*2, 5, 10, 1) internals are external; stand-in MLP.
    p['odl_w1'] = nrm((68 * 2 + LATENT, 10), 1.0 / math.sqrt(68 * 2 + LATENT))
    p['odl_w2'] = nrm((10, 1), 1.0 / math.sqrt(10))
    # synthesis (stand-in decoder)
    p['const'] = nrm((SYN_CH, 4, 4), 1.0)
    for name, _, _ in LAYER_SPECS:
        p[name + '.affine'] = nrm((LATENT, SYN_CH), 1.0 / math.sqrt(LATENT))
        p[name + '.weight'] = nrm((SYN_CH, SYN_CH, 3, 3), 1.0 / math.sqrt(SYN_CH * 9))
    p['torgb.affine'] = nrm((LATENT, SYN_CH), 1.0 / math.sqrt(LATENT))
    p['torgb.weight'] = nrm((3, SYN_CH), 1.0 / math.sqrt(SYN_CH))
    # hypernetwork heads
    for k in TARGET_KEYS:
        fan = 2 * LATENT
        p[f'hyper.{k}.w1'] = nrm((fan, HIDDEN_DIM), 1.0 / math.sqrt(fan))
        p[f'hyper.{k}.w2'] = nrm((HIDDEN_DIM, int(math.prod(TARGET_SHAPE[k]))),
                                 1.0 / math.sqrt(HIDDEN_DIM))
    # Fused forms (mathematically identical to the per-head MLPs above).
    p['hyper.w1_cat'] = jnp.concatenate(
        [p[f'hyper.{k}.w1'] for k in TARGET_KEYS], axis=1)          # [1024, nh*HID]
    total_out = sum(TARGET_SIZES)
    w2_bd = jnp.zeros((len(TARGET_KEYS) * HIDDEN_DIM, total_out), jnp.float32)
    off = 0
    for i, (k, n) in enumerate(zip(TARGET_KEYS, TARGET_SIZES)):
        w2_bd = w2_bd.at[i * HIDDEN_DIM:(i + 1) * HIDDEN_DIM,
                         off:off + n].set(p[f'hyper.{k}.w2'])
        off += n
    p['hyper.w2_bd'] = w2_bd
    return p


# ----------------------------------------------------------------------------
# Forward pass (mirrors HyperInverter_online.forward), single jax.jit.
# ----------------------------------------------------------------------------
def _forward(params, x, return_latents=False):
    B = x.shape[0]
    num_ws = NUM_WS

    # TODO(synk): dlib shape_predictor landmark detection has no Pallas
    # equivalent; deterministic pseudo-landmarks are used instead.
    landmarks = jnp.sin(jnp.arange(68 * 2, dtype=jnp.float32)).reshape(68, 2)

    # F.interpolate(x, (256,256), bilinear) — small stand-in resolution RESIZE.
    x_resized = bilinear_resize(x, RESIZE, RESIZE)
    x_flat = x_resized.reshape(B, -1)

    # W encoder (stand-in flatten+linear for the pretrained backbone).
    w_codes = pallas_matmul(x_flat, params['w_enc'])

    # ODL(landmarks, w_codes) — stand-in MLP (result only printed in reference).
    odl_codes = odl_forward(params, landmarks, w_codes)
    del odl_codes

    # w_codes = w_codes + latent_avg; repeat over num_ws.  (Pallas kernel)
    w_plus = wplus_broadcast_add(w_codes, params['latent_avg'], num_ws)

    # Initial synthesis with added_weights=None (batched over B).
    w_images = synthesis_batched(params, w_plus, None)

    # Layer-wise encoders on the input and on the generated w_images.
    w_bar_codes = pallas_matmul(x_flat, params['w_bar_enc'])
    w_images_resized = bilinear_resize(w_images, RESIZE, RESIZE)
    w_image_codes = pallas_matmul(w_images_resized.reshape(B, -1),
                                  params['w_bar_enc'])

    # Hypernetwork predicts per-layer conv-weight deltas (fused heads).
    predicted_weights = hypernet(params, w_image_codes, w_bar_codes)

    # Batched re-synthesis with the per-sample predicted added weights.
    final_images = synthesis_batched(params, w_plus, predicted_weights)

    timings = [0.0] * 6  # encoder/normalize/generation/bar-encoder/hypernet/resize
    return_data = [w_images, final_images, predicted_weights, timings]
    if return_latents:
        return_data.append(w_plus)
    return tuple(return_data)


forward = jax.jit(_forward, static_argnames=("return_latents",))


# ----------------------------------------------------------------------------
if __name__ == "__main__":
    key = jax.random.PRNGKey(0)
    k_param, k_x = jax.random.split(key)
    params = init_params(k_param)

    # NCHW input, like the PyTorch module (small stand-in for 1024x1024 faces).
    x = jax.random.normal(k_x, (2, 3, 64, 64), jnp.float32)

    out = forward(params, x, return_latents=True)
    w_images, final_images, predicted_weights, timings, w_plus = out
    jax.block_until_ready((w_images, final_images, predicted_weights, w_plus))

    assert w_images.shape == (2, 3, OUTPUT_SIZE, OUTPUT_SIZE)
    assert final_images.shape == (2, 3, OUTPUT_SIZE, OUTPUT_SIZE)
    assert w_plus.shape == (2, NUM_WS, LATENT)
    for k, s in TARGET_SHAPE.items():
        assert predicted_weights[k].shape == (2,) + s

    print("KERNEL_OK")
</pallas_src>

<mosaic_0001>
module attributes {stable_mosaic.version = 11 : i64} {
  func.func private @main(%arg0: i32) attributes {dimension_semantics = [#tpu.dimension_semantics<core_parallel>], iteration_bounds = array<i64: 2>, tpu.core_type = #tpu.core_type<sc_scalar_subcore>, window_params = []} {
    return
  }
}

module attributes {stable_mosaic.version = 11 : i64} {
  func.func private @main(%arg0: i32) attributes {dimension_semantics = [#tpu.dimension_semantics<core_parallel>], iteration_bounds = array<i64: 2>, tpu.core_type = #tpu.core_type<sc_scalar_subcore>, window_params = []} {
    return
  }
}

module attributes {stable_mosaic.version = 11 : i64} {
  func.func @_resize_kernel(%arg0: i32, %arg1: memref<32x64xf32, #tpu.memory_space<vmem>>, %arg2: memref<1x64x64xf32, #tpu.memory_space<vmem>>, %arg3: memref<64x32xf32, #tpu.memory_space<vmem>>, %arg4: memref<1x32x32xf32, #tpu.memory_space<vmem>>) attributes {dimension_semantics = [#tpu.dimension_semantics<parallel>], iteration_bounds = array<i64: 6>, scalar_prefetch = 0 : i64, scratch_operands = 0 : i64, tpu.core_type = #tpu.core_type<tc>, window_params = [{pipeline_mode = #tpu.pipeline_mode<synchronous>, transform_indices = @transform_0, window_bounds = array<i64: 32, 64>}, {transform_indices = @transform_1, window_bounds = array<i64: 1, 64, 64>}, {pipeline_mode = #tpu.pipeline_mode<synchronous>, transform_indices = @transform_2, window_bounds = array<i64: 64, 32>}, {transform_indices = @transform_3, window_bounds = array<i64: 1, 32, 32>}]} {
    %c0 = arith.constant 0 : index
    %c0_0 = arith.constant 0 : index
    %0 = vector.load %arg1[%c0, %c0_0] : memref<32x64xf32, #tpu.memory_space<vmem>>, vector<32x64xf32>
    %c0_1 = arith.constant 0 : index
    %c0_2 = arith.constant 0 : index
    %c0_3 = arith.constant 0 : index
    %1 = vector.load %arg2[%c0_1, %c0_2, %c0_3] : memref<1x64x64xf32, #tpu.memory_space<vmem>>, vector<1x64x64xf32>
    %2 = vector.shape_cast %1 : vector<1x64x64xf32> to vector<64x64xf32>
    %cst = arith.constant dense<0.000000e+00> : vector<32x64xf32>
    %3 = tpu.matmul %0, %2, %cst {dimension_numbers = #tpu.dot_dimension_numbers<[1], [0], [0], [1], [0, 0, 1, 1], [], []>} : vector<32x64xf32>, vector<64x64xf32>, vector<32x64xf32> -> vector<32x64xf32>
    %c0_4 = arith.constant 0 : index
    %c0_5 = arith.constant 0 : index
    %4 = vector.load %arg3[%c0_4, %c0_5] : memref<64x32xf32, #tpu.memory_space<vmem>>, vector<64x32xf32>
    %cst_6 = arith.constant dense<0.000000e+00> : vector<32x32xf32>
    %5 = tpu.matmul %3, %4, %cst_6 {dimension_numbers = #tpu.dot_dimension_numbers<[1], [0], [0], [1], [0, 0, 1, 1], [], []>} : vector<32x64xf32>, vector<64x32xf32>, vector<32x32xf32> -> vector<32x32xf32>
    %c0_7 = arith.constant 0 : index
    %c0_8 = arith.constant 0 : index
    %c0_9 = arith.constant 0 : index
    %6 = vector.load %arg4[%c0_7, %c0_8, %c0_9] : memref<1x32x32xf32, #tpu.memory_space<vmem>>, vector<1x32x32xf32>
    %7 = vector.shape_cast %6 : vector<1x32x32xf32> to vector<32x32xf32>
    %8 = vector.shape_cast %5 : vector<32x32xf32> to vector<1x32x32xf32>
    tpu.vector_store %arg4[%c0_7, %c0_8, %c0_9], %8 {strides = array<i32>} : memref<1x32x32xf32, #tpu.memory_space<vmem>>, vector<1x32x32xf32>,
    return
  }
  func.func @transform_0(%arg0: i32) -> (i32, i32) {
    %c0_i32 = arith.constant 0 : i32
    %c0_i32_0 = arith.constant 0 : i32
    %c0_i32_1 = arith.constant 0 : i32
    return %c0_i32, %c0_i32_0 : i32, i32
  }
  func.func @transform_1(%arg0: i32) -> (i32, i32, i32) {
    %c0_i32 = arith.constant 0 : i32
    %c0_i32_0 = arith.constant 0 : i32
    %c0_i32_1 = arith.constant 0 : i32
    return %arg0, %c0_i32, %c0_i32_0 : i32, i32, i32
  }
  func.func @transform_2(%arg0: i32) -> (i32, i32) {
    %c0_i32 = arith.constant 0 : i32
    %c0_i32_0 = arith.constant 0 : i32
    %c0_i32_1 = arith.constant 0 : i32
    return %c0_i32, %c0_i32_0 : i32, i32
  }
  func.func @transform_3(%arg0: i32) -> (i32, i32, i32) {
    %c0_i32 = arith.constant 0 : i32
    %c0_i32_0 = arith.constant 0 : i32
    %c0_i32_1 = arith.constant 0 : i32
    return %arg0, %c0_i32, %c0_i32_0 : i32, i32, i32
  }
}

module attributes {stable_mosaic.version = 11 : i64} {
  func.func @_mm_ktiled_kernel(%arg0: i32, %arg1: i32, %arg2: i32, %arg3: memref<2x1536xbf16, #tpu.memory_space<vmem>>, %arg4: memref<1536x256xbf16, #tpu.memory_space<vmem>>, %arg5: memref<2x256xf32, #tpu.memory_space<vmem>>, %arg6: memref<2x256xf32, #tpu.memory_space<vmem>>) attributes {dimension_semantics = [#tpu.dimension_semantics<parallel>, #tpu.dimension_semantics<parallel>, #tpu.dimension_semantics<arbitrary>], iteration_bounds = array<i64: 1, 2, 2>, scalar_prefetch = 0 : i64, scratch_operands = 1 : i64, tpu.core_type = #tpu.core_type<tc>, window_params = [{transform_indices = @transform_0, window_bounds = array<i64: 2, 1536>}, {transform_indices = @transform_1, window_bounds = array<i64: 1536, 256>}, {transform_indices = @transform_2, window_bounds = array<i64: 2, 256>}]} {
    %c0_i32 = arith.constant 0 : i32
    %0 = arith.cmpi eq, %arg2, %c0_i32 : i32
    %1 = arith.extui %0 : i1 to i32
    %c0_i32_0 = arith.constant 0 : i32
    %2 = arith.cmpi ne, %1, %c0_i32_0 : i32
    scf.if %2 {
      %cst_9 = arith.constant 0.000000e+00 : f32
      %12 = vector.broadcast %cst_9 : f32 to vector<2x256xf32>
      %c0_10 = arith.constant 0 : index
      %c0_11 = arith.constant 0 : index
      %13 = vector.load %arg6[%c0_10, %c0_11] : memref<2x256xf32, #tpu.memory_space<vmem>>, vector<2x256xf32>
      tpu.vector_store %arg6[%c0_10, %c0_11], %12 {strides = array<i32>} : memref<2x256xf32, #tpu.memory_space<vmem>>, vector<2x256xf32>,
    } else {
    }
    %c0 = arith.constant 0 : index
    %c0_1 = arith.constant 0 : index
    %3 = vector.load %arg6[%c0, %c0_1] : memref<2x256xf32, #tpu.memory_space<vmem>>, vector<2x256xf32>
    %c0_2 = arith.constant 0 : index
    %c0_3 = arith.constant 0 : index
    %4 = vector.load %arg3[%c0_2, %c0_3] : memref<2x1536xbf16, #tpu.memory_space<vmem>>, vector<2x1536xbf16>
    %c0_4 = arith.constant 0 : index
    %c0_5 = arith.constant 0 : index
    %5 = vector.load %arg4[%c0_4, %c0_5] : memref<1536x256xbf16, #tpu.memory_space<vmem>>, vector<1536x256xbf16>
    %cst = arith.constant dense<0.000000e+00> : vector<2x256xf32>
    %6 = tpu.matmul %4, %5, %cst {dimension_numbers = #tpu.dot_dimension_numbers<[1], [0], [0], [1], [0, 0, 1, 1], [], []>} : vector<2x1536xbf16>, vector<1536x256xbf16>, vector<2x256xf32> -> vector<2x256xf32>
    %7 = arith.addf %3, %6 : vector<2x256xf32>
    %c0_6 = arith.constant 0 : index
    %c0_7 = arith.constant 0 : index
    %8 = vector.load %arg6[%c0_6, %c0_7] : memref<2x256xf32, #tpu.memory_space<vmem>>, vector<2x256xf32>
    tpu.vector_store %arg6[%c0_6, %c0_7], %7 {strides = array<i32>} : memref<2x256xf32, #tpu.memory_space<vmem>>, vector<2x256xf32>,
    %c1_i32 = arith.constant 1 : i32
    %9 = arith.cmpi eq, %arg2, %c1_i32 : i32
    %10 = arith.extui %9 : i1 to i32
    %c0_i32_8 = arith.constant 0 : i32
    %11 = arith.cmpi ne, %10, %c0_i32_8 : i32
    scf.if %11 {
      %c0_9 = arith.constant 0 : index
      %c0_10 = arith.constant 0 : index
      %12 = vector.load %arg6[%c0_9, %c0_10] : memref<2x256xf32, #tpu.memory_space<vmem>>, vector<2x256xf32>
      %c0_11 = arith.constant 0 : index
      %c0_12 = arith.constant 0 : index
      %13 = vector.load %arg5[%c0_11, %c0_12] : memref<2x256xf32, #tpu.memory_space<vmem>>, vector<2x256xf32>
      tpu.vector_store %arg5[%c0_11, %c0_12], %12 {strides = array<i32>} : memref<2x256xf32, #tpu.memory_space<vmem>>, vector<2x256xf32>,
    } else {
    }
    return
  }
  func.func @transform_0(%arg0: i32, %arg1: i32, %arg2: i32) -> (i32, i32) {
    %c0_i32 = arith.constant 0 : i32
    return %arg0, %arg2 : i32, i32
  }
  func.func @transform_1(%arg0: i32, %arg1: i32, %arg2: i32) -> (i32, i32) {
    %c0_i32 = arith.constant 0 : i32
    return %arg2, %arg1 : i32, i32
  }
  func.func @transform_2(%arg0: i32, %arg1: i32, %arg2: i32) -> (i32, i32) {
    %c0_i32 = arith.constant 0 : i32
    return %arg0, %arg1 : i32, i32
  }
}

module attributes {stable_mosaic.version = 11 : i64} {
  func.func @_wplus_kernel(%arg0: memref<2x512xf32, #tpu.memory_space<vmem>>, %arg1: memref<1x512xf32, #tpu.memory_space<vmem>>, %arg2: memref<2x6x512xf32, #tpu.memory_space<vmem>>) attributes {dimension_semantics = [], scalar_prefetch = 0 : i64, scratch_operands = 0 : i64, tpu.core_type = #tpu.core_type<tc>} {
    %c0 = arith.constant 0 : index
    %c0_0 = arith.constant 0 : index
    %0 = vector.load %arg0[%c0, %c0_0] : memref<2x512xf32, #tpu.memory_space<vmem>>, vector<2x512xf32>
    %c0_1 = arith.constant 0 : index
    %c0_2 = arith.constant 0 : index
    %1 = vector.load %arg1[%c0_1, %c0_2] : memref<1x512xf32, #tpu.memory_space<vmem>>, vector<1x512xf32>
    %2 = vector.broadcast %1 : vector<1x512xf32> to vector<2x512xf32>
    %3 = arith.addf %0, %2 : vector<2x512xf32>
    %4 = vector.shape_cast %3 : vector<2x512xf32> to vector<2x1x512xf32>
    %5 = vector.shape_cast %4 : vector<2x1x512xf32> to vector<2x1x512xf32>
    %6 = vector.broadcast %5 : vector<2x1x512xf32> to vector<2x6x512xf32>
    %c0_3 = arith.constant 0 : index
    %c0_4 = arith.constant 0 : index
    %c0_5 = arith.constant 0 : index
    %7 = vector.load %arg2[%c0_3, %c0_4, %c0_5] : memref<2x6x512xf32, #tpu.memory_space<vmem>>, vector<2x6x512xf32>
    tpu.vector_store %arg2[%c0_3, %c0_4, %c0_5], %6 {strides = array<i32>} : memref<2x6x512xf32, #tpu.memory_space<vmem>>, vector<2x6x512xf32>,
    return
  }
}

module attributes {stable_mosaic.version = 11 : i64} {
  func.func @_mm_single_kernel(%arg0: memref<12x512xbf16, #tpu.memory_space<vmem>>, %arg1: memref<512x80xbf16, #tpu.memory_space<vmem>>, %arg2: memref<12x80xf32, #tpu.memory_space<vmem>>) attributes {dimension_semantics = [], scalar_prefetch = 0 : i64, scratch_operands = 0 : i64, tpu.core_type = #tpu.core_type<tc>} {
    %c0 = arith.constant 0 : index
    %c0_0 = arith.constant 0 : index
    %0 = vector.load %arg0[%c0, %c0_0] : memref<12x512xbf16, #tpu.memory_space<vmem>>, vector<12x512xbf16>
    %c0_1 = arith.constant 0 : index
    %c0_2 = arith.constant 0 : index
    %1 = vector.load %arg1[%c0_1, %c0_2] : memref<512x80xbf16, #tpu.memory_space<vmem>>, vector<512x80xbf16>
    %cst = arith.constant dense<0.000000e+00> : vector<12x80xf32>
    %2 = tpu.matmul %0, %1, %cst {dimension_numbers = #tpu.dot_dimension_numbers<[1], [0], [0], [1], [0, 0, 1, 1], [], []>} : vector<12x512xbf16>, vector<512x80xbf16>, vector<12x80xf32> -> vector<12x80xf32>
    %c0_3 = arith.constant 0 : index
    %c0_4 = arith.constant 0 : index
    %3 = vector.load %arg2[%c0_3, %c0_4] : memref<12x80xf32, #tpu.memory_space<vmem>>, vector<12x80xf32>
    tpu.vector_store %arg2[%c0_3, %c0_4], %2 {strides = array<i32>} : memref<12x80xf32, #tpu.memory_space<vmem>>, vector<12x80xf32>,
    return
  }
}

module attributes {stable_mosaic.version = 11 : i64} {
  func.func @_bmm_kernel(%arg0: i32, %arg1: memref<1x16x144xbf16, #tpu.memory_space<vmem>>, %arg2: memref<1x144x64xbf16, #tpu.memory_space<vmem>>, %arg3: memref<1x16x64xf32, #tpu.memory_space<vmem>>) attributes {dimension_semantics = [#tpu.dimension_semantics<parallel>], iteration_bounds = array<i64: 2>, scalar_prefetch = 0 : i64, scratch_operands = 0 : i64, tpu.core_type = #tpu.core_type<tc>, window_params = [{transform_indices = @transform_0, window_bounds = array<i64: 1, 16, 144>}, {transform_indices = @transform_1, window_bounds = array<i64: 1, 144, 64>}, {transform_indices = @transform_2, window_bounds = array<i64: 1, 16, 64>}]} {
    %c0 = arith.constant 0 : index
    %c0_0 = arith.constant 0 : index
    %c0_1 = arith.constant 0 : index
    %0 = vector.load %arg1[%c0, %c0_0, %c0_1] : memref<1x16x144xbf16, #tpu.memory_space<vmem>>, vector<1x16x144xbf16>
    %1 = vector.shape_cast %0 : vector<1x16x144xbf16> to vector<16x144xbf16>
    %c0_2 = arith.constant 0 : index
    %c0_3 = arith.constant 0 : index
    %c0_4 = arith.constant 0 : index
    %2 = vector.load %arg2[%c0_2, %c0_3, %c0_4] : memref<1x144x64xbf16, #tpu.memory_space<vmem>>, vector<1x144x64xbf16>
    %3 = vector.shape_cast %2 : vector<1x144x64xbf16> to vector<144x64xbf16>
    %cst = arith.constant dense<0.000000e+00> : vector<16x64xf32>
    %4 = tpu.matmul %1, %3, %cst {dimension_numbers = #tpu.dot_dimension_numbers<[1], [0], [0], [1], [0, 0, 1, 1], [], []>} : vector<16x144xbf16>, vector<144x64xbf16>, vector<16x64xf32> -> vector<16x64xf32>
    %c0_5 = arith.constant 0 : index
    %c0_6 = arith.constant 0 : index
    %c0_7 = arith.constant 0 : index
    %5 = vector.load %arg3[%c0_5, %c0_6, %c0_7] : memref<1x16x64xf32, #tpu.memory_space<vmem>>, vector<1x16x64xf32>
    %6 = vector.shape_cast %5 : vector<1x16x64xf32> to vector<16x64xf32>
    %7 = vector.shape_cast %4 : vector<16x64xf32> to vector<1x16x64xf32>
    tpu.vector_store %arg3[%c0_5, %c0_6, %c0_7], %7 {strides = array<i32>} : memref<1x16x64xf32, #tpu.memory_space<vmem>>, vector<1x16x64xf32>,
    return
  }
  func.func @transform_0(%arg0: i32) -> (i32, i32, i32) {
    %c0_i32 = arith.constant 0 : i32
    %c0_i32_0 = arith.constant 0 : i32
    %c0_i32_1 = arith.constant 0 : i32
    return %arg0, %c0_i32, %c0_i32_0 : i32, i32, i32
  }
  func.func @transform_1(%arg0: i32) -> (i32, i32, i32) {
    %c0_i32 = arith.constant 0 : i32
    %c0_i32_0 = arith.constant 0 : i32
    %c0_i32_1 = arith.constant 0 : i32
    return %arg0, %c0_i32, %c0_i32_0 : i32, i32, i32
  }
  func.func @transform_2(%arg0: i32) -> (i32, i32, i32) {
    %c0_i32 = arith.constant 0 : i32
    %c0_i32_0 = arith.constant 0 : i32
    %c0_i32_1 = arith.constant 0 : i32
    return %arg0, %c0_i32, %c0_i32_0 : i32, i32, i32
  }
}

module attributes {stable_mosaic.version = 11 : i64} {
  func.func @_bmm_kernel(%arg0: i32, %arg1: memref<1x16x144xbf16, #tpu.memory_space<vmem>>, %arg2: memref<1x144x256xbf16, #tpu.memory_space<vmem>>, %arg3: memref<1x16x256xf32, #tpu.memory_space<vmem>>) attributes {dimension_semantics = [#tpu.dimension_semantics<parallel>], iteration_bounds = array<i64: 2>, scalar_prefetch = 0 : i64, scratch_operands = 0 : i64, tpu.core_type = #tpu.core_type<tc>, window_params = [{transform_indices = @transform_0, window_bounds = array<i64: 1, 16, 144>}, {transform_indices = @transform_1, window_bounds = array<i64: 1, 144, 256>}, {transform_indices = @transform_2, window_bounds = array<i64: 1, 16, 256>}]} {
    %c0 = arith.constant 0 : index
    %c0_0 = arith.constant 0 : index
    %c0_1 = arith.constant 0 : index
    %0 = vector.load %arg1[%c0, %c0_0, %c0_1] : memref<1x16x144xbf16, #tpu.memory_space<vmem>>, vector<1x16x144xbf16>
    %1 = vector.shape_cast %0 : vector<1x16x144xbf16> to vector<16x144xbf16>
    %c0_2 = arith.constant 0 : index
    %c0_3 = arith.constant 0 : index
    %c0_4 = arith.constant 0 : index
    %2 = vector.load %arg2[%c0_2, %c0_3, %c0_4] : memref<1x144x256xbf16, #tpu.memory_space<vmem>>, vector<1x144x256xbf16>
    %3 = vector.shape_cast %2 : vector<1x144x256xbf16> to vector<144x256xbf16>
    %cst = arith.constant dense<0.000000e+00> : vector<16x256xf32>
    %4 = tpu.matmul %1, %3, %cst {dimension_numbers = #tpu.dot_dimension_numbers<[1], [0], [0], [1], [0, 0, 1, 1], [], []>} : vector<16x144xbf16>, vector<144x256xbf16>, vector<16x256xf32> -> vector<16x256xf32>
    %c0_5 = arith.constant 0 : index
    %c0_6 = arith.constant 0 : index
    %c0_7 = arith.constant 0 : index
    %5 = vector.load %arg3[%c0_5, %c0_6, %c0_7] : memref<1x16x256xf32, #tpu.memory_space<vmem>>, vector<1x16x256xf32>
    %6 = vector.shape_cast %5 : vector<1x16x256xf32> to vector<16x256xf32>
    %7 = vector.shape_cast %4 : vector<16x256xf32> to vector<1x16x256xf32>
    tpu.vector_store %arg3[%c0_5, %c0_6, %c0_7], %7 {strides = array<i32>} : memref<1x16x256xf32, #tpu.memory_space<vmem>>, vector<1x16x256xf32>,
    return
  }
  func.func @transform_0(%arg0: i32) -> (i32, i32, i32) {
    %c0_i32 = arith.constant 0 : i32
    %c0_i32_0 = arith.constant 0 : i32
    %c0_i32_1 = arith.constant 0 : i32
    return %arg0, %c0_i32, %c0_i32_0 : i32, i32, i32
  }
  func.func @transform_1(%arg0: i32) -> (i32, i32, i32) {
    %c0_i32 = arith.constant 0 : i32
    %c0_i32_0 = arith.constant 0 : i32
    %c0_i32_1 = arith.constant 0 : i32
    return %arg0, %c0_i32, %c0_i32_0 : i32, i32, i32
  }
  func.func @transform_2(%arg0: i32) -> (i32, i32, i32) {
    %c0_i32 = arith.constant 0 : i32
    %c0_i32_0 = arith.constant 0 : i32
    %c0_i32_1 = arith.constant 0 : i32
    return %arg0, %c0_i32, %c0_i32_0 : i32, i32, i32
  }
}

module attributes {stable_mosaic.version = 11 : i64} {
  func.func @_bmm_kernel(%arg0: i32, %arg1: memref<1x3x16xbf16, #tpu.memory_space<vmem>>, %arg2: memref<1x16x256xbf16, #tpu.memory_space<vmem>>, %arg3: memref<1x3x256xf32, #tpu.memory_space<vmem>>) attributes {dimension_semantics = [#tpu.dimension_semantics<parallel>], iteration_bounds = array<i64: 2>, scalar_prefetch = 0 : i64, scratch_operands = 0 : i64, tpu.core_type = #tpu.core_type<tc>, window_params = [{transform_indices = @transform_0, window_bounds = array<i64: 1, 3, 16>}, {transform_indices = @transform_1, window_bounds = array<i64: 1, 16, 256>}, {transform_indices = @transform_2, window_bounds = array<i64: 1, 3, 256>}]} {
    %c0 = arith.constant 0 : index
    %c0_0 = arith.constant 0 : index
    %c0_1 = arith.constant 0 : index
    %0 = vector.load %arg1[%c0, %c0_0, %c0_1] : memref<1x3x16xbf16, #tpu.memory_space<vmem>>, vector<1x3x16xbf16>
    %1 = vector.shape_cast %0 : vector<1x3x16xbf16> to vector<3x16xbf16>
    %c0_2 = arith.constant 0 : index
    %c0_3 = arith.constant 0 : index
    %c0_4 = arith.constant 0 : index
    %2 = vector.load %arg2[%c0_2, %c0_3, %c0_4] : memref<1x16x256xbf16, #tpu.memory_space<vmem>>, vector<1x16x256xbf16>
    %3 = vector.shape_cast %2 : vector<1x16x256xbf16> to vector<16x256xbf16>
    %cst = arith.constant dense<0.000000e+00> : vector<3x256xf32>
    %4 = tpu.matmul %1, %3, %cst {dimension_numbers = #tpu.dot_dimension_numbers<[1], [0], [0], [1], [0, 0, 1, 1], [], []>} : vector<3x16xbf16>, vector<16x256xbf16>, vector<3x256xf32> -> vector<3x256xf32>
    %c0_5 = arith.constant 0 : index
    %c0_6 = arith.constant 0 : index
    %c0_7 = arith.constant 0 : index
    %5 = vector.load %arg3[%c0_5, %c0_6, %c0_7] : memref<1x3x256xf32, #tpu.memory_space<vmem>>, vector<1x3x256xf32>
    %6 = vector.shape_cast %5 : vector<1x3x256xf32> to vector<3x256xf32>
    %7 = vector.shape_cast %4 : vector<3x256xf32> to vector<1x3x256xf32>
    tpu.vector_store %arg3[%c0_5, %c0_6, %c0_7], %7 {strides = array<i32>} : memref<1x3x256xf32, #tpu.memory_space<vmem>>, vector<1x3x256xf32>,
    return
  }
  func.func @transform_0(%arg0: i32) -> (i32, i32, i32) {
    %c0_i32 = arith.constant 0 : i32
    %c0_i32_0 = arith.constant 0 : i32
    %c0_i32_1 = arith.constant 0 : i32
    return %arg0, %c0_i32, %c0_i32_0 : i32, i32, i32
  }
  func.func @transform_1(%arg0: i32) -> (i32, i32, i32) {
    %c0_i32 = arith.constant 0 : i32
    %c0_i32_0 = arith.constant 0 : i32
    %c0_i32_1 = arith.constant 0 : i32
    return %arg0, %c0_i32, %c0_i32_0 : i32, i32, i32
  }
  func.func @transform_2(%arg0: i32) -> (i32, i32, i32) {
    %c0_i32 = arith.constant 0 : i32
    %c0_i32_0 = arith.constant 0 : i32
    %c0_i32_1 = arith.constant 0 : i32
    return %arg0, %c0_i32, %c0_i32_0 : i32, i32, i32
  }
}

module attributes {stable_mosaic.version = 11 : i64} {
  func.func @_resize_kernel(%arg0: i32, %arg1: memref<32x16xf32, #tpu.memory_space<vmem>>, %arg2: memref<1x16x16xf32, #tpu.memory_space<vmem>>, %arg3: memref<16x32xf32, #tpu.memory_space<vmem>>, %arg4: memref<1x32x32xf32, #tpu.memory_space<vmem>>) attributes {dimension_semantics = [#tpu.dimension_semantics<parallel>], iteration_bounds = array<i64: 6>, scalar_prefetch = 0 : i64, scratch_operands = 0 : i64, tpu.core_type = #tpu.core_type<tc>, window_params = [{pipeline_mode = #tpu.pipeline_mode<synchronous>, transform_indices = @transform_0, window_bounds = array<i64: 32, 16>}, {transform_indices = @transform_1, window_bounds = array<i64: 1, 16, 16>}, {pipeline_mode = #tpu.pipeline_mode<synchronous>, transform_indices = @transform_2, window_bounds = array<i64: 16, 32>}, {transform_indices = @transform_3, window_bounds = array<i64: 1, 32, 32>}]} {
    %c0 = arith.constant 0 : index
    %c0_0 = arith.constant 0 : index
    %0 = vector.load %arg1[%c0, %c0_0] : memref<32x16xf32, #tpu.memory_space<vmem>>, vector<32x16xf32>
    %c0_1 = arith.constant 0 : index
    %c0_2 = arith.constant 0 : index
    %c0_3 = arith.constant 0 : index
    %1 = vector.load %arg2[%c0_1, %c0_2, %c0_3] : memref<1x16x16xf32, #tpu.memory_space<vmem>>, vector<1x16x16xf32>
    %2 = vector.shape_cast %1 : vector<1x16x16xf32> to vector<16x16xf32>
    %cst = arith.constant dense<0.000000e+00> : vector<32x16xf32>
    %3 = tpu.matmul %0, %2, %cst {dimension_numbers = #tpu.dot_dimension_numbers<[1], [0], [0], [1], [0, 0, 1, 1], [], []>} : vector<32x16xf32>, vector<16x16xf32>, vector<32x16xf32> -> vector<32x16xf32>
    %c0_4 = arith.constant 0 : index
    %c0_5 = arith.constant 0 : index
    %4 = vector.load %arg3[%c0_4, %c0_5] : memref<16x32xf32, #tpu.memory_space<vmem>>, vector<16x32xf32>
    %cst_6 = arith.constant dense<0.000000e+00> : vector<32x32xf32>
    %5 = tpu.matmul %3, %4, %cst_6 {dimension_numbers = #tpu.dot_dimension_numbers<[1], [0], [0], [1], [0, 0, 1, 1], [], []>} : vector<32x16xf32>, vector<16x32xf32>, vector<32x32xf32> -> vector<32x32xf32>
    %c0_7 = arith.constant 0 : index
    %c0_8 = arith.constant 0 : index
    %c0_9 = arith.constant 0 : index
    %6 = vector.load %arg4[%c0_7, %c0_8, %c0_9] : memref<1x32x32xf32, #tpu.memory_space<vmem>>, vector<1x32x32xf32>
    %7 = vector.shape_cast %6 : vector<1x32x32xf32> to vector<32x32xf32>
    %8 = vector.shape_cast %5 : vector<32x32xf32> to vector<1x32x32xf32>
    tpu.vector_store %arg4[%c0_7, %c0_8, %c0_9], %8 {strides = array<i32>} : memref<1x32x32xf32, #tpu.memory_space<vmem>>, vector<1x32x32xf32>,
    return
  }
  func.func @transform_0(%arg0: i32) -> (i32, i32) {
    %c0_i32 = arith.constant 0 : i32
    %c0_i32_0 = arith.constant 0 : i32
    %c0_i32_1 = arith.constant 0 : i32
    return %c0_i32, %c0_i32_0 : i32, i32
  }
  func.func @transform_1(%arg0: i32) -> (i32, i32, i32) {
    %c0_i32 = arith.constant 0 : i32
    %c0_i32_0 = arith.constant 0 : i32
    %c0_i32_1 = arith.constant 0 : i32
    return %arg0, %c0_i32, %c0_i32_0 : i32, i32, i32
  }
  func.func @transform_2(%arg0: i32) -> (i32, i32) {
    %c0_i32 = arith.constant 0 : i32
    %c0_i32_0 = arith.constant 0 : i32
    %c0_i32_1 = arith.constant 0 : i32
    return %c0_i32, %c0_i32_0 : i32, i32
  }
  func.func @transform_3(%arg0: i32) -> (i32, i32, i32) {
    %c0_i32 = arith.constant 0 : i32
    %c0_i32_0 = arith.constant 0 : i32
    %c0_i32_1 = arith.constant 0 : i32
    return %arg0, %c0_i32, %c0_i32_0 : i32, i32, i32
  }
}

module attributes {stable_mosaic.version = 11 : i64} {
  func.func @_mm_single_kernel(%arg0: memref<2x1024xbf16, #tpu.memory_space<vmem>>, %arg1: memref<1024x128xbf16, #tpu.memory_space<vmem>>, %arg2: memref<2x128xf32, #tpu.memory_space<vmem>>) attributes {dimension_semantics = [], scalar_prefetch = 0 : i64, scratch_operands = 0 : i64, tpu.core_type = #tpu.core_type<tc>} {
    %c0 = arith.constant 0 : index
    %c0_0 = arith.constant 0 : index
    %0 = vector.load %arg0[%c0, %c0_0] : memref<2x1024xbf16, #tpu.memory_space<vmem>>, vector<2x1024xbf16>
    %c0_1 = arith.constant 0 : index
    %c0_2 = arith.constant 0 : index
    %1 = vector.load %arg1[%c0_1, %c0_2] : memref<1024x128xbf16, #tpu.memory_space<vmem>>, vector<1024x128xbf16>
    %cst = arith.constant dense<0.000000e+00> : vector<2x128xf32>
    %2 = tpu.matmul %0, %1, %cst {dimension_numbers = #tpu.dot_dimension_numbers<[1], [0], [0], [1], [0, 0, 1, 1], [], []>} : vector<2x1024xbf16>, vector<1024x128xbf16>, vector<2x128xf32> -> vector<2x128xf32>
    %c0_3 = arith.constant 0 : index
    %c0_4 = arith.constant 0 : index
    %3 = vector.load %arg2[%c0_3, %c0_4] : memref<2x128xf32, #tpu.memory_space<vmem>>, vector<2x128xf32>
    tpu.vector_store %arg2[%c0_3, %c0_4], %2 {strides = array<i32>} : memref<2x128xf32, #tpu.memory_space<vmem>>, vector<2x128xf32>,
    return
  }
}

module attributes {stable_mosaic.version = 11 : i64} {
  func.func @_mm_single_kernel(%arg0: memref<2x128xbf16, #tpu.memory_space<vmem>>, %arg1: memref<128x9216xbf16, #tpu.memory_space<vmem>>, %arg2: memref<2x9216xf32, #tpu.memory_space<vmem>>) attributes {dimension_semantics = [], scalar_prefetch = 0 : i64, scratch_operands = 0 : i64, tpu.core_type = #tpu.core_type<tc>} {
    %c0 = arith.constant 0 : index
    %c0_0 = arith.constant 0 : index
    %0 = vector.load %arg0[%c0, %c0_0] : memref<2x128xbf16, #tpu.memory_space<vmem>>, vector<2x128xbf16>
    %c0_1 = arith.constant 0 : index
    %c0_2 = arith.constant 0 : index
    %1 = vector.load %arg1[%c0_1, %c0_2] : memref<128x9216xbf16, #tpu.memory_space<vmem>>, vector<128x9216xbf16>
    %cst = arith.constant dense<0.000000e+00> : vector<2x9216xf32>
    %2 = tpu.matmul %0, %1, %cst {dimension_numbers = #tpu.dot_dimension_numbers<[1], [0], [0], [1], [0, 0, 1, 1], [], []>} : vector<2x128xbf16>, vector<128x9216xbf16>, vector<2x9216xf32> -> vector<2x9216xf32>
    %c0_3 = arith.constant 0 : index
    %c0_4 = arith.constant 0 : index
    %3 = vector.load %arg2[%c0_3, %c0_4] : memref<2x9216xf32, #tpu.memory_space<vmem>>, vector<2x9216xf32>
    tpu.vector_store %arg2[%c0_3, %c0_4], %2 {strides = array<i32>} : memref<2x9216xf32, #tpu.memory_space<vmem>>, vector<2x9216xf32>,
    return
  }
}

</mosaic_0001>

<bundles_post_ra>
// kernel: _forward.20
= control target key start
LH: loop header
LB: loop body
LE: loop exit
PB: predicated region body
PF: predicated region fallthrough
CT: control target
= control target key end

     0   :  { %8 = vsyncpa [#allocation3], 0  ;;  %s680_s12 = smov 0   ;;  %s772_s0 = inlined_call_operand.hbm [shape: f32[32,64], index: 0, kind: input, shape index: {}]   ;;  %s773_s1 = inlined_call_operand.vmem [shape: f32[6,64,64], index: 1, kind: input, shape index: {}]   ;;  %s774_s2 = inlined_call_operand.vmem [shape: f32[64,32], index: 2, kind: input, shape index: {}]   ;;  %s775_s3 = inlined_call_operand.vmem [shape: f32[6,32,32], index: 3, kind: output, shape index: {}]  }
   0x1 LB: > { %s686_s13 = sadd.s32 4294967295, %s655_s12   ;;  %p475_p0 = scmp.ge.s32.totalorder %s655_s12, 1  ;;  %s655_s12 = sphi %s680_s12, %s14_s12  }
   0x2   : > { %p113_p1 = scmp.lt.s32.totalorder %s655_s12, 7  ;;  %s657_s14 = smov [#allocation2]  }
   0x3   : > { %s125_s15 = sshll.u32 %s657_s14, 4  ;;  %p776_p3 = scmp.eq.s32.totalorder %s686_s13, 0  ;;  %s126_s15 = int_to_ptr.vmem [resolvable:$true] %s125_s15 }
   0x4   : > { %p690_p2 = pnand %p475_p0, %p113_p1  ;;  %s617_s20 = scalar_lea.hbm %s772_s0, 512 }
   0x5   : > { %p618_p6 = scmp.ne.s32.totalorder %s772_s0, %s617_s20  ;;  %p624_p10 = scmp.lt.u32.totalorder %s617_s20, %s772_s0 }
   0x6   : > { %s778_s16 = scalar_select %p690_p2, 1, 0 }
   0x7   : > { %p600_p4 = pneg %p690_p2 }
   0x9   : > { %p699_p5 = pnand %p776_p3, %p600_p4 }
   0xb   : > { %p619_p7 = pneg %p699_p5 }
   0xd   : > { %p620_p8 = pnand %p619_p7, %p618_p6 }
   0xf   : > { %p621_p9 = pneg %p620_p8 }
  0x11   : > { %p626_p11 = pnand %p624_p10, %p621_p9 }
  0x13   : > { %629 = shalt.err (!%p626_p11)
}
  0x14   : > { %s630_s25 = scalar_lea.vmem %s126_s15, 512  ;;  %p638_p1 = scmp.lt.s32.totalorder %s126_s15, %s126_s15 }
  0x15   : > { %p631_p12 = scmp.ne.s32.totalorder %s126_s15, %s630_s25  ;;  %p639_p4 = scmp.lt.s32.totalorder %s630_s25, %s630_s25 }
  0x17   : > { %p633_p13 = pnand %p631_p12, %p619_p7  ;;  %p640_p3 = por %p639_p4, %p638_p1 }
  0x19   : > { %p634_p0 = pneg %p633_p13 }
  0x1b   : > { %p641_p2 = pnand %p640_p3, %p634_p0 }
  0x1d   : > { %644 = shalt.err (!%p641_p2)
}
  0x1e   : > { %s658_s26 = smov 128   ;;  %s659_s27 = smov 8  }
  0x1f   : > { %603 = dma.hbm_to_vmem [thread:$0]  (!%p699_p5), %s772_s0, 512, %s126_s15, [#allocation3], %s658_s26, %s658_s26, %s659_s27  }
  0x20   : > { %p780_p6 = scmp.ne.s32.totalorder %s778_s16, 0 }
  0x21   : > { %p781_p8 = scmp.eq.s32.totalorder (!%p780_p6), %s686_s13, 0 }
  0x22   : > { %152 = sbr.rel (%p780_p6) target bundleno = 498 (0x1f2), region = 32 }
  0x29   : > { %650 = dma.done.wait (%p781_p8), [#allocation3], 512   ;;  %p782_p7 = pmov %p781_p8 }
  0x2a   : > { %p176_p2 = scmp.lt.s32.totalorder %s686_s13, 5  ;;  %vm198_vm0 = vcmask 523264   ;;  %v186_v8 = vld [vmem:[#allocation2] sm:$0xff]  ;;  %v297_v10 = vld [vmem:[%s774_s2 + $0x8] sm:$0xff]  ;;  %v298_v11 = vld [vmem:[%s774_s2 + $0x10] sm:$0xff]  ;;  %vm401_vm1 = vcmask 261120  }
  0x2b   : > { %652 = vsyncadd (%p782_p7), [#allocation3], 4294966784  ;;  %536 = vmatprep.mubr.msk.f32.mxu0 %vm198_vm0, %v186_v8  ;;  %v296_v9 = vld [vmem:[%s774_s2] sm:$0xff]  ;;  %v299_v15 = vld [vmem:[%s774_s2 + $0x18] sm:$0xff] }
  0x2c   : > { %s784_s13 = smov (!%p176_p2, %s686_s13), 5  ;;  %v580_v14 = vpack.c.bf16 %v297_v10, %v296_v9  ;;  %v584_v17 = vpack.c.bf16 %v299_v15, %v298_v11  ;;  %v300_v18 = vld [vmem:[%s774_s2 + $0x20] sm:$0xff]  ;;  %v301_v19 = vld [vmem:[%s774_s2 + $0x28] sm:$0xff]  ;;  %v302_v22 = vld [vmem:[%s774_s2 + $0x30] sm:$0xff] }
  0x2d   : > { %s494_s30 = sshll.u32 %s784_s13, 6  ;;  %v588_v21 = vpack.c.bf16 %v301_v19, %v300_v18  ;;  %v303_v23 = vld [vmem:[%s774_s2 + $0x38] sm:$0xff]  ;;  %v187_v25 = vld [vmem:[#allocation2 + $0x8] sm:$0xff]  ;;  %v188_v26 = vld [vmem:[#allocation2 + $0x10] sm:$0xff]  ;;  %s495_s25 = sshll.u32 %s784_s13, 5 }
  0x2e   : > { %s180_s6 = scalar_lea.vmem %s773_s1, %s494_s30  ;;  %581 = vmatprep.subr.bf16.mxu1 %v580_v14  ;;  %v592_v24 = vpack.c.bf16 %v303_v23, %v302_v22  ;;  %v189_v27 = vld [vmem:[#allocation2 + $0x18] sm:$0xff]  ;;  %s185_s28 = scalar_lea.vmem %s775_s3, %s495_s25 }
  0x2f   : > { %v190_v0 = vld [vmem:[%s180_s6] sm:$0xff]  ;;  %v191_v1 = vld [vmem:[%s180_s6 + $0x8] sm:$0xff]  ;;  %v192_v2 = vld [vmem:[%s180_s6 + $0x10] sm:$0xff]  ;;  %583 = vmatpush3.bf16.msra.mxu1 %v580_v14 }
  0x30   : > { %v564_v3 = vpack.c.bf16 %v191_v1, %v190_v0  ;;  %v193_v4 = vld [vmem:[%s180_s6 + $0x18] sm:$0xff]  ;;  %v194_v6 = vld [vmem:[%s180_s6 + $0x20] sm:$0xff]  ;;  %v195_v7 = vld [vmem:[%s180_s6 + $0x28] sm:$0xff]  ;;  %585 = vmatprep.subr.bf16.mxu1 %v584_v17 }
  0x31   : > { %v568_v5 = vpack.c.bf16 %v193_v4, %v192_v2  ;;  %v572_v12 = vpack.c.bf16 %v195_v7, %v194_v6  ;;  %v196_v13 = vld [vmem:[%s180_s6 + $0x30] sm:$0xff]  ;;  %v197_v16 = vld [vmem:[%s180_s6 + $0x38] sm:$0xff] }
  0x32   : > { %565 = vmatprep.subr.bf16.mxu0 %v564_v3  ;;  %v576_v20 = vpack.c.bf16 %v197_v16, %v196_v13 }
  0x33   : > { %567 = vmatpush3.bf16.msra.mxu0 %v564_v3  ;;  %587 = vmatpush3.bf16.msra.mxu1 %v584_v17 }
  0x34   : > { %569 = vmatprep.subr.bf16.mxu0 %v568_v5  ;;  %589 = vmatprep.subr.bf16.mxu1 %v588_v21 }
  0x37   : > { %571 = vmatpush3.bf16.msra.mxu0 %v568_v5  ;;  %591 = vmatpush3.bf16.msra.mxu1 %v588_v21 }
  0x38   : > { %573 = vmatprep.subr.bf16.mxu0 %v572_v12  ;;  %593 = vmatprep.subr.bf16.mxu1 %v592_v24 }
  0x3b   : > { %575 = vmatpush3.bf16.msra.mxu0 %v572_v12  ;;  %595 = vmatpush3.bf16.msra.mxu1 %v592_v24 }
  0x3c   : > { %577 = vmatprep.subr.bf16.mxu0 %v576_v20 }
  0x3f   : > { %579 = vmatpush3.bf16.msra.mxu0 %v576_v20 }
  0x42   : > { %537 = vmatmul.mubr.msk.f32.vlgmr.msra.gmra.mrb[0].mxu0 %vm198_vm0, %v187_v25 }
  0x43   : > { %539 = vmatprep.mubr.msk.f32.mxu0 %vm198_vm0, %v188_v26 }
  0x46   : > { %540 = vmatmul.mubr.msk.f32.gmra.mrb[2].mxu0 %vm198_vm0, %v189_v27 }
 0x115   : > { %v538_v28 = vpop.f32.mrb[0].mxu0 }
 0x116   : > { %v277_v29 = vpop.f32.mrb[1].mxu0 }
 0x117   : > { %558 = vmatprep.mubr.msk.f32.mxu1 %vm198_vm0, %v277_v29 }
 0x118   : > { %559 = vmatmul.mubr.msk.f32.vlgmr.msra.gmra.mrb[0].mxu1 %vm198_vm0, %v538_v28 }
 0x119   : > { %v541_v30 = vpop.f32.mrb[2].mxu0 }
 0x11a   : > { %v287_v31 = vpop.f32.mrb[3].mxu0 }
 0x11b   : > { %561 = vmatprep.mubr.msk.f32.mxu1 %vm198_vm0, %v287_v31 }
 0x11c   : > { %562 = vmatmul.mubr.msk.f32.gmra.mrb[2].mxu1 %vm198_vm0, %v541_v30 }
 0x1eb   : > { %v560_v32 = vpop.f32.mrb[0].mxu1 }
 0x1ec   : > { %403 = vst.msk [vmem:[%s185_s28 + $0x8] sm:$0xff] %vm401_vm1, %v560_v32  ;;  %v382_v33 = vpop.f32.mrb[1].mxu1 }
 0x1ed   : > { %402 = vst.msk [vmem:[%s185_s28] sm:$0xff] %vm401_vm1, %v382_v33 }
 0x1ef   : > { %v563_v34 = vpop.f32.mrb[2].mxu1 }
 0x1f0   : > { %405 = vst.msk [vmem:[%s185_s28 + $0x18] sm:$0xff] %vm401_vm1, %v563_v34  ;;  %v392_v35 = vpop.f32.mrb[3].mxu1 }
 0x1f1   : > { %404 = vst.msk [vmem:[%s185_s28 + $0x10] sm:$0xff] %vm401_vm1, %v392_v35 }
 0x1f2 PF: > { %s14_s12 = sadd.s32 1, %s655_s12  }
 0x1f3   : > { %p11_p3 = scmp.ge.s32.totalorder %s14_s12, 8  }
 0x1f5   :  { %13 = sbr.rel (!%p11_p3) target bundleno = 1 (0x1), region = 67 }
 0x1fc   :  { %427 = vsyncpa [#allocation3], 1 }
 0x1fd   :  { %429 = vsyncpa [#allocation3 + $0x1], 1 }

// kernel: _forward.22
= control target key start
LH: loop header
LB: loop body
LE: loop exit
PB: predicated region body
PF: predicated region fallthrough
CT: control target
= control target key end

     0   :  { %v14_v0 = vlaneseq  ;;  %v112_v1 = vmov 1983009808   ;;  %v113_v6 = vmov 1966171168   ;;  %s159_s1 = inlined_call_operand.vmem [shape: f32[1,512], index: 1, kind: input, shape index: {}]   ;;  %s160_s0 = inlined_call_operand.vmem [shape: f32[2,512], index: 0, kind: input, shape index: {}]   ;;  %s161_s2 = inlined_call_operand.vmem [shape: f32[2,6,512], index: 2, kind: output, shape index: {}]  }
   0x1   :  { %v33_v2 = vunpack.c.l.s4 %v112_v1  ;;  %v12_v4 = vld [vmem:[%s159_s1] sm:$0xf]  ;;  %v51_v7 = vunpack.c.l.s4 %v113_v6 }
   0x2   :  { %v15_v3 = vshrl.u32 %v14_v0, 7  ;;  %v11_v22 = vld [vmem:[%s160_s0] sm:$0xff] }
   0x3   :  { %v34_v5 = vunpack.c.0.s8 %v33_v2  ;;  %v52_v19 = vunpack.c.0.s8 %v51_v7 }
   0x4   :  { %v16_v8 = vsub.s32 0, %v15_v3  ;;  %v20_v9 = vsub.s32 1, %v15_v3  ;;  %v24_v10 = vsub.s32 2, %v15_v3  ;;  %v28_v11 = vsub.s32 3, %v15_v3 }
   0x5   :  { %v37_v12 = vsub.s32 %v34_v5, %v15_v3  ;;  %v55_v24 = vsub.s32 %v52_v19, %v15_v3 }
   0x6   :  { %v17_v13 = vrot.slane %v12_v4, %v16_v8  ;;  %v21_v14 = vrot.slane %v12_v4, %v20_v9  ;;  %v25_v15 = vrot.slane %v12_v4, %v24_v10  ;;  %v29_v16 = vrot.slane %v12_v4, %v28_v11 }
   0x8   :  { %v30_v17 = vcombine.low %v17_v13, %v21_v14  ;;  %v31_v18 = vcombine.low %v25_v15, %v29_v16 }
   0xa   :  { %v38_v20 = vrot.slane %v30_v17, %v37_v12  ;;  %v45_v21 = vrot.slane %v31_v18, %v37_v12 }
   0xc   :  { %v46_v23 = vcombine.low %v38_v20, %v45_v21 }
   0xe   :  { %v48_v25 = vadd.f32 %v46_v23, %v11_v22 }
  0x10   :  { %v56_v26 = vrot.slane %v48_v25, %v55_v24 }
  0x12   :  { %v61_v27 = vrot.slane %v56_v26, %v16_v8  ;;  %v65_v28 = vrot.slane %v56_v26, %v20_v9  ;;  %v69_v29 = vrot.slane %v56_v26, %v24_v10  ;;  %v73_v30 = vrot.slane %v56_v26, %v28_v11 }
  0x13   :  { %v57_v31 = vcombine.high %v56_v26, %v56_v26 }
  0x14   :  { %98 = vst [vmem:[%s161_s2] sm:$0x3f] %v61_v27  ;;  %99 = vst [vmem:[%s161_s2 + $0x8] sm:$0x3f] %v65_v28 }
  0x15   :  { %100 = vst [vmem:[%s161_s2 + $0x10] sm:$0x3f] %v69_v29  ;;  %101 = vst [vmem:[%s161_s2 + $0x18] sm:$0x3f] %v73_v30  ;;  %v77_v32 = vrot.slane %v57_v31, %v16_v8  ;;  %v81_v33 = vrot.slane %v57_v31, %v20_v9  ;;  %v85_v34 = vrot.slane %v57_v31, %v24_v10 }
  0x16   :  { %v89_v35 = vrot.slane %v57_v31, %v28_v11 }
  0x17   :  { %102 = vst [vmem:[%s161_s2 + $0x20] sm:$0x3f] %v77_v32  ;;  %103 = vst [vmem:[%s161_s2 + $0x28] sm:$0x3f] %v81_v33 }
  0x18   :  { %104 = vst [vmem:[%s161_s2 + $0x30] sm:$0x3f] %v85_v34  ;;  %105 = vst [vmem:[%s161_s2 + $0x38] sm:$0x3f] %v89_v35 }

// kernel: _forward.21
= control target key start
LH: loop header
LB: loop body
LE: loop exit
PB: predicated region body
PF: predicated region fallthrough
CT: control target
= control target key end

     0   :  { %s3286_s9 = smov 0   ;;  %s3288_s10 = smov 0   ;;  %s4013_s0 = inlined_call_operand.vmem [shape: bf16[2,3072], index: 0, kind: input, shape index: {}]   ;;  %s4014_s1 = inlined_call_operand.vmem [shape: bf16[3072,512], index: 1, kind: input, shape index: {}]   ;;  %s4015_s2 = inlined_call_operand.vmem [shape: f32[2,512], index: 2, kind: output, shape index: {}]  }
   0x1   :  { %s3290_s11 = smov 0   ;;  %s3292_s12 = smov 0  }
   0x2   :  { %s3294_s13 = smov 0   ;;  %s3296_s14 = smov 0  }
   0x3   :  { %s3298_s15 = smov 0  }
   0x4 LB: > { %s24_s16 = sadd.s32 1, %s3258_s13  ;;  %s27_s17 = sadd.s32 1, %s3262_s14  ;;  %s3266_s15 = sphi %s3298_s15, %s12_s15   ;;  %s3262_s14 = sphi %s3296_s14, %s4021_s14   ;;  %s3258_s13 = sphi %s3294_s13, %s4020_s13   ;;  %s3254_s12 = sphi %s3292_s12, %s4019_s12   ;;  %s3250_s11 = sphi %s3290_s11, %s4018_s11   ;;  %s3246_s10 = sphi %s3288_s10, %s4017_s10   ;;  %s3242_s9 = sphi %s3286_s9, %s4016_s9  }
   0x5   : > { %p25_p0 = scmp.ge.s32.totalorder %s24_s16, 2  ;;  %p75_p1 = scmp.ne.s32.totalorder %s3246_s10, %s3242_s9 }
   0x6   : > { %p76_p2 = scmp.eq.s32.totalorder %s3266_s15, 0  ;;  %s68_s21 = sadd.s32 1, %s3246_s10 }
   0x7   : > { %s4023_s16 = smov (%p25_p0, %s24_s16), 0  ;;  %s4025_s17 = smov (!%p25_p0, %s27_s17), %s3262_s14 }
   0x8   : > { %p77_p3 = por %p76_p2, %p75_p1  ;;  %p29_p4 = scmp.ge.s32.totalorder %s4025_s17, 2 }
   0x9   : > { %s63_s18 = ssub.s32 %s3258_s13, %s4023_s16  ;;  %p2639_p6 = scmp.ge.s32.totalorder %s3266_s15, 4 }
   0xa   : > { %s4027_s17 = smov (%p29_p4, %s4025_s17), 0 }
   0xb   : > { %s64_s19 = ssub.s32 %s3262_s14, %s4027_s17  ;;  %129 = sbr.rel (%p2639_p6) target bundleno = 122 (0x7a), region = 16 }
   0xc   : > { %s65_s20 = sor.u32 %s64_s19, %s63_s18 }
   0xd   : > { %p66_p5 = scmp.eq.s32.totalorder %s65_s20, 0 }
   0xf   : > { %s3337_s22 = scalar_select %p66_p5, %s3246_s10, %s68_s21  }
  0x12   : > { %144 = sbr.rel (!%p77_p3) target bundleno = 122 (0x7a), region = 24  ;;  %s146_s23 = sand.u32 (%p77_p3), 1, %s3246_s10  }
  0x13   : > { %s2862_s24 = smul.u32 (%p77_p3), 1536, %s146_s23  ;;  %s2640_s25 = sshll.u32 (%p77_p3), %s3262_s14, 1 }
  0x14   : > { %s2843_s26 = smul.u32 (%p77_p3), 768, %s3258_s13 }
  0x15   : > { %s3351_s4 = scalar_lea.vmem (%p77_p3), [#allocation3], %s2862_s24 }
  0x16   : > { %s152_s27 = sadd.s32 (%p77_p3), %s2843_s26, %s2640_s25 }
  0x17   : > { %s2642_s28 = sshll.u32 (%p77_p3), %s152_s27, 2 }
  0x18   : > { %s3346_s3 = scalar_lea.vmem (%p77_p3), %s4014_s1, %s2642_s28 }
  0x19   : > { %v564_v0 = vld [vmem:[%s3346_s3] sm:$0xff]  ;;  %v566_v1 = vld [vmem:[%s3346_s3 + $0x10] sm:$0xff] }
  0x1a   : > { %v568_v2 = vld [vmem:[%s3346_s3 + $0x20] sm:$0xff]  ;;  %565 = vst [vmem:[%s3351_s4] sm:$0xff] %v564_v0  ;;  %567 = vst [vmem:[%s3351_s4 + $0x8] sm:$0xff] %v566_v1  ;;  %v570_v3 = vld [vmem:[%s3346_s3 + $0x30] sm:$0xff] }
  0x1b   : > { %569 = vst [vmem:[%s3351_s4 + $0x10] sm:$0xff] %v568_v2  ;;  %v572_v4 = vld [vmem:[%s3346_s3 + $0x40] sm:$0xff]  ;;  %v574_v5 = vld [vmem:[%s3346_s3 + $0x50] sm:$0xff]  ;;  %571 = vst [vmem:[%s3351_s4 + $0x18] sm:$0xff] %v570_v3 }
  0x1c   : > { %573 = vst [vmem:[%s3351_s4 + $0x20] sm:$0xff] %v572_v4  ;;  %575 = vst [vmem:[%s3351_s4 + $0x28] sm:$0xff] %v574_v5  ;;  %v576_v6 = vld [vmem:[%s3346_s3 + $0x60] sm:$0xff]  ;;  %v578_v7 = vld [vmem:[%s3346_s3 + $0x70] sm:$0xff] }
  0x1d   : > { %v580_v8 = vld [vmem:[%s3346_s3 + $0x80] sm:$0xff]  ;;  %577 = vst [vmem:[%s3351_s4 + $0x30] sm:$0xff] %v576_v6  ;;  %579 = vst [vmem:[%s3351_s4 + $0x38] sm:$0xff] %v578_v7  ;;  %v582_v9 = vld [vmem:[%s3346_s3 + $0x90] sm:$0xff] }
  0x1e   : > { %581 = vst [vmem:[%s3351_s4 + $0x40] sm:$0xff] %v580_v8  ;;  %v584_v10 = vld [vmem:[%s3346_s3 + $0xa0] sm:$0xff]  ;;  %v586_v11 = vld [vmem:[%s3346_s3 + $0xb0] sm:$0xff]  ;;  %583 = vst [vmem:[%s3351_s4 + $0x48] sm:$0xff] %v582_v9 }
  0x1f   : > { %585 = vst [vmem:[%s3351_s4 + $0x50] sm:$0xff] %v584_v10  ;;  %587 = vst [vmem:[%s3351_s4 + $0x58] sm:$0xff] %v586_v11  ;;  %v588_v12 = vld [vmem:[%s3346_s3 + $0xc0] sm:$0xff]  ;;  %v590_v13 = vld [vmem:[%s3346_s3 + $0xd0] sm:$0xff] }
  0x20   : > { %v592_v14 = vld [vmem:[%s3346_s3 + $0xe0] sm:$0xff]  ;;  %589 = vst [vmem:[%s3351_s4 + $0x60] sm:$0xff] %v588_v12  ;;  %591 = vst [vmem:[%s3351_s4 + $0x68] sm:$0xff] %v590_v13  ;;  %v594_v15 = vld [vmem:[%s3346_s3 + $0xf0] sm:$0xff] }
  0x21   : > { %593 = vst [vmem:[%s3351_s4 + $0x70] sm:$0xff] %v592_v14  ;;  %v596_v16 = vld [vmem:[%s3346_s3 + $0x100] sm:$0xff]  ;;  %v598_v17 = vld [vmem:[%s3346_s3 + $0x110] sm:$0xff]  ;;  %595 = vst [vmem:[%s3351_s4 + $0x78] sm:$0xff] %v594_v15 }
  0x22   : > { %597 = vst [vmem:[%s3351_s4 + $0x80] sm:$0xff] %v596_v16  ;;  %599 = vst [vmem:[%s3351_s4 + $0x88] sm:$0xff] %v598_v17  ;;  %v600_v18 = vld [vmem:[%s3346_s3 + $0x120] sm:$0xff]  ;;  %v602_v19 = vld [vmem:[%s3346_s3 + $0x130] sm:$0xff] }
  0x23   : > { %v604_v20 = vld [vmem:[%s3346_s3 + $0x140] sm:$0xff]  ;;  %601 = vst [vmem:[%s3351_s4 + $0x90] sm:$0xff] %v600_v18  ;;  %603 = vst [vmem:[%s3351_s4 + $0x98] sm:$0xff] %v602_v19  ;;  %v606_v21 = vld [vmem:[%s3346_s3 + $0x150] sm:$0xff] }
  0x24   : > { %605 = vst [vmem:[%s3351_s4 + $0xa0] sm:$0xff] %v604_v20  ;;  %v608_v22 = vld [vmem:[%s3346_s3 + $0x160] sm:$0xff]  ;;  %v610_v23 = vld [vmem:[%s3346_s3 + $0x170] sm:$0xff]  ;;  %607 = vst [vmem:[%s3351_s4 + $0xa8] sm:$0xff] %v606_v21 }
  0x25   : > { %609 = vst [vmem:[%s3351_s4 + $0xb0] sm:$0xff] %v608_v22  ;;  %611 = vst [vmem:[%s3351_s4 + $0xb8] sm:$0xff] %v610_v23  ;;  %v612_v24 = vld [vmem:[%s3346_s3 + $0x180] sm:$0xff]  ;;  %v614_v25 = vld [vmem:[%s3346_s3 + $0x190] sm:$0xff] }
  0x26   : > { %v616_v26 = vld [vmem:[%s3346_s3 + $0x1a0] sm:$0xff]  ;;  %613 = vst [vmem:[%s3351_s4 + $0xc0] sm:$0xff] %v612_v24  ;;  %615 = vst [vmem:[%s3351_s4 + $0xc8] sm:$0xff] %v614_v25  ;;  %v618_v27 = vld [vmem:[%s3346_s3 + $0x1b0] sm:$0xff] }
  0x27   : > { %617 = vst [vmem:[%s3351_s4 + $0xd0] sm:$0xff] %v616_v26  ;;  %v620_v28 = vld [vmem:[%s3346_s3 + $0x1c0] sm:$0xff]  ;;  %v622_v29 = vld [vmem:[%s3346_s3 + $0x1d0] sm:$0xff]  ;;  %619 = vst [vmem:[%s3351_s4 + $0xd8] sm:$0xff] %v618_v27 }
  0x28   : > { %621 = vst [vmem:[%s3351_s4 + $0xe0] sm:$0xff] %v620_v28  ;;  %623 = vst [vmem:[%s3351_s4 + $0xe8] sm:$0xff] %v622_v29  ;;  %v624_v30 = vld [vmem:[%s3346_s3 + $0x1e0] sm:$0xff]  ;;  %v626_v31 = vld [vmem:[%s3346_s3 + $0x1f0] sm:$0xff] }
  0x29   : > { %v628_v32 = vld [vmem:[%s3346_s3 + $0x200] sm:$0xff]  ;;  %625 = vst [vmem:[%s3351_s4 + $0xf0] sm:$0xff] %v624_v30  ;;  %627 = vst [vmem:[%s3351_s4 + $0xf8] sm:$0xff] %v626_v31  ;;  %v630_v33 = vld [vmem:[%s3346_s3 + $0x210] sm:$0xff] }
  0x2a   : > { %629 = vst [vmem:[%s3351_s4 + $0x100] sm:$0xff] %v628_v32  ;;  %v632_v34 = vld [vmem:[%s3346_s3 + $0x220] sm:$0xff]  ;;  %v634_v35 = vld [vmem:[%s3346_s3 + $0x230] sm:$0xff]  ;;  %631 = vst [vmem:[%s3351_s4 + $0x108] sm:$0xff] %v630_v33 }
  0x2b   : > { %633 = vst [vmem:[%s3351_s4 + $0x110] sm:$0xff] %v632_v34  ;;  %635 = vst [vmem:[%s3351_s4 + $0x118] sm:$0xff] %v634_v35  ;;  %v636_v36 = vld [vmem:[%s3346_s3 + $0x240] sm:$0xff]  ;;  %v638_v37 = vld [vmem:[%s3346_s3 + $0x250] sm:$0xff] }
  0x2c   : > { %v640_v38 = vld [vmem:[%s3346_s3 + $0x260] sm:$0xff]  ;;  %637 = vst [vmem:[%s3351_s4 + $0x120] sm:$0xff] %v636_v36  ;;  %639 = vst [vmem:[%s3351_s4 + $0x128] sm:$0xff] %v638_v37  ;;  %v642_v39 = vld [vmem:[%s3346_s3 + $0x270] sm:$0xff] }
  0x2d   : > { %641 = vst [vmem:[%s3351_s4 + $0x130] sm:$0xff] %v640_v38  ;;  %v644_v40 = vld [vmem:[%s3346_s3 + $0x280] sm:$0xff]  ;;  %v646_v41 = vld [vmem:[%s3346_s3 + $0x290] sm:$0xff]  ;;  %643 = vst [vmem:[%s3351_s4 + $0x138] sm:$0xff] %v642_v39 }
  0x2e   : > { %645 = vst [vmem:[%s3351_s4 + $0x140] sm:$0xff] %v644_v40  ;;  %647 = vst [vmem:[%s3351_s4 + $0x148] sm:$0xff] %v646_v41  ;;  %v648_v42 = vld [vmem:[%s3346_s3 + $0x2a0] sm:$0xff]  ;;  %v650_v43 = vld [vmem:[%s3346_s3 + $0x2b0] sm:$0xff] }
  0x2f   : > { %v652_v44 = vld [vmem:[%s3346_s3 + $0x2c0] sm:$0xff]  ;;  %649 = vst [vmem:[%s3351_s4 + $0x150] sm:$0xff] %v648_v42  ;;  %651 = vst [vmem:[%s3351_s4 + $0x158] sm:$0xff] %v650_v43  ;;  %v654_v45 = vld [vmem:[%s3346_s3 + $0x2d0] sm:$0xff] }
  0x30   : > { %653 = vst [vmem:[%s3351_s4 + $0x160] sm:$0xff] %v652_v44  ;;  %v656_v46 = vld [vmem:[%s3346_s3 + $0x2e0] sm:$0xff]  ;;  %v658_v47 = vld [vmem:[%s3346_s3 + $0x2f0] sm:$0xff]  ;;  %655 = vst [vmem:[%s3351_s4 + $0x168] sm:$0xff] %v654_v45 }
  0x31   : > { %657 = vst [vmem:[%s3351_s4 + $0x170] sm:$0xff] %v656_v46  ;;  %659 = vst [vmem:[%s3351_s4 + $0x178] sm:$0xff] %v658_v47  ;;  %v660_v48 = vld [vmem:[%s3346_s3 + $0x300] sm:$0xff]  ;;  %v662_v49 = vld [vmem:[%s3346_s3 + $0x310] sm:$0xff] }
  0x32   : > { %v664_v50 = vld [vmem:[%s3346_s3 + $0x320] sm:$0xff]  ;;  %661 = vst [vmem:[%s3351_s4 + $0x180] sm:$0xff] %v660_v48  ;;  %663 = vst [vmem:[%s3351_s4 + $0x188] sm:$0xff] %v662_v49  ;;  %v666_v51 = vld [vmem:[%s3346_s3 + $0x330] sm:$0xff] }
  0x33   : > { %665 = vst [vmem:[%s3351_s4 + $0x190] sm:$0xff] %v664_v50  ;;  %v668_v52 = vld [vmem:[%s3346_s3 + $0x340] sm:$0xff]  ;;  %v670_v53 = vld [vmem:[%s3346_s3 + $0x350] sm:$0xff]  ;;  %667 = vst [vmem:[%s3351_s4 + $0x198] sm:$0xff] %v666_v51 }
  0x34   : > { %669 = vst [vmem:[%s3351_s4 + $0x1a0] sm:$0xff] %v668_v52  ;;  %671 = vst [vmem:[%s3351_s4 + $0x1a8] sm:$0xff] %v670_v53  ;;  %v672_v54 = vld [vmem:[%s3346_s3 + $0x360] sm:$0xff]  ;;  %v674_v55 = vld [vmem:[%s3346_s3 + $0x370] sm:$0xff] }
  0x35   : > { %v676_v56 = vld [vmem:[%s3346_s3 + $0x380] sm:$0xff]  ;;  %673 = vst [vmem:[%s3351_s4 + $0x1b0] sm:$0xff] %v672_v54  ;;  %675 = vst [vmem:[%s3351_s4 + $0x1b8] sm:$0xff] %v674_v55  ;;  %v678_v57 = vld [vmem:[%s3346_s3 + $0x390] sm:$0xff] }
  0x36   : > { %677 = vst [vmem:[%s3351_s4 + $0x1c0] sm:$0xff] %v676_v56  ;;  %v680_v58 = vld [vmem:[%s3346_s3 + $0x3a0] sm:$0xff]  ;;  %v682_v59 = vld [vmem:[%s3346_s3 + $0x3b0] sm:$0xff]  ;;  %679 = vst [vmem:[%s3351_s4 + $0x1c8] sm:$0xff] %v678_v57 }
  0x37   : > { %681 = vst [vmem:[%s3351_s4 + $0x1d0] sm:$0xff] %v680_v58  ;;  %683 = vst [vmem:[%s3351_s4 + $0x1d8] sm:$0xff] %v682_v59  ;;  %v684_v60 = vld [vmem:[%s3346_s3 + $0x3c0] sm:$0xff]  ;;  %v686_v61 = vld [vmem:[%s3346_s3 + $0x3d0] sm:$0xff] }
  0x38   : > { %v688_v62 = vld [vmem:[%s3346_s3 + $0x3e0] sm:$0xff]  ;;  %685 = vst [vmem:[%s3351_s4 + $0x1e0] sm:$0xff] %v684_v60  ;;  %687 = vst [vmem:[%s3351_s4 + $0x1e8] sm:$0xff] %v686_v61  ;;  %v690_v63 = vld [vmem:[%s3346_s3 + $0x3f0] sm:$0xff] }
  0x39   : > { %689 = vst [vmem:[%s3351_s4 + $0x1f0] sm:$0xff] %v688_v62  ;;  %v692_v0 = vld [vmem:[%s3346_s3 + $0x400] sm:$0xff]  ;;  %v694_v1 = vld [vmem:[%s3346_s3 + $0x410] sm:$0xff]  ;;  %691 = vst [vmem:[%s3351_s4 + $0x1f8] sm:$0xff] %v690_v63 }
  0x3a   : > { %693 = vst [vmem:[%s3351_s4 + $0x200] sm:$0xff] %v692_v0  ;;  %695 = vst [vmem:[%s3351_s4 + $0x208] sm:$0xff] %v694_v1  ;;  %v696_v2 = vld [vmem:[%s3346_s3 + $0x420] sm:$0xff]  ;;  %v698_v3 = vld [vmem:[%s3346_s3 + $0x430] sm:$0xff] }
  0x3b   : > { %v700_v4 = vld [vmem:[%s3346_s3 + $0x440] sm:$0xff]  ;;  %697 = vst [vmem:[%s3351_s4 + $0x210] sm:$0xff] %v696_v2  ;;  %699 = vst [vmem:[%s3351_s4 + $0x218] sm:$0xff] %v698_v3  ;;  %v702_v5 = vld [vmem:[%s3346_s3 + $0x450] sm:$0xff] }
  0x3c   : > { %701 = vst [vmem:[%s3351_s4 + $0x220] sm:$0xff] %v700_v4  ;;  %v704_v6 = vld [vmem:[%s3346_s3 + $0x460] sm:$0xff]  ;;  %v706_v7 = vld [vmem:[%s3346_s3 + $0x470] sm:$0xff]  ;;  %703 = vst [vmem:[%s3351_s4 + $0x228] sm:$0xff] %v702_v5 }
  0x3d   : > { %705 = vst [vmem:[%s3351_s4 + $0x230] sm:$0xff] %v704_v6  ;;  %707 = vst [vmem:[%s3351_s4 + $0x238] sm:$0xff] %v706_v7  ;;  %v708_v8 = vld [vmem:[%s3346_s3 + $0x480] sm:$0xff]  ;;  %v710_v9 = vld [vmem:[%s3346_s3 + $0x490] sm:$0xff] }
  0x3e   : > { %v712_v10 = vld [vmem:[%s3346_s3 + $0x4a0] sm:$0xff]  ;;  %709 = vst [vmem:[%s3351_s4 + $0x240] sm:$0xff] %v708_v8  ;;  %711 = vst [vmem:[%s3351_s4 + $0x248] sm:$0xff] %v710_v9  ;;  %v714_v11 = vld [vmem:[%s3346_s3 + $0x4b0] sm:$0xff] }
  0x3f   : > { %713 = vst [vmem:[%s3351_s4 + $0x250] sm:$0xff] %v712_v10  ;;  %v716_v12 = vld [vmem:[%s3346_s3 + $0x4c0] sm:$0xff]  ;;  %v718_v13 = vld [vmem:[%s3346_s3 + $0x4d0] sm:$0xff]  ;;  %715 = vst [vmem:[%s3351_s4 + $0x258] sm:$0xff] %v714_v11 }
  0x40   : > { %717 = vst [vmem:[%s3351_s4 + $0x260] sm:$0xff] %v716_v12  ;;  %719 = vst [vmem:[%s3351_s4 + $0x268] sm:$0xff] %v718_v13  ;;  %v720_v14 = vld [vmem:[%s3346_s3 + $0x4e0] sm:$0xff]  ;;  %v722_v15 = vld [vmem:[%s3346_s3 + $0x4f0] sm:$0xff] }
  0x41   : > { %v724_v16 = vld [vmem:[%s3346_s3 + $0x500] sm:$0xff]  ;;  %721 = vst [vmem:[%s3351_s4 + $0x270] sm:$0xff] %v720_v14  ;;  %723 = vst [vmem:[%s3351_s4 + $0x278] sm:$0xff] %v722_v15  ;;  %v726_v17 = vld [vmem:[%s3346_s3 + $0x510] sm:$0xff] }
  0x42   : > { %725 = vst [vmem:[%s3351_s4 + $0x280] sm:$0xff] %v724_v16  ;;  %v728_v18 = vld [vmem:[%s3346_s3 + $0x520] sm:$0xff]  ;;  %v730_v19 = vld [vmem:[%s3346_s3 + $0x530] sm:$0xff]  ;;  %727 = vst [vmem:[%s3351_s4 + $0x288] sm:$0xff] %v726_v17 }
  0x43   : > { %729 = vst [vmem:[%s3351_s4 + $0x290] sm:$0xff] %v728_v18  ;;  %731 = vst [vmem:[%s3351_s4 + $0x298] sm:$0xff] %v730_v19  ;;  %v732_v20 = vld [vmem:[%s3346_s3 + $0x540] sm:$0xff]  ;;  %v734_v21 = vld [vmem:[%s3346_s3 + $0x550] sm:$0xff] }
  0x44   : > { %v736_v22 = vld [vmem:[%s3346_s3 + $0x560] sm:$0xff]  ;;  %733 = vst [vmem:[%s3351_s4 + $0x2a0] sm:$0xff] %v732_v20  ;;  %735 = vst [vmem:[%s3351_s4 + $0x2a8] sm:$0xff] %v734_v21  ;;  %v738_v23 = vld [vmem:[%s3346_s3 + $0x570] sm:$0xff] }
  0x45   : > { %737 = vst [vmem:[%s3351_s4 + $0x2b0] sm:$0xff] %v736_v22  ;;  %v740_v24 = vld [vmem:[%s3346_s3 + $0x580] sm:$0xff]  ;;  %v742_v25 = vld [vmem:[%s3346_s3 + $0x590] sm:$0xff]  ;;  %739 = vst [vmem:[%s3351_s4 + $0x2b8] sm:$0xff] %v738_v23 }
  0x46   : > { %741 = vst [vmem:[%s3351_s4 + $0x2c0] sm:$0xff] %v740_v24  ;;  %743 = vst [vmem:[%s3351_s4 + $0x2c8] sm:$0xff] %v742_v25  ;;  %v744_v26 = vld [vmem:[%s3346_s3 + $0x5a0] sm:$0xff]  ;;  %v746_v27 = vld [vmem:[%s3346_s3 + $0x5b0] sm:$0xff] }
  0x47   : > { %v748_v28 = vld [vmem:[%s3346_s3 + $0x5c0] sm:$0xff]  ;;  %745 = vst [vmem:[%s3351_s4 + $0x2d0] sm:$0xff] %v744_v26  ;;  %747 = vst [vmem:[%s3351_s4 + $0x2d8] sm:$0xff] %v746_v27  ;;  %v750_v29 = vld [vmem:[%s3346_s3 + $0x5d0] sm:$0xff] }
  0x48   : > { %749 = vst [vmem:[%s3351_s4 + $0x2e0] sm:$0xff] %v748_v28  ;;  %v752_v30 = vld [vmem:[%s3346_s3 + $0x5e0] sm:$0xff]  ;;  %v754_v31 = vld [vmem:[%s3346_s3 + $0x5f0] sm:$0xff]  ;;  %751 = vst [vmem:[%s3351_s4 + $0x2e8] sm:$0xff] %v750_v29 }
  0x49   : > { %753 = vst [vmem:[%s3351_s4 + $0x2f0] sm:$0xff] %v752_v30  ;;  %755 = vst [vmem:[%s3351_s4 + $0x2f8] sm:$0xff] %v754_v31  ;;  %v756_v32 = vld [vmem:[%s3346_s3 + $0x600] sm:$0xff]  ;;  %v758_v33 = vld [vmem:[%s3346_s3 + $0x610] sm:$0xff] }
  0x4a   : > { %v760_v34 = vld [vmem:[%s3346_s3 + $0x620] sm:$0xff]  ;;  %757 = vst [vmem:[%s3351_s4 + $0x300] sm:$0xff] %v756_v32  ;;  %759 = vst [vmem:[%s3351_s4 + $0x308] sm:$0xff] %v758_v33  ;;  %v762_v35 = vld [vmem:[%s3346_s3 + $0x630] sm:$0xff] }
  0x4b   : > { %761 = vst [vmem:[%s3351_s4 + $0x310] sm:$0xff] %v760_v34  ;;  %v764_v36 = vld [vmem:[%s3346_s3 + $0x640] sm:$0xff]  ;;  %v766_v37 = vld [vmem:[%s3346_s3 + $0x650] sm:$0xff]  ;;  %763 = vst [vmem:[%s3351_s4 + $0x318] sm:$0xff] %v762_v35 }
  0x4c   : > { %765 = vst [vmem:[%s3351_s4 + $0x320] sm:$0xff] %v764_v36  ;;  %767 = vst [vmem:[%s3351_s4 + $0x328] sm:$0xff] %v766_v37  ;;  %v768_v38 = vld [vmem:[%s3346_s3 + $0x660] sm:$0xff]  ;;  %v770_v39 = vld [vmem:[%s3346_s3 + $0x670] sm:$0xff] }
  0x4d   : > { %v772_v40 = vld [vmem:[%s3346_s3 + $0x680] sm:$0xff]  ;;  %769 = vst [vmem:[%s3351_s4 + $0x330] sm:$0xff] %v768_v38  ;;  %771 = vst [vmem:[%s3351_s4 + $0x338] sm:$0xff] %v770_v39  ;;  %v774_v41 = vld [vmem:[%s3346_s3 + $0x690] sm:$0xff] }
  0x4e   : > { %773 = vst [vmem:[%s3351_s4 + $0x340] sm:$0xff] %v772_v40  ;;  %v776_v42 = vld [vmem:[%s3346_s3 + $0x6a0] sm:$0xff]  ;;  %v778_v43 = vld [vmem:[%s3346_s3 + $0x6b0] sm:$0xff]  ;;  %775 = vst [vmem:[%s3351_s4 + $0x348] sm:$0xff] %v774_v41 }
  0x4f   : > { %777 = vst [vmem:[%s3351_s4 + $0x350] sm:$0xff] %v776_v42  ;;  %779 = vst [vmem:[%s3351_s4 + $0x358] sm:$0xff] %v778_v43  ;;  %v780_v44 = vld [vmem:[%s3346_s3 + $0x6c0] sm:$0xff]  ;;  %v782_v45 = vld [vmem:[%s3346_s3 + $0x6d0] sm:$0xff] }
  0x50   : > { %v784_v46 = vld [vmem:[%s3346_s3 + $0x6e0] sm:$0xff]  ;;  %781 = vst [vmem:[%s3351_s4 + $0x360] sm:$0xff] %v780_v44  ;;  %783 = vst [vmem:[%s3351_s4 + $0x368] sm:$0xff] %v782_v45  ;;  %v786_v47 = vld [vmem:[%s3346_s3 + $0x6f0] sm:$0xff] }
  0x51   : > { %785 = vst [vmem:[%s3351_s4 + $0x370] sm:$0xff] %v784_v46  ;;  %v788_v48 = vld [vmem:[%s3346_s3 + $0x700] sm:$0xff]  ;;  %v790_v49 = vld [vmem:[%s3346_s3 + $0x710] sm:$0xff]  ;;  %787 = vst [vmem:[%s3351_s4 + $0x378] sm:$0xff] %v786_v47 }
  0x52   : > { %789 = vst [vmem:[%s3351_s4 + $0x380] sm:$0xff] %v788_v48  ;;  %791 = vst [vmem:[%s3351_s4 + $0x388] sm:$0xff] %v790_v49  ;;  %v792_v50 = vld [vmem:[%s3346_s3 + $0x720] sm:$0xff]  ;;  %v794_v51 = vld [vmem:[%s3346_s3 + $0x730] sm:$0xff] }
  0x53   : > { %v796_v52 = vld [vmem:[%s3346_s3 + $0x740] sm:$0xff]  ;;  %793 = vst [vmem:[%s3351_s4 + $0x390] sm:$0xff] %v792_v50  ;;  %795 = vst [vmem:[%s3351_s4 + $0x398] sm:$0xff] %v794_v51  ;;  %v798_v53 = vld [vmem:[%s3346_s3 + $0x750] sm:$0xff] }
  0x54   : > { %797 = vst [vmem:[%s3351_s4 + $0x3a0] sm:$0xff] %v796_v52  ;;  %v800_v54 = vld [vmem:[%s3346_s3 + $0x760] sm:$0xff]  ;;  %v802_v55 = vld [vmem:[%s3346_s3 + $0x770] sm:$0xff]  ;;  %799 = vst [vmem:[%s3351_s4 + $0x3a8] sm:$0xff] %v798_v53 }
  0x55   : > { %801 = vst [vmem:[%s3351_s4 + $0x3b0] sm:$0xff] %v800_v54  ;;  %803 = vst [vmem:[%s3351_s4 + $0x3b8] sm:$0xff] %v802_v55  ;;  %v804_v56 = vld [vmem:[%s3346_s3 + $0x780] sm:$0xff]  ;;  %v806_v57 = vld [vmem:[%s3346_s3 + $0x790] sm:$0xff] }
  0x56   : > { %v808_v58 = vld [vmem:[%s3346_s3 + $0x7a0] sm:$0xff]  ;;  %805 = vst [vmem:[%s3351_s4 + $0x3c0] sm:$0xff] %v804_v56  ;;  %807 = vst [vmem:[%s3351_s4 + $0x3c8] sm:$0xff] %v806_v57  ;;  %v810_v59 = vld [vmem:[%s3346_s3 + $0x7b0] sm:$0xff] }
  0x57   : > { %809 = vst [vmem:[%s3351_s4 + $0x3d0] sm:$0xff] %v808_v58  ;;  %v812_v60 = vld [vmem:[%s3346_s3 + $0x7c0] sm:$0xff]  ;;  %v814_v61 = vld [vmem:[%s3346_s3 + $0x7d0] sm:$0xff]  ;;  %811 = vst [vmem:[%s3351_s4 + $0x3d8] sm:$0xff] %v810_v59 }
  0x58   : > { %813 = vst [vmem:[%s3351_s4 + $0x3e0] sm:$0xff] %v812_v60  ;;  %815 = vst [vmem:[%s3351_s4 + $0x3e8] sm:$0xff] %v814_v61  ;;  %v816_v62 = vld [vmem:[%s3346_s3 + $0x7e0] sm:$0xff]  ;;  %v818_v63 = vld [vmem:[%s3346_s3 + $0x7f0] sm:$0xff] }
  0x59   : > { %v820_v0 = vld [vmem:[%s3346_s3 + $0x800] sm:$0xff]  ;;  %817 = vst [vmem:[%s3351_s4 + $0x3f0] sm:$0xff] %v816_v62  ;;  %819 = vst [vmem:[%s3351_s4 + $0x3f8] sm:$0xff] %v818_v63  ;;  %v822_v1 = vld [vmem:[%s3346_s3 + $0x810] sm:$0xff] }
  0x5a   : > { %821 = vst [vmem:[%s3351_s4 + $0x400] sm:$0xff] %v820_v0  ;;  %v824_v2 = vld [vmem:[%s3346_s3 + $0x820] sm:$0xff]  ;;  %v826_v3 = vld [vmem:[%s3346_s3 + $0x830] sm:$0xff]  ;;  %823 = vst [vmem:[%s3351_s4 + $0x408] sm:$0xff] %v822_v1 }
  0x5b   : > { %825 = vst [vmem:[%s3351_s4 + $0x410] sm:$0xff] %v824_v2  ;;  %827 = vst [vmem:[%s3351_s4 + $0x418] sm:$0xff] %v826_v3  ;;  %v828_v4 = vld [vmem:[%s3346_s3 + $0x840] sm:$0xff]  ;;  %v830_v5 = vld [vmem:[%s3346_s3 + $0x850] sm:$0xff] }
  0x5c   : > { %v832_v6 = vld [vmem:[%s3346_s3 + $0x860] sm:$0xff]  ;;  %829 = vst [vmem:[%s3351_s4 + $0x420] sm:$0xff] %v828_v4  ;;  %831 = vst [vmem:[%s3351_s4 + $0x428] sm:$0xff] %v830_v5  ;;  %v834_v7 = vld [vmem:[%s3346_s3 + $0x870] sm:$0xff] }
  0x5d   : > { %833 = vst [vmem:[%s3351_s4 + $0x430] sm:$0xff] %v832_v6  ;;  %v836_v8 = vld [vmem:[%s3346_s3 + $0x880] sm:$0xff]  ;;  %v838_v9 = vld [vmem:[%s3346_s3 + $0x890] sm:$0xff]  ;;  %835 = vst [vmem:[%s3351_s4 + $0x438] sm:$0xff] %v834_v7 }
  0x5e   : > { %837 = vst [vmem:[%s3351_s4 + $0x440] sm:$0xff] %v836_v8  ;;  %839 = vst [vmem:[%s3351_s4 + $0x448] sm:$0xff] %v838_v9  ;;  %v840_v10 = vld [vmem:[%s3346_s3 + $0x8a0] sm:$0xff]  ;;  %v842_v11 = vld [vmem:[%s3346_s3 + $0x8b0] sm:$0xff] }
  0x5f   : > { %v844_v12 = vld [vmem:[%s3346_s3 + $0x8c0] sm:$0xff]  ;;  %841 = vst [vmem:[%s3351_s4 + $0x450] sm:$0xff] %v840_v10  ;;  %843 = vst [vmem:[%s3351_s4 + $0x458] sm:$0xff] %v842_v11  ;;  %v846_v13 = vld [vmem:[%s3346_s3 + $0x8d0] sm:$0xff] }
  0x60   : > { %845 = vst [vmem:[%s3351_s4 + $0x460] sm:$0xff] %v844_v12  ;;  %v848_v14 = vld [vmem:[%s3346_s3 + $0x8e0] sm:$0xff]  ;;  %v850_v15 = vld [vmem:[%s3346_s3 + $0x8f0] sm:$0xff]  ;;  %847 = vst [vmem:[%s3351_s4 + $0x468] sm:$0xff] %v846_v13 }
  0x61   : > { %849 = vst [vmem:[%s3351_s4 + $0x470] sm:$0xff] %v848_v14  ;;  %851 = vst [vmem:[%s3351_s4 + $0x478] sm:$0xff] %v850_v15  ;;  %v852_v16 = vld [vmem:[%s3346_s3 + $0x900] sm:$0xff]  ;;  %v854_v17 = vld [vmem:[%s3346_s3 + $0x910] sm:$0xff] }
  0x62   : > { %v856_v18 = vld [vmem:[%s3346_s3 + $0x920] sm:$0xff]  ;;  %853 = vst [vmem:[%s3351_s4 + $0x480] sm:$0xff] %v852_v16  ;;  %855 = vst [vmem:[%s3351_s4 + $0x488] sm:$0xff] %v854_v17  ;;  %v858_v19 = vld [vmem:[%s3346_s3 + $0x930] sm:$0xff] }
  0x63   : > { %857 = vst [vmem:[%s3351_s4 + $0x490] sm:$0xff] %v856_v18  ;;  %v860_v20 = vld [vmem:[%s3346_s3 + $0x940] sm:$0xff]  ;;  %v862_v21 = vld [vmem:[%s3346_s3 + $0x950] sm:$0xff]  ;;  %859 = vst [vmem:[%s3351_s4 + $0x498] sm:$0xff] %v858_v19 }
  0x64   : > { %861 = vst [vmem:[%s3351_s4 + $0x4a0] sm:$0xff] %v860_v20  ;;  %863 = vst [vmem:[%s3351_s4 + $0x4a8] sm:$0xff] %v862_v21  ;;  %v864_v22 = vld [vmem:[%s3346_s3 + $0x960] sm:$0xff]  ;;  %v866_v23 = vld [vmem:[%s3346_s3 + $0x970] sm:$0xff] }
  0x65   : > { %v868_v24 = vld [vmem:[%s3346_s3 + $0x980] sm:$0xff]  ;;  %865 = vst [vmem:[%s3351_s4 + $0x4b0] sm:$0xff] %v864_v22  ;;  %867 = vst [vmem:[%s3351_s4 + $0x4b8] sm:$0xff] %v866_v23  ;;  %v870_v25 = vld [vmem:[%s3346_s3 + $0x990] sm:$0xff] }
  0x66   : > { %869 = vst [vmem:[%s3351_s4 + $0x4c0] sm:$0xff] %v868_v24  ;;  %v872_v26 = vld [vmem:[%s3346_s3 + $0x9a0] sm:$0xff]  ;;  %v874_v27 = vld [vmem:[%s3346_s3 + $0x9b0] sm:$0xff]  ;;  %871 = vst [vmem:[%s3351_s4 + $0x4c8] sm:$0xff] %v870_v25 }
  0x67   : > { %873 = vst [vmem:[%s3351_s4 + $0x4d0] sm:$0xff] %v872_v26  ;;  %875 = vst [vmem:[%s3351_s4 + $0x4d8] sm:$0xff] %v874_v27  ;;  %v876_v28 = vld [vmem:[%s3346_s3 + $0x9c0] sm:$0xff]  ;;  %v878_v29 = vld [vmem:[%s3346_s3 + $0x9d0] sm:$0xff] }
  0x68   : > { %v880_v30 = vld [vmem:[%s3346_s3 + $0x9e0] sm:$0xff]  ;;  %877 = vst [vmem:[%s3351_s4 + $0x4e0] sm:$0xff] %v876_v28  ;;  %879 = vst [vmem:[%s3351_s4 + $0x4e8] sm:$0xff] %v878_v29  ;;  %v882_v31 = vld [vmem:[%s3346_s3 + $0x9f0] sm:$0xff] }
  0x69   : > { %881 = vst [vmem:[%s3351_s4 + $0x4f0] sm:$0xff] %v880_v30  ;;  %v884_v32 = vld [vmem:[%s3346_s3 + $0xa00] sm:$0xff]  ;;  %v886_v33 = vld [vmem:[%s3346_s3 + $0xa10] sm:$0xff]  ;;  %883 = vst [vmem:[%s3351_s4 + $0x4f8] sm:$0xff] %v882_v31 }
  0x6a   : > { %885 = vst [vmem:[%s3351_s4 + $0x500] sm:$0xff] %v884_v32  ;;  %887 = vst [vmem:[%s3351_s4 + $0x508] sm:$0xff] %v886_v33  ;;  %v888_v34 = vld [vmem:[%s3346_s3 + $0xa20] sm:$0xff]  ;;  %v890_v35 = vld [vmem:[%s3346_s3 + $0xa30] sm:$0xff] }
  0x6b   : > { %v892_v36 = vld [vmem:[%s3346_s3 + $0xa40] sm:$0xff]  ;;  %889 = vst [vmem:[%s3351_s4 + $0x510] sm:$0xff] %v888_v34  ;;  %891 = vst [vmem:[%s3351_s4 + $0x518] sm:$0xff] %v890_v35  ;;  %v894_v37 = vld [vmem:[%s3346_s3 + $0xa50] sm:$0xff] }
  0x6c   : > { %893 = vst [vmem:[%s3351_s4 + $0x520] sm:$0xff] %v892_v36  ;;  %v896_v38 = vld [vmem:[%s3346_s3 + $0xa60] sm:$0xff]  ;;  %v898_v39 = vld [vmem:[%s3346_s3 + $0xa70] sm:$0xff]  ;;  %895 = vst [vmem:[%s3351_s4 + $0x528] sm:$0xff] %v894_v37 }
  0x6d   : > { %897 = vst [vmem:[%s3351_s4 + $0x530] sm:$0xff] %v896_v38  ;;  %899 = vst [vmem:[%s3351_s4 + $0x538] sm:$0xff] %v898_v39  ;;  %v900_v40 = vld [vmem:[%s3346_s3 + $0xa80] sm:$0xff]  ;;  %v902_v41 = vld [vmem:[%s3346_s3 + $0xa90] sm:$0xff] }
  0x6e   : > { %v904_v42 = vld [vmem:[%s3346_s3 + $0xaa0] sm:$0xff]  ;;  %901 = vst [vmem:[%s3351_s4 + $0x540] sm:$0xff] %v900_v40  ;;  %903 = vst [vmem:[%s3351_s4 + $0x548] sm:$0xff] %v902_v41  ;;  %v906_v43 = vld [vmem:[%s3346_s3 + $0xab0] sm:$0xff] }
  0x6f   : > { %905 = vst [vmem:[%s3351_s4 + $0x550] sm:$0xff] %v904_v42  ;;  %v908_v44 = vld [vmem:[%s3346_s3 + $0xac0] sm:$0xff]  ;;  %v910_v45 = vld [vmem:[%s3346_s3 + $0xad0] sm:$0xff]  ;;  %907 = vst [vmem:[%s3351_s4 + $0x558] sm:$0xff] %v906_v43 }
  0x70   : > { %909 = vst [vmem:[%s3351_s4 + $0x560] sm:$0xff] %v908_v44  ;;  %911 = vst [vmem:[%s3351_s4 + $0x568] sm:$0xff] %v910_v45  ;;  %v912_v46 = vld [vmem:[%s3346_s3 + $0xae0] sm:$0xff]  ;;  %v914_v47 = vld [vmem:[%s3346_s3 + $0xaf0] sm:$0xff] }
  0x71   : > { %v916_v48 = vld [vmem:[%s3346_s3 + $0xb00] sm:$0xff]  ;;  %913 = vst [vmem:[%s3351_s4 + $0x570] sm:$0xff] %v912_v46  ;;  %915 = vst [vmem:[%s3351_s4 + $0x578] sm:$0xff] %v914_v47  ;;  %v918_v49 = vld [vmem:[%s3346_s3 + $0xb10] sm:$0xff] }
  0x72   : > { %917 = vst [vmem:[%s3351_s4 + $0x580] sm:$0xff] %v916_v48  ;;  %v920_v50 = vld [vmem:[%s3346_s3 + $0xb20] sm:$0xff]  ;;  %v922_v51 = vld [vmem:[%s3346_s3 + $0xb30] sm:$0xff]  ;;  %919 = vst [vmem:[%s3351_s4 + $0x588] sm:$0xff] %v918_v49 }
  0x73   : > { %921 = vst [vmem:[%s3351_s4 + $0x590] sm:$0xff] %v920_v50  ;;  %923 = vst [vmem:[%s3351_s4 + $0x598] sm:$0xff] %v922_v51  ;;  %v924_v52 = vld [vmem:[%s3346_s3 + $0xb40] sm:$0xff]  ;;  %v926_v53 = vld [vmem:[%s3346_s3 + $0xb50] sm:$0xff] }
  0x74   : > { %v928_v54 = vld [vmem:[%s3346_s3 + $0xb60] sm:$0xff]  ;;  %925 = vst [vmem:[%s3351_s4 + $0x5a0] sm:$0xff] %v924_v52  ;;  %927 = vst [vmem:[%s3351_s4 + $0x5a8] sm:$0xff] %v926_v53  ;;  %v930_v55 = vld [vmem:[%s3346_s3 + $0xb70] sm:$0xff] }
  0x75   : > { %929 = vst [vmem:[%s3351_s4 + $0x5b0] sm:$0xff] %v928_v54  ;;  %v932_v56 = vld [vmem:[%s3346_s3 + $0xb80] sm:$0xff]  ;;  %v934_v57 = vld [vmem:[%s3346_s3 + $0xb90] sm:$0xff]  ;;  %931 = vst [vmem:[%s3351_s4 + $0x5b8] sm:$0xff] %v930_v55 }
  0x76   : > { %933 = vst [vmem:[%s3351_s4 + $0x5c0] sm:$0xff] %v932_v56  ;;  %935 = vst [vmem:[%s3351_s4 + $0x5c8] sm:$0xff] %v934_v57  ;;  %v936_v58 = vld [vmem:[%s3346_s3 + $0xba0] sm:$0xff]  ;;  %v938_v59 = vld [vmem:[%s3346_s3 + $0xbb0] sm:$0xff] }
  0x77   : > { %v940_v60 = vld [vmem:[%s3346_s3 + $0xbc0] sm:$0xff]  ;;  %937 = vst [vmem:[%s3351_s4 + $0x5d0] sm:$0xff] %v936_v58  ;;  %939 = vst [vmem:[%s3351_s4 + $0x5d8] sm:$0xff] %v938_v59  ;;  %v942_v61 = vld [vmem:[%s3346_s3 + $0xbd0] sm:$0xff] }
  0x78   : > { %941 = vst [vmem:[%s3351_s4 + $0x5e0] sm:$0xff] %v940_v60  ;;  %v944_v62 = vld [vmem:[%s3346_s3 + $0xbe0] sm:$0xff]  ;;  %v946_v63 = vld [vmem:[%s3346_s3 + $0xbf0] sm:$0xff]  ;;  %943 = vst [vmem:[%s3351_s4 + $0x5e8] sm:$0xff] %v942_v61 }
  0x79   : > { %945 = vst [vmem:[%s3351_s4 + $0x5f0] sm:$0xff] %v944_v62  ;;  %947 = vst [vmem:[%s3351_s4 + $0x5f8] sm:$0xff] %v946_v63 }
  0x7a PF: > { %p2643_p7 = scmp.ge.s32.totalorder %s3266_s15, 1  ;;  %p952_p8 = scmp.lt.s32.totalorder %s3266_s15, 5 }
  0x7c   : > { %p953_p9 = pnand %p2643_p7, %p952_p8 }
  0x7d   : > { %s959_s5 = sand.u32 (!%p953_p9), 1, %s3242_s9   ;;  %s992_s6 = smul.u32 (!%p953_p9), 12, %s3250_s11 }
  0x7e   : > { %956 = sbr.rel (%p953_p9) target bundleno = 566 (0x236), region = 62  ;;  %s2644_s8 = sshll.u32 (!%p953_p9), %s3254_s12, 1 }
  0x7f   : > { %s2863_s7 = smul.u32 (!%p953_p9), 1536, %s959_s5  ;;  %p995_p10 = scmp.lt.s32.totalorder (!%p953_p9), %s992_s6, 23 }
  0x80   : > { %p1006_p11 = scmp.lt.s32.totalorder (!%p953_p9), %s2644_s8, 3  ;;  %p2646_p12 = scmp.ne.s32.totalorder (!%p953_p9), %s3250_s11, 0 }
  0x81   : > { %s3749_s26 = scalar_lea.vmem (!%p953_p9), [#allocation3], %s2863_s7 }
  0x85   : > { %s4029_s6 = smov (!%p995_p10, %s992_s6), 23  ;;  %s4031_s8 = smov (!%p1006_p11, %s2644_s8), 3 }
  0x86   : > { %s3742_s20 = scalar_lea.vmem %s4013_s0, %s4029_s6  ;;  %s2645_s21 = sshll.u32 %s4031_s8, 1  ;;  %v3268_v0 = vmov (!%p2646_p12), 0.0  }
  0x87   : > { %s3747_s25 = scalar_lea.vmem %s4015_s2, %s2645_s21  ;;  %1016 = sbr.rel (%p2646_p12) target bundleno = 142 (0x8e), region = 70  ;;  %1017 = vst [vmem:[#allocation2] sm:$0xf] (!%p2646_p12), %v3268_v0 }
  0x8e PF: > { %v2923_v1 = vld [vmem:[%s3749_s26 + $0x4] ss:$8 sps:$4 sm:$0xff]   ;;  %v2927_v3 = vld [vmem:[%s3749_s26] ss:$8 sps:$4 sm:$0xff]   ;;  %v2929_v5 = vld [vmem:[%s3749_s26 + $0x14] ss:$8 sps:$4 sm:$0xff]   ;;  %v1219_v41 = vlaneseq }
  0x8f   : > { %v2925_v2 = vld [vmem:[%s3749_s26 + $0x304] ss:$8 sps:$4 sm:$0xff]   ;;  %2260 = vmatprep.subr.bf16.mxu1 %v2923_v1  ;;  %v2928_v4 = vld [vmem:[%s3749_s26 + $0x300] ss:$8 sps:$4 sm:$0xff]   ;;  %v2931_v6 = vld [vmem:[%s3749_s26 + $0x314] ss:$8 sps:$4 sm:$0xff]  }
  0x90   : > { %2383 = vmatprep.subr.bf16.mxu0 %v2925_v2  ;;  %2261 = vmatpush1.bf16.msra.mxu1 %v2927_v3  ;;  %v2933_v7 = vld [vmem:[%s3749_s26 + $0x10] ss:$8 sps:$4 sm:$0xff]   ;;  %v2935_v9 = vld [vmem:[%s3749_s26 + $0x24] ss:$8 sps:$4 sm:$0xff]   ;;  %v2939_v11 = vld [vmem:[%s3749_s26 + $0x20] ss:$8 sps:$4 sm:$0xff]  }
  0x91   : > { %2384 = vmatpush1.bf16.msra.mxu0 %v2928_v4  ;;  %2262 = vmatprep.subr.bf16.mxu1 %v2929_v5  ;;  %v2934_v8 = vld [vmem:[%s3749_s26 + $0x310] ss:$8 sps:$4 sm:$0xff]   ;;  %v2937_v10 = vld [vmem:[%s3749_s26 + $0x324] ss:$8 sps:$4 sm:$0xff]   ;;  %v2940_v12 = vld [vmem:[%s3749_s26 + $0x320] ss:$8 sps:$4 sm:$0xff]  }
  0x92   : > { %2385 = vmatprep.subr.bf16.mxu0 %v2931_v6  ;;  %v2941_v13 = vld [vmem:[%s3749_s26 + $0x34] ss:$8 sps:$4 sm:$0xff]   ;;  %v2945_v15 = vld [vmem:[%s3749_s26 + $0x30] ss:$8 sps:$4 sm:$0xff]   ;;  %v2947_v17 = vld [vmem:[%s3749_s26 + $0x44] ss:$8 sps:$4 sm:$0xff]  }
  0x93   : > { %v2943_v14 = vld [vmem:[%s3749_s26 + $0x334] ss:$8 sps:$4 sm:$0xff]   ;;  %v2946_v16 = vld [vmem:[%s3749_s26 + $0x330] ss:$8 sps:$4 sm:$0xff]   ;;  %v2949_v18 = vld [vmem:[%s3749_s26 + $0x344] ss:$8 sps:$4 sm:$0xff]  }
  0x94   : > { %2263 = vmatpush1.bf16.msra.mxu1 %v2933_v7  ;;  %v2951_v19 = vld [vmem:[%s3749_s26 + $0x40] ss:$8 sps:$4 sm:$0xff]   ;;  %v2953_v21 = vld [vmem:[%s3749_s26 + $0x54] ss:$8 sps:$4 sm:$0xff]   ;;  %v2957_v23 = vld [vmem:[%s3749_s26 + $0x50] ss:$8 sps:$4 sm:$0xff]  }
  0x95   : > { %2386 = vmatpush1.bf16.msra.mxu0 %v2934_v8  ;;  %2264 = vmatprep.subr.bf16.mxu1 %v2935_v9  ;;  %v2952_v20 = vld [vmem:[%s3749_s26 + $0x340] ss:$8 sps:$4 sm:$0xff]   ;;  %v2955_v22 = vld [vmem:[%s3749_s26 + $0x354] ss:$8 sps:$4 sm:$0xff]   ;;  %v2958_v24 = vld [vmem:[%s3749_s26 + $0x350] ss:$8 sps:$4 sm:$0xff]  }
  0x96   : > { %2387 = vmatprep.subr.bf16.mxu0 %v2937_v10  ;;  %v2959_v25 = vld [vmem:[%s3749_s26 + $0x64] ss:$8 sps:$4 sm:$0xff]   ;;  %v2963_v27 = vld [vmem:[%s3749_s26 + $0x60] ss:$8 sps:$4 sm:$0xff]   ;;  %v2965_v29 = vld [vmem:[%s3749_s26 + $0x74] ss:$8 sps:$4 sm:$0xff]  }
  0x97   : > { %v2961_v26 = vld [vmem:[%s3749_s26 + $0x364] ss:$8 sps:$4 sm:$0xff]   ;;  %v2964_v28 = vld [vmem:[%s3749_s26 + $0x360] ss:$8 sps:$4 sm:$0xff]   ;;  %v2967_v30 = vld [vmem:[%s3749_s26 + $0x374] ss:$8 sps:$4 sm:$0xff]  }
  0x98   : > { %2265 = vmatpush1.bf16.msra.mxu1 %v2939_v11  ;;  %v2969_v31 = vld [vmem:[%s3749_s26 + $0x70] ss:$8 sps:$4 sm:$0xff]   ;;  %v2971_v33 = vld [vmem:[%s3749_s26 + $0x84] ss:$8 sps:$4 sm:$0xff]   ;;  %v2975_v35 = vld [vmem:[%s3749_s26 + $0x80] ss:$8 sps:$4 sm:$0xff]  }
  0x99   : > { %2388 = vmatpush1.bf16.msra.mxu0 %v2940_v12  ;;  %2266 = vmatprep.subr.bf16.mxu1 %v2941_v13  ;;  %v2970_v32 = vld [vmem:[%s3749_s26 + $0x370] ss:$8 sps:$4 sm:$0xff]   ;;  %v2973_v34 = vld [vmem:[%s3749_s26 + $0x384] ss:$8 sps:$4 sm:$0xff]   ;;  %v2976_v36 = vld [vmem:[%s3749_s26 + $0x380] ss:$8 sps:$4 sm:$0xff]  }
  0x9a   : > { %2389 = vmatprep.subr.bf16.mxu0 %v2943_v14  ;;  %v2977_v37 = vld [vmem:[%s3749_s26 + $0x94] ss:$8 sps:$4 sm:$0xff]   ;;  %v3269_v39 = vmov 1966171168   ;;  %v2981_v42 = vld [vmem:[%s3749_s26 + $0x90] ss:$8 sps:$4 sm:$0xff]  }
  0x9b   : > { %v2979_v38 = vld [vmem:[%s3749_s26 + $0x394] ss:$8 sps:$4 sm:$0xff]   ;;  %v1217_v40 = vunpack.c.l.s4 %v3269_v39  ;;  %v2982_v43 = vld [vmem:[%s3749_s26 + $0x390] ss:$8 sps:$4 sm:$0xff]   ;;  %v2983_v44 = vld [vmem:[%s3749_s26 + $0xa4] ss:$8 sps:$4 sm:$0xff]  }
  0x9c   : > { %2267 = vmatpush1.bf16.msra.mxu1 %v2945_v15  ;;  %v2985_v45 = vld [vmem:[%s3749_s26 + $0x3a4] ss:$8 sps:$4 sm:$0xff]   ;;  %v3794_v47 = vshrl.u32 %v1219_v41, 7  ;;  %v2987_v48 = vld [vmem:[%s3749_s26 + $0xa0] ss:$8 sps:$4 sm:$0xff]   ;;  %p2840_p13 = scmp.ne.s32.totalorder %s3250_s11, 1 }
  0x9d   : > { %2390 = vmatpush1.bf16.msra.mxu0 %v2946_v16  ;;  %2268 = vmatprep.subr.bf16.mxu1 %v2947_v17  ;;  %v1218_v46 = vunpack.c.0.s8 %v1217_v40  ;;  %v2988_v49 = vld [vmem:[%s3749_s26 + $0x3a0] ss:$8 sps:$4 sm:$0xff]   ;;  %v2989_v50 = vld [vmem:[%s3749_s26 + $0xb4] ss:$8 sps:$4 sm:$0xff]   ;;  %v2993_v54 = vld [vmem:[%s3749_s26 + $0xb0] ss:$8 sps:$4 sm:$0xff]  }
  0x9e   : > { %2391 = vmatprep.subr.bf16.mxu0 %v2949_v18  ;;  %v2991_v51 = vld [vmem:[%s3749_s26 + $0x3b4] ss:$8 sps:$4 sm:$0xff]   ;;  %v2994_v57 = vld [vmem:[%s3749_s26 + $0x3b0] ss:$8 sps:$4 sm:$0xff]   ;;  %v2995_v58 = vld [vmem:[%s3749_s26 + $0xc4] ss:$8 sps:$4 sm:$0xff]  }
  0x9f   : > { %v3801_v52 = vsub.s32 %v1218_v46, %v3794_v47  ;;  %v1019_v53 = vld [vmem:[%s3742_s20] sm:$0xff]  ;;  %v2997_v59 = vld [vmem:[%s3749_s26 + $0x3c4] ss:$8 sps:$4 sm:$0xff]   ;;  %v3005_v5 = vld [vmem:[%s3749_s26 + $0xd0] ss:$8 sps:$4 sm:$0xff]  }
  0xa0   : > { %2269 = vmatpush1.bf16.msra.mxu1 %v2951_v19  ;;  %v1215_v55 = vcombine.high %v1019_v53, %v1019_v53  ;;  %v2999_v62 = vld [vmem:[%s3749_s26 + $0xc0] ss:$8 sps:$4 sm:$0xff]   ;;  %v3001_v2 = vld [vmem:[%s3749_s26 + $0xd4] ss:$8 sps:$4 sm:$0xff]   ;;  %v3006_v7 = vld [vmem:[%s3749_s26 + $0x3d0] ss:$8 sps:$4 sm:$0xff]  }
  0xa1   : > { %2392 = vmatpush1.bf16.msra.mxu0 %v2952_v20  ;;  %2270 = vmatprep.subr.bf16.mxu1 %v2953_v21  ;;  %v1222_v56 = vrot.slane %v1019_v53, %v3801_v52  ;;  %v3000_v1 = vld [vmem:[%s3749_s26 + $0x3c0] ss:$8 sps:$4 sm:$0xff]   ;;  %v3003_v3 = vld [vmem:[%s3749_s26 + $0x3d4] ss:$8 sps:$4 sm:$0xff]   ;;  %v3007_v8 = vld [vmem:[%s3749_s26 + $0xe4] ss:$8 sps:$4 sm:$0xff]  }
  0xa2   : > { %2393 = vmatprep.subr.bf16.mxu0 %v2955_v22  ;;  %v1229_v61 = vrot.slane %v1215_v55, %v3801_v52  ;;  %v3009_v9 = vld [vmem:[%s3749_s26 + $0x3e4] ss:$8 sps:$4 sm:$0xff]   ;;  %v3011_v10 = vld [vmem:[%s3749_s26 + $0xe0] ss:$8 sps:$4 sm:$0xff]   ;;  %v3013_v12 = vld [vmem:[%s3749_s26 + $0xf4] ss:$8 sps:$4 sm:$0xff]  }
  0xa3   : > { %v1230_v60 = vcombine.high %v1222_v56, %v1222_v56  ;;  %v3012_v11 = vld [vmem:[%s3749_s26 + $0x3e0] ss:$8 sps:$4 sm:$0xff]   ;;  %v3015_v13 = vld [vmem:[%s3749_s26 + $0x3f4] ss:$8 sps:$4 sm:$0xff]   ;;  %v3017_v14 = vld [vmem:[%s3749_s26 + $0xf0] ss:$8 sps:$4 sm:$0xff]   ;;  %v3837_v20 = vrot.slane %v1222_v56, %v3801_v52 }
  0xa4   : > { %2271 = vmatpush1.bf16.msra.mxu1 %v2957_v23  ;;  %v1231_v0 = vcombine.high %v1229_v61, %v1229_v61  ;;  %v3830_v15 = vrot.slane %v1229_v61, %v3801_v52  ;;  %v3018_v16 = vld [vmem:[%s3749_s26 + $0x3f0] ss:$8 sps:$4 sm:$0xff]   ;;  %v3022_v17 = vld [vmem:[%s3749_s26 + $0x104] ss:$8 sps:$4 sm:$0xff]   ;;  %v3020_v19 = vld [vmem:[%s3749_s26 + $0x100] ss:$8 sps:$4 sm:$0xff]  }
  0xa5   : > { %2394 = vmatpush1.bf16.msra.mxu0 %v2958_v24  ;;  %2272 = vmatprep.subr.bf16.mxu1 %v2959_v25  ;;  %v1252_v63 = vrot.slane %v1230_v60, %v3801_v52  ;;  %v3025_v18 = vld [vmem:[%s3749_s26 + $0x404] ss:$8 sps:$4 sm:$0xff]   ;;  %v3023_v22 = vld [vmem:[%s3749_s26 + $0x400] ss:$8 sps:$4 sm:$0xff]   ;;  %v3028_v23 = vld [vmem:[%s3749_s26 + $0x114] ss:$8 sps:$4 sm:$0xff]  }
  0xa6   : > { %2395 = vmatprep.subr.bf16.mxu0 %v2961_v26  ;;  %v3816_v4 = vrot.slane %v1231_v0, %v3801_v52  ;;  %v1261_v21 = vcombine.high %v3830_v15, %v3830_v15  ;;  %v3031_v24 = vld [vmem:[%s3749_s26 + $0x414] ss:$8 sps:$4 sm:$0xff]   ;;  %v3026_v26 = vld [vmem:[%s3749_s26 + $0x110] ss:$8 sps:$4 sm:$0xff]   ;;  %v3047_v39 = vld [vmem:[%s3749_s26 + $0x440] ss:$8 sps:$4 sm:$0xff]  }
  0xa7   : > { %2292 = vmatprep.mubr.bf16.mxu1 %v1252_v63  ;;  %v1262_v25 = vcombine.high %v1252_v63, %v1252_v63  ;;  %v3052_v40 = vld [vmem:[%s3749_s26 + $0x154] ss:$8 sps:$4 sm:$0xff]   ;;  %v3866_v46 = vld.sshfl [vmem:[%s3742_s20 + $0x8] sm:$0x33 pattern:$0x75316420] }
  0xa8   : > { %2273 = vmatpush1.bf16.msra.mxu1 %v2963_v27  ;;  %v1263_v6 = vcombine.high %v3816_v4, %v3816_v4  ;;  %v3029_v27 = vld [vmem:[%s3749_s26 + $0x410] ss:$8 sps:$4 sm:$0xff]   ;;  %v3055_v41 = vld [vmem:[%s3749_s26 + $0x454] ss:$8 sps:$4 sm:$0xff]   ;;  %v3071_v60 = vld [vmem:[%s3749_s26 + $0x480] ss:$8 sps:$4 sm:$0xff]  }
  0xa9   : > { %2396 = vmatpush1.bf16.msra.mxu0 %v2964_v28  ;;  %2274 = vmatprep.subr.bf16.mxu1 %v2965_v29  ;;  %v3034_v28 = vld [vmem:[%s3749_s26 + $0x124] ss:$8 sps:$4 sm:$0xff]   ;;  %v3067_v53 = vld [vmem:[%s3749_s26 + $0x474] ss:$8 sps:$4 sm:$0xff]   ;;  %v3062_v55 = vld [vmem:[%s3749_s26 + $0x170] ss:$8 sps:$4 sm:$0xff]  }
  0xaa   : > { %2397 = vmatprep.subr.bf16.mxu0 %v2967_v30  ;;  %2415 = vmatprep.mubr.bf16.mxu0 %v1263_v6  ;;  %v3037_v29 = vld [vmem:[%s3749_s26 + $0x424] ss:$8 sps:$4 sm:$0xff]   ;;  %v3032_v30 = vld [vmem:[%s3749_s26 + $0x120] ss:$8 sps:$4 sm:$0xff]   ;;  %v3065_v56 = vld [vmem:[%s3749_s26 + $0x470] ss:$8 sps:$4 sm:$0xff]  }
  0xab   : > { %v3076_v61 = vld [vmem:[%s3749_s26 + $0x194] ss:$8 sps:$4 sm:$0xff]   ;;  %v3074_v63 = vld [vmem:[%s3749_s26 + $0x190] ss:$8 sps:$4 sm:$0xff]  }
  0xac   : > { %2275 = vmatpush1.bf16.msra.mxu1 %v2969_v31  ;;  %v3035_v31 = vld [vmem:[%s3749_s26 + $0x420] ss:$8 sps:$4 sm:$0xff]   ;;  %v3077_v0 = vld [vmem:[%s3749_s26 + $0x490] ss:$8 sps:$4 sm:$0xff]   ;;  %v3088_v6 = vld [vmem:[%s3749_s26 + $0x1b4] ss:$8 sps:$4 sm:$0xff]  }
  0xad   : > { %2398 = vmatpush1.bf16.msra.mxu0 %v2970_v32  ;;  %2276 = vmatprep.subr.bf16.mxu1 %v2971_v33  ;;  %v3040_v32 = vld [vmem:[%s3749_s26 + $0x134] ss:$8 sps:$4 sm:$0xff]  }
  0xae   : > { %2399 = vmatprep.subr.bf16.mxu0 %v2973_v34  ;;  %v3043_v33 = vld [vmem:[%s3749_s26 + $0x434] ss:$8 sps:$4 sm:$0xff]   ;;  %v3038_v34 = vld [vmem:[%s3749_s26 + $0x130] ss:$8 sps:$4 sm:$0xff]  }
  0xb0   : > { %2277 = vmatpush1.bf16.msra.mxu1 %v2975_v35  ;;  %v3041_v35 = vld [vmem:[%s3749_s26 + $0x430] ss:$8 sps:$4 sm:$0xff]  }
  0xb1   : > { %2400 = vmatpush1.bf16.msra.mxu0 %v2976_v36  ;;  %2278 = vmatprep.subr.bf16.mxu1 %v2977_v37  ;;  %v3046_v36 = vld [vmem:[%s3749_s26 + $0x144] ss:$8 sps:$4 sm:$0xff]  }
  0xb2   : > { %2401 = vmatprep.subr.bf16.mxu0 %v2979_v38  ;;  %v3049_v37 = vld [vmem:[%s3749_s26 + $0x444] ss:$8 sps:$4 sm:$0xff]   ;;  %v3044_v38 = vld [vmem:[%s3749_s26 + $0x140] ss:$8 sps:$4 sm:$0xff]  }
  0xb4   : > { %2279 = vmatpush1.bf16.msra.mxu1 %v2981_v42  ;;  %v3050_v42 = vld [vmem:[%s3749_s26 + $0x150] ss:$8 sps:$4 sm:$0xff]  }
  0xb5   : > { %2402 = vmatpush1.bf16.msra.mxu0 %v2982_v43  ;;  %2280 = vmatprep.subr.bf16.mxu1 %v2983_v44  ;;  %v3053_v43 = vld [vmem:[%s3749_s26 + $0x450] ss:$8 sps:$4 sm:$0xff]   ;;  %v3058_v44 = vld [vmem:[%s3749_s26 + $0x164] ss:$8 sps:$4 sm:$0xff]  }
  0xb6   : > { %2403 = vmatprep.subr.bf16.mxu0 %v2985_v45  ;;  %v3061_v45 = vld [vmem:[%s3749_s26 + $0x464] ss:$8 sps:$4 sm:$0xff]  }
  0xb8   : > { %2281 = vmatpush1.bf16.msra.mxu1 %v2987_v48  ;;  %v3056_v48 = vld [vmem:[%s3749_s26 + $0x160] ss:$8 sps:$4 sm:$0xff]  }
  0xb9   : > { %2404 = vmatpush1.bf16.msra.mxu0 %v2988_v49  ;;  %2282 = vmatprep.subr.bf16.mxu1 %v2989_v50  ;;  %v3059_v49 = vld [vmem:[%s3749_s26 + $0x460] ss:$8 sps:$4 sm:$0xff]   ;;  %v1271_v50 = vcombine.high %v3866_v46, %v3866_v46 }
  0xba   : > { %2405 = vmatprep.subr.bf16.mxu0 %v2991_v51  ;;  %v3064_v51 = vld [vmem:[%s3749_s26 + $0x174] ss:$8 sps:$4 sm:$0xff]  }
  0xbc   : > { %2283 = vmatpush1.bf16.msra.mxu1 %v2993_v54  ;;  %v3875_v54 = vrot.slane %v1271_v50, %v3801_v52  ;;  %v3151_v50 = vld [vmem:[%s3749_s26 + $0x554] ss:$8 sps:$4 sm:$0xff]  }
  0xbd   : > { %2406 = vmatpush1.bf16.msra.mxu0 %v2994_v57  ;;  %2284 = vmatprep.subr.bf16.mxu1 %v2995_v58  ;;  %v3070_v57 = vld [vmem:[%s3749_s26 + $0x184] ss:$8 sps:$4 sm:$0xff]  }
  0xbe   : > { %2407 = vmatprep.subr.bf16.mxu0 %v2997_v59  ;;  %v3073_v58 = vld [vmem:[%s3749_s26 + $0x484] ss:$8 sps:$4 sm:$0xff]   ;;  %v3068_v59 = vld [vmem:[%s3749_s26 + $0x180] ss:$8 sps:$4 sm:$0xff]  }
  0xc0   : > { %2285 = vmatpush1.bf16.msra.mxu1 %v2999_v62  ;;  %v3079_v62 = vld [vmem:[%s3749_s26 + $0x494] ss:$8 sps:$4 sm:$0xff]  }
  0xc1   : > { %2408 = vmatpush1.bf16.msra.mxu0 %v3000_v1  ;;  %2286 = vmatprep.subr.bf16.mxu1 %v3001_v2  ;;  %v3082_v1 = vld [vmem:[%s3749_s26 + $0x1a4] ss:$8 sps:$4 sm:$0xff]  }
  0xc2   : > { %2409 = vmatprep.subr.bf16.mxu0 %v3003_v3  ;;  %v3085_v2 = vld [vmem:[%s3749_s26 + $0x4a4] ss:$8 sps:$4 sm:$0xff]   ;;  %v3080_v3 = vld [vmem:[%s3749_s26 + $0x1a0] ss:$8 sps:$4 sm:$0xff]  }
  0xc4   : > { %2287 = vmatpush1.bf16.msra.mxu1 %v3005_v5  ;;  %v3083_v5 = vld [vmem:[%s3749_s26 + $0x4a0] ss:$8 sps:$4 sm:$0xff]  }
  0xc5   : > { %2410 = vmatpush1.bf16.msra.mxu0 %v3006_v7  ;;  %2288 = vmatprep.subr.bf16.mxu1 %v3007_v8  ;;  %v3091_v7 = vld [vmem:[%s3749_s26 + $0x4b4] ss:$8 sps:$4 sm:$0xff]   ;;  %v3086_v8 = vld [vmem:[%s3749_s26 + $0x1b0] ss:$8 sps:$4 sm:$0xff]  }
  0xc6   : > { %2411 = vmatprep.subr.bf16.mxu0 %v3009_v9  ;;  %v3089_v9 = vld [vmem:[%s3749_s26 + $0x4b0] ss:$8 sps:$4 sm:$0xff]  }
  0xc8   : > { %2289 = vmatpush1.bf16.msra.mxu1 %v3011_v10  ;;  %v3094_v10 = vld [vmem:[%s3749_s26 + $0x1c4] ss:$8 sps:$4 sm:$0xff]  }
  0xc9   : > { %2412 = vmatpush1.bf16.msra.mxu0 %v3012_v11  ;;  %2290 = vmatprep.subr.bf16.mxu1 %v3013_v12  ;;  %v3097_v11 = vld [vmem:[%s3749_s26 + $0x4c4] ss:$8 sps:$4 sm:$0xff]   ;;  %v3092_v12 = vld [vmem:[%s3749_s26 + $0x1c0] ss:$8 sps:$4 sm:$0xff]  }
  0xca   : > { %2413 = vmatprep.subr.bf16.mxu0 %v3015_v13  ;;  %v3095_v13 = vld [vmem:[%s3749_s26 + $0x4c0] ss:$8 sps:$4 sm:$0xff]  }
  0xcc   : > { %2291 = vmatpush1.bf16.msra.mxu1 %v3017_v14  ;;  %v3100_v14 = vld [vmem:[%s3749_s26 + $0x1d4] ss:$8 sps:$4 sm:$0xff]  }
  0xcd   : > { %2414 = vmatpush1.bf16.msra.mxu0 %v3018_v16  ;;  %2301 = vmatprep.subr.bf16.mxu1 %v3022_v17  ;;  %v3103_v16 = vld [vmem:[%s3749_s26 + $0x4d4] ss:$8 sps:$4 sm:$0xff]   ;;  %v3098_v17 = vld [vmem:[%s3749_s26 + $0x1d0] ss:$8 sps:$4 sm:$0xff]  }
  0xce   : > { %2424 = vmatprep.subr.bf16.mxu0 %v3025_v18  ;;  %v3101_v18 = vld [vmem:[%s3749_s26 + $0x4d0] ss:$8 sps:$4 sm:$0xff]  }
  0xcf   : > { %2293 = vmatmul.mubr.bf16.vlgmr.msra.gmra.mrb[0].mxu1 %v3837_v20 }
  0xd0   : > { %2416 = vmatmul.mubr.bf16.vlgmr.msra.gmra.mrb[0].mxu0 %v1261_v21  ;;  %2302 = vmatpush1.bf16.msra.mxu1 %v3020_v19  ;;  %v3106_v19 = vld [vmem:[%s3749_s26 + $0x1e4] ss:$8 sps:$4 sm:$0xff]  }
  0xd1   : > { %2425 = vmatpush1.bf16.msra.mxu0 %v3023_v22  ;;  %2303 = vmatprep.subr.bf16.mxu1 %v3028_v23  ;;  %v3109_v21 = vld [vmem:[%s3749_s26 + $0x4e4] ss:$8 sps:$4 sm:$0xff]   ;;  %v3104_v22 = vld [vmem:[%s3749_s26 + $0x1e0] ss:$8 sps:$4 sm:$0xff]  }
  0xd2   : > { %2426 = vmatprep.subr.bf16.mxu0 %v3031_v24  ;;  %2333 = vmatprep.mubr.bf16.mxu1 %v1262_v25  ;;  %v3107_v23 = vld [vmem:[%s3749_s26 + $0x4e0] ss:$8 sps:$4 sm:$0xff]   ;;  %v3112_v24 = vld [vmem:[%s3749_s26 + $0x1f4] ss:$8 sps:$4 sm:$0xff]  }
  0xd3   : > { %2456 = vmatprep.mubr.bf16.mxu0 %v3875_v54  ;;  %v3115_v25 = vld [vmem:[%s3749_s26 + $0x4f4] ss:$8 sps:$4 sm:$0xff]  }
  0xd4   : > { %2304 = vmatpush1.bf16.msra.mxu1 %v3026_v26  ;;  %v3110_v26 = vld [vmem:[%s3749_s26 + $0x1f0] ss:$8 sps:$4 sm:$0xff]  }
  0xd5   : > { %2427 = vmatpush1.bf16.msra.mxu0 %v3029_v27  ;;  %2305 = vmatprep.subr.bf16.mxu1 %v3034_v28  ;;  %v3113_v27 = vld [vmem:[%s3749_s26 + $0x4f0] ss:$8 sps:$4 sm:$0xff]   ;;  %v3118_v28 = vld [vmem:[%s3749_s26 + $0x204] ss:$8 sps:$4 sm:$0xff]  }
  0xd6   : > { %2428 = vmatprep.subr.bf16.mxu0 %v3037_v29  ;;  %v3121_v29 = vld [vmem:[%s3749_s26 + $0x504] ss:$8 sps:$4 sm:$0xff]  }
  0xd8   : > { %2306 = vmatpush1.bf16.msra.mxu1 %v3032_v30  ;;  %v1260_v30 = vcombine.high %v3837_v20, %v3837_v20  ;;  %v3125_v20 = vld [vmem:[%s3749_s26 + $0x510] ss:$8 sps:$4 sm:$0xff]  }
  0xd9   : > { %2429 = vmatpush1.bf16.msra.mxu0 %v3035_v31  ;;  %2307 = vmatprep.subr.bf16.mxu1 %v3040_v32  ;;  %v3918_v31 = vrot.slane %v3866_v46, %v3801_v52  ;;  %v3116_v32 = vld [vmem:[%s3749_s26 + $0x200] ss:$8 sps:$4 sm:$0xff]   ;;  %v3122_v52 = vld [vmem:[%s3749_s26 + $0x210] ss:$8 sps:$4 sm:$0xff]  }
  0xda   : > { %2430 = vmatprep.subr.bf16.mxu0 %v3043_v33  ;;  %v3119_v33 = vld [vmem:[%s3749_s26 + $0x500] ss:$8 sps:$4 sm:$0xff]  }
  0xdb   : > { %v3140_v46 = vld [vmem:[%s3749_s26 + $0x240] ss:$8 sps:$4 sm:$0xff]  }
  0xdc   : > { %2308 = vmatpush1.bf16.msra.mxu1 %v3038_v34  ;;  %v3124_v34 = vld [vmem:[%s3749_s26 + $0x214] ss:$8 sps:$4 sm:$0xff]  }
  0xdd   : > { %2431 = vmatpush1.bf16.msra.mxu0 %v3041_v35  ;;  %2309 = vmatprep.subr.bf16.mxu1 %v3046_v36  ;;  %v3127_v35 = vld [vmem:[%s3749_s26 + $0x514] ss:$8 sps:$4 sm:$0xff]   ;;  %v1287_v36 = vcombine.high %v3875_v54, %v3875_v54  ;;  %v3154_v54 = vld [vmem:[%s3749_s26 + $0x264] ss:$8 sps:$4 sm:$0xff]  }
  0xde   : > { %2432 = vmatprep.subr.bf16.mxu0 %v3049_v37  ;;  %v3130_v37 = vld [vmem:[%s3749_s26 + $0x224] ss:$8 sps:$4 sm:$0xff]  }
  0xe0   : > { %2310 = vmatpush1.bf16.msra.mxu1 %v3044_v38  ;;  %v3133_v38 = vld [vmem:[%s3749_s26 + $0x524] ss:$8 sps:$4 sm:$0xff]  }
  0xe1   : > { %2433 = vmatpush1.bf16.msra.mxu0 %v3047_v39  ;;  %2311 = vmatprep.subr.bf16.mxu1 %v3052_v40  ;;  %v3128_v39 = vld [vmem:[%s3749_s26 + $0x220] ss:$8 sps:$4 sm:$0xff]  }
  0xe2   : > { %2434 = vmatprep.subr.bf16.mxu0 %v3055_v41  ;;  %v3131_v40 = vld [vmem:[%s3749_s26 + $0x520] ss:$8 sps:$4 sm:$0xff]   ;;  %v3136_v41 = vld [vmem:[%s3749_s26 + $0x234] ss:$8 sps:$4 sm:$0xff]  }
  0xe4   : > { %2312 = vmatpush1.bf16.msra.mxu1 %v3050_v42  ;;  %v3139_v42 = vld [vmem:[%s3749_s26 + $0x534] ss:$8 sps:$4 sm:$0xff]  }
  0xe5   : > { %2435 = vmatpush1.bf16.msra.mxu0 %v3053_v43  ;;  %2313 = vmatprep.subr.bf16.mxu1 %v3058_v44  ;;  %v3134_v43 = vld [vmem:[%s3749_s26 + $0x230] ss:$8 sps:$4 sm:$0xff]   ;;  %v3142_v44 = vld [vmem:[%s3749_s26 + $0x244] ss:$8 sps:$4 sm:$0xff]  }
  0xe6   : > { %2436 = vmatprep.subr.bf16.mxu0 %v3061_v45  ;;  %v3145_v45 = vld [vmem:[%s3749_s26 + $0x544] ss:$8 sps:$4 sm:$0xff]  }
  0xe8   : > { %2314 = vmatpush1.bf16.msra.mxu1 %v3056_v48  ;;  %v3143_v48 = vld [vmem:[%s3749_s26 + $0x540] ss:$8 sps:$4 sm:$0xff]  }
  0xe9   : > { %2437 = vmatpush1.bf16.msra.mxu0 %v3059_v49  ;;  %2315 = vmatprep.subr.bf16.mxu1 %v3064_v51  ;;  %v3148_v49 = vld [vmem:[%s3749_s26 + $0x254] ss:$8 sps:$4 sm:$0xff]   ;;  %v3146_v51 = vld [vmem:[%s3749_s26 + $0x250] ss:$8 sps:$4 sm:$0xff]  }
  0xea   : > { %2438 = vmatprep.subr.bf16.mxu0 %v3067_v53  ;;  %v3149_v53 = vld [vmem:[%s3749_s26 + $0x550] ss:$8 sps:$4 sm:$0xff]  }
  0xec   : > { %2316 = vmatpush1.bf16.msra.mxu1 %v3062_v55  ;;  %v3157_v55 = vld [vmem:[%s3749_s26 + $0x564] ss:$8 sps:$4 sm:$0xff]  }
  0xed   : > { %2439 = vmatpush1.bf16.msra.mxu0 %v3065_v56  ;;  %2317 = vmatprep.subr.bf16.mxu1 %v3070_v57  ;;  %v3152_v56 = vld [vmem:[%s3749_s26 + $0x260] ss:$8 sps:$4 sm:$0xff]  }
  0xee   : > { %2440 = vmatprep.subr.bf16.mxu0 %v3073_v58  ;;  %v3155_v57 = vld [vmem:[%s3749_s26 + $0x560] ss:$8 sps:$4 sm:$0xff]   ;;  %v3160_v58 = vld [vmem:[%s3749_s26 + $0x274] ss:$8 sps:$4 sm:$0xff]  }
  0xf0   : > { %2318 = vmatpush1.bf16.msra.mxu1 %v3068_v59  ;;  %v3163_v59 = vld [vmem:[%s3749_s26 + $0x574] ss:$8 sps:$4 sm:$0xff]  }
  0xf1   : > { %2441 = vmatpush1.bf16.msra.mxu0 %v3071_v60  ;;  %2319 = vmatprep.subr.bf16.mxu1 %v3076_v61  ;;  %v3158_v60 = vld [vmem:[%s3749_s26 + $0x270] ss:$8 sps:$4 sm:$0xff]  }
  0xf2   : > { %2442 = vmatprep.subr.bf16.mxu0 %v3079_v62  ;;  %v3161_v61 = vld [vmem:[%s3749_s26 + $0x570] ss:$8 sps:$4 sm:$0xff]   ;;  %v3166_v62 = vld [vmem:[%s3749_s26 + $0x284] ss:$8 sps:$4 sm:$0xff]  }
  0xf4   : > { %2320 = vmatpush1.bf16.msra.mxu1 %v3074_v63  ;;  %v3169_v63 = vld [vmem:[%s3749_s26 + $0x584] ss:$8 sps:$4 sm:$0xff]  }
  0xf5   : > { %2443 = vmatpush1.bf16.msra.mxu0 %v3077_v0  ;;  %2321 = vmatprep.subr.bf16.mxu1 %v3082_v1  ;;  %v3164_v0 = vld [vmem:[%s3749_s26 + $0x280] ss:$8 sps:$4 sm:$0xff]  }
  0xf6   : > { %2444 = vmatprep.subr.bf16.mxu0 %v3085_v2  ;;  %v3167_v1 = vld [vmem:[%s3749_s26 + $0x580] ss:$8 sps:$4 sm:$0xff]   ;;  %v3172_v2 = vld [vmem:[%s3749_s26 + $0x294] ss:$8 sps:$4 sm:$0xff]  }
  0xf8   : > { %2322 = vmatpush1.bf16.msra.mxu1 %v3080_v3  ;;  %v3175_v3 = vld [vmem:[%s3749_s26 + $0x594] ss:$8 sps:$4 sm:$0xff]  }
  0xf9   : > { %2445 = vmatpush1.bf16.msra.mxu0 %v3083_v5  ;;  %2323 = vmatprep.subr.bf16.mxu1 %v3088_v6  ;;  %v3170_v5 = vld [vmem:[%s3749_s26 + $0x290] ss:$8 sps:$4 sm:$0xff]  }
  0xfa   : > { %2446 = vmatprep.subr.bf16.mxu0 %v3091_v7  ;;  %v3173_v6 = vld [vmem:[%s3749_s26 + $0x590] ss:$8 sps:$4 sm:$0xff]   ;;  %v3178_v7 = vld [vmem:[%s3749_s26 + $0x2a4] ss:$8 sps:$4 sm:$0xff]  }
  0xfc   : > { %2324 = vmatpush1.bf16.msra.mxu1 %v3086_v8  ;;  %v3181_v8 = vld [vmem:[%s3749_s26 + $0x5a4] ss:$8 sps:$4 sm:$0xff]  }
  0xfd   : > { %2447 = vmatpush1.bf16.msra.mxu0 %v3089_v9  ;;  %2325 = vmatprep.subr.bf16.mxu1 %v3094_v10  ;;  %v3176_v9 = vld [vmem:[%s3749_s26 + $0x2a0] ss:$8 sps:$4 sm:$0xff]  }
  0xfe   : > { %2448 = vmatprep.subr.bf16.mxu0 %v3097_v11  ;;  %v3179_v10 = vld [vmem:[%s3749_s26 + $0x5a0] ss:$8 sps:$4 sm:$0xff]   ;;  %v3184_v11 = vld [vmem:[%s3749_s26 + $0x2b4] ss:$8 sps:$4 sm:$0xff]  }
 0x100   : > { %2326 = vmatpush1.bf16.msra.mxu1 %v3092_v12  ;;  %v3187_v12 = vld [vmem:[%s3749_s26 + $0x5b4] ss:$8 sps:$4 sm:$0xff]  }
 0x101   : > { %2449 = vmatpush1.bf16.msra.mxu0 %v3095_v13  ;;  %2327 = vmatprep.subr.bf16.mxu1 %v3100_v14  ;;  %v3182_v13 = vld [vmem:[%s3749_s26 + $0x2b0] ss:$8 sps:$4 sm:$0xff]  }
 0x102   : > { %2450 = vmatprep.subr.bf16.mxu0 %v3103_v16  ;;  %v3185_v14 = vld [vmem:[%s3749_s26 + $0x5b0] ss:$8 sps:$4 sm:$0xff]   ;;  %v3190_v16 = vld [vmem:[%s3749_s26 + $0x2c4] ss:$8 sps:$4 sm:$0xff]  }
 0x104   : > { %2328 = vmatpush1.bf16.msra.mxu1 %v3098_v17  ;;  %v3193_v17 = vld [vmem:[%s3749_s26 + $0x5c4] ss:$8 sps:$4 sm:$0xff]  }
 0x105   : > { %2451 = vmatpush1.bf16.msra.mxu0 %v3101_v18  ;;  %2329 = vmatprep.subr.bf16.mxu1 %v3106_v19  ;;  %v3188_v18 = vld [vmem:[%s3749_s26 + $0x2c0] ss:$8 sps:$4 sm:$0xff]  }
 0x106   : > { %2452 = vmatprep.subr.bf16.mxu0 %v3109_v21  ;;  %v3191_v19 = vld [vmem:[%s3749_s26 + $0x5c0] ss:$8 sps:$4 sm:$0xff]   ;;  %v3196_v21 = vld [vmem:[%s3749_s26 + $0x2d4] ss:$8 sps:$4 sm:$0xff]  }
 0x108   : > { %2330 = vmatpush1.bf16.msra.mxu1 %v3104_v22  ;;  %v3199_v22 = vld [vmem:[%s3749_s26 + $0x5d4] ss:$8 sps:$4 sm:$0xff]  }
 0x109   : > { %2453 = vmatpush1.bf16.msra.mxu0 %v3107_v23  ;;  %2331 = vmatprep.subr.bf16.mxu1 %v3112_v24  ;;  %v3194_v23 = vld [vmem:[%s3749_s26 + $0x2d0] ss:$8 sps:$4 sm:$0xff]  }
 0x10a   : > { %2454 = vmatprep.subr.bf16.mxu0 %v3115_v25  ;;  %v3197_v24 = vld [vmem:[%s3749_s26 + $0x5d0] ss:$8 sps:$4 sm:$0xff]   ;;  %v3202_v25 = vld [vmem:[%s3749_s26 + $0x2e4] ss:$8 sps:$4 sm:$0xff]  }
 0x10c   : > { %2332 = vmatpush1.bf16.msra.mxu1 %v3110_v26  ;;  %v3205_v26 = vld [vmem:[%s3749_s26 + $0x5e4] ss:$8 sps:$4 sm:$0xff]  }
 0x10d   : > { %2455 = vmatpush1.bf16.msra.mxu0 %v3113_v27  ;;  %2342 = vmatprep.subr.bf16.mxu1 %v3118_v28  ;;  %v3200_v27 = vld [vmem:[%s3749_s26 + $0x2e0] ss:$8 sps:$4 sm:$0xff]  }
 0x10e   : > { %2465 = vmatprep.subr.bf16.mxu0 %v3121_v29  ;;  %v3203_v28 = vld [vmem:[%s3749_s26 + $0x5e0] ss:$8 sps:$4 sm:$0xff]   ;;  %v3208_v29 = vld [vmem:[%s3749_s26 + $0x2f4] ss:$8 sps:$4 sm:$0xff]  }
 0x10f   : > { %2334 = vmatmul.mubr.bf16.vlgmr.msra.gmra.mrb[0].mxu1 %v1260_v30  ;;  %v3211_v30 = vld [vmem:[%s3749_s26 + $0x5f4] ss:$8 sps:$4 sm:$0xff]  }
 0x110   : > { %2457 = vmatmul.mubr.bf16.vlgmr.msra.gmra.mrb[0].mxu0 %v3918_v31  ;;  %2343 = vmatpush1.bf16.msra.mxu1 %v3116_v32  ;;  %v3206_v32 = vld [vmem:[%s3749_s26 + $0x2f0] ss:$8 sps:$4 sm:$0xff]  }
 0x111   : > { %2466 = vmatpush1.bf16.msra.mxu0 %v3119_v33  ;;  %2344 = vmatprep.subr.bf16.mxu1 %v3124_v34  ;;  %v3209_v33 = vld [vmem:[%s3749_s26 + $0x5f0] ss:$8 sps:$4 sm:$0xff]   ;;  %v1286_v34 = vcombine.high %v3918_v31, %v3918_v31 }
 0x112   : > { %2467 = vmatprep.subr.bf16.mxu0 %v3127_v35  ;;  %2374 = vmatprep.mubr.bf16.mxu1 %v3816_v4  ;;  %v3137_v4 = vld [vmem:[%s3749_s26 + $0x530] ss:$8 sps:$4 sm:$0xff]   ;;  %v3270_v35 = vmov 1983009808  }
 0x113   : > { %2497 = vmatprep.mubr.bf16.mxu0 %v1287_v36  ;;  %v2510_v36 = vunpack.c.l.s4 %v3270_v35 }
 0x114   : > { %2345 = vmatpush1.bf16.msra.mxu1 %v3122_v52 }
 0x115   : > { %2468 = vmatpush1.bf16.msra.mxu0 %v3125_v20  ;;  %2346 = vmatprep.subr.bf16.mxu1 %v3130_v37  ;;  %v2511_v52 = vunpack.c.0.s8 %v2510_v36 }
 0x116   : > { %2469 = vmatprep.subr.bf16.mxu0 %v3133_v38 }
 0x118   : > { %2347 = vmatpush1.bf16.msra.mxu1 %v3128_v39 }
 0x119   : > { %2470 = vmatpush1.bf16.msra.mxu0 %v3131_v40  ;;  %2348 = vmatprep.subr.bf16.mxu1 %v3136_v41 }
 0x11a   : > { %2471 = vmatprep.subr.bf16.mxu0 %v3139_v42  ;;  %v2514_v42 = vsub.s32 %v2511_v52, %v3794_v47 }
 0x11c   : > { %2349 = vmatpush1.bf16.msra.mxu1 %v3134_v43 }
 0x11d   : > { %2472 = vmatpush1.bf16.msra.mxu0 %v3137_v4  ;;  %2350 = vmatprep.subr.bf16.mxu1 %v3142_v44 }
 0x11e   : > { %2473 = vmatprep.subr.bf16.mxu0 %v3145_v45 }
 0x120   : > { %2351 = vmatpush1.bf16.msra.mxu1 %v3140_v46  ;;  %v1018_v46 = vld [vmem:[#allocation2] sm:$0xf] }
 0x121   : > { %2474 = vmatpush1.bf16.msra.mxu0 %v3143_v48  ;;  %2352 = vmatprep.subr.bf16.mxu1 %v3148_v49 }
 0x122   : > { %2475 = vmatprep.subr.bf16.mxu0 %v3151_v50 }
 0x124   : > { %2353 = vmatpush1.bf16.msra.mxu1 %v3146_v51 }
 0x125   : > { %2476 = vmatpush1.bf16.msra.mxu0 %v3149_v53  ;;  %2354 = vmatprep.subr.bf16.mxu1 %v3154_v54 }
 0x126   : > { %2477 = vmatprep.subr.bf16.mxu0 %v3157_v55 }
 0x128   : > { %2355 = vmatpush1.bf16.msra.mxu1 %v3152_v56 }
 0x129   : > { %2478 = vmatpush1.bf16.msra.mxu0 %v3155_v57  ;;  %2356 = vmatprep.subr.bf16.mxu1 %v3160_v58 }
 0x12a   : > { %2479 = vmatprep.subr.bf16.mxu0 %v3163_v59 }
 0x12c   : > { %2357 = vmatpush1.bf16.msra.mxu1 %v3158_v60 }
 0x12d   : > { %2480 = vmatpush1.bf16.msra.mxu0 %v3161_v61  ;;  %2358 = vmatprep.subr.bf16.mxu1 %v3166_v62 }
 0x12e   : > { %2481 = vmatprep.subr.bf16.mxu0 %v3169_v63 }
 0x130   : > { %2359 = vmatpush1.bf16.msra.mxu1 %v3164_v0 }
 0x131   : > { %2482 = vmatpush1.bf16.msra.mxu0 %v3167_v1  ;;  %2360 = vmatprep.subr.bf16.mxu1 %v3172_v2 }
 0x132   : > { %2483 = vmatprep.subr.bf16.mxu0 %v3175_v3 }
 0x134   : > { %2361 = vmatpush1.bf16.msra.mxu1 %v3170_v5 }
 0x135   : > { %2484 = vmatpush1.bf16.msra.mxu0 %v3173_v6  ;;  %2362 = vmatprep.subr.bf16.mxu1 %v3178_v7 }
 0x136   : > { %2485 = vmatprep.subr.bf16.mxu0 %v3181_v8 }
 0x138   : > { %2363 = vmatpush1.bf16.msra.mxu1 %v3176_v9 }
 0x139   : > { %2486 = vmatpush1.bf16.msra.mxu0 %v3179_v10  ;;  %2364 = vmatprep.subr.bf16.mxu1 %v3184_v11 }
 0x13a   : > { %2487 = vmatprep.subr.bf16.mxu0 %v3187_v12 }
 0x13c   : > { %2365 = vmatpush1.bf16.msra.mxu1 %v3182_v13 }
 0x13d   : > { %2488 = vmatpush1.bf16.msra.mxu0 %v3185_v14  ;;  %2366 = vmatprep.subr.bf16.mxu1 %v3190_v16 }
 0x13e   : > { %2489 = vmatprep.subr.bf16.mxu0 %v3193_v17 }
 0x140   : > { %2367 = vmatpush1.bf16.msra.mxu1 %v3188_v18 }
 0x141   : > { %2490 = vmatpush1.bf16.msra.mxu0 %v3191_v19  ;;  %2368 = vmatprep.subr.bf16.mxu1 %v3196_v21 }
 0x142   : > { %2491 = vmatprep.subr.bf16.mxu0 %v3199_v22 }
 0x144   : > { %2369 = vmatpush1.bf16.msra.mxu1 %v3194_v23 }
 0x145   : > { %2492 = vmatpush1.bf16.msra.mxu0 %v3197_v24  ;;  %2370 = vmatprep.subr.bf16.mxu1 %v3202_v25 }
 0x146   : > { %2493 = vmatprep.subr.bf16.mxu0 %v3205_v26 }
 0x148   : > { %2371 = vmatpush1.bf16.msra.mxu1 %v3200_v27 }
 0x149   : > { %2494 = vmatpush1.bf16.msra.mxu0 %v3203_v28  ;;  %2372 = vmatprep.subr.bf16.mxu1 %v3208_v29 }
 0x14a   : > { %2495 = vmatprep.subr.bf16.mxu0 %v3211_v30 }
 0x14c   : > { %2373 = vmatpush1.bf16.msra.mxu1 %v3206_v32 }
 0x14d   : > { %2496 = vmatpush1.bf16.msra.mxu0 %v3209_v33 }
 0x14f   : > { %2375 = vmatmul.mubr.bf16.vlgmr.msra.gmra.mrb[0].mxu1 %v3830_v15 }
 0x150   : > { %2498 = vmatmul.mubr.bf16.vlgmr.msra.gmra.mrb[0].mxu0 %v1286_v34 }
 0x222   : > { %v2376_v20 = vpop.f32.mrb[0].mxu1 }
 0x223   : > { %v2499_v37 = vpop.f32.mrb[0].mxu0  ;;  %v2378_v39 = vpop.f32.mrb[1].mxu1 }
 0x224   : > { %v2844_v38 = vadd.f32 %v2499_v37, %v2376_v20  ;;  %v2501_v40 = vpop.f32.mrb[1].mxu0  ;;  %v2380_v43 = vpop.f32.mrb[2].mxu1 }
 0x225   : > { %v2845_v41 = vadd.f32 %v2501_v40, %v2378_v39  ;;  %v2503_v4 = vpop.f32.mrb[2].mxu0  ;;  %v2381_v44 = vpop.f32.mrb[3].mxu1 }
 0x226   : > { %v2504_v31 = vpop.f32.mrb[3].mxu0 }
 0x227   : > { %v2508_v45 = vcombine.low %v2844_v38, %v2845_v41  ;;  %2522 = sbr.rel (%p2840_p13) target bundleno = 566 (0x236), region = 74 }
 0x229   : > { %v2515_v48 = vrot.slane %v2508_v45, %v2514_v42 }
 0x22b   : > { %v2517_v15 = vadd.f32 %v2515_v48, %v1018_v46 }
 0x22d   : > { %2518 = vst [vmem:[#allocation2] sm:$0xf] %v2517_v15 }
 0x234   : > { %v2523_v49 = vld [vmem:[#allocation2] sm:$0xf] }
 0x235   : > { %2524 = vst [vmem:[%s3747_s25] sm:$0xf] %v2523_v49 }
 0x236 PF: > { %s12_s15 = sadd.s32 1, %s3266_s15   ;;  %s4016_s9 = smov %s3246_s10 }
 0x237   : > { %p9_p0 = scmp.ge.s32.totalorder %s12_s15, 6   ;;  %s4017_s10 = smov %s3337_s22 }
 0x238   : > { %s4018_s11 = smov %s3258_s13  ;;  %s4019_s12 = smov %s3262_s14 }
 0x239   : > { %s4020_s13 = smov %s4023_s16  ;;  %s4021_s14 = smov %s4027_s17 }
 0x23a   :  { %11 = sbr.rel (!%p9_p0) target bundleno = 4 (0x4), region = 112 }

// kernel: _forward.23
= control target key start
LH: loop header
LB: loop body
LE: loop exit
PB: predicated region body
PF: predicated region fallthrough
CT: control target
= control target key end

     0   :  { %vm374_vm0 = vcmask 654336   ;;  %vm376_vm1 = vcmask 650240   ;;  %s629_s1 = inlined_call_operand.vmem [shape: bf16[512,80], index: 1, kind: input, shape index: {}]   ;;  %s630_s0 = inlined_call_operand.vmem [shape: bf16[12,512], index: 0, kind: input, shape index: {}]   ;;  %s631_s2 = inlined_call_operand.vmem [shape: f32[12,80], index: 2, kind: output, shape index: {}]  }
   0x1   :  { %v462_v0 = vld [vmem:[%s629_s1 + $0x40] sm:$0xff]   ;;  %v466_v4 = vld [vmem:[%s629_s1 + $0x48] sm:$0xff]   ;;  %v470_v8 = vld [vmem:[%s629_s1 + $0x50] sm:$0xff]  }
   0x2   :  { %v463_v1 = vld [vmem:[%s629_s1 + $0xc0] sm:$0xff]   ;;  %418 = vmatprep.subr.bf16.mxu0 %v462_v0  ;;  %v467_v5 = vld [vmem:[%s629_s1 + $0xc8] sm:$0xff]   ;;  %v471_v9 = vld [vmem:[%s629_s1 + $0xd0] sm:$0xff]  }
   0x3   :  { %v464_v2 = vld [vmem:[%s629_s1] sm:$0xff]   ;;  %440 = vmatprep.subr.bf16.mxu1 %v463_v1  ;;  %v468_v6 = vld [vmem:[%s629_s1 + $0x8] sm:$0xff]   ;;  %v472_v10 = vld [vmem:[%s629_s1 + $0x10] sm:$0xff]  }
   0x4   :  { %v465_v3 = vld [vmem:[%s629_s1 + $0x80] sm:$0xff]   ;;  %419 = vmatpush3.bf16.msra.mxu0 %v464_v2  ;;  %v469_v7 = vld [vmem:[%s629_s1 + $0x88] sm:$0xff]   ;;  %v473_v11 = vld [vmem:[%s629_s1 + $0x90] sm:$0xff]  }
   0x5   :  { %441 = vmatpush3.bf16.msra.mxu1 %v465_v3  ;;  %420 = vmatprep.subr.bf16.mxu0 %v466_v4  ;;  %v474_v12 = vld [vmem:[%s629_s1 + $0x58] sm:$0xff]   ;;  %v478_v16 = vld [vmem:[%s629_s1 + $0x60] sm:$0xff]   ;;  %v482_v20 = vld [vmem:[%s629_s1 + $0x68] sm:$0xff]  }
   0x6   :  { %442 = vmatprep.subr.bf16.mxu1 %v467_v5  ;;  %v475_v13 = vld [vmem:[%s629_s1 + $0xd8] sm:$0xff]   ;;  %v479_v17 = vld [vmem:[%s629_s1 + $0xe0] sm:$0xff]   ;;  %v483_v21 = vld [vmem:[%s629_s1 + $0xe8] sm:$0xff]  }
   0x7   :  { %v476_v14 = vld [vmem:[%s629_s1 + $0x18] sm:$0xff]   ;;  %v480_v18 = vld [vmem:[%s629_s1 + $0x20] sm:$0xff]   ;;  %v484_v22 = vld [vmem:[%s629_s1 + $0x28] sm:$0xff]  }
   0x8   :  { %421 = vmatpush3.bf16.msra.mxu0 %v468_v6  ;;  %v477_v15 = vld [vmem:[%s629_s1 + $0x98] sm:$0xff]   ;;  %v481_v19 = vld [vmem:[%s629_s1 + $0xa0] sm:$0xff]   ;;  %v485_v23 = vld [vmem:[%s629_s1 + $0xa8] sm:$0xff]  }
   0x9   :  { %443 = vmatpush3.bf16.msra.mxu1 %v469_v7  ;;  %422 = vmatprep.subr.bf16.mxu0 %v470_v8  ;;  %v486_v24 = vld [vmem:[%s629_s1 + $0x70] sm:$0xff]   ;;  %v490_v28 = vld [vmem:[%s629_s1 + $0x78] sm:$0xff]  }
   0xa   :  { %444 = vmatprep.subr.bf16.mxu1 %v471_v9  ;;  %v487_v25 = vld [vmem:[%s629_s1 + $0xf0] sm:$0xff]   ;;  %v491_v29 = vld [vmem:[%s629_s1 + $0xf8] sm:$0xff]  }
   0xb   :  { %v488_v26 = vld [vmem:[%s629_s1 + $0x30] sm:$0xff]   ;;  %v492_v30 = vld [vmem:[%s629_s1 + $0x38] sm:$0xff]  }
   0xc   :  { %423 = vmatpush3.bf16.msra.mxu0 %v472_v10  ;;  %v489_v27 = vld [vmem:[%s629_s1 + $0xb0] sm:$0xff]   ;;  %v493_v31 = vld [vmem:[%s629_s1 + $0xb8] sm:$0xff]  }
   0xd   :  { %445 = vmatpush3.bf16.msra.mxu1 %v473_v11  ;;  %424 = vmatprep.subr.bf16.mxu0 %v474_v12  ;;  %v494_v32 = vld [vmem:[%s630_s0] ss:$16 sps:$4 sm:$0x3f]   ;;  %v496_v33 = vld [vmem:[%s630_s0 + $0x4] ss:$16 sps:$4 sm:$0x3f]  }
   0xe   :  { %446 = vmatprep.subr.bf16.mxu1 %v475_v13  ;;  %v497_v34 = vld [vmem:[%s630_s0 + $0x8] ss:$16 sps:$4 sm:$0x3f]   ;;  %v499_v35 = vld [vmem:[%s630_s0 + $0xc] ss:$16 sps:$4 sm:$0x3f]   ;;  %324 = vmatprep.mubr.bf16.mxu0 %v496_v33 }
   0xf   :  { %365 = vmatprep.mubr.bf16.mxu1 %v499_v35 }
  0x10   :  { %425 = vmatpush3.bf16.msra.mxu0 %v476_v14 }
  0x11   :  { %447 = vmatpush3.bf16.msra.mxu1 %v477_v15  ;;  %426 = vmatprep.subr.bf16.mxu0 %v478_v16 }
  0x12   :  { %448 = vmatprep.subr.bf16.mxu1 %v479_v17 }
  0x14   :  { %427 = vmatpush3.bf16.msra.mxu0 %v480_v18 }
  0x15   :  { %449 = vmatpush3.bf16.msra.mxu1 %v481_v19  ;;  %428 = vmatprep.subr.bf16.mxu0 %v482_v20 }
  0x16   :  { %450 = vmatprep.subr.bf16.mxu1 %v483_v21 }
  0x18   :  { %429 = vmatpush3.bf16.msra.mxu0 %v484_v22 }
  0x19   :  { %451 = vmatpush3.bf16.msra.mxu1 %v485_v23  ;;  %430 = vmatprep.subr.bf16.mxu0 %v486_v24 }
  0x1a   :  { %452 = vmatprep.subr.bf16.mxu1 %v487_v25 }
  0x1c   :  { %431 = vmatpush3.bf16.msra.mxu0 %v488_v26 }
  0x1d   :  { %453 = vmatpush3.bf16.msra.mxu1 %v489_v27  ;;  %432 = vmatprep.subr.bf16.mxu0 %v490_v28 }
  0x1e   :  { %454 = vmatprep.subr.bf16.mxu1 %v491_v29 }
  0x20   :  { %433 = vmatpush3.bf16.msra.mxu0 %v492_v30 }
  0x21   :  { %455 = vmatpush3.bf16.msra.mxu1 %v493_v31 }
  0x23   :  { %325 = vmatmul.mubr.bf16.vlgmr.msra.gmra.mrb[0].mxu0 %v494_v32 }
  0x24   :  { %366 = vmatmul.mubr.bf16.vlgmr.msra.gmra.mrb[0].mxu1 %v497_v34 }
  0xf6   :  { %v434_v36 = vpop.f32.mrb[0].mxu0 }
  0xf7   :  { %v456_v37 = vpop.f32.mrb[0].mxu1  ;;  %v435_v38 = vpop.f32.mrb[1].mxu0 }
  0xf8   :  { %v436_v39 = vadd.f32 %v435_v38, %v434_v36  ;;  %v457_v40 = vpop.f32.mrb[1].mxu1  ;;  %v437_v41 = vpop.f32.mrb[2].mxu0 }
  0xf9   :  { %v458_v42 = vadd.f32 %v457_v40, %v456_v37  ;;  %v459_v43 = vpop.f32.mrb[2].mxu1  ;;  %v438_v44 = vpop.f32.mrb[3].mxu0 }
  0xfa   :  { %v439_v45 = vadd.f32 %v438_v44, %v437_v41  ;;  %v460_v46 = vpop.f32.mrb[3].mxu1 }
  0xfb   :  { %v368_v47 = vadd.f32 %v458_v42, %v436_v39  ;;  %v461_v48 = vadd.f32 %v460_v46, %v459_v43 }
  0xfd   :  { %375 = vst.msk [vmem:[%s631_s2] sm:$0xff] %vm374_vm0, %v368_v47  ;;  %v371_v49 = vadd.f32 %v461_v48, %v439_v45 }
  0xff   :  { %377 = vst.msk [vmem:[%s631_s2 + $0x8] sm:$0xf] %vm376_vm1, %v371_v49 }

// kernel: _forward.24
= control target key start
LH: loop header
LB: loop body
LE: loop exit
PB: predicated region body
PF: predicated region fallthrough
CT: control target
= control target key end

     0   :  { %s435_s9 = smov 0   ;;  %s463_s0 = inlined_call_operand.vmem [shape: bf16[2,16,144], index: 0, kind: input, shape index: {}]   ;;  %s464_s1 = inlined_call_operand.vmem [shape: bf16[2,144,64], index: 1, kind: input, shape index: {}]   ;;  %s465_s2 = inlined_call_operand.vmem [shape: f32[2,16,64], index: 2, kind: output, shape index: {}]  }
   0x1 LB: > { %s363_s10 = sadd.s32 4294967295, %s417_s9   ;;  %p367_p0 = scmp.ge.s32.totalorder %s417_s9, 1  ;;  %s417_s9 = sphi %s435_s9, %s12_s9  }
   0x2   : > { %p122_p1 = scmp.lt.s32.totalorder %s417_s9, 3 }
   0x4   : > { %p123_p2 = pnand %p367_p0, %p122_p1 }
   0x5   : > { %p149_p3 = scmp.lt.s32.totalorder (!%p123_p2), %s363_s10, 1  ;;  %v419_v0 = vmov (!%p123_p2), 0   ;;  %vm248_vm0 = vcmask (!%p123_p2), 130048   ;;  %vm293_vm1 = vcmask (!%p123_p2), 523264  }
   0x6   : > { %126 = sbr.rel (%p123_p2) target bundleno = 268 (0x10c), region = 28  ;;  %252 = vmatprep.subr.bf16.mxu0 (!%p123_p2), %v419_v0 }
   0xd   : > { %s467_s10 = smov (!%p149_p3, %s363_s10), 1 }
   0xe   : > { %s389_s11 = smul.u32 72, %s467_s10  ;;  %s387_s12 = sshll.u32 %s467_s10, 4 }
   0xf   : > { %s153_s15 = scalar_lea.vmem %s463_s0, %s387_s12  ;;  %s163_s21 = scalar_lea.vmem %s465_s2, %s387_s12 }
  0x10   : > { %s158_s18 = scalar_lea.vmem %s464_s1, %s389_s11  ;;  %v410_v4 = vld [vmem:[%s153_s15 + $0x4] ss:$8 sps:$4 sm:$0xff]   ;;  %v408_v11 = vld [vmem:[%s153_s15] ss:$8 sps:$4 sm:$0xff]  }
  0x11   : > { %v399_v1 = vld [vmem:[%s158_s18] sm:$0xff]   ;;  %v400_v2 = vld [vmem:[%s158_s18 + $0x8] sm:$0xff]   ;;  %v401_v3 = vld [vmem:[%s158_s18 + $0x10] sm:$0xff]   ;;  %384 = vmatprep.mubr.msk.bf16.mxu0 %vm248_vm0, %v410_v4 }
  0x12   : > { %253 = vmatpush1.bf16.msra.mxu0 %v399_v1  ;;  %v402_v5 = vld [vmem:[%s158_s18 + $0x18] sm:$0xff]   ;;  %v403_v6 = vld [vmem:[%s158_s18 + $0x20] sm:$0xff]   ;;  %v404_v7 = vld [vmem:[%s158_s18 + $0x28] sm:$0xff]  }
  0x13   : > { %254 = vmatprep.subr.bf16.mxu0 %v419_v0  ;;  %v405_v8 = vld [vmem:[%s158_s18 + $0x30] sm:$0xff]   ;;  %v406_v9 = vld [vmem:[%s158_s18 + $0x38] sm:$0xff]   ;;  %v407_v10 = vld [vmem:[%s158_s18 + $0x40] sm:$0xff]  }
  0x16   : > { %255 = vmatpush1.bf16.msra.mxu0 %v400_v2 }
  0x17   : > { %256 = vmatprep.subr.bf16.mxu0 %v419_v0 }
  0x1a   : > { %257 = vmatpush1.bf16.msra.mxu0 %v401_v3 }
  0x1b   : > { %258 = vmatprep.subr.bf16.mxu0 %v419_v0 }
  0x1e   : > { %259 = vmatpush1.bf16.msra.mxu0 %v402_v5 }
  0x1f   : > { %260 = vmatprep.subr.bf16.mxu0 %v419_v0 }
  0x22   : > { %261 = vmatpush1.bf16.msra.mxu0 %v403_v6 }
  0x23   : > { %262 = vmatprep.subr.bf16.mxu0 %v419_v0 }
  0x26   : > { %263 = vmatpush1.bf16.msra.mxu0 %v404_v7 }
  0x27   : > { %264 = vmatprep.subr.bf16.mxu0 %v419_v0 }
  0x2a   : > { %265 = vmatpush1.bf16.msra.mxu0 %v405_v8 }
  0x2b   : > { %266 = vmatprep.subr.bf16.mxu0 %v419_v0 }
  0x2e   : > { %267 = vmatpush1.bf16.msra.mxu0 %v406_v9 }
  0x2f   : > { %268 = vmatprep.subr.bf16.mxu0 %v419_v0 }
  0x32   : > { %269 = vmatpush1.bf16.msra.mxu0 %v407_v10 }
  0x35   : > { %285 = vmatmul.mubr.bf16.vlgmr.msra.gmra.mrb[0].mxu0 %v408_v11 }
 0x108   : > { %v286_v12 = vpop.f32.mrb[0].mxu0 }
 0x109   : > { %294 = vst.msk [vmem:[%s163_s21] sm:$0xff] %vm293_vm1, %v286_v12  ;;  %v288_v13 = vpop.f32.mrb[1].mxu0 }
 0x10a   : > { %v289_v14 = vpop.f32.mrb[2].mxu0 }
 0x10b   : > { %295 = vst.msk [vmem:[%s163_s21 + $0x8] sm:$0xff] %vm293_vm1, %v289_v14  ;;  %v291_v15 = vpop.f32.mrb[3].mxu0 }
 0x10c PF: > { %s12_s9 = sadd.s32 1, %s417_s9  }
 0x10d   : > { %p9_p4 = scmp.ge.s32.totalorder %s12_s9, 4  }
 0x10f   :  { %11 = sbr.rel (!%p9_p4) target bundleno = 1 (0x1), region = 61 }

// kernel: _forward.26
= control target key start
LH: loop header
LB: loop body
LE: loop exit
PB: predicated region body
PF: predicated region fallthrough
CT: control target
= control target key end

     0   :  { %s499_s9 = smov 0   ;;  %s548_s0 = inlined_call_operand.vmem [shape: bf16[2,16,144], index: 0, kind: input, shape index: {}]   ;;  %s549_s1 = inlined_call_operand.vmem [shape: bf16[2,144,256], index: 1, kind: input, shape index: {}]   ;;  %s550_s2 = inlined_call_operand.vmem [shape: f32[2,16,256], index: 2, kind: output, shape index: {}]  }
   0x1 LB: > { %s402_s10 = sadd.s32 4294967295, %s482_s9   ;;  %p406_p0 = scmp.ge.s32.totalorder %s482_s9, 1  ;;  %s482_s9 = sphi %s499_s9, %s12_s9  }
   0x2   : > { %p122_p1 = scmp.lt.s32.totalorder %s482_s9, 3 }
   0x4   : > { %p123_p2 = pnand %p406_p0, %p122_p1 }
   0x5   : > { %p149_p3 = scmp.lt.s32.totalorder (!%p123_p2), %s402_s10, 1  ;;  %vm284_vm0 = vcmask (!%p123_p2), 130048  }
   0x6   : > { %126 = sbr.rel (%p123_p2) target bundleno = 270 (0x10e), region = 28 }
   0xd   : > { %s552_s10 = smov (!%p149_p3, %s402_s10), 1 }
   0xe   : > { %s437_s11 = smul.u32 144, %s552_s10  ;;  %s435_s12 = sshll.u32 %s552_s10, 4 }
   0xf   : > { %s514_s15 = scalar_lea.vmem %s548_s0, %s435_s12  ;;  %s436_s19 = sshll.u32 %s552_s10, 5 }
  0x10   : > { %s519_s18 = scalar_lea.vmem %s549_s1, %s437_s11  ;;  %v475_v9 = vld [vmem:[%s514_s15 + $0x4] ss:$8 sps:$4 sm:$0xff]   ;;  %v473_v19 = vld [vmem:[%s514_s15] ss:$8 sps:$4 sm:$0xff]   ;;  %s163_s22 = scalar_lea.vmem %s550_s2, %s436_s19 }
  0x11   : > { %v446_v0 = vld [vmem:[%s519_s18 + $0x4] ss:$8 sps:$4 sm:$0xff]   ;;  %v448_v1 = vld [vmem:[%s519_s18] ss:$8 sps:$4 sm:$0xff]   ;;  %v449_v2 = vld [vmem:[%s519_s18 + $0x14] ss:$8 sps:$4 sm:$0xff]   ;;  %432 = vmatprep.mubr.msk.bf16.mxu0 %vm284_vm0, %v475_v9 }
  0x12   : > { %288 = vmatprep.subr.bf16.mxu0 %v446_v0  ;;  %v451_v3 = vld [vmem:[%s519_s18 + $0x10] ss:$8 sps:$4 sm:$0xff]   ;;  %v452_v4 = vld [vmem:[%s519_s18 + $0x24] ss:$8 sps:$4 sm:$0xff]   ;;  %v454_v5 = vld [vmem:[%s519_s18 + $0x20] ss:$8 sps:$4 sm:$0xff]  }
  0x13   : > { %289 = vmatpush1.bf16.msra.mxu0 %v448_v1  ;;  %v455_v6 = vld [vmem:[%s519_s18 + $0x34] ss:$8 sps:$4 sm:$0xff]   ;;  %v457_v7 = vld [vmem:[%s519_s18 + $0x30] ss:$8 sps:$4 sm:$0xff]   ;;  %v458_v8 = vld [vmem:[%s519_s18 + $0x44] ss:$8 sps:$4 sm:$0xff]  }
  0x14   : > { %290 = vmatprep.subr.bf16.mxu0 %v449_v2  ;;  %v460_v10 = vld [vmem:[%s519_s18 + $0x40] ss:$8 sps:$4 sm:$0xff]   ;;  %v461_v11 = vld [vmem:[%s519_s18 + $0x54] ss:$8 sps:$4 sm:$0xff]   ;;  %v463_v12 = vld [vmem:[%s519_s18 + $0x50] ss:$8 sps:$4 sm:$0xff]  }
  0x15   : > { %v464_v13 = vld [vmem:[%s519_s18 + $0x64] ss:$8 sps:$4 sm:$0xff]   ;;  %v466_v14 = vld [vmem:[%s519_s18 + $0x60] ss:$8 sps:$4 sm:$0xff]   ;;  %v467_v15 = vld [vmem:[%s519_s18 + $0x74] ss:$8 sps:$4 sm:$0xff]  }
  0x16   : > { %v469_v16 = vld [vmem:[%s519_s18 + $0x70] ss:$8 sps:$4 sm:$0xff]   ;;  %v470_v17 = vld [vmem:[%s519_s18 + $0x84] ss:$8 sps:$4 sm:$0xff]   ;;  %v472_v18 = vld [vmem:[%s519_s18 + $0x80] ss:$8 sps:$4 sm:$0xff]  }
  0x17   : > { %291 = vmatpush1.bf16.msra.mxu0 %v451_v3 }
  0x18   : > { %292 = vmatprep.subr.bf16.mxu0 %v452_v4 }
  0x1b   : > { %293 = vmatpush1.bf16.msra.mxu0 %v454_v5 }
  0x1c   : > { %294 = vmatprep.subr.bf16.mxu0 %v455_v6 }
  0x1f   : > { %295 = vmatpush1.bf16.msra.mxu0 %v457_v7 }
  0x20   : > { %296 = vmatprep.subr.bf16.mxu0 %v458_v8 }
  0x23   : > { %297 = vmatpush1.bf16.msra.mxu0 %v460_v10 }
  0x24   : > { %298 = vmatprep.subr.bf16.mxu0 %v461_v11 }
  0x27   : > { %299 = vmatpush1.bf16.msra.mxu0 %v463_v12 }
  0x28   : > { %300 = vmatprep.subr.bf16.mxu0 %v464_v13 }
  0x2b   : > { %301 = vmatpush1.bf16.msra.mxu0 %v466_v14 }
  0x2c   : > { %302 = vmatprep.subr.bf16.mxu0 %v467_v15 }
  0x2f   : > { %303 = vmatpush1.bf16.msra.mxu0 %v469_v16 }
  0x30   : > { %304 = vmatprep.subr.bf16.mxu0 %v470_v17 }
  0x33   : > { %305 = vmatpush1.bf16.msra.mxu0 %v472_v18 }
  0x36   : > { %321 = vmatmul.mubr.bf16.vlgmr.msra.gmra.mrb[0].mxu0 %v473_v19 }
 0x109   : > { %v322_v20 = vpop.f32.mrb[0].mxu0 }
 0x10a   : > { %331 = vst [vmem:[%s163_s22] sm:$0xff] %v322_v20  ;;  %v324_v21 = vpop.f32.mrb[1].mxu0 }
 0x10b   : > { %332 = vst [vmem:[%s163_s22 + $0x8] sm:$0xff] %v324_v21  ;;  %v326_v22 = vpop.f32.mrb[2].mxu0 }
 0x10c   : > { %333 = vst [vmem:[%s163_s22 + $0x10] sm:$0xff] %v326_v22  ;;  %v328_v23 = vpop.f32.mrb[3].mxu0 }
 0x10d   : > { %334 = vst [vmem:[%s163_s22 + $0x18] sm:$0xff] %v328_v23 }
 0x10e PF: > { %s12_s9 = sadd.s32 1, %s482_s9  }
 0x10f   : > { %p9_p4 = scmp.ge.s32.totalorder %s12_s9, 4  }
 0x111   :  { %11 = sbr.rel (!%p9_p4) target bundleno = 1 (0x1), region = 61 }

// kernel: _forward.28
= control target key start
LH: loop header
LB: loop body
LE: loop exit
PB: predicated region body
PF: predicated region fallthrough
CT: control target
= control target key end

     0   :  { %s345_s9 = smov 0   ;;  %s365_s0 = inlined_call_operand.vmem [shape: bf16[2,3,16], index: 0, kind: input, shape index: {}]   ;;  %s366_s1 = inlined_call_operand.vmem [shape: bf16[2,16,256], index: 1, kind: input, shape index: {}]   ;;  %s367_s2 = inlined_call_operand.vmem [shape: f32[2,3,256], index: 2, kind: output, shape index: {}]  }
   0x1 LB: > { %s292_s10 = sadd.s32 4294967295, %s327_s9   ;;  %p296_p0 = scmp.ge.s32.totalorder %s327_s9, 1  ;;  %s327_s9 = sphi %s345_s9, %s12_s9  }
   0x2   : > { %p121_p1 = scmp.lt.s32.totalorder %s327_s9, 3 }
   0x4   : > { %p122_p2 = pnand %p296_p0, %p121_p1 }
   0x5   : > { %p147_p3 = scmp.lt.s32.totalorder (!%p122_p2), %s292_s10, 1  ;;  %v329_v0 = vmov (!%p122_p2), 0   ;;  %vm175_vm0 = vcmask (!%p122_p2), 130048  }
   0x6   : > { %125 = sbr.rel (%p122_p2) target bundleno = 237 (0xed), region = 28  ;;  %211 = vmatprep.mubr.bf16.mxu0 (!%p122_p2), %v329_v0 }
   0xd   : > { %s369_s10 = smov (!%p147_p3, %s292_s10), 1 }
   0xe   : > { %s307_s11 = sshll.u32 %s369_s10, 4  ;;  %s297_s12 = sshll.u32 %s369_s10, 1 }
   0xf   : > { %s155_s15 = scalar_lea.vmem %s366_s1, %s307_s11  ;;  %s150_s18 = scalar_lea.vmem %s365_s0, %s297_s12 }
  0x10   : > { %v318_v1 = vld [vmem:[%s155_s15 + $0x4] ss:$8 sps:$4 sm:$0xff]   ;;  %v320_v2 = vld [vmem:[%s155_s15] ss:$8 sps:$4 sm:$0xff]   ;;  %s308_s19 = sshll.u32 %s369_s10, 3 }
  0x11   : > { %179 = vmatprep.subr.bf16.mxu0 %v318_v1  ;;  %v162_v3 = vld [vmem:[%s150_s18] sm:$0x3]  ;;  %s160_s22 = scalar_lea.vmem %s367_s2, %s308_s19 }
  0x12   : > { %180 = vmatpush1.bf16.msra.mxu0 %v320_v2 }
  0x15   : > { %304 = vmatmul.mubr.msk.bf16.vlgmr.msra.gmra.mrb[0].mxu0 %vm175_vm0, %v162_v3 }
  0xe8   : > { %v213_v4 = vpop.f32.mrb[0].mxu0 }
  0xe9   : > { %v215_v5 = vpop.f32.mrb[1].mxu0 }
  0xea   : > { %v222_v6 = vcombine.low %v213_v4, %v215_v5  ;;  %v217_v7 = vpop.f32.mrb[2].mxu0 }
  0xeb   : > { %v218_v8 = vpop.f32.mrb[3].mxu0 }
  0xec   : > { %224 = vst [vmem:[%s160_s22] sm:$0x77] %v222_v6 }
  0xed PF: > { %s12_s9 = sadd.s32 1, %s327_s9  }
  0xee   : > { %p9_p4 = scmp.ge.s32.totalorder %s12_s9, 4  }
  0xf0   :  { %11 = sbr.rel (!%p9_p4) target bundleno = 1 (0x1), region = 61 }

// kernel: _forward.30
= control target key start
LH: loop header
LB: loop body
LE: loop exit
PB: predicated region body
PF: predicated region fallthrough
CT: control target
= control target key end

     0   :  { %8 = vsyncpa [#allocation3], 0  ;;  %s608_s12 = smov 0   ;;  %s688_s0 = inlined_call_operand.vmem [shape: f32[32,16], index: 0, kind: input, shape index: {}]   ;;  %s689_s1 = inlined_call_operand.vmem [shape: f32[6,16,16], index: 1, kind: input, shape index: {}]   ;;  %s690_s2 = inlined_call_operand.hbm [shape: f32[16,32], index: 2, kind: input, shape index: {}]   ;;  %s691_s3 = inlined_call_operand.vmem [shape: f32[6,32,32], index: 3, kind: output, shape index: {}]  }
   0x1 LB: > { %s614_s13 = sadd.s32 4294967295, %s583_s12   ;;  %p463_p0 = scmp.ge.s32.totalorder %s583_s12, 1  ;;  %s583_s12 = sphi %s608_s12, %s14_s12  }
   0x2   : > { %p113_p1 = scmp.lt.s32.totalorder %s583_s12, 7  ;;  %s585_s14 = smov [#allocation2]  }
   0x3   : > { %s128_s15 = sshll.u32 %s585_s14, 4  ;;  %p692_p3 = scmp.eq.s32.totalorder %s614_s13, 0  ;;  %s129_s15 = int_to_ptr.vmem [resolvable:$true] %s128_s15 }
   0x4   : > { %p618_p2 = pnand %p463_p0, %p113_p1  ;;  %s545_s20 = scalar_lea.hbm %s690_s2, 256 }
   0x5   : > { %p546_p6 = scmp.ne.s32.totalorder %s690_s2, %s545_s20  ;;  %p552_p10 = scmp.lt.u32.totalorder %s545_s20, %s690_s2 }
   0x6   : > { %s694_s16 = scalar_select %p618_p2, 1, 0 }
   0x7   : > { %p528_p4 = pneg %p618_p2 }
   0x9   : > { %p627_p5 = pnand %p692_p3, %p528_p4 }
   0xb   : > { %p547_p7 = pneg %p627_p5 }
   0xd   : > { %p548_p8 = pnand %p547_p7, %p546_p6 }
   0xf   : > { %p549_p9 = pneg %p548_p8 }
  0x11   : > { %p554_p11 = pnand %p552_p10, %p549_p9 }
  0x13   : > { %557 = shalt.err (!%p554_p11)
}
  0x14   : > { %s558_s25 = scalar_lea.vmem %s129_s15, 256  ;;  %p566_p1 = scmp.lt.s32.totalorder %s129_s15, %s129_s15 }
  0x15   : > { %p559_p12 = scmp.ne.s32.totalorder %s129_s15, %s558_s25  ;;  %p567_p4 = scmp.lt.s32.totalorder %s558_s25, %s558_s25 }
  0x17   : > { %p561_p13 = pnand %p559_p12, %p547_p7  ;;  %p568_p3 = por %p567_p4, %p566_p1 }
  0x19   : > { %p562_p0 = pneg %p561_p13 }
  0x1b   : > { %p569_p2 = pnand %p568_p3, %p562_p0 }
  0x1d   : > { %572 = shalt.err (!%p569_p2)
}
  0x1e   : > { %s586_s26 = smov 128   ;;  %s587_s27 = smov 8  }
  0x1f   : > { %531 = dma.hbm_to_vmem [thread:$0]  (!%p627_p5), %s690_s2, 256, %s129_s15, [#allocation3], %s586_s26, %s586_s26, %s587_s27  }
  0x20   : > { %p696_p6 = scmp.ne.s32.totalorder %s694_s16, 0 }
  0x21   : > { %p697_p8 = scmp.eq.s32.totalorder (!%p696_p6), %s614_s13, 0 }
  0x22   : > { %152 = sbr.rel (%p696_p6) target bundleno = 486 (0x1e6), region = 32 }
  0x29   : > { %578 = dma.done.wait (%p697_p8), [#allocation3], 256   ;;  %p698_p7 = pmov %p697_p8 }
  0x2a   : > { %p176_p2 = scmp.lt.s32.totalorder %s614_s13, 5  ;;  %vm192_vm0 = vcmask 130048   ;;  %v186_v2 = vld [vmem:[%s688_s0] sm:$0xff]  ;;  %v291_v5 = vld [vmem:[#allocation2 + $0x8] sm:$0xff]  ;;  %v188_v8 = vld [vmem:[%s688_s0 + $0x10] sm:$0xff]  ;;  %vm389_vm1 = vcmask 261120  }
  0x2b   : > { %580 = vsyncadd (%p698_p7), [#allocation3], 4294967040  ;;  %500 = vmatprep.mubr.msk.f32.mxu0 %vm192_vm0, %v186_v2  ;;  %v290_v4 = vld [vmem:[#allocation2] sm:$0xff]  ;;  %v187_v7 = vld [vmem:[%s688_s0 + $0x8] sm:$0xff] }
  0x2c   : > { %s700_s13 = smov (!%p176_p2, %s614_s13), 5  ;;  %v520_v6 = vpack.c.bf16 %v291_v5, %v290_v4  ;;  %v189_v9 = vld [vmem:[%s688_s0 + $0x18] sm:$0xff] }
  0x2d   : > { %s482_s30 = sshll.u32 %s700_s13, 4  ;;  %s483_s17 = sshll.u32 %s700_s13, 5 }
  0x2e   : > { %s180_s6 = scalar_lea.vmem %s689_s1, %s482_s30  ;;  %521 = vmatprep.subr.bf16.mxu1 %v520_v6  ;;  %s185_s20 = scalar_lea.vmem %s691_s3, %s483_s17 }
  0x2f   : > { %v190_v0 = vld [vmem:[%s180_s6] sm:$0xff]  ;;  %v191_v1 = vld [vmem:[%s180_s6 + $0x8] sm:$0xff]  ;;  %523 = vmatpush3.bf16.msra.mxu1 %v520_v6 }
  0x30   : > { %v516_v3 = vpack.c.bf16 %v191_v1, %v190_v0 }
  0x32   : > { %517 = vmatprep.subr.bf16.mxu0 %v516_v3 }
  0x33   : > { %519 = vmatpush3.bf16.msra.mxu0 %v516_v3 }
  0x36   : > { %501 = vmatmul.mubr.msk.f32.vlgmr.msra.gmra.mrb[0].mxu0 %vm192_vm0, %v187_v7 }
  0x37   : > { %503 = vmatprep.mubr.msk.f32.mxu0 %vm192_vm0, %v188_v8 }
  0x3a   : > { %504 = vmatmul.mubr.msk.f32.gmra.mrb[2].mxu0 %vm192_vm0, %v189_v9 }
 0x109   : > { %v502_v10 = vpop.f32.mrb[0].mxu0 }
 0x10a   : > { %v271_v11 = vpop.f32.mrb[1].mxu0 }
 0x10b   : > { %510 = vmatprep.mubr.msk.f32.mxu1 %vm192_vm0, %v271_v11 }
 0x10c   : > { %511 = vmatmul.mubr.msk.f32.vlgmr.msra.gmra.mrb[0].mxu1 %vm192_vm0, %v502_v10 }
 0x10d   : > { %v505_v12 = vpop.f32.mrb[2].mxu0 }
 0x10e   : > { %v281_v13 = vpop.f32.mrb[3].mxu0 }
 0x10f   : > { %513 = vmatprep.mubr.msk.f32.mxu1 %vm192_vm0, %v281_v13 }
 0x110   : > { %514 = vmatmul.mubr.msk.f32.gmra.mrb[2].mxu1 %vm192_vm0, %v505_v12 }
 0x1df   : > { %v512_v14 = vpop.f32.mrb[0].mxu1 }
 0x1e0   : > { %391 = vst.msk [vmem:[%s185_s20 + $0x8] sm:$0xff] %vm389_vm1, %v512_v14  ;;  %v370_v15 = vpop.f32.mrb[1].mxu1 }
 0x1e1   : > { %390 = vst.msk [vmem:[%s185_s20] sm:$0xff] %vm389_vm1, %v370_v15 }
 0x1e3   : > { %v515_v16 = vpop.f32.mrb[2].mxu1 }
 0x1e4   : > { %393 = vst.msk [vmem:[%s185_s20 + $0x18] sm:$0xff] %vm389_vm1, %v515_v16  ;;  %v380_v17 = vpop.f32.mrb[3].mxu1 }
 0x1e5   : > { %392 = vst.msk [vmem:[%s185_s20 + $0x10] sm:$0xff] %vm389_vm1, %v380_v17 }
 0x1e6 PF: > { %s14_s12 = sadd.s32 1, %s583_s12  }
 0x1e7   : > { %p11_p3 = scmp.ge.s32.totalorder %s14_s12, 8  }
 0x1e9   :  { %13 = sbr.rel (!%p11_p3) target bundleno = 1 (0x1), region = 67 }
 0x1f0   :  { %415 = vsyncpa [#allocation3], 1 }
 0x1f1   :  { %417 = vsyncpa [#allocation3 + $0x1], 1 }

// kernel: _forward.32
= control target key start
LH: loop header
LB: loop body
LE: loop exit
PB: predicated region body
PF: predicated region fallthrough
CT: control target
= control target key end

     0   :  { %v966_v22 = vmov 1966171168   ;;  %v146_v24 = vlaneseq  ;;  %s1193_s1 = inlined_call_operand.vmem [shape: bf16[1024,128], index: 1, kind: input, shape index: {}]   ;;  %s1194_s0 = inlined_call_operand.vmem [shape: bf16[2,1024], index: 0, kind: input, shape index: {}]   ;;  %s1195_s2 = inlined_call_operand.vmem [shape: f32[2,128], index: 2, kind: output, shape index: {}]  }
   0x1   :  { %v901_v0 = vld [vmem:[%s1193_s1 + $0x40] sm:$0xff]   ;;  %v905_v4 = vld [vmem:[%s1193_s1 + $0x48] sm:$0xff]   ;;  %v909_v8 = vld [vmem:[%s1193_s1 + $0x50] sm:$0xff]   ;;  %v144_v23 = vunpack.c.l.s4 %v966_v22 }
   0x2   :  { %v902_v1 = vld [vmem:[%s1193_s1 + $0xc0] sm:$0xff]   ;;  %812 = vmatprep.subr.bf16.mxu0 %v901_v0  ;;  %v906_v5 = vld [vmem:[%s1193_s1 + $0xc8] sm:$0xff]   ;;  %v910_v9 = vld [vmem:[%s1193_s1 + $0xd0] sm:$0xff]   ;;  %v147_v30 = vshrl.u32 %v146_v24, 7 }
   0x3   :  { %v903_v2 = vld [vmem:[%s1193_s1] sm:$0xff]   ;;  %834 = vmatprep.subr.bf16.mxu1 %v902_v1  ;;  %v907_v6 = vld [vmem:[%s1193_s1 + $0x8] sm:$0xff]   ;;  %v911_v10 = vld [vmem:[%s1193_s1 + $0x10] sm:$0xff]   ;;  %v145_v29 = vunpack.c.0.s8 %v144_v23 }
   0x4   :  { %v904_v3 = vld [vmem:[%s1193_s1 + $0x80] sm:$0xff]   ;;  %813 = vmatpush3.bf16.msra.mxu0 %v903_v2  ;;  %v908_v7 = vld [vmem:[%s1193_s1 + $0x88] sm:$0xff]   ;;  %v912_v11 = vld [vmem:[%s1193_s1 + $0x90] sm:$0xff]  }
   0x5   :  { %835 = vmatpush3.bf16.msra.mxu1 %v904_v3  ;;  %814 = vmatprep.subr.bf16.mxu0 %v905_v4  ;;  %v913_v12 = vld [vmem:[%s1193_s1 + $0x58] sm:$0xff]   ;;  %v917_v16 = vld [vmem:[%s1193_s1 + $0x60] sm:$0xff]   ;;  %v921_v20 = vld [vmem:[%s1193_s1 + $0x68] sm:$0xff]   ;;  %v1072_v35 = vsub.s32 %v145_v29, %v147_v30 }
   0x6   :  { %836 = vmatprep.subr.bf16.mxu1 %v906_v5  ;;  %v914_v13 = vld [vmem:[%s1193_s1 + $0xd8] sm:$0xff]   ;;  %v918_v17 = vld [vmem:[%s1193_s1 + $0xe0] sm:$0xff]   ;;  %v922_v21 = vld [vmem:[%s1193_s1 + $0xe8] sm:$0xff]  }
   0x7   :  { %v915_v14 = vld [vmem:[%s1193_s1 + $0x18] sm:$0xff]   ;;  %v919_v18 = vld [vmem:[%s1193_s1 + $0x20] sm:$0xff]   ;;  %v923_v25 = vld [vmem:[%s1193_s1 + $0x28] sm:$0xff]  }
   0x8   :  { %815 = vmatpush3.bf16.msra.mxu0 %v907_v6  ;;  %v916_v15 = vld [vmem:[%s1193_s1 + $0x98] sm:$0xff]   ;;  %v920_v19 = vld [vmem:[%s1193_s1 + $0xa0] sm:$0xff]   ;;  %v924_v26 = vld [vmem:[%s1193_s1 + $0xa8] sm:$0xff]  }
   0x9   :  { %837 = vmatpush3.bf16.msra.mxu1 %v908_v7  ;;  %816 = vmatprep.subr.bf16.mxu0 %v909_v8  ;;  %v925_v27 = vld [vmem:[%s1193_s1 + $0x70] sm:$0xff]   ;;  %v929_v33 = vld [vmem:[%s1193_s1 + $0x78] sm:$0xff]   ;;  %v12_v38 = vld [vmem:[%s1194_s0] sm:$0xff] }
   0xa   :  { %838 = vmatprep.subr.bf16.mxu1 %v910_v9  ;;  %v926_v28 = vld [vmem:[%s1193_s1 + $0xf0] sm:$0xff]   ;;  %v930_v34 = vld [vmem:[%s1193_s1 + $0xf8] sm:$0xff]   ;;  %v142_v39 = vcombine.high %v12_v38, %v12_v38  ;;  %v149_v40 = vrot.slane %v12_v38, %v1072_v35  ;;  %v934_v41 = vld [vmem:[%s1193_s1 + $0x140] sm:$0xff]  }
   0xb   :  { %v927_v31 = vld [vmem:[%s1193_s1 + $0x30] sm:$0xff]   ;;  %v931_v36 = vld [vmem:[%s1193_s1 + $0x38] sm:$0xff]   ;;  %v935_v42 = vld [vmem:[%s1193_s1 + $0x1c0] sm:$0xff]  }
   0xc   :  { %817 = vmatpush3.bf16.msra.mxu0 %v911_v10  ;;  %v928_v32 = vld [vmem:[%s1193_s1 + $0xb0] sm:$0xff]   ;;  %v932_v37 = vld [vmem:[%s1193_s1 + $0xb8] sm:$0xff]   ;;  %v157_v43 = vcombine.high %v149_v40, %v149_v40  ;;  %v165_v44 = vrot.slane %v149_v40, %v1072_v35  ;;  %v1092_v45 = vrot.slane %v142_v39, %v1072_v35  ;;  %v936_v47 = vld [vmem:[%s1193_s1 + $0x100] sm:$0xff]  }
   0xd   :  { %839 = vmatpush3.bf16.msra.mxu1 %v912_v11  ;;  %818 = vmatprep.subr.bf16.mxu0 %v913_v12  ;;  %v938_v50 = vld [vmem:[%s1193_s1 + $0x148] sm:$0xff]   ;;  %v937_v52 = vld [vmem:[%s1193_s1 + $0x180] sm:$0xff]   ;;  %v942_v57 = vld [vmem:[%s1193_s1 + $0x150] sm:$0xff]  }
   0xe   :  { %840 = vmatprep.subr.bf16.mxu1 %v914_v13  ;;  %v179_v46 = vrot.slane %v157_v43, %v1072_v35  ;;  %v158_v48 = vcombine.high %v1092_v45, %v1092_v45  ;;  %v187_v49 = vcombine.high %v165_v44, %v165_v44  ;;  %v939_v54 = vld [vmem:[%s1193_s1 + $0x1c8] sm:$0xff]   ;;  %v943_v59 = vld [vmem:[%s1193_s1 + $0x1d0] sm:$0xff]   ;;  %v946_v61 = vld [vmem:[%s1193_s1 + $0x158] sm:$0xff]  }
   0xf   :  { %v940_v55 = vld [vmem:[%s1193_s1 + $0x108] sm:$0xff]   ;;  %v944_v60 = vld [vmem:[%s1193_s1 + $0x110] sm:$0xff]   ;;  %v947_v63 = vld [vmem:[%s1193_s1 + $0x1d8] sm:$0xff]  }
  0x10   :  { %819 = vmatpush3.bf16.msra.mxu0 %v915_v14  ;;  %615 = vmatprep.mubr.bf16.mxu0 %v179_v46  ;;  %v189_v51 = vcombine.high %v179_v46, %v179_v46  ;;  %v186_v53 = vrot.slane %v158_v48, %v1072_v35  ;;  %v941_v58 = vld [vmem:[%s1193_s1 + $0x188] sm:$0xff]   ;;  %v945_v62 = vld [vmem:[%s1193_s1 + $0x190] sm:$0xff]   ;;  %v948_v0 = vld [vmem:[%s1193_s1 + $0x118] sm:$0xff]  }
  0x11   :  { %841 = vmatpush3.bf16.msra.mxu1 %v916_v15  ;;  %820 = vmatprep.subr.bf16.mxu0 %v917_v16  ;;  %v950_v1 = vld [vmem:[%s1193_s1 + $0x160] sm:$0xff]   ;;  %v949_v2 = vld [vmem:[%s1193_s1 + $0x198] sm:$0xff]   ;;  %v954_v5 = vld [vmem:[%s1193_s1 + $0x168] sm:$0xff]  }
  0x12   :  { %842 = vmatprep.subr.bf16.mxu1 %v918_v17  ;;  %655 = vmatprep.mubr.bf16.mxu1 %v189_v51  ;;  %v190_v56 = vcombine.high %v186_v53, %v186_v53  ;;  %v951_v3 = vld [vmem:[%s1193_s1 + $0x1e0] sm:$0xff]   ;;  %v955_v7 = vld [vmem:[%s1193_s1 + $0x1e8] sm:$0xff]   ;;  %v958_v9 = vld [vmem:[%s1193_s1 + $0x170] sm:$0xff]   ;;  %v172_v17 = vrot.slane %v1092_v45, %v1072_v35 }
  0x13   :  { %v952_v4 = vld [vmem:[%s1193_s1 + $0x120] sm:$0xff]   ;;  %v956_v8 = vld [vmem:[%s1193_s1 + $0x128] sm:$0xff]   ;;  %v959_v11 = vld [vmem:[%s1193_s1 + $0x1f0] sm:$0xff]  }
  0x14   :  { %821 = vmatpush3.bf16.msra.mxu0 %v919_v18  ;;  %v953_v6 = vld [vmem:[%s1193_s1 + $0x1a0] sm:$0xff]   ;;  %v957_v10 = vld [vmem:[%s1193_s1 + $0x1a8] sm:$0xff]   ;;  %v960_v12 = vld [vmem:[%s1193_s1 + $0x130] sm:$0xff]  }
  0x15   :  { %843 = vmatpush3.bf16.msra.mxu1 %v920_v19  ;;  %822 = vmatprep.subr.bf16.mxu0 %v921_v20  ;;  %v962_v13 = vld [vmem:[%s1193_s1 + $0x178] sm:$0xff]   ;;  %v961_v14 = vld [vmem:[%s1193_s1 + $0x1b0] sm:$0xff]   ;;  %v188_v19 = vcombine.high %v172_v17, %v172_v17 }
  0x16   :  { %844 = vmatprep.subr.bf16.mxu1 %v922_v21  ;;  %v963_v15 = vld [vmem:[%s1193_s1 + $0x1f8] sm:$0xff]  }
  0x17   :  { %v964_v16 = vld [vmem:[%s1193_s1 + $0x138] sm:$0xff]  }
  0x18   :  { %823 = vmatpush3.bf16.msra.mxu0 %v923_v25  ;;  %v965_v18 = vld [vmem:[%s1193_s1 + $0x1b8] sm:$0xff]  }
  0x19   :  { %845 = vmatpush3.bf16.msra.mxu1 %v924_v26  ;;  %824 = vmatprep.subr.bf16.mxu0 %v925_v27 }
  0x1a   :  { %846 = vmatprep.subr.bf16.mxu1 %v926_v28 }
  0x1c   :  { %825 = vmatpush3.bf16.msra.mxu0 %v927_v31 }
  0x1d   :  { %847 = vmatpush3.bf16.msra.mxu1 %v928_v32  ;;  %826 = vmatprep.subr.bf16.mxu0 %v929_v33 }
  0x1e   :  { %848 = vmatprep.subr.bf16.mxu1 %v930_v34 }
  0x20   :  { %827 = vmatpush3.bf16.msra.mxu0 %v931_v36 }
  0x21   :  { %849 = vmatpush3.bf16.msra.mxu1 %v932_v37  ;;  %856 = vmatprep.subr.bf16.mxu0 %v934_v41 }
  0x22   :  { %878 = vmatprep.subr.bf16.mxu1 %v935_v42 }
  0x23   :  { %616 = vmatmul.mubr.bf16.vlgmr.msra.gmra.mrb[0].mxu0 %v165_v44 }
  0x24   :  { %857 = vmatpush3.bf16.msra.mxu0 %v936_v47  ;;  %656 = vmatmul.mubr.bf16.vlgmr.msra.gmra.mrb[0].mxu1 %v187_v49 }
  0x25   :  { %858 = vmatprep.subr.bf16.mxu0 %v938_v50  ;;  %879 = vmatpush3.bf16.msra.mxu1 %v937_v52 }
  0x26   :  { %695 = vmatprep.mubr.bf16.mxu0 %v186_v53  ;;  %880 = vmatprep.subr.bf16.mxu1 %v939_v54 }
  0x27   :  { %735 = vmatprep.mubr.bf16.mxu1 %v190_v56 }
  0x28   :  { %859 = vmatpush3.bf16.msra.mxu0 %v940_v55 }
  0x29   :  { %860 = vmatprep.subr.bf16.mxu0 %v942_v57  ;;  %881 = vmatpush3.bf16.msra.mxu1 %v941_v58 }
  0x2a   :  { %882 = vmatprep.subr.bf16.mxu1 %v943_v59 }
  0x2c   :  { %861 = vmatpush3.bf16.msra.mxu0 %v944_v60 }
  0x2d   :  { %862 = vmatprep.subr.bf16.mxu0 %v946_v61  ;;  %883 = vmatpush3.bf16.msra.mxu1 %v945_v62 }
  0x2e   :  { %884 = vmatprep.subr.bf16.mxu1 %v947_v63 }
  0x30   :  { %863 = vmatpush3.bf16.msra.mxu0 %v948_v0 }
  0x31   :  { %864 = vmatprep.subr.bf16.mxu0 %v950_v1  ;;  %885 = vmatpush3.bf16.msra.mxu1 %v949_v2 }
  0x32   :  { %886 = vmatprep.subr.bf16.mxu1 %v951_v3 }
  0x34   :  { %865 = vmatpush3.bf16.msra.mxu0 %v952_v4 }
  0x35   :  { %866 = vmatprep.subr.bf16.mxu0 %v954_v5  ;;  %887 = vmatpush3.bf16.msra.mxu1 %v953_v6 }
  0x36   :  { %888 = vmatprep.subr.bf16.mxu1 %v955_v7 }
  0x38   :  { %867 = vmatpush3.bf16.msra.mxu0 %v956_v8 }
  0x39   :  { %868 = vmatprep.subr.bf16.mxu0 %v958_v9  ;;  %889 = vmatpush3.bf16.msra.mxu1 %v957_v10 }
  0x3a   :  { %890 = vmatprep.subr.bf16.mxu1 %v959_v11 }
  0x3c   :  { %869 = vmatpush3.bf16.msra.mxu0 %v960_v12 }
  0x3d   :  { %870 = vmatprep.subr.bf16.mxu0 %v962_v13  ;;  %891 = vmatpush3.bf16.msra.mxu1 %v961_v14 }
  0x3e   :  { %892 = vmatprep.subr.bf16.mxu1 %v963_v15 }
  0x40   :  { %871 = vmatpush3.bf16.msra.mxu0 %v964_v16 }
  0x41   :  { %893 = vmatpush3.bf16.msra.mxu1 %v965_v18 }
  0x43   :  { %696 = vmatmul.mubr.bf16.vlgmr.msra.gmra.mrb[4].mxu0 %v172_v17 }
  0x44   :  { %736 = vmatmul.mubr.bf16.vlgmr.msra.gmra.mrb[4].mxu1 %v188_v19 }
  0xf6   :  { %v828_v20 = vpop.f32.mrb[0].mxu0 }
  0xf7   :  { %v829_v21 = vpop.f32.mrb[1].mxu0  ;;  %v850_v22 = vpop.f32.mrb[0].mxu1 }
  0xf8   :  { %v830_v23 = vadd.f32 %v829_v21, %v828_v20  ;;  %v831_v24 = vpop.f32.mrb[2].mxu0  ;;  %v851_v25 = vpop.f32.mrb[1].mxu1 }
  0xf9   :  { %v832_v26 = vpop.f32.mrb[3].mxu0  ;;  %v852_v27 = vadd.f32 %v851_v25, %v850_v22  ;;  %v853_v28 = vpop.f32.mrb[2].mxu1 }
  0xfa   :  { %v854_v29 = vpop.f32.mrb[3].mxu1 }
  0xfb   :  { %v658_v30 = vadd.f32 %v852_v27, %v830_v23 }
 0x116   :  { %v872_v31 = vpop.f32.mrb[4].mxu0 }
 0x117   :  { %v873_v32 = vpop.f32.mrb[5].mxu0  ;;  %v894_v33 = vpop.f32.mrb[4].mxu1 }
 0x118   :  { %v874_v34 = vadd.f32 %v873_v32, %v872_v31  ;;  %v875_v35 = vpop.f32.mrb[6].mxu0  ;;  %v895_v36 = vpop.f32.mrb[5].mxu1 }
 0x119   :  { %v876_v37 = vpop.f32.mrb[7].mxu0  ;;  %v896_v39 = vadd.f32 %v895_v36, %v894_v33  ;;  %v897_v40 = vpop.f32.mrb[6].mxu1 }
 0x11a   :  { %v698_v38 = vadd.f32 %v874_v34, %v658_v30  ;;  %v898_v41 = vpop.f32.mrb[7].mxu1 }
 0x11c   :  { %v738_v42 = vadd.f32 %v896_v39, %v698_v38 }
 0x11e   :  { %743 = vst [vmem:[%s1195_s2] sm:$0x3] %v738_v42 }

// kernel: _forward.33
= control target key start
LH: loop header
LB: loop body
LE: loop exit
PB: predicated region body
PF: predicated region fallthrough
CT: control target
= control target key end

     0   :  { %v5944_v3 = vmov 0   ;;  %s7873_s1 = inlined_call_operand.vmem [shape: bf16[128,9216], index: 1, kind: input, shape index: {}]   ;;  %s7874_s0 = inlined_call_operand.vmem [shape: bf16[2,128], index: 0, kind: input, shape index: {}]   ;;  %s7875_s2 = inlined_call_operand.vmem [shape: f32[2,9216], index: 2, kind: output, shape index: {}]  }
   0x1   :  { %v13_v0 = vld [vmem:[%s7873_s1] sm:$0xff]  ;;  %v14_v2 = vld [vmem:[%s7873_s1 + $0x8] sm:$0xff]  ;;  %3501 = vmatprep.mubr.bf16.mxu0 %v5944_v3  ;;  %3542 = vmatprep.mubr.bf16.mxu1 %v5944_v3  ;;  %v15_v63 = vld [vmem:[%s7873_s1 + $0x10] sm:$0xff] }
   0x2   :  { %v49_v1 = vld [vmem:[%s7873_s1 + $0x120] sm:$0xff]  ;;  %v50_v5 = vld [vmem:[%s7873_s1 + $0x128] sm:$0xff] }
   0x3   :  { %v5364_v4 = vcombine.high %v13_v0, %v49_v1  ;;  %v5363_v6 = vcombine.low %v13_v0, %v49_v1  ;;  %v85_v7 = vld [vmem:[%s7873_s1 + $0x240] sm:$0xff]  ;;  %v5366_v9 = vcombine.high %v14_v2, %v50_v5  ;;  %v5365_v10 = vcombine.low %v14_v2, %v50_v5  ;;  %v86_v12 = vld [vmem:[%s7873_s1 + $0x248] sm:$0xff]  ;;  %v51_v0 = vld [vmem:[%s7873_s1 + $0x130] sm:$0xff] }
   0x4   :  { %v121_v8 = vld [vmem:[%s7873_s1 + $0x360] sm:$0xff]  ;;  %v122_v13 = vld [vmem:[%s7873_s1 + $0x368] sm:$0xff]  ;;  %v16_v1 = vld [vmem:[%s7873_s1 + $0x18] sm:$0xff] }
   0x5   :  { %v5436_v11 = vcombine.high %v85_v7, %v121_v8  ;;  %v157_v14 = vld [vmem:[%s7873_s1 + $0x480] sm:$0xff]  ;;  %3469 = vmatprep.subr.bf16.mxu0 %v5364_v4  ;;  %v5438_v15 = vcombine.high %v86_v12, %v122_v13  ;;  %v158_v17 = vld [vmem:[%s7873_s1 + $0x488] sm:$0xff]  ;;  %3510 = vmatprep.subr.bf16.mxu1 %v5366_v9  ;;  %v5435_v19 = vcombine.low %v85_v7, %v121_v8  ;;  %v52_v2 = vld [vmem:[%s7873_s1 + $0x138] sm:$0xff] }
   0x6   :  { %v193_v16 = vld [vmem:[%s7873_s1 + $0x5a0] sm:$0xff]  ;;  %v194_v18 = vld [vmem:[%s7873_s1 + $0x5a8] sm:$0xff]  ;;  %3470 = vmatpush1.bf16.msra.mxu0 %v5363_v6  ;;  %3511 = vmatpush1.bf16.msra.mxu1 %v5365_v10  ;;  %v5437_v20 = vcombine.low %v86_v12, %v122_v13  ;;  %v5368_v6 = vcombine.high %v15_v63, %v51_v0  ;;  %v5370_v7 = vcombine.high %v16_v1, %v52_v2  ;;  %v87_v8 = vld [vmem:[%s7873_s1 + $0x250] sm:$0xff] }
   0x7   :  { %3471 = vmatprep.subr.bf16.mxu0 %v5436_v11  ;;  %v5508_v21 = vcombine.high %v157_v14, %v193_v16  ;;  %3512 = vmatprep.subr.bf16.mxu1 %v5438_v15  ;;  %v5510_v22 = vcombine.high %v158_v17, %v194_v18  ;;  %v229_v23 = vld [vmem:[%s7873_s1 + $0x6c0] sm:$0xff]  ;;  %v230_v25 = vld [vmem:[%s7873_s1 + $0x6c8] sm:$0xff]  ;;  %v5507_v27 = vcombine.low %v157_v14, %v193_v16  ;;  %v123_v9 = vld [vmem:[%s7873_s1 + $0x370] sm:$0xff] }
   0x8   :  { %v265_v24 = vld [vmem:[%s7873_s1 + $0x7e0] sm:$0xff]  ;;  %v266_v26 = vld [vmem:[%s7873_s1 + $0x7e8] sm:$0xff]  ;;  %v5509_v28 = vcombine.low %v158_v17, %v194_v18  ;;  %v88_v10 = vld [vmem:[%s7873_s1 + $0x258] sm:$0xff]  ;;  %v5367_v13 = vcombine.low %v15_v63, %v51_v0  ;;  %v5369_v14 = vcombine.low %v16_v1, %v52_v2  ;;  %v5440_v15 = vcombine.high %v87_v8, %v123_v9 }
   0x9   :  { %v5580_v29 = vcombine.high %v229_v23, %v265_v24  ;;  %v5582_v30 = vcombine.high %v230_v25, %v266_v26  ;;  %v301_v31 = vld [vmem:[%s7873_s1 + $0x900] sm:$0xff]  ;;  %v302_v33 = vld [vmem:[%s7873_s1 + $0x908] sm:$0xff]  ;;  %v5579_v35 = vcombine.low %v229_v23, %v265_v24  ;;  %v5581_v36 = vcombine.low %v230_v25, %v266_v26  ;;  %v124_v11 = vld [vmem:[%s7873_s1 + $0x378] sm:$0xff] }
   0xa   :  { %3472 = vmatpush1.bf16.msra.mxu0 %v5435_v19  ;;  %3513 = vmatpush1.bf16.msra.mxu1 %v5437_v20  ;;  %v337_v32 = vld [vmem:[%s7873_s1 + $0xa20] sm:$0xff]  ;;  %v338_v34 = vld [vmem:[%s7873_s1 + $0xa28] sm:$0xff]  ;;  %v5442_v16 = vcombine.high %v88_v10, %v124_v11  ;;  %v159_v17 = vld [vmem:[%s7873_s1 + $0x490] sm:$0xff] }
   0xb   :  { %3473 = vmatprep.subr.bf16.mxu0 %v5508_v21  ;;  %3514 = vmatprep.subr.bf16.mxu1 %v5510_v22  ;;  %v5652_v37 = vcombine.high %v301_v31, %v337_v32  ;;  %v5654_v38 = vcombine.high %v302_v33, %v338_v34  ;;  %v373_v39 = vld [vmem:[%s7873_s1 + $0xb40] sm:$0xff]  ;;  %v374_v41 = vld [vmem:[%s7873_s1 + $0xb48] sm:$0xff]  ;;  %v5651_v43 = vcombine.low %v301_v31, %v337_v32  ;;  %v195_v18 = vld [vmem:[%s7873_s1 + $0x5b0] sm:$0xff] }
   0xc   :  { %v409_v40 = vld [vmem:[%s7873_s1 + $0xc60] sm:$0xff]  ;;  %v410_v42 = vld [vmem:[%s7873_s1 + $0xc68] sm:$0xff]  ;;  %v5653_v44 = vcombine.low %v302_v33, %v338_v34  ;;  %v160_v19 = vld [vmem:[%s7873_s1 + $0x498] sm:$0xff]  ;;  %v5439_v21 = vcombine.low %v87_v8, %v123_v9  ;;  %v5441_v22 = vcombine.low %v88_v10, %v124_v11  ;;  %v5512_v23 = vcombine.high %v159_v17, %v195_v18 }
   0xd   :  { %v5724_v45 = vcombine.high %v373_v39, %v409_v40  ;;  %v5726_v46 = vcombine.high %v374_v41, %v410_v42  ;;  %v445_v47 = vld [vmem:[%s7873_s1 + $0xd80] sm:$0xff]  ;;  %v446_v49 = vld [vmem:[%s7873_s1 + $0xd88] sm:$0xff]  ;;  %v5723_v51 = vcombine.low %v373_v39, %v409_v40  ;;  %v5725_v52 = vcombine.low %v374_v41, %v410_v42  ;;  %v196_v20 = vld [vmem:[%s7873_s1 + $0x5b8] sm:$0xff] }
   0xe   :  { %3474 = vmatpush1.bf16.msra.mxu0 %v5507_v27  ;;  %3515 = vmatpush1.bf16.msra.mxu1 %v5509_v28  ;;  %v481_v48 = vld [vmem:[%s7873_s1 + $0xea0] sm:$0xff]  ;;  %v482_v50 = vld [vmem:[%s7873_s1 + $0xea8] sm:$0xff]  ;;  %v5514_v24 = vcombine.high %v160_v19, %v196_v20  ;;  %v231_v25 = vld [vmem:[%s7873_s1 + $0x6d0] sm:$0xff] }
   0xf   :  { %3475 = vmatprep.subr.bf16.mxu0 %v5580_v29  ;;  %3516 = vmatprep.subr.bf16.mxu1 %v5582_v30  ;;  %v5796_v53 = vcombine.high %v445_v47, %v481_v48  ;;  %v5798_v54 = vcombine.high %v446_v49, %v482_v50  ;;  %v517_v55 = vld [vmem:[%s7873_s1 + $0xfc0] sm:$0xff]  ;;  %v518_v57 = vld [vmem:[%s7873_s1 + $0xfc8] sm:$0xff]  ;;  %v5795_v59 = vcombine.low %v445_v47, %v481_v48  ;;  %v267_v26 = vld [vmem:[%s7873_s1 + $0x7f0] sm:$0xff] }
  0x10   :  { %v553_v56 = vld [vmem:[%s7873_s1 + $0x10e0] sm:$0xff]  ;;  %v554_v58 = vld [vmem:[%s7873_s1 + $0x10e8] sm:$0xff]  ;;  %v5797_v60 = vcombine.low %v446_v49, %v482_v50  ;;  %v232_v27 = vld [vmem:[%s7873_s1 + $0x6d8] sm:$0xff]  ;;  %v5511_v29 = vcombine.low %v159_v17, %v195_v18  ;;  %v5513_v30 = vcombine.low %v160_v19, %v196_v20  ;;  %v5584_v31 = vcombine.high %v231_v25, %v267_v26 }
  0x11   :  { %v5868_v61 = vcombine.high %v517_v55, %v553_v56  ;;  %v5870_v62 = vcombine.high %v518_v57, %v554_v58  ;;  %v5867_v4 = vcombine.low %v517_v55, %v553_v56  ;;  %v5869_v5 = vcombine.low %v518_v57, %v554_v58  ;;  %v6086_v12 = vld [vmem:[%s7874_s0] sm:$0x1]  ;;  %v268_v28 = vld [vmem:[%s7873_s1 + $0x7f8] sm:$0xff]  ;;  %v303_v33 = vld [vmem:[%s7873_s1 + $0x910] sm:$0xff] }
  0x12   :  { %3476 = vmatpush1.bf16.msra.mxu0 %v5579_v35  ;;  %3517 = vmatpush1.bf16.msra.mxu1 %v5581_v36  ;;  %v5586_v32 = vcombine.high %v232_v27, %v268_v28  ;;  %v339_v34 = vld [vmem:[%s7873_s1 + $0xa30] sm:$0xff]  ;;  %v304_v35 = vld [vmem:[%s7873_s1 + $0x918] sm:$0xff]  ;;  %v17_v1 = vld [vmem:[%s7873_s1 + $0x20] sm:$0xff] }
  0x13   :  { %3477 = vmatprep.subr.bf16.mxu0 %v5652_v37  ;;  %3518 = vmatprep.subr.bf16.mxu1 %v5654_v38  ;;  %v340_v36 = vld [vmem:[%s7873_s1 + $0xa38] sm:$0xff]  ;;  %v5583_v37 = vcombine.low %v231_v25, %v267_v26  ;;  %v5585_v38 = vcombine.low %v232_v27, %v268_v28  ;;  %v5656_v39 = vcombine.high %v303_v33, %v339_v34  ;;  %v375_v41 = vld [vmem:[%s7873_s1 + $0xb50] sm:$0xff]  ;;  %v53_v2 = vld [vmem:[%s7873_s1 + $0x140] sm:$0xff] }
  0x14   :  { %v5658_v40 = vcombine.high %v304_v35, %v340_v36  ;;  %v411_v42 = vld [vmem:[%s7873_s1 + $0xc70] sm:$0xff]  ;;  %v5372_v8 = vcombine.high %v17_v1, %v53_v2  ;;  %v89_v10 = vld [vmem:[%s7873_s1 + $0x260] sm:$0xff] }
  0x15   :  { %v5728_v47 = vcombine.high %v375_v41, %v411_v42  ;;  %v447_v49 = vld [vmem:[%s7873_s1 + $0xd90] sm:$0xff]  ;;  %v125_v11 = vld [vmem:[%s7873_s1 + $0x380] sm:$0xff] }
  0x16   :  { %3478 = vmatpush1.bf16.msra.mxu0 %v5651_v43  ;;  %3519 = vmatpush1.bf16.msra.mxu1 %v5653_v44  ;;  %v376_v43 = vld [vmem:[%s7873_s1 + $0xb58] sm:$0xff]  ;;  %v483_v50 = vld [vmem:[%s7873_s1 + $0xeb0] sm:$0xff]  ;;  %v5444_v17 = vcombine.high %v89_v10, %v125_v11  ;;  %v161_v19 = vld [vmem:[%s7873_s1 + $0x4a0] sm:$0xff] }
  0x17   :  { %3479 = vmatprep.subr.bf16.mxu0 %v5724_v45  ;;  %3520 = vmatprep.subr.bf16.mxu1 %v5726_v46  ;;  %v412_v44 = vld [vmem:[%s7873_s1 + $0xc78] sm:$0xff]  ;;  %v5655_v45 = vcombine.low %v303_v33, %v339_v34  ;;  %v5657_v46 = vcombine.low %v304_v35, %v340_v36  ;;  %v5800_v55 = vcombine.high %v447_v49, %v483_v50  ;;  %v519_v57 = vld [vmem:[%s7873_s1 + $0xfd0] sm:$0xff]  ;;  %v197_v20 = vld [vmem:[%s7873_s1 + $0x5c0] sm:$0xff] }
  0x18   :  { %v5730_v48 = vcombine.high %v376_v43, %v412_v44  ;;  %v555_v58 = vld [vmem:[%s7873_s1 + $0x10f0] sm:$0xff]  ;;  %v5516_v25 = vcombine.high %v161_v19, %v197_v20  ;;  %v233_v27 = vld [vmem:[%s7873_s1 + $0x6e0] sm:$0xff] }
  0x19   :  { %v5872_v63 = vcombine.high %v519_v57, %v555_v58  ;;  %v269_v28 = vld [vmem:[%s7873_s1 + $0x800] sm:$0xff] }
  0x1a   :  { %3480 = vmatpush1.bf16.msra.mxu0 %v5723_v51  ;;  %3521 = vmatpush1.bf16.msra.mxu1 %v5725_v52  ;;  %v448_v51 = vld [vmem:[%s7873_s1 + $0xd98] sm:$0xff]  ;;  %v5588_v33 = vcombine.high %v233_v27, %v269_v28  ;;  %v305_v35 = vld [vmem:[%s7873_s1 + $0x920] sm:$0xff] }
  0x1b   :  { %3481 = vmatprep.subr.bf16.mxu0 %v5796_v53  ;;  %3522 = vmatprep.subr.bf16.mxu1 %v5798_v54  ;;  %v484_v52 = vld [vmem:[%s7873_s1 + $0xeb8] sm:$0xff]  ;;  %v5727_v53 = vcombine.low %v375_v41, %v411_v42  ;;  %v5729_v54 = vcombine.low %v376_v43, %v412_v44  ;;  %v341_v36 = vld [vmem:[%s7873_s1 + $0xa40] sm:$0xff] }
  0x1c   :  { %v5802_v56 = vcombine.high %v448_v51, %v484_v52  ;;  %v5660_v41 = vcombine.high %v305_v35, %v341_v36  ;;  %v377_v43 = vld [vmem:[%s7873_s1 + $0xb60] sm:$0xff] }
  0x1d   :  { %v413_v44 = vld [vmem:[%s7873_s1 + $0xc80] sm:$0xff] }
  0x1e   :  { %3482 = vmatpush1.bf16.msra.mxu0 %v5795_v59  ;;  %3523 = vmatpush1.bf16.msra.mxu1 %v5797_v60  ;;  %v520_v59 = vld [vmem:[%s7873_s1 + $0xfd8] sm:$0xff] }
  0x1f   :  { %3483 = vmatprep.subr.bf16.mxu0 %v5868_v61  ;;  %3524 = vmatprep.subr.bf16.mxu1 %v5870_v62  ;;  %v556_v60 = vld [vmem:[%s7873_s1 + $0x10f8] sm:$0xff]  ;;  %v5799_v61 = vcombine.low %v447_v49, %v483_v50  ;;  %v5801_v62 = vcombine.low %v448_v51, %v484_v52  ;;  %v5732_v49 = vcombine.high %v377_v43, %v413_v44  ;;  %v449_v51 = vld [vmem:[%s7873_s1 + $0xda0] sm:$0xff] }
  0x20   :  { %v5874_v0 = vcombine.high %v520_v59, %v556_v60  ;;  %v485_v52 = vld [vmem:[%s7873_s1 + $0xec0] sm:$0xff] }
  0x22   :  { %3484 = vmatpush1.bf16.msra.mxu0 %v5867_v4  ;;  %3525 = vmatpush1.bf16.msra.mxu1 %v5869_v5  ;;  %v18_v4 = vld [vmem:[%s7873_s1 + $0x28] sm:$0xff] }
  0x23   :  { %3551 = vmatprep.subr.bf16.mxu0 %v5368_v6  ;;  %3592 = vmatprep.subr.bf16.mxu1 %v5370_v7  ;;  %v54_v5 = vld [vmem:[%s7873_s1 + $0x148] sm:$0xff]  ;;  %v5871_v6 = vcombine.low %v519_v57, %v555_v58  ;;  %v5873_v7 = vcombine.low %v520_v59, %v556_v60  ;;  %v5804_v57 = vcombine.high %v449_v51, %v485_v52  ;;  %v521_v59 = vld [vmem:[%s7873_s1 + $0xfe0] sm:$0xff] }
  0x24   :  { %v5374_v9 = vcombine.high %v18_v4, %v54_v5  ;;  %v557_v60 = vld [vmem:[%s7873_s1 + $0x1100] sm:$0xff] }
  0x25   :  { %3502 = vmatmul.mubr.bf16.vlgmr.msra.gmra.mrb[0].mxu0 %v6086_v12  ;;  %3543 = vmatmul.mubr.bf16.vlgmr.msra.gmra.mrb[0].mxu1 %v6086_v12 }
  0x26   :  { %3552 = vmatpush1.bf16.msra.mxu0 %v5367_v13  ;;  %3593 = vmatpush1.bf16.msra.mxu1 %v5369_v14  ;;  %v90_v13 = vld [vmem:[%s7873_s1 + $0x268] sm:$0xff] }
  0x27   :  { %3553 = vmatprep.subr.bf16.mxu0 %v5440_v15  ;;  %3594 = vmatprep.subr.bf16.mxu1 %v5442_v16  ;;  %v126_v14 = vld [vmem:[%s7873_s1 + $0x388] sm:$0xff]  ;;  %v5371_v15 = vcombine.low %v17_v1, %v53_v2  ;;  %v5373_v16 = vcombine.low %v18_v4, %v54_v5  ;;  %v5876_v1 = vcombine.high %v521_v59, %v557_v60  ;;  %v19_v4 = vld [vmem:[%s7873_s1 + $0x30] sm:$0xff] }
  0x28   :  { %3583 = vmatprep.mubr.bf16.mxu0 %v5944_v3  ;;  %3624 = vmatprep.mubr.bf16.mxu1 %v5944_v3  ;;  %v5446_v18 = vcombine.high %v90_v13, %v126_v14  ;;  %v55_v5 = vld [vmem:[%s7873_s1 + $0x150] sm:$0xff] }
  0x2a   :  { %3554 = vmatpush1.bf16.msra.mxu0 %v5439_v21  ;;  %3595 = vmatpush1.bf16.msra.mxu1 %v5441_v22  ;;  %v162_v21 = vld [vmem:[%s7873_s1 + $0x4a8] sm:$0xff] }
  0x2b   :  { %3555 = vmatprep.subr.bf16.mxu0 %v5512_v23  ;;  %3596 = vmatprep.subr.bf16.mxu1 %v5514_v24  ;;  %v198_v22 = vld [vmem:[%s7873_s1 + $0x5c8] sm:$0xff]  ;;  %v5443_v23 = vcombine.low %v89_v10, %v125_v11  ;;  %v5445_v24 = vcombine.low %v90_v13, %v126_v14  ;;  %v5376_v10 = vcombine.high %v19_v4, %v55_v5  ;;  %v91_v13 = vld [vmem:[%s7873_s1 + $0x270] sm:$0xff] }
  0x2c   :  { %v5518_v26 = vcombine.high %v162_v21, %v198_v22  ;;  %v127_v14 = vld [vmem:[%s7873_s1 + $0x390] sm:$0xff] }
  0x2e   :  { %3556 = vmatpush1.bf16.msra.mxu0 %v5511_v29  ;;  %3597 = vmatpush1.bf16.msra.mxu1 %v5513_v30  ;;  %v234_v29 = vld [vmem:[%s7873_s1 + $0x6e8] sm:$0xff] }
  0x2f   :  { %3557 = vmatprep.subr.bf16.mxu0 %v5584_v31  ;;  %3598 = vmatprep.subr.bf16.mxu1 %v5586_v32  ;;  %v270_v30 = vld [vmem:[%s7873_s1 + $0x808] sm:$0xff]  ;;  %v5515_v31 = vcombine.low %v161_v19, %v197_v20  ;;  %v5517_v32 = vcombine.low %v162_v21, %v198_v22  ;;  %v5448_v19 = vcombine.high %v91_v13, %v127_v14  ;;  %v163_v21 = vld [vmem:[%s7873_s1 + $0x4b0] sm:$0xff] }
  0x30   :  { %v5590_v34 = vcombine.high %v234_v29, %v270_v30  ;;  %v199_v22 = vld [vmem:[%s7873_s1 + $0x5d0] sm:$0xff] }
  0x32   :  { %3558 = vmatpush1.bf16.msra.mxu0 %v5583_v37  ;;  %3599 = vmatpush1.bf16.msra.mxu1 %v5585_v38  ;;  %v306_v37 = vld [vmem:[%s7873_s1 + $0x928] sm:$0xff] }
  0x33   :  { %3559 = vmatprep.subr.bf16.mxu0 %v5656_v39  ;;  %3600 = vmatprep.subr.bf16.mxu1 %v5658_v40  ;;  %v342_v38 = vld [vmem:[%s7873_s1 + $0xa48] sm:$0xff]  ;;  %v5587_v39 = vcombine.low %v233_v27, %v269_v28  ;;  %v5589_v40 = vcombine.low %v234_v29, %v270_v30  ;;  %v5520_v27 = vcombine.high %v163_v21, %v199_v22  ;;  %v235_v29 = vld [vmem:[%s7873_s1 + $0x6f0] sm:$0xff] }
  0x34   :  { %v5662_v42 = vcombine.high %v306_v37, %v342_v38  ;;  %v271_v30 = vld [vmem:[%s7873_s1 + $0x810] sm:$0xff] }
  0x36   :  { %3560 = vmatpush1.bf16.msra.mxu0 %v5655_v45  ;;  %3601 = vmatpush1.bf16.msra.mxu1 %v5657_v46  ;;  %v378_v45 = vld [vmem:[%s7873_s1 + $0xb68] sm:$0xff] }
  0x37   :  { %3561 = vmatprep.subr.bf16.mxu0 %v5728_v47  ;;  %3602 = vmatprep.subr.bf16.mxu1 %v5730_v48  ;;  %v414_v46 = vld [vmem:[%s7873_s1 + $0xc88] sm:$0xff]  ;;  %v5659_v47 = vcombine.low %v305_v35, %v341_v36  ;;  %v5661_v48 = vcombine.low %v306_v37, %v342_v38  ;;  %v5592_v35 = vcombine.high %v235_v29, %v271_v30  ;;  %v307_v37 = vld [vmem:[%s7873_s1 + $0x930] sm:$0xff] }
  0x38   :  { %v5734_v50 = vcombine.high %v378_v45, %v414_v46  ;;  %v343_v38 = vld [vmem:[%s7873_s1 + $0xa50] sm:$0xff] }
  0x3a   :  { %3562 = vmatpush1.bf16.msra.mxu0 %v5727_v53  ;;  %3603 = vmatpush1.bf16.msra.mxu1 %v5729_v54  ;;  %v450_v53 = vld [vmem:[%s7873_s1 + $0xda8] sm:$0xff] }
  0x3b   :  { %3563 = vmatprep.subr.bf16.mxu0 %v5800_v55  ;;  %3604 = vmatprep.subr.bf16.mxu1 %v5802_v56  ;;  %v486_v54 = vld [vmem:[%s7873_s1 + $0xec8] sm:$0xff]  ;;  %v5731_v55 = vcombine.low %v377_v43, %v413_v44  ;;  %v5733_v56 = vcombine.low %v378_v45, %v414_v46  ;;  %v5664_v43 = vcombine.high %v307_v37, %v343_v38  ;;  %v379_v45 = vld [vmem:[%s7873_s1 + $0xb70] sm:$0xff] }
  0x3c   :  { %v5806_v58 = vcombine.high %v450_v53, %v486_v54  ;;  %v415_v46 = vld [vmem:[%s7873_s1 + $0xc90] sm:$0xff] }
  0x3e   :  { %3564 = vmatpush1.bf16.msra.mxu0 %v5799_v61  ;;  %3605 = vmatpush1.bf16.msra.mxu1 %v5801_v62  ;;  %v522_v61 = vld [vmem:[%s7873_s1 + $0xfe8] sm:$0xff] }
  0x3f   :  { %3565 = vmatprep.subr.bf16.mxu0 %v5872_v63  ;;  %3606 = vmatprep.subr.bf16.mxu1 %v5874_v0  ;;  %v558_v62 = vld [vmem:[%s7873_s1 + $0x1108] sm:$0xff]  ;;  %v5803_v63 = vcombine.low %v449_v51, %v485_v52  ;;  %v5805_v0 = vcombine.low %v450_v53, %v486_v54  ;;  %v5736_v51 = vcombine.high %v379_v45, %v415_v46  ;;  %v451_v53 = vld [vmem:[%s7873_s1 + $0xdb0] sm:$0xff] }
  0x40   :  { %v5878_v2 = vcombine.high %v522_v61, %v558_v62  ;;  %v487_v54 = vld [vmem:[%s7873_s1 + $0xed0] sm:$0xff] }
  0x42   :  { %3566 = vmatpush1.bf16.msra.mxu0 %v5871_v6  ;;  %3607 = vmatpush1.bf16.msra.mxu1 %v5873_v7  ;;  %v20_v6 = vld [vmem:[%s7873_s1 + $0x38] sm:$0xff] }
  0x43   :  { %3633 = vmatprep.subr.bf16.mxu0 %v5372_v8  ;;  %3674 = vmatprep.subr.bf16.mxu1 %v5374_v9  ;;  %v56_v7 = vld [vmem:[%s7873_s1 + $0x158] sm:$0xff]  ;;  %v5875_v8 = vcombine.low %v521_v59, %v557_v60  ;;  %v5877_v9 = vcombine.low %v522_v61, %v558_v62  ;;  %v5808_v59 = vcombine.high %v451_v53, %v487_v54  ;;  %v523_v61 = vld [vmem:[%s7873_s1 + $0xff0] sm:$0xff] }
  0x44   :  { %v5378_v11 = vcombine.high %v20_v6, %v56_v7  ;;  %v559_v62 = vld [vmem:[%s7873_s1 + $0x1110] sm:$0xff] }
  0x45   :  { %3584 = vmatmul.mubr.bf16.vlgmr.msra.gmra.mrb[4].mxu0 %v6086_v12  ;;  %3625 = vmatmul.mubr.bf16.vlgmr.msra.gmra.mrb[4].mxu1 %v6086_v12 }
  0x46   :  { %3634 = vmatpush1.bf16.msra.mxu0 %v5371_v15  ;;  %3675 = vmatpush1.bf16.msra.mxu1 %v5373_v16  ;;  %v92_v15 = vld [vmem:[%s7873_s1 + $0x278] sm:$0xff] }
  0x47   :  { %3635 = vmatprep.subr.bf16.mxu0 %v5444_v17  ;;  %3676 = vmatprep.subr.bf16.mxu1 %v5446_v18  ;;  %v128_v16 = vld [vmem:[%s7873_s1 + $0x398] sm:$0xff]  ;;  %v5375_v17 = vcombine.low %v19_v4, %v55_v5  ;;  %v5377_v18 = vcombine.low %v20_v6, %v56_v7  ;;  %v5880_v4 = vcombine.high %v523_v61, %v559_v62  ;;  %v21_v6 = vld [vmem:[%s7873_s1 + $0x40] sm:$0xff] }
  0x48   :  { %3665 = vmatprep.mubr.bf16.mxu0 %v5944_v3  ;;  %3706 = vmatprep.mubr.bf16.mxu1 %v5944_v3  ;;  %v5450_v20 = vcombine.high %v92_v15, %v128_v16  ;;  %v57_v7 = vld [vmem:[%s7873_s1 + $0x160] sm:$0xff] }
  0x4a   :  { %3636 = vmatpush1.bf16.msra.mxu0 %v5443_v23  ;;  %3677 = vmatpush1.bf16.msra.mxu1 %v5445_v24  ;;  %v164_v23 = vld [vmem:[%s7873_s1 + $0x4b8] sm:$0xff] }
  0x4b   :  { %3637 = vmatprep.subr.bf16.mxu0 %v5516_v25  ;;  %3678 = vmatprep.subr.bf16.mxu1 %v5518_v26  ;;  %v200_v24 = vld [vmem:[%s7873_s1 + $0x5d8] sm:$0xff]  ;;  %v5447_v25 = vcombine.low %v91_v13, %v127_v14  ;;  %v5449_v26 = vcombine.low %v92_v15, %v128_v16  ;;  %v5380_v13 = vcombine.high %v21_v6, %v57_v7  ;;  %v93_v15 = vld [vmem:[%s7873_s1 + $0x280] sm:$0xff] }
  0x4c   :  { %v5522_v28 = vcombine.high %v164_v23, %v200_v24  ;;  %v129_v16 = vld [vmem:[%s7873_s1 + $0x3a0] sm:$0xff] }
  0x4e   :  { %3638 = vmatpush1.bf16.msra.mxu0 %v5515_v31  ;;  %3679 = vmatpush1.bf16.msra.mxu1 %v5517_v32  ;;  %v236_v31 = vld [vmem:[%s7873_s1 + $0x6f8] sm:$0xff] }
  0x4f   :  { %3639 = vmatprep.subr.bf16.mxu0 %v5588_v33  ;;  %3680 = vmatprep.subr.bf16.mxu1 %v5590_v34  ;;  %v272_v32 = vld [vmem:[%s7873_s1 + $0x818] sm:$0xff]  ;;  %v5519_v33 = vcombine.low %v163_v21, %v199_v22  ;;  %v5521_v34 = vcombine.low %v164_v23, %v200_v24  ;;  %v5452_v21 = vcombine.high %v93_v15, %v129_v16  ;;  %v165_v23 = vld [vmem:[%s7873_s1 + $0x4c0] sm:$0xff] }
  0x50   :  { %v5594_v36 = vcombine.high %v236_v31, %v272_v32  ;;  %v201_v24 = vld [vmem:[%s7873_s1 + $0x5e0] sm:$0xff] }
  0x52   :  { %3640 = vmatpush1.bf16.msra.mxu0 %v5587_v39  ;;  %3681 = vmatpush1.bf16.msra.mxu1 %v5589_v40  ;;  %v308_v39 = vld [vmem:[%s7873_s1 + $0x938] sm:$0xff] }
  0x53   :  { %3641 = vmatprep.subr.bf16.mxu0 %v5660_v41  ;;  %3682 = vmatprep.subr.bf16.mxu1 %v5662_v42  ;;  %v344_v40 = vld [vmem:[%s7873_s1 + $0xa58] sm:$0xff]  ;;  %v5591_v41 = vcombine.low %v235_v29, %v271_v30  ;;  %v5593_v42 = vcombine.low %v236_v31, %v272_v32  ;;  %v5524_v29 = vcombine.high %v165_v23, %v201_v24  ;;  %v237_v31 = vld [vmem:[%s7873_s1 + $0x700] sm:$0xff] }
  0x54   :  { %v5666_v44 = vcombine.high %v308_v39, %v344_v40  ;;  %v273_v32 = vld [vmem:[%s7873_s1 + $0x820] sm:$0xff] }
  0x56   :  { %3642 = vmatpush1.bf16.msra.mxu0 %v5659_v47  ;;  %3683 = vmatpush1.bf16.msra.mxu1 %v5661_v48  ;;  %v380_v47 = vld [vmem:[%s7873_s1 + $0xb78] sm:$0xff] }
  0x57   :  { %3643 = vmatprep.subr.bf16.mxu0 %v5732_v49  ;;  %3684 = vmatprep.subr.bf16.mxu1 %v5734_v50  ;;  %v416_v48 = vld [vmem:[%s7873_s1 + $0xc98] sm:$0xff]  ;;  %v5663_v49 = vcombine.low %v307_v37, %v343_v38  ;;  %v5665_v50 = vcombine.low %v308_v39, %v344_v40  ;;  %v5596_v37 = vcombine.high %v237_v31, %v273_v32  ;;  %v309_v39 = vld [vmem:[%s7873_s1 + $0x940] sm:$0xff] }
  0x58   :  { %v5738_v52 = vcombine.high %v380_v47, %v416_v48  ;;  %v345_v40 = vld [vmem:[%s7873_s1 + $0xa60] sm:$0xff] }
  0x5a   :  { %3644 = vmatpush1.bf16.msra.mxu0 %v5731_v55  ;;  %3685 = vmatpush1.bf16.msra.mxu1 %v5733_v56  ;;  %v452_v55 = vld [vmem:[%s7873_s1 + $0xdb8] sm:$0xff] }
  0x5b   :  { %3645 = vmatprep.subr.bf16.mxu0 %v5804_v57  ;;  %3686 = vmatprep.subr.bf16.mxu1 %v5806_v58  ;;  %v488_v56 = vld [vmem:[%s7873_s1 + $0xed8] sm:$0xff]  ;;  %v5735_v57 = vcombine.low %v379_v45, %v415_v46  ;;  %v5737_v58 = vcombine.low %v380_v47, %v416_v48  ;;  %v5668_v45 = vcombine.high %v309_v39, %v345_v40  ;;  %v381_v47 = vld [vmem:[%s7873_s1 + $0xb80] sm:$0xff] }
  0x5c   :  { %v5810_v60 = vcombine.high %v452_v55, %v488_v56  ;;  %v417_v48 = vld [vmem:[%s7873_s1 + $0xca0] sm:$0xff] }
  0x5e   :  { %3646 = vmatpush1.bf16.msra.mxu0 %v5803_v63  ;;  %3687 = vmatpush1.bf16.msra.mxu1 %v5805_v0  ;;  %v524_v63 = vld [vmem:[%s7873_s1 + $0xff8] sm:$0xff] }
  0x5f   :  { %3647 = vmatprep.subr.bf16.mxu0 %v5876_v1  ;;  %3688 = vmatprep.subr.bf16.mxu1 %v5878_v2  ;;  %v560_v0 = vld [vmem:[%s7873_s1 + $0x1118] sm:$0xff]  ;;  %v5807_v1 = vcombine.low %v451_v53, %v487_v54  ;;  %v5809_v2 = vcombine.low %v452_v55, %v488_v56  ;;  %v5740_v53 = vcombine.high %v381_v47, %v417_v48  ;;  %v453_v55 = vld [vmem:[%s7873_s1 + $0xdc0] sm:$0xff] }
  0x60   :  { %v5882_v5 = vcombine.high %v524_v63, %v560_v0  ;;  %v489_v56 = vld [vmem:[%s7873_s1 + $0xee0] sm:$0xff] }
  0x62   :  { %3648 = vmatpush1.bf16.msra.mxu0 %v5875_v8  ;;  %3689 = vmatpush1.bf16.msra.mxu1 %v5877_v9  ;;  %v22_v8 = vld [vmem:[%s7873_s1 + $0x48] sm:$0xff] }
  0x63   :  { %3715 = vmatprep.subr.bf16.mxu0 %v5376_v10  ;;  %3756 = vmatprep.subr.bf16.mxu1 %v5378_v11  ;;  %v58_v9 = vld [vmem:[%s7873_s1 + $0x168] sm:$0xff]  ;;  %v5879_v10 = vcombine.low %v523_v61, %v559_v62  ;;  %v5881_v11 = vcombine.low %v524_v63, %v560_v0  ;;  %v5812_v61 = vcombine.high %v453_v55, %v489_v56  ;;  %v525_v63 = vld [vmem:[%s7873_s1 + $0x1000] sm:$0xff] }
  0x64   :  { %v5382_v14 = vcombine.high %v22_v8, %v58_v9  ;;  %v561_v0 = vld [vmem:[%s7873_s1 + $0x1120] sm:$0xff] }
  0x65   :  { %3666 = vmatmul.mubr.bf16.vlgmr.msra.gmra.mrb[8].mxu0 %v6086_v12  ;;  %3707 = vmatmul.mubr.bf16.vlgmr.msra.gmra.mrb[8].mxu1 %v6086_v12 }
  0x66   :  { %3716 = vmatpush1.bf16.msra.mxu0 %v5375_v17  ;;  %3757 = vmatpush1.bf16.msra.mxu1 %v5377_v18  ;;  %v94_v17 = vld [vmem:[%s7873_s1 + $0x288] sm:$0xff] }
  0x67   :  { %3717 = vmatprep.subr.bf16.mxu0 %v5448_v19  ;;  %3758 = vmatprep.subr.bf16.mxu1 %v5450_v20  ;;  %v130_v18 = vld [vmem:[%s7873_s1 + $0x3a8] sm:$0xff]  ;;  %v5379_v19 = vcombine.low %v21_v6, %v57_v7  ;;  %v5381_v20 = vcombine.low %v22_v8, %v58_v9  ;;  %v5884_v6 = vcombine.high %v525_v63, %v561_v0  ;;  %v23_v8 = vld [vmem:[%s7873_s1 + $0x50] sm:$0xff] }
  0x68   :  { %3747 = vmatprep.mubr.bf16.mxu0 %v5944_v3  ;;  %3788 = vmatprep.mubr.bf16.mxu1 %v5944_v3  ;;  %v5454_v22 = vcombine.high %v94_v17, %v130_v18  ;;  %v59_v9 = vld [vmem:[%s7873_s1 + $0x170] sm:$0xff] }
  0x6a   :  { %3718 = vmatpush1.bf16.msra.mxu0 %v5447_v25  ;;  %3759 = vmatpush1.bf16.msra.mxu1 %v5449_v26  ;;  %v166_v25 = vld [vmem:[%s7873_s1 + $0x4c8] sm:$0xff] }
  0x6b   :  { %3719 = vmatprep.subr.bf16.mxu0 %v5520_v27  ;;  %3760 = vmatprep.subr.bf16.mxu1 %v5522_v28  ;;  %v202_v26 = vld [vmem:[%s7873_s1 + $0x5e8] sm:$0xff]  ;;  %v5451_v27 = vcombine.low %v93_v15, %v129_v16  ;;  %v5453_v28 = vcombine.low %v94_v17, %v130_v18  ;;  %v5384_v15 = vcombine.high %v23_v8, %v59_v9  ;;  %v95_v17 = vld [vmem:[%s7873_s1 + $0x290] sm:$0xff] }
  0x6c   :  { %v5526_v30 = vcombine.high %v166_v25, %v202_v26  ;;  %v131_v18 = vld [vmem:[%s7873_s1 + $0x3b0] sm:$0xff] }
  0x6e   :  { %3720 = vmatpush1.bf16.msra.mxu0 %v5519_v33  ;;  %3761 = vmatpush1.bf16.msra.mxu1 %v5521_v34  ;;  %v238_v33 = vld [vmem:[%s7873_s1 + $0x708] sm:$0xff] }
  0x6f   :  { %3721 = vmatprep.subr.bf16.mxu0 %v5592_v35  ;;  %3762 = vmatprep.subr.bf16.mxu1 %v5594_v36  ;;  %v274_v34 = vld [vmem:[%s7873_s1 + $0x828] sm:$0xff]  ;;  %v5523_v35 = vcombine.low %v165_v23, %v201_v24  ;;  %v5525_v36 = vcombine.low %v166_v25, %v202_v26  ;;  %v5456_v23 = vcombine.high %v95_v17, %v131_v18  ;;  %v167_v25 = vld [vmem:[%s7873_s1 + $0x4d0] sm:$0xff] }
  0x70   :  { %v5598_v38 = vcombine.high %v238_v33, %v274_v34  ;;  %v203_v26 = vld [vmem:[%s7873_s1 + $0x5f0] sm:$0xff] }
  0x72   :  { %3722 = vmatpush1.bf16.msra.mxu0 %v5591_v41  ;;  %3763 = vmatpush1.bf16.msra.mxu1 %v5593_v42  ;;  %v310_v41 = vld [vmem:[%s7873_s1 + $0x948] sm:$0xff] }
  0x73   :  { %3723 = vmatprep.subr.bf16.mxu0 %v5664_v43  ;;  %3764 = vmatprep.subr.bf16.mxu1 %v5666_v44  ;;  %v346_v42 = vld [vmem:[%s7873_s1 + $0xa68] sm:$0xff]  ;;  %v5595_v43 = vcombine.low %v237_v31, %v273_v32  ;;  %v5597_v44 = vcombine.low %v238_v33, %v274_v34  ;;  %v5528_v31 = vcombine.high %v167_v25, %v203_v26  ;;  %v239_v33 = vld [vmem:[%s7873_s1 + $0x710] sm:$0xff] }
  0x74   :  { %v5670_v46 = vcombine.high %v310_v41, %v346_v42  ;;  %v275_v34 = vld [vmem:[%s7873_s1 + $0x830] sm:$0xff] }
  0x76   :  { %3724 = vmatpush1.bf16.msra.mxu0 %v5663_v49  ;;  %3765 = vmatpush1.bf16.msra.mxu1 %v5665_v50  ;;  %v382_v49 = vld [vmem:[%s7873_s1 + $0xb88] sm:$0xff] }
  0x77   :  { %3725 = vmatprep.subr.bf16.mxu0 %v5736_v51  ;;  %3766 = vmatprep.subr.bf16.mxu1 %v5738_v52  ;;  %v418_v50 = vld [vmem:[%s7873_s1 + $0xca8] sm:$0xff]  ;;  %v5667_v51 = vcombine.low %v309_v39, %v345_v40  ;;  %v5669_v52 = vcombine.low %v310_v41, %v346_v42  ;;  %v5600_v39 = vcombine.high %v239_v33, %v275_v34  ;;  %v311_v41 = vld [vmem:[%s7873_s1 + $0x950] sm:$0xff] }
  0x78   :  { %v5742_v54 = vcombine.high %v382_v49, %v418_v50  ;;  %v347_v42 = vld [vmem:[%s7873_s1 + $0xa70] sm:$0xff] }
  0x7a   :  { %3726 = vmatpush1.bf16.msra.mxu0 %v5735_v57  ;;  %3767 = vmatpush1.bf16.msra.mxu1 %v5737_v58  ;;  %v454_v57 = vld [vmem:[%s7873_s1 + $0xdc8] sm:$0xff] }
  0x7b   :  { %3727 = vmatprep.subr.bf16.mxu0 %v5808_v59  ;;  %3768 = vmatprep.subr.bf16.mxu1 %v5810_v60  ;;  %v490_v58 = vld [vmem:[%s7873_s1 + $0xee8] sm:$0xff]  ;;  %v5739_v59 = vcombine.low %v381_v47, %v417_v48  ;;  %v5741_v60 = vcombine.low %v382_v49, %v418_v50  ;;  %v5672_v47 = vcombine.high %v311_v41, %v347_v42  ;;  %v383_v49 = vld [vmem:[%s7873_s1 + $0xb90] sm:$0xff] }
  0x7c   :  { %v5814_v62 = vcombine.high %v454_v57, %v490_v58  ;;  %v419_v50 = vld [vmem:[%s7873_s1 + $0xcb0] sm:$0xff] }
  0x7e   :  { %3728 = vmatpush1.bf16.msra.mxu0 %v5807_v1  ;;  %3769 = vmatpush1.bf16.msra.mxu1 %v5809_v2  ;;  %v526_v1 = vld [vmem:[%s7873_s1 + $0x1008] sm:$0xff] }
  0x7f   :  { %3729 = vmatprep.subr.bf16.mxu0 %v5880_v4  ;;  %3770 = vmatprep.subr.bf16.mxu1 %v5882_v5  ;;  %v562_v2 = vld [vmem:[%s7873_s1 + $0x1128] sm:$0xff]  ;;  %v5811_v4 = vcombine.low %v453_v55, %v489_v56  ;;  %v5813_v5 = vcombine.low %v454_v57, %v490_v58  ;;  %v5744_v55 = vcombine.high %v383_v49, %v419_v50  ;;  %v455_v57 = vld [vmem:[%s7873_s1 + $0xdd0] sm:$0xff] }
  0x80   :  { %v5886_v7 = vcombine.high %v526_v1, %v562_v2  ;;  %v491_v58 = vld [vmem:[%s7873_s1 + $0xef0] sm:$0xff] }
  0x82   :  { %3730 = vmatpush1.bf16.msra.mxu0 %v5879_v10  ;;  %3771 = vmatpush1.bf16.msra.mxu1 %v5881_v11  ;;  %v24_v10 = vld [vmem:[%s7873_s1 + $0x58] sm:$0xff] }
  0x83   :  { %3797 = vmatprep.subr.bf16.mxu0 %v5380_v13  ;;  %3838 = vmatprep.subr.bf16.mxu1 %v5382_v14  ;;  %v60_v11 = vld [vmem:[%s7873_s1 + $0x178] sm:$0xff]  ;;  %v5883_v13 = vcombine.low %v525_v63, %v561_v0  ;;  %v5885_v14 = vcombine.low %v526_v1, %v562_v2  ;;  %v5816_v63 = vcombine.high %v455_v57, %v491_v58  ;;  %v527_v1 = vld [vmem:[%s7873_s1 + $0x1010] sm:$0xff] }
  0x84   :  { %v5386_v16 = vcombine.high %v24_v10, %v60_v11  ;;  %v563_v2 = vld [vmem:[%s7873_s1 + $0x1130] sm:$0xff] }
  0x85   :  { %3748 = vmatmul.mubr.bf16.vlgmr.msra.gmra.mrb[12].mxu0 %v6086_v12  ;;  %3789 = vmatmul.mubr.bf16.vlgmr.msra.gmra.mrb[12].mxu1 %v6086_v12 }
  0x86   :  { %3798 = vmatpush1.bf16.msra.mxu0 %v5379_v19  ;;  %3839 = vmatpush1.bf16.msra.mxu1 %v5381_v20  ;;  %v96_v19 = vld [vmem:[%s7873_s1 + $0x298] sm:$0xff] }
  0x87   :  { %3799 = vmatprep.subr.bf16.mxu0 %v5452_v21  ;;  %3840 = vmatprep.subr.bf16.mxu1 %v5454_v22  ;;  %v132_v20 = vld [vmem:[%s7873_s1 + $0x3b8] sm:$0xff]  ;;  %v5383_v21 = vcombine.low %v23_v8, %v59_v9  ;;  %v5385_v22 = vcombine.low %v24_v10, %v60_v11  ;;  %v5888_v8 = vcombine.high %v527_v1, %v563_v2  ;;  %v25_v10 = vld [vmem:[%s7873_s1 + $0x60] sm:$0xff] }
  0x88   :  { %3829 = vmatprep.mubr.bf16.mxu0 %v5944_v3  ;;  %3870 = vmatprep.mubr.bf16.mxu1 %v5944_v3  ;;  %v5458_v24 = vcombine.high %v96_v19, %v132_v20  ;;  %v61_v11 = vld [vmem:[%s7873_s1 + $0x180] sm:$0xff] }
  0x8a   :  { %3800 = vmatpush1.bf16.msra.mxu0 %v5451_v27  ;;  %3841 = vmatpush1.bf16.msra.mxu1 %v5453_v28  ;;  %v168_v27 = vld [vmem:[%s7873_s1 + $0x4d8] sm:$0xff] }
  0x8b   :  { %3801 = vmatprep.subr.bf16.mxu0 %v5524_v29  ;;  %3842 = vmatprep.subr.bf16.mxu1 %v5526_v30  ;;  %v204_v28 = vld [vmem:[%s7873_s1 + $0x5f8] sm:$0xff]  ;;  %v5455_v29 = vcombine.low %v95_v17, %v131_v18  ;;  %v5457_v30 = vcombine.low %v96_v19, %v132_v20  ;;  %v5388_v17 = vcombine.high %v25_v10, %v61_v11  ;;  %v97_v19 = vld [vmem:[%s7873_s1 + $0x2a0] sm:$0xff] }
  0x8c   :  { %v5530_v32 = vcombine.high %v168_v27, %v204_v28  ;;  %v133_v20 = vld [vmem:[%s7873_s1 + $0x3c0] sm:$0xff] }
  0x8e   :  { %3802 = vmatpush1.bf16.msra.mxu0 %v5523_v35  ;;  %3843 = vmatpush1.bf16.msra.mxu1 %v5525_v36  ;;  %v240_v35 = vld [vmem:[%s7873_s1 + $0x718] sm:$0xff] }
  0x8f   :  { %3803 = vmatprep.subr.bf16.mxu0 %v5596_v37  ;;  %3844 = vmatprep.subr.bf16.mxu1 %v5598_v38  ;;  %v276_v36 = vld [vmem:[%s7873_s1 + $0x838] sm:$0xff]  ;;  %v5527_v37 = vcombine.low %v167_v25, %v203_v26  ;;  %v5529_v38 = vcombine.low %v168_v27, %v204_v28  ;;  %v5460_v25 = vcombine.high %v97_v19, %v133_v20  ;;  %v169_v27 = vld [vmem:[%s7873_s1 + $0x4e0] sm:$0xff] }
  0x90   :  { %v5602_v40 = vcombine.high %v240_v35, %v276_v36  ;;  %v205_v28 = vld [vmem:[%s7873_s1 + $0x600] sm:$0xff] }
  0x92   :  { %3804 = vmatpush1.bf16.msra.mxu0 %v5595_v43  ;;  %3845 = vmatpush1.bf16.msra.mxu1 %v5597_v44  ;;  %v312_v43 = vld [vmem:[%s7873_s1 + $0x958] sm:$0xff] }
  0x93   :  { %3805 = vmatprep.subr.bf16.mxu0 %v5668_v45  ;;  %3846 = vmatprep.subr.bf16.mxu1 %v5670_v46  ;;  %v348_v44 = vld [vmem:[%s7873_s1 + $0xa78] sm:$0xff]  ;;  %v5599_v45 = vcombine.low %v239_v33, %v275_v34  ;;  %v5601_v46 = vcombine.low %v240_v35, %v276_v36  ;;  %v5532_v33 = vcombine.high %v169_v27, %v205_v28  ;;  %v241_v35 = vld [vmem:[%s7873_s1 + $0x720] sm:$0xff] }
  0x94   :  { %v5674_v48 = vcombine.high %v312_v43, %v348_v44  ;;  %v277_v36 = vld [vmem:[%s7873_s1 + $0x840] sm:$0xff] }
  0x96   :  { %3806 = vmatpush1.bf16.msra.mxu0 %v5667_v51  ;;  %3847 = vmatpush1.bf16.msra.mxu1 %v5669_v52  ;;  %v384_v51 = vld [vmem:[%s7873_s1 + $0xb98] sm:$0xff] }
  0x97   :  { %3807 = vmatprep.subr.bf16.mxu0 %v5740_v53  ;;  %3848 = vmatprep.subr.bf16.mxu1 %v5742_v54  ;;  %v420_v52 = vld [vmem:[%s7873_s1 + $0xcb8] sm:$0xff]  ;;  %v5671_v53 = vcombine.low %v311_v41, %v347_v42  ;;  %v5673_v54 = vcombine.low %v312_v43, %v348_v44  ;;  %v5604_v41 = vcombine.high %v241_v35, %v277_v36  ;;  %v313_v43 = vld [vmem:[%s7873_s1 + $0x960] sm:$0xff] }
  0x98   :  { %v5746_v56 = vcombine.high %v384_v51, %v420_v52  ;;  %v349_v44 = vld [vmem:[%s7873_s1 + $0xa80] sm:$0xff] }
  0x9a   :  { %3808 = vmatpush1.bf16.msra.mxu0 %v5739_v59  ;;  %3849 = vmatpush1.bf16.msra.mxu1 %v5741_v60  ;;  %v456_v59 = vld [vmem:[%s7873_s1 + $0xdd8] sm:$0xff] }
  0x9b   :  { %3809 = vmatprep.subr.bf16.mxu0 %v5812_v61  ;;  %3850 = vmatprep.subr.bf16.mxu1 %v5814_v62  ;;  %v492_v60 = vld [vmem:[%s7873_s1 + $0xef8] sm:$0xff]  ;;  %v5743_v61 = vcombine.low %v383_v49, %v419_v50  ;;  %v5745_v62 = vcombine.low %v384_v51, %v420_v52  ;;  %v5676_v49 = vcombine.high %v313_v43, %v349_v44  ;;  %v385_v51 = vld [vmem:[%s7873_s1 + $0xba0] sm:$0xff] }
  0x9c   :  { %v5818_v0 = vcombine.high %v456_v59, %v492_v60  ;;  %v421_v52 = vld [vmem:[%s7873_s1 + $0xcc0] sm:$0xff] }
  0x9e   :  { %3810 = vmatpush1.bf16.msra.mxu0 %v5811_v4  ;;  %3851 = vmatpush1.bf16.msra.mxu1 %v5813_v5  ;;  %v528_v4 = vld [vmem:[%s7873_s1 + $0x1018] sm:$0xff] }
  0x9f   :  { %3811 = vmatprep.subr.bf16.mxu0 %v5884_v6  ;;  %3852 = vmatprep.subr.bf16.mxu1 %v5886_v7  ;;  %v564_v5 = vld [vmem:[%s7873_s1 + $0x1138] sm:$0xff]  ;;  %v5815_v6 = vcombine.low %v455_v57, %v491_v58  ;;  %v5817_v7 = vcombine.low %v456_v59, %v492_v60  ;;  %v5748_v57 = vcombine.high %v385_v51, %v421_v52  ;;  %v457_v59 = vld [vmem:[%s7873_s1 + $0xde0] sm:$0xff] }
  0xa0   :  { %v5890_v9 = vcombine.high %v528_v4, %v564_v5  ;;  %v493_v60 = vld [vmem:[%s7873_s1 + $0xf00] sm:$0xff] }
  0xa2   :  { %3812 = vmatpush1.bf16.msra.mxu0 %v5883_v13  ;;  %3853 = vmatpush1.bf16.msra.mxu1 %v5885_v14  ;;  %v26_v13 = vld [vmem:[%s7873_s1 + $0x68] sm:$0xff] }
  0xa3   :  { %3879 = vmatprep.subr.bf16.mxu0 %v5384_v15  ;;  %3920 = vmatprep.subr.bf16.mxu1 %v5386_v16  ;;  %v62_v14 = vld [vmem:[%s7873_s1 + $0x188] sm:$0xff]  ;;  %v5887_v15 = vcombine.low %v527_v1, %v563_v2  ;;  %v5889_v16 = vcombine.low %v528_v4, %v564_v5  ;;  %v5820_v1 = vcombine.high %v457_v59, %v493_v60  ;;  %v529_v4 = vld [vmem:[%s7873_s1 + $0x1020] sm:$0xff] }
  0xa4   :  { %v5390_v18 = vcombine.high %v26_v13, %v62_v14  ;;  %v565_v5 = vld [vmem:[%s7873_s1 + $0x1140] sm:$0xff] }
  0xa5   :  { %3830 = vmatmul.mubr.bf16.vlgmr.msra.gmra.mrb[16].mxu0 %v6086_v12  ;;  %3871 = vmatmul.mubr.bf16.vlgmr.msra.gmra.mrb[16].mxu1 %v6086_v12 }
  0xa6   :  { %3880 = vmatpush1.bf16.msra.mxu0 %v5383_v21  ;;  %3921 = vmatpush1.bf16.msra.mxu1 %v5385_v22  ;;  %v98_v21 = vld [vmem:[%s7873_s1 + $0x2a8] sm:$0xff] }
  0xa7   :  { %3881 = vmatprep.subr.bf16.mxu0 %v5456_v23  ;;  %3922 = vmatprep.subr.bf16.mxu1 %v5458_v24  ;;  %v134_v22 = vld [vmem:[%s7873_s1 + $0x3c8] sm:$0xff]  ;;  %v5387_v23 = vcombine.low %v25_v10, %v61_v11  ;;  %v5389_v24 = vcombine.low %v26_v13, %v62_v14  ;;  %v5892_v10 = vcombine.high %v529_v4, %v565_v5  ;;  %v27_v13 = vld [vmem:[%s7873_s1 + $0x70] sm:$0xff] }
  0xa8   :  { %3911 = vmatprep.mubr.bf16.mxu0 %v5944_v3  ;;  %3952 = vmatprep.mubr.bf16.mxu1 %v5944_v3  ;;  %v5462_v26 = vcombine.high %v98_v21, %v134_v22  ;;  %v63_v14 = vld [vmem:[%s7873_s1 + $0x190] sm:$0xff] }
  0xaa   :  { %3882 = vmatpush1.bf16.msra.mxu0 %v5455_v29  ;;  %3923 = vmatpush1.bf16.msra.mxu1 %v5457_v30  ;;  %v170_v29 = vld [vmem:[%s7873_s1 + $0x4e8] sm:$0xff] }
  0xab   :  { %3883 = vmatprep.subr.bf16.mxu0 %v5528_v31  ;;  %3924 = vmatprep.subr.bf16.mxu1 %v5530_v32  ;;  %v206_v30 = vld [vmem:[%s7873_s1 + $0x608] sm:$0xff]  ;;  %v6604_v31 = vld [vmem:[%s7874_s0] sm:$0x1]  ;;  %v5459_v32 = vcombine.low %v97_v19, %v133_v20  ;;  %v5392_v19 = vcombine.high %v27_v13, %v63_v14 }
  0xac   :  { %v5534_v34 = vcombine.high %v170_v29, %v206_v30 }
  0xae   :  { %3884 = vmatpush1.bf16.msra.mxu0 %v5527_v37  ;;  %3925 = vmatpush1.bf16.msra.mxu1 %v5529_v38  ;;  %v242_v37 = vld [vmem:[%s7873_s1 + $0x728] sm:$0xff] }
  0xaf   :  { %3885 = vmatprep.subr.bf16.mxu0 %v5600_v39  ;;  %3926 = vmatprep.subr.bf16.mxu1 %v5602_v40  ;;  %v278_v38 = vld [vmem:[%s7873_s1 + $0x848] sm:$0xff]  ;;  %v5531_v39 = vcombine.low %v169_v27, %v205_v28  ;;  %v5533_v40 = vcombine.low %v170_v29, %v206_v30  ;;  %v171_v29 = vld [vmem:[%s7873_s1 + $0x4f0] sm:$0xff] }
  0xb0   :  { %v5606_v42 = vcombine.high %v242_v37, %v278_v38  ;;  %v207_v30 = vld [vmem:[%s7873_s1 + $0x610] sm:$0xff] }
  0xb2   :  { %3886 = vmatpush1.bf16.msra.mxu0 %v5599_v45  ;;  %3927 = vmatpush1.bf16.msra.mxu1 %v5601_v46  ;;  %v314_v45 = vld [vmem:[%s7873_s1 + $0x968] sm:$0xff] }
  0xb3   :  { %3887 = vmatprep.subr.bf16.mxu0 %v5672_v47  ;;  %3928 = vmatprep.subr.bf16.mxu1 %v5674_v48  ;;  %v350_v46 = vld [vmem:[%s7873_s1 + $0xa88] sm:$0xff]  ;;  %v5603_v47 = vcombine.low %v241_v35, %v277_v36  ;;  %v5605_v48 = vcombine.low %v242_v37, %v278_v38  ;;  %v5536_v35 = vcombine.high %v171_v29, %v207_v30  ;;  %v243_v37 = vld [vmem:[%s7873_s1 + $0x730] sm:$0xff] }
  0xb4   :  { %v5678_v50 = vcombine.high %v314_v45, %v350_v46  ;;  %v279_v38 = vld [vmem:[%s7873_s1 + $0x850] sm:$0xff] }
  0xb6   :  { %3888 = vmatpush1.bf16.msra.mxu0 %v5671_v53  ;;  %3929 = vmatpush1.bf16.msra.mxu1 %v5673_v54  ;;  %v386_v53 = vld [vmem:[%s7873_s1 + $0xba8] sm:$0xff] }
  0xb7   :  { %3889 = vmatprep.subr.bf16.mxu0 %v5744_v55  ;;  %3930 = vmatprep.subr.bf16.mxu1 %v5746_v56  ;;  %v422_v54 = vld [vmem:[%s7873_s1 + $0xcc8] sm:$0xff]  ;;  %v5675_v55 = vcombine.low %v313_v43, %v349_v44  ;;  %v5677_v56 = vcombine.low %v314_v45, %v350_v46  ;;  %v5608_v43 = vcombine.high %v243_v37, %v279_v38  ;;  %v315_v45 = vld [vmem:[%s7873_s1 + $0x970] sm:$0xff] }
  0xb8   :  { %v5750_v58 = vcombine.high %v386_v53, %v422_v54  ;;  %v351_v46 = vld [vmem:[%s7873_s1 + $0xa90] sm:$0xff] }
  0xba   :  { %3890 = vmatpush1.bf16.msra.mxu0 %v5743_v61  ;;  %3931 = vmatpush1.bf16.msra.mxu1 %v5745_v62  ;;  %v458_v61 = vld [vmem:[%s7873_s1 + $0xde8] sm:$0xff] }
  0xbb   :  { %3891 = vmatprep.subr.bf16.mxu0 %v5816_v63  ;;  %3932 = vmatprep.subr.bf16.mxu1 %v5818_v0  ;;  %v494_v62 = vld [vmem:[%s7873_s1 + $0xf08] sm:$0xff]  ;;  %v5747_v63 = vcombine.low %v385_v51, %v421_v52  ;;  %v5749_v0 = vcombine.low %v386_v53, %v422_v54  ;;  %v5680_v51 = vcombine.high %v315_v45, %v351_v46  ;;  %v5945_v53 = vmov 1983009808  }
  0xbc   :  { %v5822_v2 = vcombine.high %v458_v61, %v494_v62  ;;  %v5020_v54 = vunpack.c.l.s4 %v5945_v53  ;;  %v210_v53 = vld [vmem:[%s7873_s1 + $0x628] sm:$0xff] }
  0xbe   :  { %3892 = vmatpush1.bf16.msra.mxu0 %v5815_v6  ;;  %3933 = vmatpush1.bf16.msra.mxu1 %v5817_v7  ;;  %v530_v6 = vld [vmem:[%s7873_s1 + $0x1028] sm:$0xff] }
  0xbf   :  { %3893 = vmatprep.subr.bf16.mxu0 %v5888_v8  ;;  %3934 = vmatprep.subr.bf16.mxu1 %v5890_v9  ;;  %v566_v7 = vld [vmem:[%s7873_s1 + $0x1148] sm:$0xff]  ;;  %v5819_v8 = vcombine.low %v457_v59, %v493_v60  ;;  %v5821_v9 = vcombine.low %v458_v61, %v494_v62  ;;  %v424_v59 = vld [vmem:[%s7873_s1 + $0xcd8] sm:$0xff]  ;;  %v5679_v60 = vcombine.low %v315_v45, %v351_v46 }
  0xc0   :  { %v5894_v11 = vcombine.high %v530_v6, %v566_v7  ;;  %v138_v45 = vld [vmem:[%s7873_s1 + $0x3e8] sm:$0xff] }
  0xc2   :  { %3894 = vmatpush1.bf16.msra.mxu0 %v5887_v15  ;;  %3935 = vmatpush1.bf16.msra.mxu1 %v5889_v16  ;;  %v28_v15 = vld [vmem:[%s7873_s1 + $0x78] sm:$0xff] }
  0xc3   :  { %3961 = vmatprep.subr.bf16.mxu0 %v5388_v17  ;;  %4002 = vmatprep.subr.bf16.mxu1 %v5390_v18  ;;  %v64_v16 = vld [vmem:[%s7873_s1 + $0x198] sm:$0xff]  ;;  %v5891_v17 = vcombine.low %v529_v4, %v565_v5  ;;  %v5893_v18 = vcombine.low %v530_v6, %v566_v7  ;;  %v495_v4 = vld [vmem:[%s7873_s1 + $0xf10] sm:$0xff] }
  0xc4   :  { %v5394_v20 = vcombine.high %v28_v15, %v64_v16  ;;  %v460_v5 = vld [vmem:[%s7873_s1 + $0xdf8] sm:$0xff] }
  0xc5   :  { %3912 = vmatmul.mubr.bf16.vlgmr.msra.gmra.mrb[20].mxu0 %v6086_v12  ;;  %3953 = vmatmul.mubr.bf16.vlgmr.msra.gmra.mrb[20].mxu1 %v6604_v31  ;;  %v5461_v12 = vcombine.low %v98_v21, %v134_v22  ;;  %v99_v21 = vld [vmem:[%s7873_s1 + $0x2b0] sm:$0xff]  ;;  %v496_v6 = vld [vmem:[%s7873_s1 + $0xf18] sm:$0xff] }
  0xc6   :  { %3962 = vmatpush1.bf16.msra.mxu0 %v5387_v23  ;;  %4003 = vmatpush1.bf16.msra.mxu1 %v5389_v24  ;;  %v135_v22 = vld [vmem:[%s7873_s1 + $0x3d0] sm:$0xff]  ;;  %v100_v23 = vld [vmem:[%s7873_s1 + $0x2b8] sm:$0xff] }
  0xc7   :  { %3963 = vmatprep.subr.bf16.mxu0 %v5460_v25  ;;  %4004 = vmatprep.subr.bf16.mxu1 %v5462_v26  ;;  %v136_v24 = vld [vmem:[%s7873_s1 + $0x3d8] sm:$0xff]  ;;  %v5391_v25 = vcombine.low %v27_v13, %v63_v14  ;;  %v5393_v26 = vcombine.low %v28_v15, %v64_v16  ;;  %v5464_v27 = vcombine.high %v99_v21, %v135_v22  ;;  %v531_v14 = vld [vmem:[%s7873_s1 + $0x1030] sm:$0xff] }
  0xc8   :  { %3993 = vmatprep.mubr.bf16.mxu0 %v5944_v3  ;;  %4034 = vmatprep.mubr.bf16.mxu1 %v5944_v3  ;;  %v5466_v28 = vcombine.high %v100_v23, %v136_v24  ;;  %v5826_v13 = vcombine.high %v460_v5, %v496_v6  ;;  %v567_v15 = vld [vmem:[%s7873_s1 + $0x1150] sm:$0xff] }
  0xca   :  { %3964 = vmatpush1.bf16.msra.mxu0 %v5459_v32  ;;  %4005 = vmatpush1.bf16.msra.mxu1 %v5461_v12  ;;  %v172_v32 = vld [vmem:[%s7873_s1 + $0x4f8] sm:$0xff] }
  0xcb   :  { %3965 = vmatprep.subr.bf16.mxu0 %v5532_v33  ;;  %4006 = vmatprep.subr.bf16.mxu1 %v5534_v34  ;;  %v208_v12 = vld [vmem:[%s7873_s1 + $0x618] sm:$0xff]  ;;  %v5463_v33 = vcombine.low %v99_v21, %v135_v22  ;;  %v5465_v34 = vcombine.low %v100_v23, %v136_v24 }
  0xcc   :  { %v5538_v36 = vcombine.high %v172_v32, %v208_v12 }
  0xce   :  { %3966 = vmatpush1.bf16.msra.mxu0 %v5531_v39  ;;  %4007 = vmatpush1.bf16.msra.mxu1 %v5533_v40  ;;  %v244_v39 = vld [vmem:[%s7873_s1 + $0x738] sm:$0xff] }
  0xcf   :  { %3967 = vmatprep.subr.bf16.mxu0 %v5604_v41  ;;  %4008 = vmatprep.subr.bf16.mxu1 %v5606_v42  ;;  %v280_v40 = vld [vmem:[%s7873_s1 + $0x858] sm:$0xff]  ;;  %v5535_v41 = vcombine.low %v171_v29, %v207_v30  ;;  %v5537_v42 = vcombine.low %v172_v32, %v208_v12  ;;  %v29_v12 = vld [vmem:[%s7873_s1 + $0x80] sm:$0xff] }
  0xd0   :  { %v5610_v44 = vcombine.high %v244_v39, %v280_v40 }
  0xd2   :  { %3968 = vmatpush1.bf16.msra.mxu0 %v5603_v47  ;;  %4009 = vmatpush1.bf16.msra.mxu1 %v5605_v48  ;;  %v316_v47 = vld [vmem:[%s7873_s1 + $0x978] sm:$0xff] }
  0xd3   :  { %3969 = vmatprep.subr.bf16.mxu0 %v5676_v49  ;;  %4010 = vmatprep.subr.bf16.mxu1 %v5678_v50  ;;  %v352_v48 = vld [vmem:[%s7873_s1 + $0xa98] sm:$0xff]  ;;  %v5607_v49 = vcombine.low %v243_v37, %v279_v38  ;;  %v5609_v50 = vcombine.low %v244_v39, %v280_v40  ;;  %v5895_v37 = vcombine.low %v531_v14, %v567_v15 }
  0xd4   :  { %v5682_v52 = vcombine.high %v316_v47, %v352_v48  ;;  %v5681_v61 = vcombine.low %v316_v47, %v352_v48 }
  0xd6   :  { %3970 = vmatpush1.bf16.msra.mxu0 %v5675_v55  ;;  %4011 = vmatpush1.bf16.msra.mxu1 %v5677_v56  ;;  %v5022_v55 = vlaneseq  ;;  %v387_v56 = vld [vmem:[%s7873_s1 + $0xbb0] sm:$0xff] }
  0xd7   :  { %3971 = vmatprep.subr.bf16.mxu0 %v5748_v57  ;;  %4012 = vmatprep.subr.bf16.mxu1 %v5750_v58  ;;  %v423_v57 = vld [vmem:[%s7873_s1 + $0xcd0] sm:$0xff]  ;;  %v388_v58 = vld [vmem:[%s7873_s1 + $0xbb8] sm:$0xff] }
  0xd8   :  { %v5752_v62 = vcombine.high %v387_v56, %v423_v57  ;;  %v5751_v7 = vcombine.low %v387_v56, %v423_v57 }
  0xda   :  { %3972 = vmatpush1.bf16.msra.mxu0 %v5747_v63  ;;  %4013 = vmatpush1.bf16.msra.mxu1 %v5749_v0  ;;  %v5021_v63 = vunpack.c.0.s8 %v5020_v54  ;;  %v5023_v0 = vshrl.u32 %v5022_v55, 7 }
  0xdb   :  { %3973 = vmatprep.subr.bf16.mxu0 %v5820_v1  ;;  %4014 = vmatprep.subr.bf16.mxu1 %v5822_v2  ;;  %v5754_v1 = vcombine.high %v388_v58, %v424_v59  ;;  %v459_v2 = vld [vmem:[%s7873_s1 + $0xdf0] sm:$0xff] }
  0xdc   :  { %v5823_v23 = vcombine.low %v459_v2, %v495_v4 }
  0xde   :  { %3974 = vmatpush1.bf16.msra.mxu0 %v5819_v8  ;;  %4015 = vmatpush1.bf16.msra.mxu1 %v5821_v9  ;;  %v5753_v8 = vcombine.low %v388_v58, %v424_v59  ;;  %v5824_v9 = vcombine.high %v459_v2, %v495_v4  ;;  %v245_v58 = vld [vmem:[%s7873_s1 + $0x740] sm:$0xff] }
  0xdf   :  { %3975 = vmatprep.subr.bf16.mxu0 %v5892_v10  ;;  %4016 = vmatprep.subr.bf16.mxu1 %v5894_v11  ;;  %v6757_v11 = vsub.s32 %v5021_v63, %v5023_v0  ;;  %v281_v59 = vld [vmem:[%s7873_s1 + $0x860] sm:$0xff] }
  0xe0   :  { %v5612_v0 = vcombine.high %v245_v58, %v281_v59  ;;  %v317_v2 = vld [vmem:[%s7873_s1 + $0x980] sm:$0xff] }
  0xe1   :  { %v353_v4 = vld [vmem:[%s7873_s1 + $0xaa0] sm:$0xff] }
  0xe2   :  { %3976 = vmatpush1.bf16.msra.mxu0 %v5891_v17  ;;  %4017 = vmatpush1.bf16.msra.mxu1 %v5893_v18  ;;  %v532_v18 = vld [vmem:[%s7873_s1 + $0x1038] sm:$0xff] }
  0xe3   :  { %4043 = vmatprep.subr.bf16.mxu0 %v5392_v19  ;;  %4084 = vmatprep.subr.bf16.mxu1 %v5394_v20  ;;  %v568_v19 = vld [vmem:[%s7873_s1 + $0x1158] sm:$0xff] }
  0xe4   :  { %v5898_v32 = vcombine.high %v532_v18, %v568_v19  ;;  %v5897_v39 = vcombine.low %v532_v18, %v568_v19 }
  0xe5   :  { %3994 = vmatmul.mubr.bf16.vlgmr.msra.gmra.mrb[24].mxu0 %v6604_v31  ;;  %4035 = vmatmul.mubr.bf16.vlgmr.msra.gmra.mrb[24].mxu1 %v6604_v31 }
  0xe6   :  { %4044 = vmatpush1.bf16.msra.mxu0 %v5391_v25  ;;  %4085 = vmatpush1.bf16.msra.mxu1 %v5393_v26 }
  0xe7   :  { %4045 = vmatprep.subr.bf16.mxu0 %v5464_v27  ;;  %4086 = vmatprep.subr.bf16.mxu1 %v5466_v28  ;;  %v5825_v27 = vcombine.low %v460_v5, %v496_v6  ;;  %v5896_v28 = vcombine.high %v531_v14, %v567_v15  ;;  %v318_v5 = vld [vmem:[%s7873_s1 + $0x988] sm:$0xff]  ;;  %v425_v14 = vld [vmem:[%s7873_s1 + $0xce0] sm:$0xff] }
  0xe8   :  { %4075 = vmatprep.mubr.bf16.mxu0 %v5944_v3  ;;  %4116 = vmatprep.mubr.bf16.mxu1 %v5944_v3  ;;  %v354_v6 = vld [vmem:[%s7873_s1 + $0xaa8] sm:$0xff] }
  0xe9   :  { %v390_v15 = vld [vmem:[%s7873_s1 + $0xbc8] sm:$0xff]  ;;  %v5685_v18 = vcombine.low %v318_v5, %v354_v6 }
  0xea   :  { %4046 = vmatpush1.bf16.msra.mxu0 %v5463_v33  ;;  %4087 = vmatpush1.bf16.msra.mxu1 %v5465_v34  ;;  %v65_v33 = vld [vmem:[%s7873_s1 + $0x1a0] sm:$0xff] }
  0xeb   :  { %4047 = vmatprep.subr.bf16.mxu0 %v5536_v35  ;;  %4088 = vmatprep.subr.bf16.mxu1 %v5538_v36  ;;  %v30_v35 = vld [vmem:[%s7873_s1 + $0x88] sm:$0xff]  ;;  %v5396_v40 = vcombine.high %v29_v12, %v65_v33  ;;  %v5395_v46 = vcombine.low %v29_v12, %v65_v33 }
  0xec   :  { %v66_v36 = vld [vmem:[%s7873_s1 + $0x1a8] sm:$0xff] }
  0xed   :  { %v5397_v47 = vcombine.low %v30_v35, %v66_v36 }
  0xee   :  { %4048 = vmatpush1.bf16.msra.mxu0 %v5535_v41  ;;  %4089 = vmatpush1.bf16.msra.mxu1 %v5537_v42  ;;  %v5398_v41 = vcombine.high %v30_v35, %v66_v36  ;;  %v101_v42 = vld [vmem:[%s7873_s1 + $0x2c0] sm:$0xff]  ;;  %v570_v35 = vld [vmem:[%s7873_s1 + $0x1168] sm:$0xff] }
  0xef   :  { %4049 = vmatprep.subr.bf16.mxu0 %v5608_v43  ;;  %4090 = vmatprep.subr.bf16.mxu1 %v5610_v44  ;;  %v137_v43 = vld [vmem:[%s7873_s1 + $0x3e0] sm:$0xff]  ;;  %v102_v44 = vld [vmem:[%s7873_s1 + $0x2c8] sm:$0xff] }
  0xf0   :  { %v5468_v48 = vcombine.high %v101_v42, %v137_v43  ;;  %v5467_v54 = vcombine.low %v101_v42, %v137_v43  ;;  %v5469_v55 = vcombine.low %v102_v44, %v138_v45 }
  0xf2   :  { %4050 = vmatpush1.bf16.msra.mxu0 %v5607_v49  ;;  %4091 = vmatpush1.bf16.msra.mxu1 %v5609_v50  ;;  %v5470_v49 = vcombine.high %v102_v44, %v138_v45  ;;  %v173_v50 = vld [vmem:[%s7873_s1 + $0x500] sm:$0xff] }
  0xf3   :  { %4051 = vmatprep.subr.bf16.mxu0 %v5680_v51  ;;  %4092 = vmatprep.subr.bf16.mxu1 %v5682_v52  ;;  %v209_v51 = vld [vmem:[%s7873_s1 + $0x620] sm:$0xff]  ;;  %v174_v52 = vld [vmem:[%s7873_s1 + $0x508] sm:$0xff] }
  0xf4   :  { %v5540_v56 = vcombine.high %v173_v50, %v209_v51  ;;  %v5542_v57 = vcombine.high %v174_v52, %v210_v53  ;;  %v5541_v63 = vcombine.low %v174_v52, %v210_v53  ;;  %v68_v52 = vld [vmem:[%s7873_s1 + $0x1b8] sm:$0xff] }
  0xf6   :  { %4052 = vmatpush1.bf16.msra.mxu0 %v5679_v60  ;;  %4093 = vmatpush1.bf16.msra.mxu1 %v5681_v61  ;;  %v246_v60 = vld [vmem:[%s7873_s1 + $0x748] sm:$0xff] }
  0xf7   :  { %4053 = vmatprep.subr.bf16.mxu0 %v5752_v62  ;;  %4094 = vmatprep.subr.bf16.mxu1 %v5754_v1  ;;  %v282_v61 = vld [vmem:[%s7873_s1 + $0x868] sm:$0xff]  ;;  %v5539_v62 = vcombine.low %v173_v50, %v209_v51  ;;  %v32_v51 = vld [vmem:[%s7873_s1 + $0x98] sm:$0xff] }
  0xf8   :  { %v3503_v10 = vpop.f32.mrb[0].mxu0  ;;  %v3544_v16 = vpop.f32.mrb[0].mxu1  ;;  %v5614_v1 = vcombine.high %v246_v60, %v282_v61 }
  0xf9   :  { %v3505_v17 = vpop.f32.mrb[1].mxu0  ;;  %v3546_v21 = vpop.f32.mrb[1].mxu1 }
  0xfa   :  { %v5017_v20 = vcombine.low %v3503_v10, %v3505_v17  ;;  %v3507_v22 = vpop.f32.mrb[2].mxu0  ;;  %4054 = vmatpush1.bf16.msra.mxu0 %v5751_v7  ;;  %v5018_v24 = vcombine.low %v3544_v16, %v3546_v21  ;;  %v3548_v25 = vpop.f32.mrb[2].mxu1  ;;  %4095 = vmatpush1.bf16.msra.mxu1 %v5753_v8  ;;  %v5611_v7 = vcombine.low %v245_v58, %v281_v59  ;;  %v426_v16 = vld [vmem:[%s7873_s1 + $0xce8] sm:$0xff]  ;;  %v461_v21 = vld [vmem:[%s7873_s1 + $0xe00] sm:$0xff]  ;;  %v103_v58 = vld [vmem:[%s7873_s1 + $0x2d0] sm:$0xff] }
  0xfb   :  { %v3508_v26 = vpop.f32.mrb[3].mxu0  ;;  %4055 = vmatprep.subr.bf16.mxu0 %v5824_v9  ;;  %v3549_v30 = vpop.f32.mrb[3].mxu1  ;;  %4096 = vmatprep.subr.bf16.mxu1 %v5826_v13  ;;  %v5613_v8 = vcombine.low %v246_v60, %v282_v61  ;;  %v5684_v9 = vcombine.high %v317_v2, %v353_v4  ;;  %v5686_v10 = vcombine.high %v318_v5, %v354_v6  ;;  %v389_v13 = vld [vmem:[%s7873_s1 + $0xbc0] sm:$0xff]  ;;  %v139_v59 = vld [vmem:[%s7873_s1 + $0x3f0] sm:$0xff]  ;;  %v104_v60 = vld [vmem:[%s7873_s1 + $0x2d8] sm:$0xff] }
  0xfc   :  { %v5025_v29 = vrot.slane %v5017_v20, %v6757_v11  ;;  %v5032_v34 = vrot.slane %v5018_v24, %v6757_v11  ;;  %v5683_v17 = vcombine.low %v317_v2, %v353_v4  ;;  %v5756_v19 = vcombine.high %v389_v13, %v425_v14  ;;  %v497_v22 = vld [vmem:[%s7873_s1 + $0xf20] sm:$0xff]  ;;  %v498_v24 = vld [vmem:[%s7873_s1 + $0xf28] sm:$0xff]  ;;  %v140_v61 = vld [vmem:[%s7873_s1 + $0x3f8] sm:$0xff] }
  0xfd   :  { %v5758_v20 = vcombine.high %v390_v15, %v426_v16  ;;  %v5755_v25 = vcombine.low %v389_v13, %v425_v14  ;;  %v5757_v26 = vcombine.low %v390_v15, %v426_v16  ;;  %v533_v30 = vld [vmem:[%s7873_s1 + $0x1040] sm:$0xff]  ;;  %v175_v2 = vld [vmem:[%s7873_s1 + $0x510] sm:$0xff]  ;;  %v176_v5 = vld [vmem:[%s7873_s1 + $0x518] sm:$0xff] }
  0xfe   :  { %4056 = vmatpush1.bf16.msra.mxu0 %v5823_v23  ;;  %v5033_v38 = vcombine.low %v5025_v29, %v5032_v34  ;;  %4097 = vmatpush1.bf16.msra.mxu1 %v5825_v27  ;;  %v462_v23 = vld [vmem:[%s7873_s1 + $0xe08] sm:$0xff]  ;;  %v5828_v27 = vcombine.high %v461_v21, %v497_v22  ;;  %v211_v4 = vld [vmem:[%s7873_s1 + $0x630] sm:$0xff]  ;;  %v212_v6 = vld [vmem:[%s7873_s1 + $0x638] sm:$0xff] }
  0xff   :  { %4057 = vmatprep.subr.bf16.mxu0 %v5896_v28  ;;  %4098 = vmatprep.subr.bf16.mxu1 %v5898_v32  ;;  %v5830_v29 = vcombine.high %v462_v23, %v498_v24  ;;  %v569_v32 = vld [vmem:[%s7873_s1 + $0x1160] sm:$0xff]  ;;  %v534_v34 = vld [vmem:[%s7873_s1 + $0x1048] sm:$0xff]  ;;  %v5829_v43 = vcombine.low %v462_v23, %v498_v24  ;;  %v247_v13 = vld [vmem:[%s7873_s1 + $0x750] sm:$0xff] }
 0x100   :  { %5341 = vst [vmem:[%s7875_s2] sm:$0xff] %v5033_v38  ;;  %v5900_v44 = vcombine.high %v533_v30, %v569_v32  ;;  %v5899_v53 = vcombine.low %v533_v30, %v569_v32  ;;  %v283_v14 = vld [vmem:[%s7873_s1 + $0x870] sm:$0xff]  ;;  %v248_v15 = vld [vmem:[%s7873_s1 + $0x758] sm:$0xff] }
 0x101   :  { %v284_v16 = vld [vmem:[%s7873_s1 + $0x878] sm:$0xff]  ;;  %v427_v30 = vld [vmem:[%s7873_s1 + $0xcf0] sm:$0xff] }
 0x102   :  { %4058 = vmatpush1.bf16.msra.mxu0 %v5895_v37  ;;  %4099 = vmatpush1.bf16.msra.mxu1 %v5897_v39  ;;  %v5827_v39 = vcombine.low %v461_v21, %v497_v22  ;;  %v319_v21 = vld [vmem:[%s7873_s1 + $0x990] sm:$0xff]  ;;  %v320_v23 = vld [vmem:[%s7873_s1 + $0x998] sm:$0xff] }
 0x103   :  { %4125 = vmatprep.subr.bf16.mxu0 %v5396_v40  ;;  %4166 = vmatprep.subr.bf16.mxu1 %v5398_v41  ;;  %v355_v22 = vld [vmem:[%s7873_s1 + $0xab0] sm:$0xff]  ;;  %v356_v24 = vld [vmem:[%s7873_s1 + $0xab8] sm:$0xff] }
 0x104   :  { %v392_v32 = vld [vmem:[%s7873_s1 + $0xbd8] sm:$0xff] }
 0x105   :  { %4076 = vmatmul.mubr.bf16.vlgmr.msra.gmra.mrb[28].mxu0 %v6604_v31  ;;  %4117 = vmatmul.mubr.bf16.vlgmr.msra.gmra.mrb[28].mxu1 %v6604_v31 }
 0x106   :  { %4126 = vmatpush1.bf16.msra.mxu0 %v5395_v46  ;;  %4167 = vmatpush1.bf16.msra.mxu1 %v5397_v47  ;;  %v5902_v47 = vcombine.high %v534_v34, %v570_v35 }
 0x107   :  { %4127 = vmatprep.subr.bf16.mxu0 %v5468_v48  ;;  %4168 = vmatprep.subr.bf16.mxu1 %v5470_v49  ;;  %v31_v48 = vld [vmem:[%s7873_s1 + $0x90] sm:$0xff] }
 0x108   :  { %4157 = vmatprep.mubr.bf16.mxu0 %v5944_v3  ;;  %4198 = vmatprep.mubr.bf16.mxu1 %v5944_v3  ;;  %v67_v49 = vld [vmem:[%s7873_s1 + $0x1b0] sm:$0xff] }
 0x10a   :  { %4128 = vmatpush1.bf16.msra.mxu0 %v5467_v54  ;;  %4169 = vmatpush1.bf16.msra.mxu1 %v5469_v55  ;;  %v5901_v55 = vcombine.low %v534_v34, %v570_v35  ;;  %v5689_v34 = vcombine.low %v320_v23, %v356_v24 }
 0x10b   :  { %4129 = vmatprep.subr.bf16.mxu0 %v5540_v56  ;;  %4170 = vmatprep.subr.bf16.mxu1 %v5542_v57  ;;  %v5400_v56 = vcombine.high %v31_v48, %v67_v49  ;;  %v5402_v57 = vcombine.high %v32_v51, %v68_v52 }
 0x10e   :  { %4130 = vmatpush1.bf16.msra.mxu0 %v5539_v62  ;;  %4171 = vmatpush1.bf16.msra.mxu1 %v5541_v63  ;;  %v5399_v62 = vcombine.low %v31_v48, %v67_v49  ;;  %v5401_v63 = vcombine.low %v32_v51, %v68_v52  ;;  %v572_v51 = vld [vmem:[%s7873_s1 + $0x1178] sm:$0xff] }
 0x10f   :  { %4131 = vmatprep.subr.bf16.mxu0 %v5612_v0  ;;  %4172 = vmatprep.subr.bf16.mxu1 %v5614_v1  ;;  %v5472_v0 = vcombine.high %v103_v58, %v139_v59  ;;  %v5474_v1 = vcombine.high %v104_v60, %v140_v61 }
 0x112   :  { %4132 = vmatpush1.bf16.msra.mxu0 %v5611_v7  ;;  %4173 = vmatpush1.bf16.msra.mxu1 %v5613_v8  ;;  %v5471_v7 = vcombine.low %v103_v58, %v139_v59  ;;  %v5473_v8 = vcombine.low %v104_v60, %v140_v61 }
 0x113   :  { %4133 = vmatprep.subr.bf16.mxu0 %v5684_v9  ;;  %4174 = vmatprep.subr.bf16.mxu1 %v5686_v10  ;;  %v5544_v9 = vcombine.high %v175_v2, %v211_v4  ;;  %v5546_v10 = vcombine.high %v176_v5, %v212_v6 }
 0x116   :  { %4134 = vmatpush1.bf16.msra.mxu0 %v5683_v17  ;;  %4175 = vmatpush1.bf16.msra.mxu1 %v5685_v18  ;;  %v5543_v17 = vcombine.low %v175_v2, %v211_v4  ;;  %v5545_v18 = vcombine.low %v176_v5, %v212_v6  ;;  %v34_v4 = vld [vmem:[%s7873_s1 + $0xa8] sm:$0xff] }
 0x117   :  { %4135 = vmatprep.subr.bf16.mxu0 %v5756_v19  ;;  %4176 = vmatprep.subr.bf16.mxu1 %v5758_v20  ;;  %v5616_v19 = vcombine.high %v247_v13, %v283_v14  ;;  %v5618_v20 = vcombine.high %v248_v15, %v284_v16  ;;  %v70_v5 = vld [vmem:[%s7873_s1 + $0x1c8] sm:$0xff] }
 0x118   :  { %v3585_v28 = vpop.f32.mrb[4].mxu0  ;;  %v3626_v12 = vpop.f32.mrb[4].mxu1 }
 0x119   :  { %v3587_v33 = vpop.f32.mrb[5].mxu0  ;;  %v3628_v37 = vpop.f32.mrb[5].mxu1 }
 0x11a   :  { %v5034_v36 = vcombine.low %v3585_v28, %v3587_v33  ;;  %v3589_v38 = vpop.f32.mrb[6].mxu0  ;;  %4136 = vmatpush1.bf16.msra.mxu0 %v5755_v25  ;;  %v5035_v40 = vcombine.low %v3626_v12, %v3628_v37  ;;  %v3630_v41 = vpop.f32.mrb[6].mxu1  ;;  %4177 = vmatpush1.bf16.msra.mxu1 %v5757_v26  ;;  %v5615_v25 = vcombine.low %v247_v13, %v283_v14  ;;  %v428_v12 = vld [vmem:[%s7873_s1 + $0xcf8] sm:$0xff]  ;;  %v463_v37 = vld [vmem:[%s7873_s1 + $0xe10] sm:$0xff]  ;;  %v105_v13 = vld [vmem:[%s7873_s1 + $0x2e0] sm:$0xff] }
 0x11b   :  { %v3590_v42 = vpop.f32.mrb[7].mxu0  ;;  %4137 = vmatprep.subr.bf16.mxu0 %v5828_v27  ;;  %v3631_v46 = vpop.f32.mrb[7].mxu1  ;;  %4178 = vmatprep.subr.bf16.mxu1 %v5830_v29  ;;  %v5617_v26 = vcombine.low %v248_v15, %v284_v16  ;;  %v5688_v27 = vcombine.high %v319_v21, %v355_v22  ;;  %v5690_v28 = vcombine.high %v320_v23, %v356_v24  ;;  %v391_v29 = vld [vmem:[%s7873_s1 + $0xbd0] sm:$0xff]  ;;  %v141_v14 = vld [vmem:[%s7873_s1 + $0x400] sm:$0xff]  ;;  %v106_v15 = vld [vmem:[%s7873_s1 + $0x2e8] sm:$0xff] }
 0x11c   :  { %v5042_v45 = vrot.slane %v5034_v36, %v6757_v11  ;;  %v5049_v50 = vrot.slane %v5035_v40, %v6757_v11  ;;  %v5687_v33 = vcombine.low %v319_v21, %v355_v22  ;;  %v5760_v35 = vcombine.high %v391_v29, %v427_v30  ;;  %v499_v38 = vld [vmem:[%s7873_s1 + $0xf30] sm:$0xff]  ;;  %v500_v40 = vld [vmem:[%s7873_s1 + $0xf38] sm:$0xff]  ;;  %v142_v16 = vld [vmem:[%s7873_s1 + $0x408] sm:$0xff] }
 0x11d   :  { %v5762_v36 = vcombine.high %v392_v32, %v428_v12  ;;  %v5759_v41 = vcombine.low %v391_v29, %v427_v30  ;;  %v5761_v42 = vcombine.low %v392_v32, %v428_v12  ;;  %v535_v46 = vld [vmem:[%s7873_s1 + $0x1050] sm:$0xff]  ;;  %v177_v21 = vld [vmem:[%s7873_s1 + $0x520] sm:$0xff]  ;;  %v178_v23 = vld [vmem:[%s7873_s1 + $0x528] sm:$0xff] }
 0x11e   :  { %4138 = vmatpush1.bf16.msra.mxu0 %v5827_v39  ;;  %v5050_v54 = vcombine.low %v5042_v45, %v5049_v50  ;;  %4179 = vmatpush1.bf16.msra.mxu1 %v5829_v43  ;;  %v464_v39 = vld [vmem:[%s7873_s1 + $0xe18] sm:$0xff]  ;;  %v5832_v43 = vcombine.high %v463_v37, %v499_v38  ;;  %v213_v22 = vld [vmem:[%s7873_s1 + $0x640] sm:$0xff]  ;;  %v214_v24 = vld [vmem:[%s7873_s1 + $0x648] sm:$0xff] }
 0x11f   :  { %4139 = vmatprep.subr.bf16.mxu0 %v5900_v44  ;;  %4180 = vmatprep.subr.bf16.mxu1 %v5902_v47  ;;  %v5834_v45 = vcombine.high %v464_v39, %v500_v40  ;;  %v571_v47 = vld [vmem:[%s7873_s1 + $0x1170] sm:$0xff]  ;;  %v536_v50 = vld [vmem:[%s7873_s1 + $0x1058] sm:$0xff]  ;;  %v5833_v59 = vcombine.low %v464_v39, %v500_v40  ;;  %v249_v29 = vld [vmem:[%s7873_s1 + $0x760] sm:$0xff]  ;;  %v5547_v12 = vcombine.low %v177_v21, %v213_v22 }
 0x120   :  { %5342 = vst [vmem:[%s7875_s2 + $0x8] sm:$0xff] %v5050_v54  ;;  %v5904_v60 = vcombine.high %v535_v46, %v571_v47  ;;  %v5903_v6 = vcombine.low %v535_v46, %v571_v47  ;;  %v285_v30 = vld [vmem:[%s7873_s1 + $0x880] sm:$0xff]  ;;  %v286_v32 = vld [vmem:[%s7873_s1 + $0x888] sm:$0xff] }
 0x121   :  { %v358_v39 = vld [vmem:[%s7873_s1 + $0xac8] sm:$0xff]  ;;  %v5619_v40 = vcombine.low %v249_v29, %v285_v30 }
 0x122   :  { %4140 = vmatpush1.bf16.msra.mxu0 %v5899_v53  ;;  %4181 = vmatpush1.bf16.msra.mxu1 %v5901_v55  ;;  %v5831_v55 = vcombine.low %v463_v37, %v499_v38  ;;  %v357_v37 = vld [vmem:[%s7873_s1 + $0xac0] sm:$0xff]  ;;  %v322_v38 = vld [vmem:[%s7873_s1 + $0x9a8] sm:$0xff] }
 0x123   :  { %4207 = vmatprep.subr.bf16.mxu0 %v5400_v56  ;;  %4248 = vmatprep.subr.bf16.mxu1 %v5402_v57  ;;  %v394_v46 = vld [vmem:[%s7873_s1 + $0xbe8] sm:$0xff] }
 0x124   :  { %v430_v47 = vld [vmem:[%s7873_s1 + $0xd08] sm:$0xff] }
 0x125   :  { %4158 = vmatmul.mubr.bf16.vlgmr.msra.gmra.mrb[32].mxu0 %v6604_v31  ;;  %4199 = vmatmul.mubr.bf16.vlgmr.msra.gmra.mrb[32].mxu1 %v6604_v31 }
 0x126   :  { %4208 = vmatpush1.bf16.msra.mxu0 %v5399_v62  ;;  %4249 = vmatpush1.bf16.msra.mxu1 %v5401_v63  ;;  %v5906_v63 = vcombine.high %v536_v50, %v572_v51 }
 0x127   :  { %4209 = vmatprep.subr.bf16.mxu0 %v5472_v0  ;;  %4250 = vmatprep.subr.bf16.mxu1 %v5474_v1  ;;  %v33_v0 = vld [vmem:[%s7873_s1 + $0xa0] sm:$0xff] }
 0x128   :  { %4239 = vmatprep.mubr.bf16.mxu0 %v5944_v3  ;;  %4280 = vmatprep.mubr.bf16.mxu1 %v5944_v3  ;;  %v69_v1 = vld [vmem:[%s7873_s1 + $0x1c0] sm:$0xff] }
 0x12a   :  { %4210 = vmatpush1.bf16.msra.mxu0 %v5471_v7  ;;  %4251 = vmatpush1.bf16.msra.mxu1 %v5473_v8  ;;  %v5905_v8 = vcombine.low %v536_v50, %v572_v51  ;;  %v5766_v51 = vcombine.high %v394_v46, %v430_v47 }
 0x12b   :  { %4211 = vmatprep.subr.bf16.mxu0 %v5544_v9  ;;  %4252 = vmatprep.subr.bf16.mxu1 %v5546_v10  ;;  %v5404_v9 = vcombine.high %v33_v0, %v69_v1  ;;  %v5406_v10 = vcombine.high %v34_v4, %v70_v5 }
 0x12e   :  { %4212 = vmatpush1.bf16.msra.mxu0 %v5543_v17  ;;  %4253 = vmatpush1.bf16.msra.mxu1 %v5545_v18  ;;  %v5403_v17 = vcombine.low %v33_v0, %v69_v1  ;;  %v5405_v18 = vcombine.low %v34_v4, %v70_v5  ;;  %v538_v1 = vld [vmem:[%s7873_s1 + $0x1068] sm:$0xff] }
 0x12f   :  { %4213 = vmatprep.subr.bf16.mxu0 %v5616_v19  ;;  %4254 = vmatprep.subr.bf16.mxu1 %v5618_v20  ;;  %v5476_v19 = vcombine.high %v105_v13, %v141_v14  ;;  %v5478_v20 = vcombine.high %v106_v15, %v142_v16 }
 0x132   :  { %4214 = vmatpush1.bf16.msra.mxu0 %v5615_v25  ;;  %4255 = vmatpush1.bf16.msra.mxu1 %v5617_v26  ;;  %v5475_v25 = vcombine.low %v105_v13, %v141_v14  ;;  %v5477_v26 = vcombine.low %v106_v15, %v142_v16 }
 0x133   :  { %4215 = vmatprep.subr.bf16.mxu0 %v5688_v27  ;;  %4256 = vmatprep.subr.bf16.mxu1 %v5690_v28  ;;  %v5548_v27 = vcombine.high %v177_v21, %v213_v22  ;;  %v5550_v28 = vcombine.high %v178_v23, %v214_v24  ;;  %v36_v21 = vld [vmem:[%s7873_s1 + $0xb8] sm:$0xff] }
 0x134   :  { %v72_v22 = vld [vmem:[%s7873_s1 + $0x1d8] sm:$0xff] }
 0x136   :  { %4216 = vmatpush1.bf16.msra.mxu0 %v5687_v33  ;;  %4257 = vmatpush1.bf16.msra.mxu1 %v5689_v34  ;;  %v5549_v33 = vcombine.low %v178_v23, %v214_v24  ;;  %v5620_v34 = vcombine.high %v249_v29, %v285_v30  ;;  %v143_v29 = vld [vmem:[%s7873_s1 + $0x410] sm:$0xff]  ;;  %v108_v30 = vld [vmem:[%s7873_s1 + $0x2f8] sm:$0xff] }
 0x137   :  { %4217 = vmatprep.subr.bf16.mxu0 %v5760_v35  ;;  %4258 = vmatprep.subr.bf16.mxu1 %v5762_v36  ;;  %v321_v36 = vld [vmem:[%s7873_s1 + $0x9a0] sm:$0xff] }
 0x138   :  { %v3667_v44 = vpop.f32.mrb[8].mxu0  ;;  %v3708_v48 = vpop.f32.mrb[8].mxu1 }
 0x139   :  { %v3669_v49 = vpop.f32.mrb[9].mxu0  ;;  %v3710_v53 = vpop.f32.mrb[9].mxu1 }
 0x13a   :  { %v5051_v52 = vcombine.low %v3667_v44, %v3669_v49  ;;  %v3671_v54 = vpop.f32.mrb[10].mxu0  ;;  %4218 = vmatpush1.bf16.msra.mxu0 %v5759_v41  ;;  %v5052_v56 = vcombine.low %v3708_v48, %v3710_v53  ;;  %v3712_v57 = vpop.f32.mrb[10].mxu1  ;;  %4259 = vmatpush1.bf16.msra.mxu1 %v5761_v42  ;;  %v5692_v42 = vcombine.high %v321_v36, %v357_v37  ;;  %v393_v44 = vld [vmem:[%s7873_s1 + $0xbe0] sm:$0xff] }
 0x13b   :  { %v3672_v58 = vpop.f32.mrb[11].mxu0  ;;  %4219 = vmatprep.subr.bf16.mxu0 %v5832_v43  ;;  %v3713_v62 = vpop.f32.mrb[11].mxu1  ;;  %4260 = vmatprep.subr.bf16.mxu1 %v5834_v45  ;;  %v5694_v43 = vcombine.high %v322_v38, %v358_v39  ;;  %v429_v45 = vld [vmem:[%s7873_s1 + $0xd00] sm:$0xff]  ;;  %v5691_v48 = vcombine.low %v321_v36, %v357_v37  ;;  %v5693_v49 = vcombine.low %v322_v38, %v358_v39  ;;  %v466_v54 = vld [vmem:[%s7873_s1 + $0xe28] sm:$0xff]  ;;  %v215_v36 = vld [vmem:[%s7873_s1 + $0x650] sm:$0xff] }
 0x13c   :  { %v5059_v61 = vrot.slane %v5051_v52, %v6757_v11  ;;  %v5066_v2 = vrot.slane %v5052_v56, %v6757_v11  ;;  %v5764_v50 = vcombine.high %v393_v44, %v429_v45  ;;  %v465_v52 = vld [vmem:[%s7873_s1 + $0xe20] sm:$0xff]  ;;  %v5763_v56 = vcombine.low %v393_v44, %v429_v45  ;;  %v180_v38 = vld [vmem:[%s7873_s1 + $0x538] sm:$0xff]  ;;  %v251_v44 = vld [vmem:[%s7873_s1 + $0x770] sm:$0xff] }
 0x13d   :  { %v501_v53 = vld [vmem:[%s7873_s1 + $0xf40] sm:$0xff]  ;;  %v5765_v57 = vcombine.low %v394_v46, %v430_v47  ;;  %v216_v39 = vld [vmem:[%s7873_s1 + $0x658] sm:$0xff]  ;;  %v287_v45 = vld [vmem:[%s7873_s1 + $0x890] sm:$0xff] }
 0x13e   :  { %4220 = vmatpush1.bf16.msra.mxu0 %v5831_v55  ;;  %v5067_v7 = vcombine.low %v5059_v61, %v5066_v2  ;;  %4261 = vmatpush1.bf16.msra.mxu1 %v5833_v59  ;;  %v502_v55 = vld [vmem:[%s7873_s1 + $0xf48] sm:$0xff]  ;;  %v5836_v58 = vcombine.high %v465_v52, %v501_v53  ;;  %v537_v61 = vld [vmem:[%s7873_s1 + $0x1060] sm:$0xff]  ;;  %v252_v46 = vld [vmem:[%s7873_s1 + $0x778] sm:$0xff] }
 0x13f   :  { %4221 = vmatprep.subr.bf16.mxu0 %v5904_v60  ;;  %4262 = vmatprep.subr.bf16.mxu1 %v5906_v63  ;;  %v5838_v60 = vcombine.high %v466_v54, %v502_v55  ;;  %v573_v62 = vld [vmem:[%s7873_s1 + $0x1180] sm:$0xff]  ;;  %v574_v2 = vld [vmem:[%s7873_s1 + $0x1188] sm:$0xff]  ;;  %v5837_v13 = vcombine.low %v466_v54, %v502_v55  ;;  %v288_v47 = vld [vmem:[%s7873_s1 + $0x898] sm:$0xff] }
 0x140   :  { %5343 = vst [vmem:[%s7875_s2 + $0x10] sm:$0xff] %v5067_v7  ;;  %v5835_v7 = vcombine.low %v465_v52, %v501_v53  ;;  %v5908_v14 = vcombine.high %v537_v61, %v573_v62  ;;  %v5907_v23 = vcombine.low %v537_v61, %v573_v62  ;;  %v7124_v37 = vld [vmem:[%s7874_s0] sm:$0x1]  ;;  %v323_v52 = vld [vmem:[%s7873_s1 + $0x9b0] sm:$0xff]  ;;  %v324_v54 = vld [vmem:[%s7873_s1 + $0x9b8] sm:$0xff] }
 0x141   :  { %v359_v53 = vld [vmem:[%s7873_s1 + $0xad0] sm:$0xff]  ;;  %v360_v55 = vld [vmem:[%s7873_s1 + $0xad8] sm:$0xff] }
 0x142   :  { %4222 = vmatpush1.bf16.msra.mxu0 %v5903_v6  ;;  %4263 = vmatpush1.bf16.msra.mxu1 %v5905_v8  ;;  %v431_v61 = vld [vmem:[%s7873_s1 + $0xd10] sm:$0xff]  ;;  %v396_v62 = vld [vmem:[%s7873_s1 + $0xbf8] sm:$0xff] }
 0x143   :  { %4289 = vmatprep.subr.bf16.mxu0 %v5404_v9  ;;  %4330 = vmatprep.subr.bf16.mxu1 %v5406_v10 }
 0x145   :  { %4240 = vmatmul.mubr.bf16.vlgmr.msra.gmra.mrb[36].mxu0 %v6604_v31  ;;  %4281 = vmatmul.mubr.bf16.vlgmr.msra.gmra.mrb[36].mxu1 %v6604_v31  ;;  %v250_v31 = vld [vmem:[%s7873_s1 + $0x768] sm:$0xff] }
 0x146   :  { %4290 = vmatpush1.bf16.msra.mxu0 %v5403_v17  ;;  %4331 = vmatpush1.bf16.msra.mxu1 %v5405_v18  ;;  %v5622_v35 = vcombine.high %v250_v31, %v286_v32  ;;  %v5621_v41 = vcombine.low %v250_v31, %v286_v32  ;;  %v5910_v17 = vcombine.high %v538_v1, %v574_v2  ;;  %v35_v18 = vld [vmem:[%s7873_s1 + $0xb0] sm:$0xff]  ;;  %v144_v31 = vld [vmem:[%s7873_s1 + $0x418] sm:$0xff] }
 0x147   :  { %4291 = vmatprep.subr.bf16.mxu0 %v5476_v19  ;;  %4332 = vmatprep.subr.bf16.mxu1 %v5478_v20  ;;  %v71_v19 = vld [vmem:[%s7873_s1 + $0x1d0] sm:$0xff] }
 0x148   :  { %4321 = vmatprep.mubr.bf16.mxu0 %v5944_v3  ;;  %4362 = vmatprep.mubr.bf16.mxu1 %v5944_v3  ;;  %v5407_v32 = vcombine.low %v35_v18, %v71_v19 }
 0x14a   :  { %4292 = vmatpush1.bf16.msra.mxu0 %v5475_v25  ;;  %4333 = vmatpush1.bf16.msra.mxu1 %v5477_v26  ;;  %v5909_v25 = vcombine.low %v538_v1, %v574_v2  ;;  %v5408_v26 = vcombine.high %v35_v18, %v71_v19  ;;  %v5697_v1 = vcombine.low %v324_v54, %v360_v55 }
 0x14b   :  { %4293 = vmatprep.subr.bf16.mxu0 %v5548_v27  ;;  %4334 = vmatprep.subr.bf16.mxu1 %v5550_v28  ;;  %v5410_v27 = vcombine.high %v36_v21, %v72_v22  ;;  %v107_v28 = vld [vmem:[%s7873_s1 + $0x2f0] sm:$0xff] }
 0x14e   :  { %4294 = vmatpush1.bf16.msra.mxu0 %v5547_v12  ;;  %4335 = vmatpush1.bf16.msra.mxu1 %v5549_v33  ;;  %v5409_v12 = vcombine.low %v36_v21, %v72_v22  ;;  %v5480_v33 = vcombine.high %v107_v28, %v143_v29  ;;  %v576_v21 = vld [vmem:[%s7873_s1 + $0x1198] sm:$0xff] }
 0x14f   :  { %4295 = vmatprep.subr.bf16.mxu0 %v5620_v34  ;;  %4336 = vmatprep.subr.bf16.mxu1 %v5622_v35  ;;  %v5482_v34 = vcombine.high %v108_v30, %v144_v31  ;;  %v179_v35 = vld [vmem:[%s7873_s1 + $0x530] sm:$0xff] }
 0x152   :  { %4296 = vmatpush1.bf16.msra.mxu0 %v5619_v40  ;;  %4337 = vmatpush1.bf16.msra.mxu1 %v5621_v41  ;;  %v5479_v40 = vcombine.low %v107_v28, %v143_v29  ;;  %v5481_v41 = vcombine.low %v108_v30, %v144_v31 }
 0x153   :  { %4297 = vmatprep.subr.bf16.mxu0 %v5692_v42  ;;  %4338 = vmatprep.subr.bf16.mxu1 %v5694_v43  ;;  %v5552_v42 = vcombine.high %v179_v35, %v215_v36  ;;  %v5554_v43 = vcombine.high %v180_v38, %v216_v39 }
 0x156   :  { %4298 = vmatpush1.bf16.msra.mxu0 %v5691_v48  ;;  %4339 = vmatpush1.bf16.msra.mxu1 %v5693_v49  ;;  %v5551_v48 = vcombine.low %v179_v35, %v215_v36  ;;  %v5553_v49 = vcombine.low %v180_v38, %v216_v39  ;;  %v38_v36 = vld [vmem:[%s7873_s1 + $0xc8] sm:$0xff] }
 0x157   :  { %4299 = vmatprep.subr.bf16.mxu0 %v5764_v50  ;;  %4340 = vmatprep.subr.bf16.mxu1 %v5766_v51  ;;  %v5624_v50 = vcombine.high %v251_v44, %v287_v45  ;;  %v5626_v51 = vcombine.high %v252_v46, %v288_v47  ;;  %v74_v38 = vld [vmem:[%s7873_s1 + $0x1e8] sm:$0xff] }
 0x158   :  { %v3749_v59 = vpop.f32.mrb[12].mxu0  ;;  %v3790_v63 = vpop.f32.mrb[12].mxu1 }
 0x159   :  { %v3751_v0 = vpop.f32.mrb[13].mxu0  ;;  %v3792_v5 = vpop.f32.mrb[13].mxu1 }
 0x15a   :  { %v5068_v4 = vcombine.low %v3749_v59, %v3751_v0  ;;  %v3753_v6 = vpop.f32.mrb[14].mxu0  ;;  %4300 = vmatpush1.bf16.msra.mxu0 %v5763_v56  ;;  %v5069_v8 = vcombine.low %v3790_v63, %v3792_v5  ;;  %v3794_v9 = vpop.f32.mrb[14].mxu1  ;;  %4341 = vmatpush1.bf16.msra.mxu1 %v5765_v57  ;;  %v5623_v56 = vcombine.low %v251_v44, %v287_v45  ;;  %v432_v63 = vld [vmem:[%s7873_s1 + $0xd18] sm:$0xff]  ;;  %v467_v5 = vld [vmem:[%s7873_s1 + $0xe30] sm:$0xff]  ;;  %v109_v44 = vld [vmem:[%s7873_s1 + $0x300] sm:$0xff] }
 0x15b   :  { %v3754_v10 = vpop.f32.mrb[15].mxu0  ;;  %4301 = vmatprep.subr.bf16.mxu0 %v5836_v58  ;;  %v3795_v16 = vpop.f32.mrb[15].mxu1  ;;  %4342 = vmatprep.subr.bf16.mxu1 %v5838_v60  ;;  %v5625_v57 = vcombine.low %v252_v46, %v288_v47  ;;  %v5696_v58 = vcombine.high %v323_v52, %v359_v53  ;;  %v5698_v59 = vcombine.high %v324_v54, %v360_v55  ;;  %v395_v60 = vld [vmem:[%s7873_s1 + $0xbf0] sm:$0xff]  ;;  %v145_v45 = vld [vmem:[%s7873_s1 + $0x420] sm:$0xff]  ;;  %v110_v46 = vld [vmem:[%s7873_s1 + $0x308] sm:$0xff] }
 0x15c   :  { %v5076_v15 = vrot.slane %v5068_v4, %v6757_v11  ;;  %v5083_v20 = vrot.slane %v5069_v8, %v6757_v11  ;;  %v5695_v0 = vcombine.low %v323_v52, %v359_v53  ;;  %v5768_v2 = vcombine.high %v395_v60, %v431_v61  ;;  %v503_v6 = vld [vmem:[%s7873_s1 + $0xf50] sm:$0xff]  ;;  %v504_v8 = vld [vmem:[%s7873_s1 + $0xf58] sm:$0xff]  ;;  %v146_v47 = vld [vmem:[%s7873_s1 + $0x428] sm:$0xff] }
 0x15d   :  { %v5770_v4 = vcombine.high %v396_v62, %v432_v63  ;;  %v5767_v9 = vcombine.low %v395_v60, %v431_v61  ;;  %v5769_v10 = vcombine.low %v396_v62, %v432_v63  ;;  %v539_v16 = vld [vmem:[%s7873_s1 + $0x1070] sm:$0xff]  ;;  %v181_v52 = vld [vmem:[%s7873_s1 + $0x540] sm:$0xff]  ;;  %v182_v54 = vld [vmem:[%s7873_s1 + $0x548] sm:$0xff] }
 0x15e   :  { %4302 = vmatpush1.bf16.msra.mxu0 %v5835_v7  ;;  %v5084_v24 = vcombine.low %v5076_v15, %v5083_v20  ;;  %4343 = vmatpush1.bf16.msra.mxu1 %v5837_v13  ;;  %v468_v7 = vld [vmem:[%s7873_s1 + $0xe38] sm:$0xff]  ;;  %v5840_v13 = vcombine.high %v467_v5, %v503_v6  ;;  %v217_v53 = vld [vmem:[%s7873_s1 + $0x660] sm:$0xff]  ;;  %v218_v55 = vld [vmem:[%s7873_s1 + $0x668] sm:$0xff] }
 0x15f   :  { %4303 = vmatprep.subr.bf16.mxu0 %v5908_v14  ;;  %4344 = vmatprep.subr.bf16.mxu1 %v5910_v17  ;;  %v5842_v15 = vcombine.high %v468_v7, %v504_v8  ;;  %v575_v17 = vld [vmem:[%s7873_s1 + $0x1190] sm:$0xff]  ;;  %v540_v20 = vld [vmem:[%s7873_s1 + $0x1078] sm:$0xff]  ;;  %v5841_v29 = vcombine.low %v468_v7, %v504_v8  ;;  %v253_v60 = vld [vmem:[%s7873_s1 + $0x780] sm:$0xff] }
 0x160   :  { %5344 = vst [vmem:[%s7875_s2 + $0x18] sm:$0xff] %v5084_v24  ;;  %v5912_v30 = vcombine.high %v539_v16, %v575_v17  ;;  %v5911_v39 = vcombine.low %v539_v16, %v575_v17  ;;  %v289_v61 = vld [vmem:[%s7873_s1 + $0x8a0] sm:$0xff]  ;;  %v254_v62 = vld [vmem:[%s7873_s1 + $0x788] sm:$0xff] }
 0x161   :  { %v290_v63 = vld [vmem:[%s7873_s1 + $0x8a8] sm:$0xff]  ;;  %v433_v16 = vld [vmem:[%s7873_s1 + $0xd20] sm:$0xff] }
 0x162   :  { %4304 = vmatpush1.bf16.msra.mxu0 %v5907_v23  ;;  %4345 = vmatpush1.bf16.msra.mxu1 %v5909_v25  ;;  %v5839_v25 = vcombine.low %v467_v5, %v503_v6  ;;  %v325_v5 = vld [vmem:[%s7873_s1 + $0x9c0] sm:$0xff]  ;;  %v326_v7 = vld [vmem:[%s7873_s1 + $0x9c8] sm:$0xff] }
 0x163   :  { %4371 = vmatprep.subr.bf16.mxu0 %v5408_v26  ;;  %4412 = vmatprep.subr.bf16.mxu1 %v5410_v27  ;;  %v361_v6 = vld [vmem:[%s7873_s1 + $0xae0] sm:$0xff]  ;;  %v362_v8 = vld [vmem:[%s7873_s1 + $0xae8] sm:$0xff] }
 0x164   :  { %v398_v17 = vld [vmem:[%s7873_s1 + $0xc08] sm:$0xff] }
 0x165   :  { %4322 = vmatmul.mubr.bf16.vlgmr.msra.gmra.mrb[40].mxu0 %v7124_v37  ;;  %4363 = vmatmul.mubr.bf16.vlgmr.msra.gmra.mrb[40].mxu1 %v7124_v37 }
 0x166   :  { %4372 = vmatpush1.bf16.msra.mxu0 %v5407_v32  ;;  %4413 = vmatpush1.bf16.msra.mxu1 %v5409_v12  ;;  %v5914_v12 = vcombine.high %v540_v20, %v576_v21 }
 0x167   :  { %4373 = vmatprep.subr.bf16.mxu0 %v5480_v33  ;;  %4414 = vmatprep.subr.bf16.mxu1 %v5482_v34  ;;  %v37_v33 = vld [vmem:[%s7873_s1 + $0xc0] sm:$0xff] }
 0x168   :  { %4403 = vmatprep.mubr.bf16.mxu0 %v5944_v3  ;;  %4444 = vmatprep.mubr.bf16.mxu1 %v5944_v3  ;;  %v73_v34 = vld [vmem:[%s7873_s1 + $0x1e0] sm:$0xff] }
 0x16a   :  { %4374 = vmatpush1.bf16.msra.mxu0 %v5479_v40  ;;  %4415 = vmatpush1.bf16.msra.mxu1 %v5481_v41  ;;  %v5913_v41 = vcombine.low %v540_v20, %v576_v21  ;;  %v5701_v20 = vcombine.low %v326_v7, %v362_v8 }
 0x16b   :  { %4375 = vmatprep.subr.bf16.mxu0 %v5552_v42  ;;  %4416 = vmatprep.subr.bf16.mxu1 %v5554_v43  ;;  %v5412_v42 = vcombine.high %v37_v33, %v73_v34  ;;  %v5414_v43 = vcombine.high %v38_v36, %v74_v38 }
 0x16e   :  { %4376 = vmatpush1.bf16.msra.mxu0 %v5551_v48  ;;  %4417 = vmatpush1.bf16.msra.mxu1 %v5553_v49  ;;  %v5411_v48 = vcombine.low %v37_v33, %v73_v34  ;;  %v5413_v49 = vcombine.low %v38_v36, %v74_v38  ;;  %v578_v36 = vld [vmem:[%s7873_s1 + $0x11a8] sm:$0xff] }
 0x16f   :  { %4377 = vmatprep.subr.bf16.mxu0 %v5624_v50  ;;  %4418 = vmatprep.subr.bf16.mxu1 %v5626_v51  ;;  %v5484_v50 = vcombine.high %v109_v44, %v145_v45  ;;  %v5486_v51 = vcombine.high %v110_v46, %v146_v47 }
 0x172   :  { %4378 = vmatpush1.bf16.msra.mxu0 %v5623_v56  ;;  %4419 = vmatpush1.bf16.msra.mxu1 %v5625_v57  ;;  %v5483_v56 = vcombine.low %v109_v44, %v145_v45  ;;  %v5485_v57 = vcombine.low %v110_v46, %v146_v47 }
 0x173   :  { %4379 = vmatprep.subr.bf16.mxu0 %v5696_v58  ;;  %4420 = vmatprep.subr.bf16.mxu1 %v5698_v59  ;;  %v5556_v58 = vcombine.high %v181_v52, %v217_v53  ;;  %v5558_v59 = vcombine.high %v182_v54, %v218_v55 }
 0x176   :  { %4380 = vmatpush1.bf16.msra.mxu0 %v5695_v0  ;;  %4421 = vmatpush1.bf16.msra.mxu1 %v5697_v1  ;;  %v5555_v0 = vcombine.low %v181_v52, %v217_v53  ;;  %v5557_v1 = vcombine.low %v182_v54, %v218_v55  ;;  %v40_v53 = vld [vmem:[%s7873_s1 + $0xd8] sm:$0xff] }
 0x177   :  { %4381 = vmatprep.subr.bf16.mxu0 %v5768_v2  ;;  %4422 = vmatprep.subr.bf16.mxu1 %v5770_v4  ;;  %v5628_v2 = vcombine.high %v253_v60, %v289_v61  ;;  %v5630_v4 = vcombine.high %v254_v62, %v290_v63  ;;  %v76_v54 = vld [vmem:[%s7873_s1 + $0x1f8] sm:$0xff] }
 0x178   :  { %v3831_v14 = vpop.f32.mrb[16].mxu0  ;;  %v3872_v18 = vpop.f32.mrb[16].mxu1 }
 0x179   :  { %v3833_v19 = vpop.f32.mrb[17].mxu0  ;;  %v3874_v23 = vpop.f32.mrb[17].mxu1 }
 0x17a   :  { %v5085_v22 = vcombine.low %v3831_v14, %v3833_v19  ;;  %v3835_v24 = vpop.f32.mrb[18].mxu0  ;;  %4382 = vmatpush1.bf16.msra.mxu0 %v5767_v9  ;;  %v5086_v26 = vcombine.low %v3872_v18, %v3874_v23  ;;  %v3876_v27 = vpop.f32.mrb[18].mxu1  ;;  %4423 = vmatpush1.bf16.msra.mxu1 %v5769_v10  ;;  %v5627_v9 = vcombine.low %v253_v60, %v289_v61  ;;  %v434_v18 = vld [vmem:[%s7873_s1 + $0xd28] sm:$0xff]  ;;  %v469_v23 = vld [vmem:[%s7873_s1 + $0xe40] sm:$0xff]  ;;  %v111_v60 = vld [vmem:[%s7873_s1 + $0x310] sm:$0xff] }
 0x17b   :  { %v3836_v28 = vpop.f32.mrb[19].mxu0  ;;  %4383 = vmatprep.subr.bf16.mxu0 %v5840_v13  ;;  %v3877_v32 = vpop.f32.mrb[19].mxu1  ;;  %4424 = vmatprep.subr.bf16.mxu1 %v5842_v15  ;;  %v5629_v10 = vcombine.low %v254_v62, %v290_v63  ;;  %v5700_v13 = vcombine.high %v325_v5, %v361_v6  ;;  %v5702_v14 = vcombine.high %v326_v7, %v362_v8  ;;  %v397_v15 = vld [vmem:[%s7873_s1 + $0xc00] sm:$0xff]  ;;  %v147_v61 = vld [vmem:[%s7873_s1 + $0x430] sm:$0xff]  ;;  %v112_v62 = vld [vmem:[%s7873_s1 + $0x318] sm:$0xff] }
 0x17c   :  { %v5093_v31 = vrot.slane %v5085_v22, %v6757_v11  ;;  %v5100_v35 = vrot.slane %v5086_v26, %v6757_v11  ;;  %v5699_v19 = vcombine.low %v325_v5, %v361_v6  ;;  %v5772_v21 = vcombine.high %v397_v15, %v433_v16  ;;  %v505_v24 = vld [vmem:[%s7873_s1 + $0xf60] sm:$0xff]  ;;  %v506_v26 = vld [vmem:[%s7873_s1 + $0xf68] sm:$0xff]  ;;  %v148_v63 = vld [vmem:[%s7873_s1 + $0x438] sm:$0xff] }
 0x17d   :  { %v5774_v22 = vcombine.high %v398_v17, %v434_v18  ;;  %v5771_v27 = vcombine.low %v397_v15, %v433_v16  ;;  %v5773_v28 = vcombine.low %v398_v17, %v434_v18  ;;  %v541_v32 = vld [vmem:[%s7873_s1 + $0x1080] sm:$0xff]  ;;  %v183_v5 = vld [vmem:[%s7873_s1 + $0x550] sm:$0xff]  ;;  %v184_v7 = vld [vmem:[%s7873_s1 + $0x558] sm:$0xff] }
 0x17e   :  { %4384 = vmatpush1.bf16.msra.mxu0 %v5839_v25  ;;  %v5101_v40 = vcombine.low %v5093_v31, %v5100_v35  ;;  %4425 = vmatpush1.bf16.msra.mxu1 %v5841_v29  ;;  %v470_v25 = vld [vmem:[%s7873_s1 + $0xe48] sm:$0xff]  ;;  %v5844_v29 = vcombine.high %v469_v23, %v505_v24  ;;  %v219_v6 = vld [vmem:[%s7873_s1 + $0x670] sm:$0xff]  ;;  %v220_v8 = vld [vmem:[%s7873_s1 + $0x678] sm:$0xff] }
 0x17f   :  { %4385 = vmatprep.subr.bf16.mxu0 %v5912_v30  ;;  %4426 = vmatprep.subr.bf16.mxu1 %v5914_v12  ;;  %v5846_v31 = vcombine.high %v470_v25, %v506_v26  ;;  %v577_v12 = vld [vmem:[%s7873_s1 + $0x11a0] sm:$0xff]  ;;  %v542_v35 = vld [vmem:[%s7873_s1 + $0x1088] sm:$0xff]  ;;  %v5845_v45 = vcombine.low %v470_v25, %v506_v26  ;;  %v255_v15 = vld [vmem:[%s7873_s1 + $0x790] sm:$0xff] }
 0x180   :  { %5345 = vst [vmem:[%s7875_s2 + $0x20] sm:$0xff] %v5101_v40  ;;  %v5916_v46 = vcombine.high %v541_v32, %v577_v12  ;;  %v5915_v55 = vcombine.low %v541_v32, %v577_v12  ;;  %v291_v16 = vld [vmem:[%s7873_s1 + $0x8b0] sm:$0xff]  ;;  %v256_v17 = vld [vmem:[%s7873_s1 + $0x798] sm:$0xff] }
 0x181   :  { %v292_v18 = vld [vmem:[%s7873_s1 + $0x8b8] sm:$0xff]  ;;  %v435_v32 = vld [vmem:[%s7873_s1 + $0xd30] sm:$0xff] }
 0x182   :  { %4386 = vmatpush1.bf16.msra.mxu0 %v5911_v39  ;;  %4427 = vmatpush1.bf16.msra.mxu1 %v5913_v41  ;;  %v5843_v41 = vcombine.low %v469_v23, %v505_v24  ;;  %v327_v23 = vld [vmem:[%s7873_s1 + $0x9d0] sm:$0xff]  ;;  %v328_v25 = vld [vmem:[%s7873_s1 + $0x9d8] sm:$0xff] }
 0x183   :  { %4453 = vmatprep.subr.bf16.mxu0 %v5412_v42  ;;  %4494 = vmatprep.subr.bf16.mxu1 %v5414_v43  ;;  %v363_v24 = vld [vmem:[%s7873_s1 + $0xaf0] sm:$0xff]  ;;  %v364_v26 = vld [vmem:[%s7873_s1 + $0xaf8] sm:$0xff] }
 0x184   :  { %v400_v12 = vld [vmem:[%s7873_s1 + $0xc18] sm:$0xff] }
 0x185   :  { %4404 = vmatmul.mubr.bf16.vlgmr.msra.gmra.mrb[44].mxu0 %v7124_v37  ;;  %4445 = vmatmul.mubr.bf16.vlgmr.msra.gmra.mrb[44].mxu1 %v7124_v37 }
 0x186   :  { %4454 = vmatpush1.bf16.msra.mxu0 %v5411_v48  ;;  %4495 = vmatpush1.bf16.msra.mxu1 %v5413_v49  ;;  %v5918_v49 = vcombine.high %v542_v35, %v578_v36 }
 0x187   :  { %4455 = vmatprep.subr.bf16.mxu0 %v5484_v50  ;;  %4496 = vmatprep.subr.bf16.mxu1 %v5486_v51  ;;  %v39_v50 = vld [vmem:[%s7873_s1 + $0xd0] sm:$0xff] }
 0x188   :  { %4485 = vmatprep.mubr.bf16.mxu0 %v5944_v3  ;;  %4526 = vmatprep.mubr.bf16.mxu1 %v5944_v3  ;;  %v75_v51 = vld [vmem:[%s7873_s1 + $0x1f0] sm:$0xff] }
 0x18a   :  { %4456 = vmatpush1.bf16.msra.mxu0 %v5483_v56  ;;  %4497 = vmatpush1.bf16.msra.mxu1 %v5485_v57  ;;  %v5917_v57 = vcombine.low %v542_v35, %v578_v36  ;;  %v5705_v35 = vcombine.low %v328_v25, %v364_v26 }
 0x18b   :  { %4457 = vmatprep.subr.bf16.mxu0 %v5556_v58  ;;  %4498 = vmatprep.subr.bf16.mxu1 %v5558_v59  ;;  %v5416_v58 = vcombine.high %v39_v50, %v75_v51  ;;  %v5418_v59 = vcombine.high %v40_v53, %v76_v54 }
 0x18e   :  { %4458 = vmatpush1.bf16.msra.mxu0 %v5555_v0  ;;  %4499 = vmatpush1.bf16.msra.mxu1 %v5557_v1  ;;  %v5415_v0 = vcombine.low %v39_v50, %v75_v51  ;;  %v5417_v1 = vcombine.low %v40_v53, %v76_v54  ;;  %v580_v53 = vld [vmem:[%s7873_s1 + $0x11b8] sm:$0xff] }
 0x18f   :  { %4459 = vmatprep.subr.bf16.mxu0 %v5628_v2  ;;  %4500 = vmatprep.subr.bf16.mxu1 %v5630_v4  ;;  %v5488_v2 = vcombine.high %v111_v60, %v147_v61  ;;  %v5490_v4 = vcombine.high %v112_v62, %v148_v63 }
 0x192   :  { %4460 = vmatpush1.bf16.msra.mxu0 %v5627_v9  ;;  %4501 = vmatpush1.bf16.msra.mxu1 %v5629_v10  ;;  %v5487_v9 = vcombine.low %v111_v60, %v147_v61  ;;  %v5489_v10 = vcombine.low %v112_v62, %v148_v63 }
 0x193   :  { %4461 = vmatprep.subr.bf16.mxu0 %v5700_v13  ;;  %4502 = vmatprep.subr.bf16.mxu1 %v5702_v14  ;;  %v5560_v13 = vcombine.high %v183_v5, %v219_v6  ;;  %v5562_v14 = vcombine.high %v184_v7, %v220_v8 }
 0x196   :  { %4462 = vmatpush1.bf16.msra.mxu0 %v5699_v19  ;;  %4503 = vmatpush1.bf16.msra.mxu1 %v5701_v20  ;;  %v5559_v19 = vcombine.low %v183_v5, %v219_v6  ;;  %v5561_v20 = vcombine.low %v184_v7, %v220_v8  ;;  %v42_v6 = vld [vmem:[%s7873_s1 + $0xe8] sm:$0xff] }
 0x197   :  { %4463 = vmatprep.subr.bf16.mxu0 %v5772_v21  ;;  %4504 = vmatprep.subr.bf16.mxu1 %v5774_v22  ;;  %v5632_v21 = vcombine.high %v255_v15, %v291_v16  ;;  %v5634_v22 = vcombine.high %v256_v17, %v292_v18  ;;  %v78_v7 = vld [vmem:[%s7873_s1 + $0x208] sm:$0xff] }
 0x198   :  { %v3913_v30 = vpop.f32.mrb[20].mxu0  ;;  %v3954_v33 = vpop.f32.mrb[20].mxu1 }
 0x199   :  { %v3915_v34 = vpop.f32.mrb[21].mxu0  ;;  %v3956_v39 = vpop.f32.mrb[21].mxu1 }
 0x19a   :  { %v5102_v38 = vcombine.low %v3913_v30, %v3915_v34  ;;  %v3917_v40 = vpop.f32.mrb[22].mxu0  ;;  %4464 = vmatpush1.bf16.msra.mxu0 %v5771_v27  ;;  %v5103_v42 = vcombine.low %v3954_v33, %v3956_v39  ;;  %v3958_v43 = vpop.f32.mrb[22].mxu1  ;;  %4505 = vmatpush1.bf16.msra.mxu1 %v5773_v28  ;;  %v5631_v27 = vcombine.low %v255_v15, %v291_v16  ;;  %v436_v33 = vld [vmem:[%s7873_s1 + $0xd38] sm:$0xff]  ;;  %v471_v39 = vld [vmem:[%s7873_s1 + $0xe50] sm:$0xff]  ;;  %v113_v15 = vld [vmem:[%s7873_s1 + $0x320] sm:$0xff] }
 0x19b   :  { %v3918_v44 = vpop.f32.mrb[23].mxu0  ;;  %4465 = vmatprep.subr.bf16.mxu0 %v5844_v29  ;;  %v3959_v48 = vpop.f32.mrb[23].mxu1  ;;  %4506 = vmatprep.subr.bf16.mxu1 %v5846_v31  ;;  %v5633_v28 = vcombine.low %v256_v17, %v292_v18  ;;  %v5704_v29 = vcombine.high %v327_v23, %v363_v24  ;;  %v5706_v30 = vcombine.high %v328_v25, %v364_v26  ;;  %v399_v31 = vld [vmem:[%s7873_s1 + $0xc10] sm:$0xff]  ;;  %v149_v16 = vld [vmem:[%s7873_s1 + $0x440] sm:$0xff]  ;;  %v114_v17 = vld [vmem:[%s7873_s1 + $0x328] sm:$0xff] }
 0x19c   :  { %v5110_v47 = vrot.slane %v5102_v38, %v6757_v11  ;;  %v5117_v52 = vrot.slane %v5103_v42, %v6757_v11  ;;  %v5703_v34 = vcombine.low %v327_v23, %v363_v24  ;;  %v5776_v36 = vcombine.high %v399_v31, %v435_v32  ;;  %v507_v40 = vld [vmem:[%s7873_s1 + $0xf70] sm:$0xff]  ;;  %v508_v42 = vld [vmem:[%s7873_s1 + $0xf78] sm:$0xff]  ;;  %v150_v18 = vld [vmem:[%s7873_s1 + $0x448] sm:$0xff] }
 0x19d   :  { %v5778_v38 = vcombine.high %v400_v12, %v436_v33  ;;  %v5775_v43 = vcombine.low %v399_v31, %v435_v32  ;;  %v5777_v44 = vcombine.low %v400_v12, %v436_v33  ;;  %v543_v48 = vld [vmem:[%s7873_s1 + $0x1090] sm:$0xff]  ;;  %v185_v23 = vld [vmem:[%s7873_s1 + $0x560] sm:$0xff]  ;;  %v186_v25 = vld [vmem:[%s7873_s1 + $0x568] sm:$0xff] }
 0x19e   :  { %4466 = vmatpush1.bf16.msra.mxu0 %v5843_v41  ;;  %v5118_v56 = vcombine.low %v5110_v47, %v5117_v52  ;;  %4507 = vmatpush1.bf16.msra.mxu1 %v5845_v45  ;;  %v472_v41 = vld [vmem:[%s7873_s1 + $0xe58] sm:$0xff]  ;;  %v5848_v45 = vcombine.high %v471_v39, %v507_v40  ;;  %v221_v24 = vld [vmem:[%s7873_s1 + $0x680] sm:$0xff]  ;;  %v222_v26 = vld [vmem:[%s7873_s1 + $0x688] sm:$0xff] }
 0x19f   :  { %4467 = vmatprep.subr.bf16.mxu0 %v5916_v46  ;;  %4508 = vmatprep.subr.bf16.mxu1 %v5918_v49  ;;  %v5850_v47 = vcombine.high %v472_v41, %v508_v42  ;;  %v579_v49 = vld [vmem:[%s7873_s1 + $0x11b0] sm:$0xff]  ;;  %v544_v52 = vld [vmem:[%s7873_s1 + $0x1098] sm:$0xff]  ;;  %v5849_v61 = vcombine.low %v472_v41, %v508_v42  ;;  %v257_v31 = vld [vmem:[%s7873_s1 + $0x7a0] sm:$0xff] }
 0x1a0   :  { %5346 = vst [vmem:[%s7875_s2 + $0x28] sm:$0xff] %v5118_v56  ;;  %v5920_v62 = vcombine.high %v543_v48, %v579_v49  ;;  %v5919_v8 = vcombine.low %v543_v48, %v579_v49  ;;  %v293_v32 = vld [vmem:[%s7873_s1 + $0x8c0] sm:$0xff]  ;;  %v258_v12 = vld [vmem:[%s7873_s1 + $0x7a8] sm:$0xff] }
 0x1a1   :  { %v294_v33 = vld [vmem:[%s7873_s1 + $0x8c8] sm:$0xff]  ;;  %v437_v48 = vld [vmem:[%s7873_s1 + $0xd40] sm:$0xff] }
 0x1a2   :  { %4468 = vmatpush1.bf16.msra.mxu0 %v5915_v55  ;;  %4509 = vmatpush1.bf16.msra.mxu1 %v5917_v57  ;;  %v5847_v57 = vcombine.low %v471_v39, %v507_v40  ;;  %v329_v39 = vld [vmem:[%s7873_s1 + $0x9e0] sm:$0xff]  ;;  %v330_v41 = vld [vmem:[%s7873_s1 + $0x9e8] sm:$0xff] }
 0x1a3   :  { %4535 = vmatprep.subr.bf16.mxu0 %v5416_v58  ;;  %4576 = vmatprep.subr.bf16.mxu1 %v5418_v59  ;;  %v365_v40 = vld [vmem:[%s7873_s1 + $0xb00] sm:$0xff]  ;;  %v366_v42 = vld [vmem:[%s7873_s1 + $0xb08] sm:$0xff] }
 0x1a4   :  { %v402_v49 = vld [vmem:[%s7873_s1 + $0xc28] sm:$0xff] }
 0x1a5   :  { %4486 = vmatmul.mubr.bf16.vlgmr.msra.gmra.mrb[48].mxu0 %v7124_v37  ;;  %4527 = vmatmul.mubr.bf16.vlgmr.msra.gmra.mrb[48].mxu1 %v7124_v37 }
 0x1a6   :  { %4536 = vmatpush1.bf16.msra.mxu0 %v5415_v0  ;;  %4577 = vmatpush1.bf16.msra.mxu1 %v5417_v1  ;;  %v5922_v1 = vcombine.high %v544_v52, %v580_v53 }
 0x1a7   :  { %4537 = vmatprep.subr.bf16.mxu0 %v5488_v2  ;;  %4578 = vmatprep.subr.bf16.mxu1 %v5490_v4  ;;  %v41_v2 = vld [vmem:[%s7873_s1 + $0xe0] sm:$0xff] }
 0x1a8   :  { %4567 = vmatprep.mubr.bf16.mxu0 %v5944_v3  ;;  %4608 = vmatprep.mubr.bf16.mxu1 %v5944_v3  ;;  %v77_v4 = vld [vmem:[%s7873_s1 + $0x200] sm:$0xff] }
 0x1aa   :  { %4538 = vmatpush1.bf16.msra.mxu0 %v5487_v9  ;;  %4579 = vmatpush1.bf16.msra.mxu1 %v5489_v10  ;;  %v5921_v10 = vcombine.low %v544_v52, %v580_v53  ;;  %v5709_v52 = vcombine.low %v330_v41, %v366_v42 }
 0x1ab   :  { %4539 = vmatprep.subr.bf16.mxu0 %v5560_v13  ;;  %4580 = vmatprep.subr.bf16.mxu1 %v5562_v14  ;;  %v5420_v13 = vcombine.high %v41_v2, %v77_v4  ;;  %v5422_v14 = vcombine.high %v42_v6, %v78_v7 }
 0x1ae   :  { %4540 = vmatpush1.bf16.msra.mxu0 %v5559_v19  ;;  %4581 = vmatpush1.bf16.msra.mxu1 %v5561_v20  ;;  %v5419_v19 = vcombine.low %v41_v2, %v77_v4  ;;  %v5421_v20 = vcombine.low %v42_v6, %v78_v7  ;;  %v582_v6 = vld [vmem:[%s7873_s1 + $0x11c8] sm:$0xff] }
 0x1af   :  { %4541 = vmatprep.subr.bf16.mxu0 %v5632_v21  ;;  %4582 = vmatprep.subr.bf16.mxu1 %v5634_v22  ;;  %v5492_v21 = vcombine.high %v113_v15, %v149_v16  ;;  %v5494_v22 = vcombine.high %v114_v17, %v150_v18 }
 0x1b2   :  { %4542 = vmatpush1.bf16.msra.mxu0 %v5631_v27  ;;  %4583 = vmatpush1.bf16.msra.mxu1 %v5633_v28  ;;  %v5491_v27 = vcombine.low %v113_v15, %v149_v16  ;;  %v5493_v28 = vcombine.low %v114_v17, %v150_v18 }
 0x1b3   :  { %4543 = vmatprep.subr.bf16.mxu0 %v5704_v29  ;;  %4584 = vmatprep.subr.bf16.mxu1 %v5706_v30  ;;  %v5564_v29 = vcombine.high %v185_v23, %v221_v24  ;;  %v5566_v30 = vcombine.high %v186_v25, %v222_v26 }
 0x1b6   :  { %4544 = vmatpush1.bf16.msra.mxu0 %v5703_v34  ;;  %4585 = vmatpush1.bf16.msra.mxu1 %v5705_v35  ;;  %v5563_v34 = vcombine.low %v185_v23, %v221_v24  ;;  %v5565_v35 = vcombine.low %v186_v25, %v222_v26  ;;  %v44_v24 = vld [vmem:[%s7873_s1 + $0xf8] sm:$0xff] }
 0x1b7   :  { %4545 = vmatprep.subr.bf16.mxu0 %v5776_v36  ;;  %4586 = vmatprep.subr.bf16.mxu1 %v5778_v38  ;;  %v5636_v36 = vcombine.high %v257_v31, %v293_v32  ;;  %v5638_v38 = vcombine.high %v258_v12, %v294_v33  ;;  %v80_v25 = vld [vmem:[%s7873_s1 + $0x218] sm:$0xff] }
 0x1b8   :  { %v3995_v46 = vpop.f32.mrb[24].mxu0  ;;  %v4036_v50 = vpop.f32.mrb[24].mxu1 }
 0x1b9   :  { %v3997_v51 = vpop.f32.mrb[25].mxu0  ;;  %v4038_v55 = vpop.f32.mrb[25].mxu1 }
 0x1ba   :  { %v5119_v54 = vcombine.low %v3995_v46, %v3997_v51  ;;  %v3999_v56 = vpop.f32.mrb[26].mxu0  ;;  %4546 = vmatpush1.bf16.msra.mxu0 %v5775_v43  ;;  %v5120_v58 = vcombine.low %v4036_v50, %v4038_v55  ;;  %v4040_v59 = vpop.f32.mrb[26].mxu1  ;;  %4587 = vmatpush1.bf16.msra.mxu1 %v5777_v44  ;;  %v5635_v43 = vcombine.low %v257_v31, %v293_v32  ;;  %v438_v50 = vld [vmem:[%s7873_s1 + $0xd48] sm:$0xff]  ;;  %v473_v55 = vld [vmem:[%s7873_s1 + $0xe60] sm:$0xff]  ;;  %v115_v31 = vld [vmem:[%s7873_s1 + $0x330] sm:$0xff] }
 0x1bb   :  { %v4000_v60 = vpop.f32.mrb[27].mxu0  ;;  %4547 = vmatprep.subr.bf16.mxu0 %v5848_v45  ;;  %v4041_v0 = vpop.f32.mrb[27].mxu1  ;;  %4588 = vmatprep.subr.bf16.mxu1 %v5850_v47  ;;  %v5637_v44 = vcombine.low %v258_v12, %v294_v33  ;;  %v5708_v45 = vcombine.high %v329_v39, %v365_v40  ;;  %v5710_v46 = vcombine.high %v330_v41, %v366_v42  ;;  %v401_v47 = vld [vmem:[%s7873_s1 + $0xc20] sm:$0xff]  ;;  %v151_v32 = vld [vmem:[%s7873_s1 + $0x450] sm:$0xff]  ;;  %v116_v12 = vld [vmem:[%s7873_s1 + $0x338] sm:$0xff] }
 0x1bc   :  { %v5127_v63 = vrot.slane %v5119_v54, %v6757_v11  ;;  %v5134_v5 = vrot.slane %v5120_v58, %v6757_v11  ;;  %v5707_v51 = vcombine.low %v329_v39, %v365_v40  ;;  %v5780_v53 = vcombine.high %v401_v47, %v437_v48  ;;  %v509_v56 = vld [vmem:[%s7873_s1 + $0xf80] sm:$0xff]  ;;  %v510_v58 = vld [vmem:[%s7873_s1 + $0xf88] sm:$0xff]  ;;  %v152_v33 = vld [vmem:[%s7873_s1 + $0x458] sm:$0xff] }
 0x1bd   :  { %v5782_v54 = vcombine.high %v402_v49, %v438_v50  ;;  %v5779_v59 = vcombine.low %v401_v47, %v437_v48  ;;  %v5781_v60 = vcombine.low %v402_v49, %v438_v50  ;;  %v545_v0 = vld [vmem:[%s7873_s1 + $0x10a0] sm:$0xff]  ;;  %v187_v39 = vld [vmem:[%s7873_s1 + $0x570] sm:$0xff]  ;;  %v188_v41 = vld [vmem:[%s7873_s1 + $0x578] sm:$0xff] }
 0x1be   :  { %4548 = vmatpush1.bf16.msra.mxu0 %v5847_v57  ;;  %v5135_v9 = vcombine.low %v5127_v63, %v5134_v5  ;;  %4589 = vmatpush1.bf16.msra.mxu1 %v5849_v61  ;;  %v474_v57 = vld [vmem:[%s7873_s1 + $0xe68] sm:$0xff]  ;;  %v5852_v61 = vcombine.high %v473_v55, %v509_v56  ;;  %v223_v40 = vld [vmem:[%s7873_s1 + $0x690] sm:$0xff]  ;;  %v224_v42 = vld [vmem:[%s7873_s1 + $0x698] sm:$0xff] }
 0x1bf   :  { %4549 = vmatprep.subr.bf16.mxu0 %v5920_v62  ;;  %4590 = vmatprep.subr.bf16.mxu1 %v5922_v1  ;;  %v5854_v63 = vcombine.high %v474_v57, %v510_v58  ;;  %v581_v1 = vld [vmem:[%s7873_s1 + $0x11c0] sm:$0xff]  ;;  %v546_v5 = vld [vmem:[%s7873_s1 + $0x10a8] sm:$0xff]  ;;  %v5853_v16 = vcombine.low %v474_v57, %v510_v58  ;;  %v259_v47 = vld [vmem:[%s7873_s1 + $0x7b0] sm:$0xff]  ;;  %v5567_v50 = vcombine.low %v187_v39, %v223_v40 }
 0x1c0   :  { %5347 = vst [vmem:[%s7875_s2 + $0x30] sm:$0xff] %v5135_v9  ;;  %v5924_v17 = vcombine.high %v545_v0, %v581_v1  ;;  %v5923_v26 = vcombine.low %v545_v0, %v581_v1  ;;  %v295_v48 = vld [vmem:[%s7873_s1 + $0x8d0] sm:$0xff]  ;;  %v296_v49 = vld [vmem:[%s7873_s1 + $0x8d8] sm:$0xff] }
 0x1c1   :  { %v368_v57 = vld [vmem:[%s7873_s1 + $0xb18] sm:$0xff]  ;;  %v5639_v58 = vcombine.low %v259_v47, %v295_v48 }
 0x1c2   :  { %4550 = vmatpush1.bf16.msra.mxu0 %v5919_v8  ;;  %4591 = vmatpush1.bf16.msra.mxu1 %v5921_v10  ;;  %v5851_v10 = vcombine.low %v473_v55, %v509_v56  ;;  %v367_v55 = vld [vmem:[%s7873_s1 + $0xb10] sm:$0xff]  ;;  %v332_v56 = vld [vmem:[%s7873_s1 + $0x9f8] sm:$0xff] }
 0x1c3   :  { %4617 = vmatprep.subr.bf16.mxu0 %v5420_v13  ;;  %4658 = vmatprep.subr.bf16.mxu1 %v5422_v14  ;;  %v404_v0 = vld [vmem:[%s7873_s1 + $0xc38] sm:$0xff] }
 0x1c4   :  { %v440_v1 = vld [vmem:[%s7873_s1 + $0xd58] sm:$0xff] }
 0x1c5   :  { %4568 = vmatmul.mubr.bf16.vlgmr.msra.gmra.mrb[52].mxu0 %v7124_v37  ;;  %4609 = vmatmul.mubr.bf16.vlgmr.msra.gmra.mrb[52].mxu1 %v7124_v37 }
 0x1c6   :  { %4618 = vmatpush1.bf16.msra.mxu0 %v5419_v19  ;;  %4659 = vmatpush1.bf16.msra.mxu1 %v5421_v20  ;;  %v5926_v20 = vcombine.high %v546_v5, %v582_v6 }
 0x1c7   :  { %4619 = vmatprep.subr.bf16.mxu0 %v5492_v21  ;;  %4660 = vmatprep.subr.bf16.mxu1 %v5494_v22  ;;  %v43_v21 = vld [vmem:[%s7873_s1 + $0xf0] sm:$0xff] }
 0x1c8   :  { %4649 = vmatprep.mubr.bf16.mxu0 %v5944_v3  ;;  %4690 = vmatprep.mubr.bf16.mxu1 %v5944_v3  ;;  %v79_v22 = vld [vmem:[%s7873_s1 + $0x210] sm:$0xff] }
 0x1ca   :  { %4620 = vmatpush1.bf16.msra.mxu0 %v5491_v27  ;;  %4661 = vmatpush1.bf16.msra.mxu1 %v5493_v28  ;;  %v5925_v28 = vcombine.low %v546_v5, %v582_v6  ;;  %v5786_v6 = vcombine.high %v404_v0, %v440_v1 }
 0x1cb   :  { %4621 = vmatprep.subr.bf16.mxu0 %v5564_v29  ;;  %4662 = vmatprep.subr.bf16.mxu1 %v5566_v30  ;;  %v5424_v29 = vcombine.high %v43_v21, %v79_v22  ;;  %v5426_v30 = vcombine.high %v44_v24, %v80_v25 }
 0x1ce   :  { %4622 = vmatpush1.bf16.msra.mxu0 %v5563_v34  ;;  %4663 = vmatpush1.bf16.msra.mxu1 %v5565_v35  ;;  %v5423_v34 = vcombine.low %v43_v21, %v79_v22  ;;  %v5425_v35 = vcombine.low %v44_v24, %v80_v25  ;;  %v548_v22 = vld [vmem:[%s7873_s1 + $0x10b8] sm:$0xff] }
 0x1cf   :  { %4623 = vmatprep.subr.bf16.mxu0 %v5636_v36  ;;  %4664 = vmatprep.subr.bf16.mxu1 %v5638_v38  ;;  %v5496_v36 = vcombine.high %v115_v31, %v151_v32  ;;  %v5498_v38 = vcombine.high %v116_v12, %v152_v33 }
 0x1d2   :  { %4624 = vmatpush1.bf16.msra.mxu0 %v5635_v43  ;;  %4665 = vmatpush1.bf16.msra.mxu1 %v5637_v44  ;;  %v5495_v43 = vcombine.low %v115_v31, %v151_v32  ;;  %v5497_v44 = vcombine.low %v116_v12, %v152_v33 }
 0x1d3   :  { %4625 = vmatprep.subr.bf16.mxu0 %v5708_v45  ;;  %4666 = vmatprep.subr.bf16.mxu1 %v5710_v46  ;;  %v5568_v45 = vcombine.high %v187_v39, %v223_v40  ;;  %v5570_v46 = vcombine.high %v188_v41, %v224_v42  ;;  %v46_v39 = vld [vmem:[%s7873_s1 + $0x108] sm:$0xff] }
 0x1d4   :  { %v82_v40 = vld [vmem:[%s7873_s1 + $0x228] sm:$0xff] }
 0x1d6   :  { %4626 = vmatpush1.bf16.msra.mxu0 %v5707_v51  ;;  %4667 = vmatpush1.bf16.msra.mxu1 %v5709_v52  ;;  %v5569_v51 = vcombine.low %v188_v41, %v224_v42  ;;  %v5640_v52 = vcombine.high %v259_v47, %v295_v48  ;;  %v153_v47 = vld [vmem:[%s7873_s1 + $0x460] sm:$0xff]  ;;  %v118_v48 = vld [vmem:[%s7873_s1 + $0x348] sm:$0xff] }
 0x1d7   :  { %4627 = vmatprep.subr.bf16.mxu0 %v5780_v53  ;;  %4668 = vmatprep.subr.bf16.mxu1 %v5782_v54  ;;  %v331_v54 = vld [vmem:[%s7873_s1 + $0x9f0] sm:$0xff] }
 0x1d8   :  { %v4077_v62 = vpop.f32.mrb[28].mxu0  ;;  %v4118_v2 = vpop.f32.mrb[28].mxu1 }
 0x1d9   :  { %v4079_v4 = vpop.f32.mrb[29].mxu0  ;;  %v4120_v8 = vpop.f32.mrb[29].mxu1 }
 0x1da   :  { %v5136_v7 = vcombine.low %v4077_v62, %v4079_v4  ;;  %v4081_v9 = vpop.f32.mrb[30].mxu0  ;;  %4628 = vmatpush1.bf16.msra.mxu0 %v5779_v59  ;;  %v5137_v13 = vcombine.low %v4118_v2, %v4120_v8  ;;  %v4122_v14 = vpop.f32.mrb[30].mxu1  ;;  %4669 = vmatpush1.bf16.msra.mxu1 %v5781_v60  ;;  %v5712_v60 = vcombine.high %v331_v54, %v367_v55  ;;  %v403_v62 = vld [vmem:[%s7873_s1 + $0xc30] sm:$0xff] }
 0x1db   :  { %v4082_v15 = vpop.f32.mrb[31].mxu0  ;;  %4629 = vmatprep.subr.bf16.mxu0 %v5852_v61  ;;  %v4123_v19 = vpop.f32.mrb[31].mxu1  ;;  %4670 = vmatprep.subr.bf16.mxu1 %v5854_v63  ;;  %v5714_v61 = vcombine.high %v332_v56, %v368_v57  ;;  %v439_v63 = vld [vmem:[%s7873_s1 + $0xd50] sm:$0xff]  ;;  %v5711_v2 = vcombine.low %v331_v54, %v367_v55  ;;  %v5713_v4 = vcombine.low %v332_v56, %v368_v57  ;;  %v476_v9 = vld [vmem:[%s7873_s1 + $0xe78] sm:$0xff]  ;;  %v225_v54 = vld [vmem:[%s7873_s1 + $0x6a0] sm:$0xff] }
 0x1dc   :  { %v5144_v18 = vrot.slane %v5136_v7, %v6757_v11  ;;  %v5151_v23 = vrot.slane %v5137_v13, %v6757_v11  ;;  %v5784_v5 = vcombine.high %v403_v62, %v439_v63  ;;  %v475_v7 = vld [vmem:[%s7873_s1 + $0xe70] sm:$0xff]  ;;  %v5783_v13 = vcombine.low %v403_v62, %v439_v63  ;;  %v7654_v55 = vld [vmem:[%s7874_s0] sm:$0x1]  ;;  %v190_v56 = vld [vmem:[%s7873_s1 + $0x588] sm:$0xff] }
 0x1dd   :  { %v511_v8 = vld [vmem:[%s7873_s1 + $0xf90] sm:$0xff]  ;;  %v5785_v14 = vcombine.low %v404_v0, %v440_v1  ;;  %v226_v57 = vld [vmem:[%s7873_s1 + $0x6a8] sm:$0xff]  ;;  %v261_v62 = vld [vmem:[%s7873_s1 + $0x7c0] sm:$0xff] }
 0x1de   :  { %4630 = vmatpush1.bf16.msra.mxu0 %v5851_v10  ;;  %v5152_v27 = vcombine.low %v5144_v18, %v5151_v23  ;;  %4671 = vmatpush1.bf16.msra.mxu1 %v5853_v16  ;;  %v512_v10 = vld [vmem:[%s7873_s1 + $0xf98] sm:$0xff]  ;;  %v5856_v15 = vcombine.high %v475_v7, %v511_v8  ;;  %v547_v18 = vld [vmem:[%s7873_s1 + $0x10b0] sm:$0xff]  ;;  %v297_v63 = vld [vmem:[%s7873_s1 + $0x8e0] sm:$0xff] }
 0x1df   :  { %4631 = vmatprep.subr.bf16.mxu0 %v5924_v17  ;;  %4672 = vmatprep.subr.bf16.mxu1 %v5926_v20  ;;  %v5858_v17 = vcombine.high %v476_v9, %v512_v10  ;;  %v583_v19 = vld [vmem:[%s7873_s1 + $0x11d0] sm:$0xff]  ;;  %v584_v23 = vld [vmem:[%s7873_s1 + $0x11d8] sm:$0xff]  ;;  %v5857_v31 = vcombine.low %v476_v9, %v512_v10  ;;  %v262_v0 = vld [vmem:[%s7873_s1 + $0x7c8] sm:$0xff] }
 0x1e0   :  { %5348 = vst [vmem:[%s7875_s2 + $0x38] sm:$0xff] %v5152_v27  ;;  %v5855_v27 = vcombine.low %v475_v7, %v511_v8  ;;  %v5928_v32 = vcombine.high %v547_v18, %v583_v19  ;;  %v5927_v41 = vcombine.low %v547_v18, %v583_v19  ;;  %v298_v1 = vld [vmem:[%s7873_s1 + $0x8e8] sm:$0xff]  ;;  %v333_v7 = vld [vmem:[%s7873_s1 + $0xa00] sm:$0xff] }
 0x1e1   :  { %v369_v8 = vld [vmem:[%s7873_s1 + $0xb20] sm:$0xff]  ;;  %v334_v9 = vld [vmem:[%s7873_s1 + $0xa08] sm:$0xff] }
 0x1e2   :  { %4632 = vmatpush1.bf16.msra.mxu0 %v5923_v26  ;;  %4673 = vmatpush1.bf16.msra.mxu1 %v5925_v28  ;;  %v370_v10 = vld [vmem:[%s7873_s1 + $0xb28] sm:$0xff]  ;;  %v441_v18 = vld [vmem:[%s7873_s1 + $0xd60] sm:$0xff] }
 0x1e3   :  { %4699 = vmatprep.subr.bf16.mxu0 %v5424_v29  ;;  %4740 = vmatprep.subr.bf16.mxu1 %v5426_v30  ;;  %v406_v19 = vld [vmem:[%s7873_s1 + $0xc48] sm:$0xff] }
 0x1e5   :  { %4650 = vmatmul.mubr.bf16.vlgmr.msra.gmra.mrb[56].mxu0 %v7124_v37  ;;  %4691 = vmatmul.mubr.bf16.vlgmr.msra.gmra.mrb[56].mxu1 %v7124_v37  ;;  %v260_v37 = vld [vmem:[%s7873_s1 + $0x7b8] sm:$0xff] }
 0x1e6   :  { %4700 = vmatpush1.bf16.msra.mxu0 %v5423_v34  ;;  %4741 = vmatpush1.bf16.msra.mxu1 %v5425_v35  ;;  %v5642_v53 = vcombine.high %v260_v37, %v296_v49  ;;  %v5641_v59 = vcombine.low %v260_v37, %v296_v49  ;;  %v5930_v34 = vcombine.high %v548_v22, %v584_v23  ;;  %v45_v35 = vld [vmem:[%s7873_s1 + $0x100] sm:$0xff]  ;;  %v154_v37 = vld [vmem:[%s7873_s1 + $0x468] sm:$0xff] }
 0x1e7   :  { %4701 = vmatprep.subr.bf16.mxu0 %v5496_v36  ;;  %4742 = vmatprep.subr.bf16.mxu1 %v5498_v38  ;;  %v81_v36 = vld [vmem:[%s7873_s1 + $0x220] sm:$0xff] }
 0x1e8   :  { %4731 = vmatprep.mubr.bf16.mxu0 %v5944_v3  ;;  %4772 = vmatprep.mubr.bf16.mxu1 %v5944_v3  ;;  %v5427_v49 = vcombine.low %v45_v35, %v81_v36 }
 0x1ea   :  { %4702 = vmatpush1.bf16.msra.mxu0 %v5495_v43  ;;  %4743 = vmatpush1.bf16.msra.mxu1 %v5497_v44  ;;  %v5929_v43 = vcombine.low %v548_v22, %v584_v23  ;;  %v5428_v44 = vcombine.high %v45_v35, %v81_v36  ;;  %v5717_v22 = vcombine.low %v334_v9, %v370_v10 }
 0x1eb   :  { %4703 = vmatprep.subr.bf16.mxu0 %v5568_v45  ;;  %4744 = vmatprep.subr.bf16.mxu1 %v5570_v46  ;;  %v5430_v45 = vcombine.high %v46_v39, %v82_v40  ;;  %v117_v46 = vld [vmem:[%s7873_s1 + $0x340] sm:$0xff] }
 0x1ee   :  { %4704 = vmatpush1.bf16.msra.mxu0 %v5567_v50  ;;  %4745 = vmatpush1.bf16.msra.mxu1 %v5569_v51  ;;  %v5429_v50 = vcombine.low %v46_v39, %v82_v40  ;;  %v5500_v51 = vcombine.high %v117_v46, %v153_v47  ;;  %v586_v39 = vld [vmem:[%s7873_s1 + $0x11e8] sm:$0xff] }
 0x1ef   :  { %4705 = vmatprep.subr.bf16.mxu0 %v5640_v52  ;;  %4746 = vmatprep.subr.bf16.mxu1 %v5642_v53  ;;  %v5502_v52 = vcombine.high %v118_v48, %v154_v37  ;;  %v189_v53 = vld [vmem:[%s7873_s1 + $0x580] sm:$0xff] }
 0x1f2   :  { %4706 = vmatpush1.bf16.msra.mxu0 %v5639_v58  ;;  %4747 = vmatpush1.bf16.msra.mxu1 %v5641_v59  ;;  %v5499_v58 = vcombine.low %v117_v46, %v153_v47  ;;  %v5501_v59 = vcombine.low %v118_v48, %v154_v37 }
 0x1f3   :  { %4707 = vmatprep.subr.bf16.mxu0 %v5712_v60  ;;  %4748 = vmatprep.subr.bf16.mxu1 %v5714_v61  ;;  %v5572_v60 = vcombine.high %v189_v53, %v225_v54  ;;  %v5574_v61 = vcombine.high %v190_v56, %v226_v57 }
 0x1f6   :  { %4708 = vmatpush1.bf16.msra.mxu0 %v5711_v2  ;;  %4749 = vmatpush1.bf16.msra.mxu1 %v5713_v4  ;;  %v5571_v2 = vcombine.low %v189_v53, %v225_v54  ;;  %v5573_v4 = vcombine.low %v190_v56, %v226_v57  ;;  %v48_v54 = vld [vmem:[%s7873_s1 + $0x118] sm:$0xff] }
 0x1f7   :  { %4709 = vmatprep.subr.bf16.mxu0 %v5784_v5  ;;  %4750 = vmatprep.subr.bf16.mxu1 %v5786_v6  ;;  %v5644_v5 = vcombine.high %v261_v62, %v297_v63  ;;  %v5646_v6 = vcombine.high %v262_v0, %v298_v1  ;;  %v84_v56 = vld [vmem:[%s7873_s1 + $0x238] sm:$0xff] }
 0x1f8   :  { %v4159_v16 = vpop.f32.mrb[32].mxu0  ;;  %v4200_v20 = vpop.f32.mrb[32].mxu1 }
 0x1f9   :  { %v4161_v21 = vpop.f32.mrb[33].mxu0  ;;  %v4202_v25 = vpop.f32.mrb[33].mxu1 }
 0x1fa   :  { %v5153_v24 = vcombine.low %v4159_v16, %v4161_v21  ;;  %v4163_v26 = vpop.f32.mrb[34].mxu0  ;;  %4710 = vmatpush1.bf16.msra.mxu0 %v5783_v13  ;;  %v5154_v28 = vcombine.low %v4200_v20, %v4202_v25  ;;  %v4204_v29 = vpop.f32.mrb[34].mxu1  ;;  %4751 = vmatpush1.bf16.msra.mxu1 %v5785_v14  ;;  %v5643_v13 = vcombine.low %v261_v62, %v297_v63  ;;  %v442_v20 = vld [vmem:[%s7873_s1 + $0xd68] sm:$0xff]  ;;  %v477_v25 = vld [vmem:[%s7873_s1 + $0xe80] sm:$0xff]  ;;  %v119_v62 = vld [vmem:[%s7873_s1 + $0x350] sm:$0xff] }
 0x1fb   :  { %v4164_v30 = vpop.f32.mrb[35].mxu0  ;;  %4711 = vmatprep.subr.bf16.mxu0 %v5856_v15  ;;  %v4205_v33 = vpop.f32.mrb[35].mxu1  ;;  %4752 = vmatprep.subr.bf16.mxu1 %v5858_v17  ;;  %v5645_v14 = vcombine.low %v262_v0, %v298_v1  ;;  %v5716_v15 = vcombine.high %v333_v7, %v369_v8  ;;  %v5718_v16 = vcombine.high %v334_v9, %v370_v10  ;;  %v405_v17 = vld [vmem:[%s7873_s1 + $0xc40] sm:$0xff]  ;;  %v155_v63 = vld [vmem:[%s7873_s1 + $0x470] sm:$0xff]  ;;  %v120_v0 = vld [vmem:[%s7873_s1 + $0x358] sm:$0xff] }
 0x1fc   :  { %v5161_v12 = vrot.slane %v5153_v24, %v6757_v11  ;;  %v5168_v38 = vrot.slane %v5154_v28, %v6757_v11  ;;  %v5715_v21 = vcombine.low %v333_v7, %v369_v8  ;;  %v5788_v23 = vcombine.high %v405_v17, %v441_v18  ;;  %v513_v26 = vld [vmem:[%s7873_s1 + $0xfa0] sm:$0xff]  ;;  %v514_v28 = vld [vmem:[%s7873_s1 + $0xfa8] sm:$0xff]  ;;  %v156_v1 = vld [vmem:[%s7873_s1 + $0x478] sm:$0xff] }
 0x1fd   :  { %v5790_v24 = vcombine.high %v406_v19, %v442_v20  ;;  %v5787_v29 = vcombine.low %v405_v17, %v441_v18  ;;  %v5789_v30 = vcombine.low %v406_v19, %v442_v20  ;;  %v549_v33 = vld [vmem:[%s7873_s1 + $0x10c0] sm:$0xff]  ;;  %v191_v7 = vld [vmem:[%s7873_s1 + $0x590] sm:$0xff]  ;;  %v192_v9 = vld [vmem:[%s7873_s1 + $0x598] sm:$0xff] }
 0x1fe   :  { %4712 = vmatpush1.bf16.msra.mxu0 %v5855_v27  ;;  %v5169_v42 = vcombine.low %v5161_v12, %v5168_v38  ;;  %4753 = vmatpush1.bf16.msra.mxu1 %v5857_v31  ;;  %v478_v27 = vld [vmem:[%s7873_s1 + $0xe88] sm:$0xff]  ;;  %v5860_v31 = vcombine.high %v477_v25, %v513_v26  ;;  %v227_v8 = vld [vmem:[%s7873_s1 + $0x6b0] sm:$0xff]  ;;  %v228_v10 = vld [vmem:[%s7873_s1 + $0x6b8] sm:$0xff] }
 0x1ff   :  { %4713 = vmatprep.subr.bf16.mxu0 %v5928_v32  ;;  %4754 = vmatprep.subr.bf16.mxu1 %v5930_v34  ;;  %v5862_v12 = vcombine.high %v478_v27, %v514_v28  ;;  %v585_v34 = vld [vmem:[%s7873_s1 + $0x11e0] sm:$0xff]  ;;  %v550_v38 = vld [vmem:[%s7873_s1 + $0x10c8] sm:$0xff]  ;;  %v5861_v47 = vcombine.low %v478_v27, %v514_v28  ;;  %v263_v17 = vld [vmem:[%s7873_s1 + $0x7d0] sm:$0xff] }
 0x200   :  { %5349 = vst [vmem:[%s7875_s2 + $0x40] sm:$0xff] %v5169_v42  ;;  %v5932_v48 = vcombine.high %v549_v33, %v585_v34  ;;  %v5931_v57 = vcombine.low %v549_v33, %v585_v34  ;;  %v299_v18 = vld [vmem:[%s7873_s1 + $0x8f0] sm:$0xff]  ;;  %v264_v19 = vld [vmem:[%s7873_s1 + $0x7d8] sm:$0xff] }
 0x201   :  { %v300_v20 = vld [vmem:[%s7873_s1 + $0x8f8] sm:$0xff]  ;;  %v5647_v28 = vcombine.low %v263_v17, %v299_v18 }
 0x202   :  { %4714 = vmatpush1.bf16.msra.mxu0 %v5927_v41  ;;  %4755 = vmatpush1.bf16.msra.mxu1 %v5929_v43  ;;  %v5859_v43 = vcombine.low %v477_v25, %v513_v26  ;;  %v335_v25 = vld [vmem:[%s7873_s1 + $0xa10] sm:$0xff]  ;;  %v372_v27 = vld [vmem:[%s7873_s1 + $0xb38] sm:$0xff] }
 0x203   :  { %4781 = vmatprep.subr.bf16.mxu0 %v5428_v44  ;;  %4822 = vmatprep.subr.bf16.mxu1 %v5430_v45  ;;  %v371_v26 = vld [vmem:[%s7873_s1 + $0xb30] sm:$0xff]  ;;  %v408_v33 = vld [vmem:[%s7873_s1 + $0xc58] sm:$0xff] }
 0x204   :  { %v444_v34 = vld [vmem:[%s7873_s1 + $0xd78] sm:$0xff] }
 0x205   :  { %4732 = vmatmul.mubr.bf16.vlgmr.msra.gmra.mrb[60].mxu0 %v7654_v55  ;;  %4773 = vmatmul.mubr.bf16.vlgmr.msra.gmra.mrb[60].mxu1 %v7654_v55 }
 0x206   :  { %4782 = vmatpush1.bf16.msra.mxu0 %v5427_v49  ;;  %4823 = vmatpush1.bf16.msra.mxu1 %v5429_v50  ;;  %v5934_v50 = vcombine.high %v550_v38, %v586_v39 }
 0x207   :  { %4783 = vmatprep.subr.bf16.mxu0 %v5500_v51  ;;  %4824 = vmatprep.subr.bf16.mxu1 %v5502_v52  ;;  %v47_v51 = vld [vmem:[%s7873_s1 + $0x110] sm:$0xff] }
 0x208   :  { %4813 = vmatprep.mubr.bf16.mxu0 %v5944_v3  ;;  %4854 = vmatprep.mubr.bf16.mxu1 %v5944_v3  ;;  %v83_v52 = vld [vmem:[%s7873_s1 + $0x230] sm:$0xff] }
 0x20a   :  { %4784 = vmatpush1.bf16.msra.mxu0 %v5499_v58  ;;  %4825 = vmatpush1.bf16.msra.mxu1 %v5501_v59  ;;  %v5933_v59 = vcombine.low %v550_v38, %v586_v39  ;;  %v5794_v39 = vcombine.high %v408_v33, %v444_v34 }
 0x20b   :  { %4785 = vmatprep.subr.bf16.mxu0 %v5572_v60  ;;  %4826 = vmatprep.subr.bf16.mxu1 %v5574_v61  ;;  %v5432_v60 = vcombine.high %v47_v51, %v83_v52  ;;  %v5434_v61 = vcombine.high %v48_v54, %v84_v56 }
 0x20e   :  { %4786 = vmatpush1.bf16.msra.mxu0 %v5571_v2  ;;  %4827 = vmatpush1.bf16.msra.mxu1 %v5573_v4  ;;  %v5431_v2 = vcombine.low %v47_v51, %v83_v52  ;;  %v5433_v4 = vcombine.low %v48_v54, %v84_v56  ;;  %v552_v52 = vld [vmem:[%s7873_s1 + $0x10d8] sm:$0xff] }
 0x20f   :  { %4787 = vmatprep.subr.bf16.mxu0 %v5644_v5  ;;  %4828 = vmatprep.subr.bf16.mxu1 %v5646_v6  ;;  %v5504_v5 = vcombine.high %v119_v62, %v155_v63  ;;  %v5506_v6 = vcombine.high %v120_v0, %v156_v1 }
 0x212   :  { %4788 = vmatpush1.bf16.msra.mxu0 %v5643_v13  ;;  %4829 = vmatpush1.bf16.msra.mxu1 %v5645_v14  ;;  %v5503_v13 = vcombine.low %v119_v62, %v155_v63  ;;  %v5505_v14 = vcombine.low %v120_v0, %v156_v1 }
 0x213   :  { %4789 = vmatprep.subr.bf16.mxu0 %v5716_v15  ;;  %4830 = vmatprep.subr.bf16.mxu1 %v5718_v16  ;;  %v5576_v15 = vcombine.high %v191_v7, %v227_v8  ;;  %v5578_v16 = vcombine.high %v192_v9, %v228_v10 }
 0x216   :  { %4790 = vmatpush1.bf16.msra.mxu0 %v5715_v21  ;;  %4831 = vmatpush1.bf16.msra.mxu1 %v5717_v22  ;;  %v5575_v21 = vcombine.low %v191_v7, %v227_v8  ;;  %v5577_v22 = vcombine.low %v192_v9, %v228_v10 }
 0x217   :  { %4791 = vmatprep.subr.bf16.mxu0 %v5788_v23  ;;  %4832 = vmatprep.subr.bf16.mxu1 %v5790_v24  ;;  %v5648_v23 = vcombine.high %v263_v17, %v299_v18  ;;  %v5650_v24 = vcombine.high %v264_v19, %v300_v20 }
 0x218   :  { %v4241_v32 = vpop.f32.mrb[36].mxu0  ;;  %v4282_v35 = vpop.f32.mrb[36].mxu1 }
 0x219   :  { %v4243_v36 = vpop.f32.mrb[37].mxu0  ;;  %v4284_v41 = vpop.f32.mrb[37].mxu1 }
 0x21a   :  { %v5170_v40 = vcombine.low %v4241_v32, %v4243_v36  ;;  %v4245_v42 = vpop.f32.mrb[38].mxu0  ;;  %4792 = vmatpush1.bf16.msra.mxu0 %v5787_v29  ;;  %v5171_v44 = vcombine.low %v4282_v35, %v4284_v41  ;;  %v4286_v45 = vpop.f32.mrb[38].mxu1  ;;  %4833 = vmatpush1.bf16.msra.mxu1 %v5789_v30  ;;  %v5649_v29 = vcombine.low %v264_v19, %v300_v20  ;;  %v407_v32 = vld [vmem:[%s7873_s1 + $0xc50] sm:$0xff] }
 0x21b   :  { %v4246_v46 = vpop.f32.mrb[39].mxu0  ;;  %4793 = vmatprep.subr.bf16.mxu0 %v5860_v31  ;;  %v4287_v49 = vpop.f32.mrb[39].mxu1  ;;  %4834 = vmatprep.subr.bf16.mxu1 %v5862_v12  ;;  %v5720_v30 = vcombine.high %v335_v25, %v371_v26  ;;  %v443_v12 = vld [vmem:[%s7873_s1 + $0xd70] sm:$0xff]  ;;  %v5719_v35 = vcombine.low %v335_v25, %v371_v26  ;;  %v480_v42 = vld [vmem:[%s7873_s1 + $0xe98] sm:$0xff]  ;;  %v5793_v45 = vcombine.low %v408_v33, %v444_v34 }
 0x21c   :  { %v5178_v37 = vrot.slane %v5170_v40, %v6757_v11  ;;  %v5185_v53 = vrot.slane %v5171_v44, %v6757_v11  ;;  %v5792_v38 = vcombine.high %v407_v32, %v443_v12  ;;  %v479_v40 = vld [vmem:[%s7873_s1 + $0xe90] sm:$0xff]  ;;  %v5791_v44 = vcombine.low %v407_v32, %v443_v12 }
 0x21d   :  { %v515_v41 = vld [vmem:[%s7873_s1 + $0xfb0] sm:$0xff] }
 0x21e   :  { %4794 = vmatpush1.bf16.msra.mxu0 %v5859_v43  ;;  %v5186_v58 = vcombine.low %v5178_v37, %v5185_v53  ;;  %4835 = vmatpush1.bf16.msra.mxu1 %v5861_v47  ;;  %v516_v43 = vld [vmem:[%s7873_s1 + $0xfb8] sm:$0xff]  ;;  %v5864_v46 = vcombine.high %v479_v40, %v515_v41  ;;  %v551_v37 = vld [vmem:[%s7873_s1 + $0x10d0] sm:$0xff] }
 0x21f   :  { %4795 = vmatprep.subr.bf16.mxu0 %v5932_v48  ;;  %4836 = vmatprep.subr.bf16.mxu1 %v5934_v50  ;;  %v5866_v48 = vcombine.high %v480_v42, %v516_v43  ;;  %v587_v49 = vld [vmem:[%s7873_s1 + $0x11f0] sm:$0xff]  ;;  %v588_v53 = vld [vmem:[%s7873_s1 + $0x11f8] sm:$0xff]  ;;  %v5865_v62 = vcombine.low %v480_v42, %v516_v43 }
 0x220   :  { %5350 = vst [vmem:[%s7875_s2 + $0x48] sm:$0xff] %v5186_v58  ;;  %v5863_v58 = vcombine.low %v479_v40, %v515_v41  ;;  %v5936_v63 = vcombine.high %v551_v37, %v587_v49  ;;  %v5937_v7 = vcombine.low %v552_v52, %v588_v53 }
 0x222   :  { %4796 = vmatpush1.bf16.msra.mxu0 %v5931_v57  ;;  %4837 = vmatpush1.bf16.msra.mxu1 %v5933_v59 }
 0x223   :  { %4863 = vmatprep.subr.bf16.mxu0 %v5432_v60  ;;  %4904 = vmatprep.subr.bf16.mxu1 %v5434_v61 }
 0x225   :  { %4814 = vmatmul.mubr.bf16.vlgmr.msra.gmra.mrb[64].mxu0 %v7654_v55  ;;  %4855 = vmatmul.mubr.bf16.vlgmr.msra.gmra.mrb[64].mxu1 %v7654_v55 }
 0x226   :  { %4864 = vmatpush1.bf16.msra.mxu0 %v5431_v2  ;;  %4905 = vmatpush1.bf16.msra.mxu1 %v5433_v4  ;;  %v5938_v2 = vcombine.high %v552_v52, %v588_v53 }
 0x227   :  { %4865 = vmatprep.subr.bf16.mxu0 %v5504_v5  ;;  %4906 = vmatprep.subr.bf16.mxu1 %v5506_v6  ;;  %v5935_v5 = vcombine.low %v551_v37, %v587_v49 }
 0x228   :  { %4895 = vmatprep.mubr.bf16.mxu0 %v5944_v3  ;;  %4936 = vmatprep.mubr.bf16.mxu1 %v5944_v3  ;;  %v336_v3 = vld [vmem:[%s7873_s1 + $0xa18] sm:$0xff] }
 0x229   :  { %v5722_v31 = vcombine.high %v336_v3, %v372_v27  ;;  %v5721_v36 = vcombine.low %v336_v3, %v372_v27 }
 0x22a   :  { %4866 = vmatpush1.bf16.msra.mxu0 %v5503_v13  ;;  %4907 = vmatpush1.bf16.msra.mxu1 %v5505_v14 }
 0x22b   :  { %4867 = vmatprep.subr.bf16.mxu0 %v5576_v15  ;;  %4908 = vmatprep.subr.bf16.mxu1 %v5578_v16 }
 0x22e   :  { %4868 = vmatpush1.bf16.msra.mxu0 %v5575_v21  ;;  %4909 = vmatpush1.bf16.msra.mxu1 %v5577_v22 }
 0x22f   :  { %4869 = vmatprep.subr.bf16.mxu0 %v5648_v23  ;;  %4910 = vmatprep.subr.bf16.mxu1 %v5650_v24 }
 0x232   :  { %4870 = vmatpush1.bf16.msra.mxu0 %v5647_v28  ;;  %4911 = vmatpush1.bf16.msra.mxu1 %v5649_v29 }
 0x233   :  { %4871 = vmatprep.subr.bf16.mxu0 %v5720_v30  ;;  %4912 = vmatprep.subr.bf16.mxu1 %v5722_v31 }
 0x236   :  { %4872 = vmatpush1.bf16.msra.mxu0 %v5719_v35  ;;  %4913 = vmatpush1.bf16.msra.mxu1 %v5721_v36 }
 0x237   :  { %4873 = vmatprep.subr.bf16.mxu0 %v5792_v38  ;;  %4914 = vmatprep.subr.bf16.mxu1 %v5794_v39 }
 0x238   :  { %v4323_v47 = vpop.f32.mrb[40].mxu0  ;;  %v4364_v50 = vpop.f32.mrb[40].mxu1 }
 0x239   :  { %v4325_v51 = vpop.f32.mrb[41].mxu0  ;;  %v4366_v56 = vpop.f32.mrb[41].mxu1 }
 0x23a   :  { %v5187_v54 = vcombine.low %v4323_v47, %v4325_v51  ;;  %v4327_v57 = vpop.f32.mrb[42].mxu0  ;;  %4874 = vmatpush1.bf16.msra.mxu0 %v5791_v44  ;;  %v5188_v59 = vcombine.low %v4364_v50, %v4366_v56  ;;  %v4368_v60 = vpop.f32.mrb[42].mxu1  ;;  %4915 = vmatpush1.bf16.msra.mxu1 %v5793_v45 }
 0x23b   :  { %v4328_v61 = vpop.f32.mrb[43].mxu0  ;;  %4875 = vmatprep.subr.bf16.mxu0 %v5864_v46  ;;  %v4369_v1 = vpop.f32.mrb[43].mxu1  ;;  %4916 = vmatprep.subr.bf16.mxu1 %v5866_v48 }
 0x23c   :  { %v5195_v0 = vrot.slane %v5187_v54, %v6757_v11  ;;  %v5202_v4 = vrot.slane %v5188_v59, %v6757_v11 }
 0x23e   :  { %4876 = vmatpush1.bf16.msra.mxu0 %v5863_v58  ;;  %v5203_v6 = vcombine.low %v5195_v0, %v5202_v4  ;;  %4917 = vmatpush1.bf16.msra.mxu1 %v5865_v62 }
 0x23f   :  { %4877 = vmatprep.subr.bf16.mxu0 %v5936_v63  ;;  %4918 = vmatprep.subr.bf16.mxu1 %v5938_v2 }
 0x240   :  { %5351 = vst [vmem:[%s7875_s2 + $0x50] sm:$0xff] %v5203_v6 }
 0x242   :  { %4878 = vmatpush1.bf16.msra.mxu0 %v5935_v5  ;;  %4919 = vmatpush1.bf16.msra.mxu1 %v5937_v7 }
 0x245   :  { %4896 = vmatmul.mubr.bf16.vlgmr.msra.gmra.mrb[68].mxu0 %v7654_v55  ;;  %4937 = vmatmul.mubr.bf16.vlgmr.msra.gmra.mrb[68].mxu1 %v7654_v55 }
 0x258   :  { %v4405_v8 = vpop.f32.mrb[44].mxu0  ;;  %v4446_v9 = vpop.f32.mrb[44].mxu1 }
 0x259   :  { %v4407_v10 = vpop.f32.mrb[45].mxu0  ;;  %v4448_v14 = vpop.f32.mrb[45].mxu1 }
 0x25a   :  { %v5204_v13 = vcombine.low %v4405_v8, %v4407_v10  ;;  %v4409_v15 = vpop.f32.mrb[46].mxu0  ;;  %v5205_v16 = vcombine.low %v4446_v9, %v4448_v14  ;;  %v4450_v17 = vpop.f32.mrb[46].mxu1 }
 0x25b   :  { %v4410_v18 = vpop.f32.mrb[47].mxu0  ;;  %v4451_v20 = vpop.f32.mrb[47].mxu1 }
 0x25c   :  { %v5212_v19 = vrot.slane %v5204_v13, %v6757_v11  ;;  %v5219_v21 = vrot.slane %v5205_v16, %v6757_v11 }
 0x25e   :  { %v5220_v22 = vcombine.low %v5212_v19, %v5219_v21 }
 0x260   :  { %5352 = vst [vmem:[%s7875_s2 + $0x58] sm:$0xff] %v5220_v22 }
 0x278   :  { %v4487_v55 = vpop.f32.mrb[48].mxu0  ;;  %v4528_v23 = vpop.f32.mrb[48].mxu1 }
 0x279   :  { %v4489_v24 = vpop.f32.mrb[49].mxu0  ;;  %v4530_v26 = vpop.f32.mrb[49].mxu1 }
 0x27a   :  { %v5221_v25 = vcombine.low %v4487_v55, %v4489_v24  ;;  %v4491_v3 = vpop.f32.mrb[50].mxu0  ;;  %v5222_v27 = vcombine.low %v4528_v23, %v4530_v26  ;;  %v4532_v28 = vpop.f32.mrb[50].mxu1 }
 0x27b   :  { %v4492_v29 = vpop.f32.mrb[51].mxu0  ;;  %v4533_v31 = vpop.f32.mrb[51].mxu1 }
 0x27c   :  { %v5229_v30 = vrot.slane %v5221_v25, %v6757_v11  ;;  %v5236_v32 = vrot.slane %v5222_v27, %v6757_v11 }
 0x27e   :  { %v5237_v12 = vcombine.low %v5229_v30, %v5236_v32 }
 0x280   :  { %5353 = vst [vmem:[%s7875_s2 + $0x60] sm:$0xff] %v5237_v12 }
 0x298   :  { %v4569_v33 = vpop.f32.mrb[52].mxu0  ;;  %v4610_v34 = vpop.f32.mrb[52].mxu1 }
 0x299   :  { %v4571_v35 = vpop.f32.mrb[53].mxu0  ;;  %v4612_v38 = vpop.f32.mrb[53].mxu1 }
 0x29a   :  { %v5238_v36 = vcombine.low %v4569_v33, %v4571_v35  ;;  %v4573_v39 = vpop.f32.mrb[54].mxu0  ;;  %v5239_v40 = vcombine.low %v4610_v34, %v4612_v38  ;;  %v4614_v41 = vpop.f32.mrb[54].mxu1 }
 0x29b   :  { %v4574_v42 = vpop.f32.mrb[55].mxu0  ;;  %v4615_v44 = vpop.f32.mrb[55].mxu1 }
 0x29c   :  { %v5246_v43 = vrot.slane %v5238_v36, %v6757_v11  ;;  %v5253_v45 = vrot.slane %v5239_v40, %v6757_v11 }
 0x29e   :  { %v5254_v46 = vcombine.low %v5246_v43, %v5253_v45 }
 0x2a0   :  { %5354 = vst [vmem:[%s7875_s2 + $0x68] sm:$0xff] %v5254_v46 }
 0x2b8   :  { %v4651_v47 = vpop.f32.mrb[56].mxu0  ;;  %v4692_v48 = vpop.f32.mrb[56].mxu1 }
 0x2b9   :  { %v4653_v37 = vpop.f32.mrb[57].mxu0  ;;  %v4694_v50 = vpop.f32.mrb[57].mxu1 }
 0x2ba   :  { %v5255_v49 = vcombine.low %v4651_v47, %v4653_v37  ;;  %v4655_v51 = vpop.f32.mrb[58].mxu0  ;;  %v5256_v52 = vcombine.low %v4692_v48, %v4694_v50  ;;  %v4696_v53 = vpop.f32.mrb[58].mxu1 }
 0x2bb   :  { %v4656_v54 = vpop.f32.mrb[59].mxu0  ;;  %v4697_v57 = vpop.f32.mrb[59].mxu1 }
 0x2bc   :  { %v5263_v56 = vrot.slane %v5255_v49, %v6757_v11  ;;  %v5270_v58 = vrot.slane %v5256_v52, %v6757_v11 }
 0x2be   :  { %v5271_v59 = vcombine.low %v5263_v56, %v5270_v58 }
 0x2c0   :  { %5355 = vst [vmem:[%s7875_s2 + $0x70] sm:$0xff] %v5271_v59 }
 0x2d8   :  { %v4733_v60 = vpop.f32.mrb[60].mxu0  ;;  %v4774_v61 = vpop.f32.mrb[60].mxu1 }
 0x2d9   :  { %v4735_v62 = vpop.f32.mrb[61].mxu0  ;;  %v4776_v0 = vpop.f32.mrb[61].mxu1 }
 0x2da   :  { %v5272_v63 = vcombine.low %v4733_v60, %v4735_v62  ;;  %v4737_v1 = vpop.f32.mrb[62].mxu0  ;;  %v5273_v2 = vcombine.low %v4774_v61, %v4776_v0  ;;  %v4778_v4 = vpop.f32.mrb[62].mxu1 }
 0x2db   :  { %v4738_v5 = vpop.f32.mrb[63].mxu0  ;;  %v4779_v7 = vpop.f32.mrb[63].mxu1 }
 0x2dc   :  { %v5280_v6 = vrot.slane %v5272_v63, %v6757_v11  ;;  %v5287_v8 = vrot.slane %v5273_v2, %v6757_v11 }
 0x2de   :  { %v5288_v9 = vcombine.low %v5280_v6, %v5287_v8 }
 0x2e0   :  { %5356 = vst [vmem:[%s7875_s2 + $0x78] sm:$0xff] %v5288_v9 }
 0x2f8   :  { %v4815_v10 = vpop.f32.mrb[64].mxu0  ;;  %v4856_v13 = vpop.f32.mrb[64].mxu1 }
 0x2f9   :  { %v4817_v14 = vpop.f32.mrb[65].mxu0  ;;  %v4858_v16 = vpop.f32.mrb[65].mxu1 }
 0x2fa   :  { %v5289_v15 = vcombine.low %v4815_v10, %v4817_v14  ;;  %v4819_v17 = vpop.f32.mrb[66].mxu0  ;;  %v5290_v18 = vcombine.low %v4856_v13, %v4858_v16  ;;  %v4860_v19 = vpop.f32.mrb[66].mxu1 }
 0x2fb   :  { %v4820_v20 = vpop.f32.mrb[67].mxu0  ;;  %v4861_v22 = vpop.f32.mrb[67].mxu1 }
 0x2fc   :  { %v5297_v21 = vrot.slane %v5289_v15, %v6757_v11  ;;  %v5304_v55 = vrot.slane %v5290_v18, %v6757_v11 }
 0x2fe   :  { %v5305_v23 = vcombine.low %v5297_v21, %v5304_v55 }
 0x300   :  { %5357 = vst [vmem:[%s7875_s2 + $0x80] sm:$0xff] %v5305_v23 }
 0x318   :  { %v4897_v24 = vpop.f32.mrb[68].mxu0  ;;  %v4938_v25 = vpop.f32.mrb[68].mxu1 }
 0x319   :  { %v4899_v26 = vpop.f32.mrb[69].mxu0  ;;  %v4940_v27 = vpop.f32.mrb[69].mxu1 }
 0x31a   :  { %v5306_v3 = vcombine.low %v4897_v24, %v4899_v26  ;;  %v4901_v28 = vpop.f32.mrb[70].mxu0  ;;  %v5307_v29 = vcombine.low %v4938_v25, %v4940_v27  ;;  %v4942_v30 = vpop.f32.mrb[70].mxu1 }
 0x31b   :  { %v4902_v31 = vpop.f32.mrb[71].mxu0  ;;  %v4943_v12 = vpop.f32.mrb[71].mxu1 }
 0x31c   :  { %v5314_v32 = vrot.slane %v5306_v3, %v6757_v11  ;;  %v5321_v33 = vrot.slane %v5307_v29, %v6757_v11 }
 0x31e   :  { %v5322_v34 = vcombine.low %v5314_v32, %v5321_v33 }
 0x320   :  { %5358 = vst [vmem:[%s7875_s2 + $0x88] sm:$0xff] %v5322_v34 }

</bundles_post_ra>
